<compile_context>
chip_gen: v6e
topology: v6e:2x2x1
jax: 0.10.0
libtpu: 0.0.40
codegen_flags: <defaults>
</compile_context>

<pallas_src>
import functools

import jax
import jax.numpy as jnp
from jax.experimental import pallas as pl
from jax.experimental.pallas import tpu as pltpu


def _lstm_recurrence_kernel(x_ref, wih_ref, whh_ref, b_ref, hs_ref,
                            gx_scr, h_scr, c_scr, *, hidden_dim, unroll):
    """One (batch-shard, time-chunk) grid step of the LSTM.

    x_ref:   (Tc, bb, E)   time-major embedded tokens for this chunk (matmul_dtype)
    wih_ref: (E, 4H)       PyTorch weight_ih_l0.T (matmul_dtype)
    whh_ref: (H, 4H)       PyTorch weight_hh_l0.T (f32 - recurrent path stays f32)
    b_ref:   (1, 4H)       bias_ih_l0 + bias_hh_l0 (f32)
    hs_ref:  (Tc, bb, H)   hidden states for this chunk
    gx_scr:  (Tc, bb, 4H)  f32 scratch: hoisted x@W_ih + b gates for this chunk
    h_scr:   (bb, H)       f32 carry, persists across time-chunks
    c_scr:   (bb, H)       f32 carry, persists across time-chunks
    """
    H = hidden_dim
    Tc, bb, E = x_ref.shape

    # Reset the recurrent state at the first time-chunk of each batch shard.
    @pl.when(pl.program_id(1) == 0)
    def _():
        h_scr[...] = jnp.zeros_like(h_scr)
        c_scr[...] = jnp.zeros_like(c_scr)

    # ---- Phase 1: hoisted input projection for this chunk (no recurrence) ------
    # One MXU matmul with M = Tc*bb instead of Tc tiny M=bb matmuls; bias once.
    x_all = x_ref[...].reshape(Tc * bb, E)
    gx = jnp.dot(x_all, wih_ref[...], preferred_element_type=jnp.float32)
    gx_scr[...] = (gx + b_ref[...]).reshape(Tc, bb, 4 * H)

    # ---- Phase 2: serial path carries only h @ W_hh + gate math ---------------
    def step(t, carry):
        h, c = carry
        gates = gx_scr[t] + jnp.dot(h, whh_ref[...],
                                    preferred_element_type=jnp.float32)   # (bb, 4H)
        # PyTorch gate order i, f, g, o; i & f sigmoids in one dense EUP slab.
        i_f = jax.nn.sigmoid(gates[:, :2 * H])
        i_g = i_f[:, :H]
        f_g = i_f[:, H:]
        g_g = jnp.tanh(gates[:, 2 * H:3 * H])
        o_g = jax.nn.sigmoid(gates[:, 3 * H:])
        c_new = f_g * c + i_g * g_g
        h_new = o_g * jnp.tanh(c_new)
        hs_ref[t] = h_new.astype(hs_ref.dtype)
        return h_new, c_new

    # Partial unroll: LLO scheduler visibility without vreg-pressure blowup.
    h_fin, c_fin = jax.lax.fori_loop(0, Tc, step, (h_scr[...], c_scr[...]),
                                     unroll=unroll)
    h_scr[...] = h_fin
    c_scr[...] = c_fin


def _fc_kernel(hs_ref, wfc_ref, bfc_ref, out_ref):
    """Hoisted fc projection for one (time-chunk, vocab-tile) grid step.

    hs_ref:  (Tc, Bp, H)  hidden-state chunk (resident across vocab tiles)
    wfc_ref: (H, tv)      vocab tile of fc.weight.T
    bfc_ref: (1, tv)      vocab tile of fc.bias
    out_ref: (Tc, Bp, tv) time-major logits tile -> one lane-dense slab store
    """
    Tc, Bp, H = hs_ref.shape
    tv = wfc_ref.shape[1]
    hs = hs_ref[...].reshape(Tc * Bp, H)
    logits = jnp.dot(hs, wfc_ref[...], preferred_element_type=jnp.float32)
    logits = logits + bfc_ref[...]                      # bias broadcast once
    out_ref[...] = logits.reshape(Tc, Bp, tv).astype(out_ref.dtype)


def _nbytes(shape, dtype):
    n = 1
    for s in shape:
        n *= int(s)
    return n * jnp.dtype(dtype).itemsize


def _vmem_limit(nbytes_needed):
    # Never below the largest per-chip scoped default (32 MiB), never above
    # v7x physical VMEM (64 MiB).  2x headroom over the computed residency.
    return int(min(max(2 * nbytes_needed, 32 << 20), 64 << 20))


def lstm_lm_forward(token_ids, params, *, matmul_dtype=jnp.bfloat16,
                    vocab_tile=256, time_chunk=32, unroll=8):
    embed_tab = params["embed"]          # (V, E)  f32
    w_ih = params["w_ih"]                # (E, 4H) == weight_ih_l0.T
    w_hh = params["w_hh"]                # (H, 4H) == weight_hh_l0.T
    b = params["b"]                      # (1, 4H) == bias_ih_l0 + bias_hh_l0
    w_fc = params["w_fc"]                # (H, V)  == fc.weight.T
    b_fc = params["b_fc"]                # (1, V)  == fc.bias

    B, T = token_ids.shape
    V, E = embed_tab.shape
    H = w_hh.shape[0]

    assert vocab_tile % 128 == 0, "vocab_tile must be a multiple of 128 (lane width)"

    # ---- padding / tiling decisions -------------------------------------------
    Bp = max(8, -(-B // 8) * 8)                  # pad batch to f32 sublane (8)
    Tc = max(1, min(time_chunk, T))              # time-chunk length
    Tp = -(-T // Tc) * Tc                        # pad T to a multiple of Tc
    tv = vocab_tile
    Vp = -(-V // tv) * tv                        # pad V to a multiple of the tile
    # Batch shards: split across the 2 TensorCores (v7x megacore) when Bp >= 16.
    bb = Bp // 2 if (Bp >= 16 and (Bp // 2) % 8 == 0) else Bp
    unroll = max(1, min(unroll, Tc))

    # Padded, time-major token ids; padded rows/steps use token 0, dropped at crop.
    tok_tm = jnp.zeros((Tp, Bp), dtype=token_ids.dtype).at[:T, :B].set(token_ids.T)

    # Embedding gather from the f32 table (plain-JAX glue); cast only the gathered slab.
    x = jnp.take(embed_tab, tok_tm, axis=0).astype(matmul_dtype)      # (Tp, Bp, E)

    w_ih_mm = w_ih.astype(matmul_dtype)
    w_hh_f32 = w_hh.astype(jnp.float32)          # recurrent matmul stays f32
    b_f32 = b.astype(jnp.float32)
    w_fc_mm = w_fc.astype(matmul_dtype)
    b_fc_f32 = b_fc.astype(jnp.float32)
    if Vp != V:
        w_fc_mm = jnp.zeros((H, Vp), w_fc_mm.dtype).at[:, :V].set(w_fc_mm)
        b_fc_f32 = jnp.zeros((1, Vp), b_fc_f32.dtype).at[:, :V].set(b_fc_f32)

    # ---- Kernel 1: input projection + LSTM recurrence (time-chunked) ----------
    rec_vmem = _vmem_limit(
        2 * _nbytes((Tc, bb, E), matmul_dtype)        # x chunk (double-buffered)
        + 2 * _nbytes((Tc, bb, H), matmul_dtype)      # hs chunk (double-buffered)
        + 2 * _nbytes((E, 4 * H), matmul_dtype)       # W_ih
        + 2 * _nbytes((H, 4 * H), jnp.float32)        # W_hh
        + 2 * _nbytes((1, 4 * H), jnp.float32)        # bias
        + _nbytes((Tc, bb, 4 * H), jnp.float32)       # per-chunk gate scratch
        + 2 * _nbytes((bb, H), jnp.float32))          # h / c carry

    rec_kernel = functools.partial(_lstm_recurrence_kernel,
                                   hidden_dim=H, unroll=unroll)
    hs = pl.pallas_call(
        rec_kernel,
        out_shape=jax.ShapeDtypeStruct((Tp, Bp, H), matmul_dtype),
        grid_spec=pltpu.PrefetchScalarGridSpec(
            num_scalar_prefetch=0,
            grid=(Bp // bb, Tp // Tc),
            in_specs=[
                pl.BlockSpec((Tc, bb, E), lambda bi, ti: (ti, bi, 0)),   # x chunk
                pl.BlockSpec((E, 4 * H), lambda bi, ti: (0, 0)),         # W_ih^T
                pl.BlockSpec((H, 4 * H), lambda bi, ti: (0, 0)),         # W_hh^T
                pl.BlockSpec((1, 4 * H), lambda bi, ti: (0, 0)),         # combined bias
            ],
            out_specs=pl.BlockSpec((Tc, bb, H), lambda bi, ti: (ti, bi, 0)),
            scratch_shapes=[
                pltpu.VMEM((Tc, bb, 4 * H), jnp.float32),   # hoisted per-chunk gates
                pltpu.VMEM((bb, H), jnp.float32),           # h carry (persists over chunks)
                pltpu.VMEM((bb, H), jnp.float32),           # c carry
            ],
        ),
        compiler_params=pltpu.CompilerParams(
            dimension_semantics=("parallel", "arbitrary"),   # batch shards || serial time
            vmem_limit_bytes=rec_vmem),
    )(x, w_ih_mm, w_hh_f32, b_f32)

    # ---- Kernel 2: fc projection, (time-chunk, vocab-tile) grid, both parallel -
    fc_vmem = _vmem_limit(
        2 * _nbytes((Tc, Bp, H), matmul_dtype)        # hs chunk
        + 2 * _nbytes((H, tv), matmul_dtype)          # W_fc vocab tile
        + 2 * _nbytes((1, tv), jnp.float32)           # bias tile
        + 2 * _nbytes((Tc, Bp, tv), jnp.float32)      # output tile
        + _nbytes((Tc, Bp, tv), jnp.float32))         # f32 logits intermediate

    logits_tm = pl.pallas_call(
        _fc_kernel,
        out_shape=jax.ShapeDtypeStruct((Tp, Bp, Vp), jnp.float32),
        grid_spec=pltpu.PrefetchScalarGridSpec(
            num_scalar_prefetch=0,
            grid=(Tp // Tc, Vp // tv),
            in_specs=[
                pl.BlockSpec((Tc, Bp, H), lambda ti, vi: (ti, 0, 0)),    # hs chunk (resident over vocab)
                pl.BlockSpec((H, tv), lambda ti, vi: (0, vi)),           # W_fc^T vocab tile
                pl.BlockSpec((1, tv), lambda ti, vi: (0, vi)),           # fc bias vocab tile
            ],
            out_specs=pl.BlockSpec((Tc, Bp, tv), lambda ti, vi: (ti, 0, vi)),
        ),
        compiler_params=pltpu.CompilerParams(
            dimension_semantics=("parallel", "parallel"),    # megacore-friendly
            vmem_limit_bytes=fc_vmem),
    )(hs, w_fc_mm, b_fc_f32)

    # TODO(synk): nn.Dropout(0.3) is identity in eval mode; training-mode dropout not modeled.
    # Crop padding and go batch-first; this transpose is wrapper-side layout plumbing.
    return jnp.transpose(logits_tm[:T, :B, :V], (1, 0, 2))             # (B, T, V)


def _reference_forward(token_ids, params, hidden_dim):
    """Pure-JAX f32 reference matching PyTorch LSTM semantics (gate order i,f,g,o)."""
    x = jnp.take(params["embed"], token_ids, axis=0)                    # (B, T, E)

    def step(carry, x_t):
        h, c = carry
        gates = x_t @ params["w_ih"] + h @ params["w_hh"] + params["b"]
        i, f, g, o = jnp.split(gates, 4, axis=-1)
        c = jax.nn.sigmoid(f) * c + jax.nn.sigmoid(i) * jnp.tanh(g)
        h = jax.nn.sigmoid(o) * jnp.tanh(c)
        return (h, c), h

    B = token_ids.shape[0]
    h0 = jnp.zeros((B, hidden_dim), jnp.float32)
    (_, _), hs = jax.lax.scan(step, (h0, h0), jnp.transpose(x, (1, 0, 2)))
    out = jnp.transpose(hs, (1, 0, 2))                                  # (B, T, H)
    return out @ params["w_fc"] + params["b_fc"]


if __name__ == "__main__":
    # Small shapes consistent with the module: vocab=256, embed=128, hidden=256, batch=2, seq=8.
    V, E, H = 256, 128, 256
    B, T = 2, 8

    key = jax.random.PRNGKey(0)
    ks = jax.random.split(key, 7)
    scale = 0.05
    params = {
        "embed": jax.random.normal(ks[0], (V, E), jnp.float32) * scale,
        "w_ih": jax.random.normal(ks[1], (E, 4 * H), jnp.float32) * scale,
        "w_hh": jax.random.normal(ks[2], (H, 4 * H), jnp.float32) * scale,
        "b":    jax.random.normal(ks[3], (1, 4 * H), jnp.float32) * scale,
        "w_fc": jax.random.normal(ks[4], (H, V), jnp.float32) * scale,
        "b_fc": jax.random.normal(ks[5], (1, V), jnp.float32) * scale,
    }
    tokens = jax.random.randint(ks[6], (B, T), 0, V, jnp.int32)

    expected = _reference_forward(tokens, params, H)

    # f32 matmul path: tight match against the pure-f32 reference (exact semantics).
    logits_f32 = jax.block_until_ready(
        lstm_lm_forward(tokens, params, matmul_dtype=jnp.float32))
    assert logits_f32.shape == (B, T, V), logits_f32.shape
    assert jnp.all(jnp.isfinite(logits_f32))
    assert jnp.allclose(logits_f32, expected, atol=1e-4, rtol=1e-4), \
        float(jnp.max(jnp.abs(logits_f32 - expected)))

    # bf16-weight path (x@W_ih and fc on the bf16 MXU; recurrence stays f32).
    logits_bf16 = jax.block_until_ready(
        lstm_lm_forward(tokens, params, matmul_dtype=jnp.bfloat16))
    assert logits_bf16.shape == (B, T, V), logits_bf16.shape
    assert jnp.all(jnp.isfinite(logits_bf16))
    assert jnp.allclose(logits_bf16, expected, atol=5e-3, rtol=5e-2), \
        float(jnp.max(jnp.abs(logits_bf16 - expected)))

    print("KERNEL_OK")
</pallas_src>

<mosaic_0001>
module attributes {stable_mosaic.version = 11 : i64} {
  func.func @_lstm_recurrence_kernel(%arg0: i32, %arg1: i32, %arg2: memref<8x8x128xf32, #tpu.memory_space<vmem>>, %arg3: memref<128x1024xf32, #tpu.memory_space<vmem>>, %arg4: memref<256x1024xf32, #tpu.memory_space<vmem>>, %arg5: memref<1x1024xf32, #tpu.memory_space<vmem>>, %arg6: memref<8x8x256xf32, #tpu.memory_space<vmem>>, %arg7: memref<8x8x1024xf32, #tpu.memory_space<vmem>>, %arg8: memref<8x256xf32, #tpu.memory_space<vmem>>, %arg9: memref<8x256xf32, #tpu.memory_space<vmem>>) attributes {dimension_semantics = [#tpu.dimension_semantics<parallel>, #tpu.dimension_semantics<arbitrary>], iteration_bounds = array<i64: 1, 1>, scalar_prefetch = 0 : i64, scratch_operands = 3 : i64, tpu.core_type = #tpu.core_type<tc>, window_params = [{transform_indices = @transform_0, window_bounds = array<i64: 8, 8, 128>}, {pipeline_mode = #tpu.pipeline_mode<synchronous>, transform_indices = @transform_1, window_bounds = array<i64: 128, 1024>}, {pipeline_mode = #tpu.pipeline_mode<synchronous>, transform_indices = @transform_2, window_bounds = array<i64: 256, 1024>}, {pipeline_mode = #tpu.pipeline_mode<synchronous>, transform_indices = @transform_3, window_bounds = array<i64: 1, 1024>}, {transform_indices = @transform_4, window_bounds = array<i64: 8, 8, 256>}]} {
    %c0_i32 = arith.constant 0 : i32
    %0 = arith.cmpi eq, %arg1, %c0_i32 : i32
    %1 = arith.extui %0 : i1 to i32
    %c0_i32_0 = arith.constant 0 : i32
    %2 = arith.cmpi ne, %1, %c0_i32_0 : i32
    scf.if %2 {
      %cst_91 = arith.constant 0.000000e+00 : f32
      %264 = vector.broadcast %cst_91 : f32 to vector<8x256xf32>
      %c0_92 = arith.constant 0 : index
      %c0_93 = arith.constant 0 : index
      %265 = vector.load %arg8[%c0_92, %c0_93] : memref<8x256xf32, #tpu.memory_space<vmem>>, vector<8x256xf32>
      tpu.vector_store %arg8[%c0_92, %c0_93], %264 {strides = array<i32>} : memref<8x256xf32, #tpu.memory_space<vmem>>, vector<8x256xf32>,
      %cst_94 = arith.constant 0.000000e+00 : f32
      %266 = vector.broadcast %cst_94 : f32 to vector<8x256xf32>
      %c0_95 = arith.constant 0 : index
      %c0_96 = arith.constant 0 : index
      %267 = vector.load %arg9[%c0_95, %c0_96] : memref<8x256xf32, #tpu.memory_space<vmem>>, vector<8x256xf32>
      tpu.vector_store %arg9[%c0_95, %c0_96], %266 {strides = array<i32>} : memref<8x256xf32, #tpu.memory_space<vmem>>, vector<8x256xf32>,
    } else {
    }
    %c0 = arith.constant 0 : index
    %c0_1 = arith.constant 0 : index
    %c0_2 = arith.constant 0 : index
    %3 = vector.load %arg2[%c0, %c0_1, %c0_2] : memref<8x8x128xf32, #tpu.memory_space<vmem>>, vector<8x8x128xf32>
    %4 = vector.shape_cast %3 : vector<8x8x128xf32> to vector<64x128xf32>
    %c0_3 = arith.constant 0 : index
    %c0_4 = arith.constant 0 : index
    %5 = vector.load %arg3[%c0_3, %c0_4] : memref<128x1024xf32, #tpu.memory_space<vmem>>, vector<128x1024xf32>
    %cst = arith.constant dense<0.000000e+00> : vector<64x1024xf32>
    %6 = tpu.matmul %4, %5, %cst {dimension_numbers = #tpu.dot_dimension_numbers<[1], [0], [0], [1], [0, 0, 1, 1], [], []>} : vector<64x128xf32>, vector<128x1024xf32>, vector<64x1024xf32> -> vector<64x1024xf32>
    %c0_5 = arith.constant 0 : index
    %c0_6 = arith.constant 0 : index
    %7 = vector.load %arg5[%c0_5, %c0_6] : memref<1x1024xf32, #tpu.memory_space<vmem>>, vector<1x1024xf32>
    %8 = vector.broadcast %7 : vector<1x1024xf32> to vector<64x1024xf32>
    %9 = arith.addf %6, %8 : vector<64x1024xf32>
    %10 = vector.shape_cast %9 : vector<64x1024xf32> to vector<8x8x1024xf32>
    %c0_7 = arith.constant 0 : index
    %c0_8 = arith.constant 0 : index
    %c0_9 = arith.constant 0 : index
    %11 = vector.load %arg7[%c0_7, %c0_8, %c0_9] : memref<8x8x1024xf32, #tpu.memory_space<vmem>>, vector<8x8x1024xf32>
    tpu.vector_store %arg7[%c0_7, %c0_8, %c0_9], %10 {strides = array<i32>} : memref<8x8x1024xf32, #tpu.memory_space<vmem>>, vector<8x8x1024xf32>,
    %c0_10 = arith.constant 0 : index
    %c0_11 = arith.constant 0 : index
    %12 = vector.load %arg8[%c0_10, %c0_11] : memref<8x256xf32, #tpu.memory_space<vmem>>, vector<8x256xf32>
    %c0_12 = arith.constant 0 : index
    %c0_13 = arith.constant 0 : index
    %13 = vector.load %arg9[%c0_12, %c0_13] : memref<8x256xf32, #tpu.memory_space<vmem>>, vector<8x256xf32>
    %c0_i32_14 = arith.constant 0 : i32
    %14 = arith.index_cast %c0_i32_14 : i32 to index
    %c0_15 = arith.constant 0 : index
    %c0_16 = arith.constant 0 : index
    %15 = vector.load %arg7[%14, %c0_15, %c0_16] : memref<8x8x1024xf32, #tpu.memory_space<vmem>>, vector<1x8x1024xf32>
    %16 = vector.shape_cast %15 : vector<1x8x1024xf32> to vector<8x1024xf32>
    %c0_17 = arith.constant 0 : index
    %c0_18 = arith.constant 0 : index
    %17 = vector.load %arg4[%c0_17, %c0_18] : memref<256x1024xf32, #tpu.memory_space<vmem>>, vector<256x1024xf32>
    %cst_19 = arith.constant dense<0.000000e+00> : vector<8x1024xf32>
    %18 = tpu.matmul %12, %17, %cst_19 {dimension_numbers = #tpu.dot_dimension_numbers<[1], [0], [0], [1], [0, 0, 1, 1], [], []>} : vector<8x256xf32>, vector<256x1024xf32>, vector<8x1024xf32> -> vector<8x1024xf32>
    %19 = arith.addf %16, %18 : vector<8x1024xf32>
    %20 = vector.extract_strided_slice %19 {offsets = [0, 0], sizes = [8, 512], strides = [1, 1]} : vector<8x1024xf32> to vector<8x512xf32>
    %21 = arith.negf %20 : vector<8x512xf32>
    %22 = math.exp %21 : vector<8x512xf32>
    %cst_20 = arith.constant 1.000000e+00 : f32
    %23 = vector.broadcast %cst_20 : f32 to vector<8x512xf32>
    %24 = arith.addf %23, %22 : vector<8x512xf32>
    %25 = arith.divf %23, %24 : vector<8x512xf32>
    %26 = vector.extract_strided_slice %25 {offsets = [0, 0], sizes = [8, 256], strides = [1, 1]} : vector<8x512xf32> to vector<8x256xf32>
    %27 = vector.extract_strided_slice %25 {offsets = [0, 256], sizes = [8, 256], strides = [1, 1]} : vector<8x512xf32> to vector<8x256xf32>
    %28 = vector.extract_strided_slice %19 {offsets = [0, 512], sizes = [8, 256], strides = [1, 1]} : vector<8x1024xf32> to vector<8x256xf32>
    %29 = math.tanh %28 : vector<8x256xf32>
    %30 = vector.extract_strided_slice %19 {offsets = [0, 768], sizes = [8, 256], strides = [1, 1]} : vector<8x1024xf32> to vector<8x256xf32>
    %31 = arith.negf %30 : vector<8x256xf32>
    %32 = math.exp %31 : vector<8x256xf32>
    %cst_21 = arith.constant 1.000000e+00 : f32
    %33 = vector.broadcast %cst_21 : f32 to vector<8x256xf32>
    %34 = arith.addf %33, %32 : vector<8x256xf32>
    %35 = arith.divf %33, %34 : vector<8x256xf32>
    %36 = arith.mulf %27, %13 : vector<8x256xf32>
    %37 = arith.mulf %26, %29 : vector<8x256xf32>
    %38 = arith.addf %36, %37 : vector<8x256xf32>
    %39 = math.tanh %38 : vector<8x256xf32>
    %40 = arith.mulf %35, %39 : vector<8x256xf32>
    %41 = arith.index_cast %c0_i32_14 : i32 to index
    %c0_22 = arith.constant 0 : index
    %c0_23 = arith.constant 0 : index
    %42 = vector.load %arg6[%41, %c0_22, %c0_23] : memref<8x8x256xf32, #tpu.memory_space<vmem>>, vector<1x8x256xf32>
    %43 = vector.shape_cast %42 : vector<1x8x256xf32> to vector<8x256xf32>
    %44 = vector.shape_cast %40 : vector<8x256xf32> to vector<1x8x256xf32>
    tpu.vector_store %arg6[%41, %c0_22, %c0_23], %44 {strides = array<i32>} : memref<8x8x256xf32, #tpu.memory_space<vmem>>, vector<1x8x256xf32>,
    %c1_i32 = arith.constant 1 : i32
    %45 = arith.index_cast %c1_i32 : i32 to index
    %c0_24 = arith.constant 0 : index
    %c0_25 = arith.constant 0 : index
    %46 = vector.load %arg7[%45, %c0_24, %c0_25] : memref<8x8x1024xf32, #tpu.memory_space<vmem>>, vector<1x8x1024xf32>
    %47 = vector.shape_cast %46 : vector<1x8x1024xf32> to vector<8x1024xf32>
    %c0_26 = arith.constant 0 : index
    %c0_27 = arith.constant 0 : index
    %48 = vector.load %arg4[%c0_26, %c0_27] : memref<256x1024xf32, #tpu.memory_space<vmem>>, vector<256x1024xf32>
    %cst_28 = arith.constant dense<0.000000e+00> : vector<8x1024xf32>
    %49 = tpu.matmul %40, %48, %cst_28 {dimension_numbers = #tpu.dot_dimension_numbers<[1], [0], [0], [1], [0, 0, 1, 1], [], []>} : vector<8x256xf32>, vector<256x1024xf32>, vector<8x1024xf32> -> vector<8x1024xf32>
    %50 = arith.addf %47, %49 : vector<8x1024xf32>
    %51 = vector.extract_strided_slice %50 {offsets = [0, 0], sizes = [8, 512], strides = [1, 1]} : vector<8x1024xf32> to vector<8x512xf32>
    %52 = arith.negf %51 : vector<8x512xf32>
    %53 = math.exp %52 : vector<8x512xf32>
    %cst_29 = arith.constant 1.000000e+00 : f32
    %54 = vector.broadcast %cst_29 : f32 to vector<8x512xf32>
    %55 = arith.addf %54, %53 : vector<8x512xf32>
    %56 = arith.divf %54, %55 : vector<8x512xf32>
    %57 = vector.extract_strided_slice %56 {offsets = [0, 0], sizes = [8, 256], strides = [1, 1]} : vector<8x512xf32> to vector<8x256xf32>
    %58 = vector.extract_strided_slice %56 {offsets = [0, 256], sizes = [8, 256], strides = [1, 1]} : vector<8x512xf32> to vector<8x256xf32>
    %59 = vector.extract_strided_slice %50 {offsets = [0, 512], sizes = [8, 256], strides = [1, 1]} : vector<8x1024xf32> to vector<8x256xf32>
    %60 = math.tanh %59 : vector<8x256xf32>
    %61 = vector.extract_strided_slice %50 {offsets = [0, 768], sizes = [8, 256], strides = [1, 1]} : vector<8x1024xf32> to vector<8x256xf32>
    %62 = arith.negf %61 : vector<8x256xf32>
    %63 = math.exp %62 : vector<8x256xf32>
    %cst_30 = arith.constant 1.000000e+00 : f32
    %64 = vector.broadcast %cst_30 : f32 to vector<8x256xf32>
    %65 = arith.addf %64, %63 : vector<8x256xf32>
    %66 = arith.divf %64, %65 : vector<8x256xf32>
    %67 = arith.mulf %58, %38 : vector<8x256xf32>
    %68 = arith.mulf %57, %60 : vector<8x256xf32>
    %69 = arith.addf %67, %68 : vector<8x256xf32>
    %70 = math.tanh %69 : vector<8x256xf32>
    %71 = arith.mulf %66, %70 : vector<8x256xf32>
    %72 = arith.index_cast %c1_i32 : i32 to index
    %c0_31 = arith.constant 0 : index
    %c0_32 = arith.constant 0 : index
    %73 = vector.load %arg6[%72, %c0_31, %c0_32] : memref<8x8x256xf32, #tpu.memory_space<vmem>>, vector<1x8x256xf32>
    %74 = vector.shape_cast %73 : vector<1x8x256xf32> to vector<8x256xf32>
    %75 = vector.shape_cast %71 : vector<8x256xf32> to vector<1x8x256xf32>
    tpu.vector_store %arg6[%72, %c0_31, %c0_32], %75 {strides = array<i32>} : memref<8x8x256xf32, #tpu.memory_space<vmem>>, vector<1x8x256xf32>,
    %c2_i32 = arith.constant 2 : i32
    %76 = arith.index_cast %c2_i32 : i32 to index
    %c0_33 = arith.constant 0 : index
    %c0_34 = arith.constant 0 : index
    %77 = vector.load %arg7[%76, %c0_33, %c0_34] : memref<8x8x1024xf32, #tpu.memory_space<vmem>>, vector<1x8x1024xf32>
    %78 = vector.shape_cast %77 : vector<1x8x1024xf32> to vector<8x1024xf32>
    %c0_35 = arith.constant 0 : index
    %c0_36 = arith.constant 0 : index
    %79 = vector.load %arg4[%c0_35, %c0_36] : memref<256x1024xf32, #tpu.memory_space<vmem>>, vector<256x1024xf32>
    %cst_37 = arith.constant dense<0.000000e+00> : vector<8x1024xf32>
    %80 = tpu.matmul %71, %79, %cst_37 {dimension_numbers = #tpu.dot_dimension_numbers<[1], [0], [0], [1], [0, 0, 1, 1], [], []>} : vector<8x256xf32>, vector<256x1024xf32>, vector<8x1024xf32> -> vector<8x1024xf32>
    %81 = arith.addf %78, %80 : vector<8x1024xf32>
    %82 = vector.extract_strided_slice %81 {offsets = [0, 0], sizes = [8, 512], strides = [1, 1]} : vector<8x1024xf32> to vector<8x512xf32>
    %83 = arith.negf %82 : vector<8x512xf32>
    %84 = math.exp %83 : vector<8x512xf32>
    %cst_38 = arith.constant 1.000000e+00 : f32
    %85 = vector.broadcast %cst_38 : f32 to vector<8x512xf32>
    %86 = arith.addf %85, %84 : vector<8x512xf32>
    %87 = arith.divf %85, %86 : vector<8x512xf32>
    %88 = vector.extract_strided_slice %87 {offsets = [0, 0], sizes = [8, 256], strides = [1, 1]} : vector<8x512xf32> to vector<8x256xf32>
    %89 = vector.extract_strided_slice %87 {offsets = [0, 256], sizes = [8, 256], strides = [1, 1]} : vector<8x512xf32> to vector<8x256xf32>
    %90 = vector.extract_strided_slice %81 {offsets = [0, 512], sizes = [8, 256], strides = [1, 1]} : vector<8x1024xf32> to vector<8x256xf32>
    %91 = math.tanh %90 : vector<8x256xf32>
    %92 = vector.extract_strided_slice %81 {offsets = [0, 768], sizes = [8, 256], strides = [1, 1]} : vector<8x1024xf32> to vector<8x256xf32>
    %93 = arith.negf %92 : vector<8x256xf32>
    %94 = math.exp %93 : vector<8x256xf32>
    %cst_39 = arith.constant 1.000000e+00 : f32
    %95 = vector.broadcast %cst_39 : f32 to vector<8x256xf32>
    %96 = arith.addf %95, %94 : vector<8x256xf32>
    %97 = arith.divf %95, %96 : vector<8x256xf32>
    %98 = arith.mulf %89, %69 : vector<8x256xf32>
    %99 = arith.mulf %88, %91 : vector<8x256xf32>
    %100 = arith.addf %98, %99 : vector<8x256xf32>
    %101 = math.tanh %100 : vector<8x256xf32>
    %102 = arith.mulf %97, %101 : vector<8x256xf32>
    %103 = arith.index_cast %c2_i32 : i32 to index
    %c0_40 = arith.constant 0 : index
    %c0_41 = arith.constant 0 : index
    %104 = vector.load %arg6[%103, %c0_40, %c0_41] : memref<8x8x256xf32, #tpu.memory_space<vmem>>, vector<1x8x256xf32>
    %105 = vector.shape_cast %104 : vector<1x8x256xf32> to vector<8x256xf32>
    %106 = vector.shape_cast %102 : vector<8x256xf32> to vector<1x8x256xf32>
    tpu.vector_store %arg6[%103, %c0_40, %c0_41], %106 {strides = array<i32>} : memref<8x8x256xf32, #tpu.memory_space<vmem>>, vector<1x8x256xf32>,
    %c3_i32 = arith.constant 3 : i32
    %107 = arith.index_cast %c3_i32 : i32 to index
    %c0_42 = arith.constant 0 : index
    %c0_43 = arith.constant 0 : index
    %108 = vector.load %arg7[%107, %c0_42, %c0_43] : memref<8x8x1024xf32, #tpu.memory_space<vmem>>, vector<1x8x1024xf32>
    %109 = vector.shape_cast %108 : vector<1x8x1024xf32> to vector<8x1024xf32>
    %c0_44 = arith.constant 0 : index
    %c0_45 = arith.constant 0 : index
    %110 = vector.load %arg4[%c0_44, %c0_45] : memref<256x1024xf32, #tpu.memory_space<vmem>>, vector<256x1024xf32>
    %cst_46 = arith.constant dense<0.000000e+00> : vector<8x1024xf32>
    %111 = tpu.matmul %102, %110, %cst_46 {dimension_numbers = #tpu.dot_dimension_numbers<[1], [0], [0], [1], [0, 0, 1, 1], [], []>} : vector<8x256xf32>, vector<256x1024xf32>, vector<8x1024xf32> -> vector<8x1024xf32>
    %112 = arith.addf %109, %111 : vector<8x1024xf32>
    %113 = vector.extract_strided_slice %112 {offsets = [0, 0], sizes = [8, 512], strides = [1, 1]} : vector<8x1024xf32> to vector<8x512xf32>
    %114 = arith.negf %113 : vector<8x512xf32>
    %115 = math.exp %114 : vector<8x512xf32>
    %cst_47 = arith.constant 1.000000e+00 : f32
    %116 = vector.broadcast %cst_47 : f32 to vector<8x512xf32>
    %117 = arith.addf %116, %115 : vector<8x512xf32>
    %118 = arith.divf %116, %117 : vector<8x512xf32>
    %119 = vector.extract_strided_slice %118 {offsets = [0, 0], sizes = [8, 256], strides = [1, 1]} : vector<8x512xf32> to vector<8x256xf32>
    %120 = vector.extract_strided_slice %118 {offsets = [0, 256], sizes = [8, 256], strides = [1, 1]} : vector<8x512xf32> to vector<8x256xf32>
    %121 = vector.extract_strided_slice %112 {offsets = [0, 512], sizes = [8, 256], strides = [1, 1]} : vector<8x1024xf32> to vector<8x256xf32>
    %122 = math.tanh %121 : vector<8x256xf32>
    %123 = vector.extract_strided_slice %112 {offsets = [0, 768], sizes = [8, 256], strides = [1, 1]} : vector<8x1024xf32> to vector<8x256xf32>
    %124 = arith.negf %123 : vector<8x256xf32>
    %125 = math.exp %124 : vector<8x256xf32>
    %cst_48 = arith.constant 1.000000e+00 : f32
    %126 = vector.broadcast %cst_48 : f32 to vector<8x256xf32>
    %127 = arith.addf %126, %125 : vector<8x256xf32>
    %128 = arith.divf %126, %127 : vector<8x256xf32>
    %129 = arith.mulf %120, %100 : vector<8x256xf32>
    %130 = arith.mulf %119, %122 : vector<8x256xf32>
    %131 = arith.addf %129, %130 : vector<8x256xf32>
    %132 = math.tanh %131 : vector<8x256xf32>
    %133 = arith.mulf %128, %132 : vector<8x256xf32>
    %134 = arith.index_cast %c3_i32 : i32 to index
    %c0_49 = arith.constant 0 : index
    %c0_50 = arith.constant 0 : index
    %135 = vector.load %arg6[%134, %c0_49, %c0_50] : memref<8x8x256xf32, #tpu.memory_space<vmem>>, vector<1x8x256xf32>
    %136 = vector.shape_cast %135 : vector<1x8x256xf32> to vector<8x256xf32>
    %137 = vector.shape_cast %133 : vector<8x256xf32> to vector<1x8x256xf32>
    tpu.vector_store %arg6[%134, %c0_49, %c0_50], %137 {strides = array<i32>} : memref<8x8x256xf32, #tpu.memory_space<vmem>>, vector<1x8x256xf32>,
    %c4_i32 = arith.constant 4 : i32
    %138 = arith.index_cast %c4_i32 : i32 to index
    %c0_51 = arith.constant 0 : index
    %c0_52 = arith.constant 0 : index
    %139 = vector.load %arg7[%138, %c0_51, %c0_52] : memref<8x8x1024xf32, #tpu.memory_space<vmem>>, vector<1x8x1024xf32>
    %140 = vector.shape_cast %139 : vector<1x8x1024xf32> to vector<8x1024xf32>
    %c0_53 = arith.constant 0 : index
    %c0_54 = arith.constant 0 : index
    %141 = vector.load %arg4[%c0_53, %c0_54] : memref<256x1024xf32, #tpu.memory_space<vmem>>, vector<256x1024xf32>
    %cst_55 = arith.constant dense<0.000000e+00> : vector<8x1024xf32>
    %142 = tpu.matmul %133, %141, %cst_55 {dimension_numbers = #tpu.dot_dimension_numbers<[1], [0], [0], [1], [0, 0, 1, 1], [], []>} : vector<8x256xf32>, vector<256x1024xf32>, vector<8x1024xf32> -> vector<8x1024xf32>
    %143 = arith.addf %140, %142 : vector<8x1024xf32>
    %144 = vector.extract_strided_slice %143 {offsets = [0, 0], sizes = [8, 512], strides = [1, 1]} : vector<8x1024xf32> to vector<8x512xf32>
    %145 = arith.negf %144 : vector<8x512xf32>
    %146 = math.exp %145 : vector<8x512xf32>
    %cst_56 = arith.constant 1.000000e+00 : f32
    %147 = vector.broadcast %cst_56 : f32 to vector<8x512xf32>
    %148 = arith.addf %147, %146 : vector<8x512xf32>
    %149 = arith.divf %147, %148 : vector<8x512xf32>
    %150 = vector.extract_strided_slice %149 {offsets = [0, 0], sizes = [8, 256], strides = [1, 1]} : vector<8x512xf32> to vector<8x256xf32>
    %151 = vector.extract_strided_slice %149 {offsets = [0, 256], sizes = [8, 256], strides = [1, 1]} : vector<8x512xf32> to vector<8x256xf32>
    %152 = vector.extract_strided_slice %143 {offsets = [0, 512], sizes = [8, 256], strides = [1, 1]} : vector<8x1024xf32> to vector<8x256xf32>
    %153 = math.tanh %152 : vector<8x256xf32>
    %154 = vector.extract_strided_slice %143 {offsets = [0, 768], sizes = [8, 256], strides = [1, 1]} : vector<8x1024xf32> to vector<8x256xf32>
    %155 = arith.negf %154 : vector<8x256xf32>
    %156 = math.exp %155 : vector<8x256xf32>
    %cst_57 = arith.constant 1.000000e+00 : f32
    %157 = vector.broadcast %cst_57 : f32 to vector<8x256xf32>
    %158 = arith.addf %157, %156 : vector<8x256xf32>
    %159 = arith.divf %157, %158 : vector<8x256xf32>
    %160 = arith.mulf %151, %131 : vector<8x256xf32>
    %161 = arith.mulf %150, %153 : vector<8x256xf32>
    %162 = arith.addf %160, %161 : vector<8x256xf32>
    %163 = math.tanh %162 : vector<8x256xf32>
    %164 = arith.mulf %159, %163 : vector<8x256xf32>
    %165 = arith.index_cast %c4_i32 : i32 to index
    %c0_58 = arith.constant 0 : index
    %c0_59 = arith.constant 0 : index
    %166 = vector.load %arg6[%165, %c0_58, %c0_59] : memref<8x8x256xf32, #tpu.memory_space<vmem>>, vector<1x8x256xf32>
    %167 = vector.shape_cast %166 : vector<1x8x256xf32> to vector<8x256xf32>
    %168 = vector.shape_cast %164 : vector<8x256xf32> to vector<1x8x256xf32>
    tpu.vector_store %arg6[%165, %c0_58, %c0_59], %168 {strides = array<i32>} : memref<8x8x256xf32, #tpu.memory_space<vmem>>, vector<1x8x256xf32>,
    %c5_i32 = arith.constant 5 : i32
    %169 = arith.index_cast %c5_i32 : i32 to index
    %c0_60 = arith.constant 0 : index
    %c0_61 = arith.constant 0 : index
    %170 = vector.load %arg7[%169, %c0_60, %c0_61] : memref<8x8x1024xf32, #tpu.memory_space<vmem>>, vector<1x8x1024xf32>
    %171 = vector.shape_cast %170 : vector<1x8x1024xf32> to vector<8x1024xf32>
    %c0_62 = arith.constant 0 : index
    %c0_63 = arith.constant 0 : index
    %172 = vector.load %arg4[%c0_62, %c0_63] : memref<256x1024xf32, #tpu.memory_space<vmem>>, vector<256x1024xf32>
    %cst_64 = arith.constant dense<0.000000e+00> : vector<8x1024xf32>
    %173 = tpu.matmul %164, %172, %cst_64 {dimension_numbers = #tpu.dot_dimension_numbers<[1], [0], [0], [1], [0, 0, 1, 1], [], []>} : vector<8x256xf32>, vector<256x1024xf32>, vector<8x1024xf32> -> vector<8x1024xf32>
    %174 = arith.addf %171, %173 : vector<8x1024xf32>
    %175 = vector.extract_strided_slice %174 {offsets = [0, 0], sizes = [8, 512], strides = [1, 1]} : vector<8x1024xf32> to vector<8x512xf32>
    %176 = arith.negf %175 : vector<8x512xf32>
    %177 = math.exp %176 : vector<8x512xf32>
    %cst_65 = arith.constant 1.000000e+00 : f32
    %178 = vector.broadcast %cst_65 : f32 to vector<8x512xf32>
    %179 = arith.addf %178, %177 : vector<8x512xf32>
    %180 = arith.divf %178, %179 : vector<8x512xf32>
    %181 = vector.extract_strided_slice %180 {offsets = [0, 0], sizes = [8, 256], strides = [1, 1]} : vector<8x512xf32> to vector<8x256xf32>
    %182 = vector.extract_strided_slice %180 {offsets = [0, 256], sizes = [8, 256], strides = [1, 1]} : vector<8x512xf32> to vector<8x256xf32>
    %183 = vector.extract_strided_slice %174 {offsets = [0, 512], sizes = [8, 256], strides = [1, 1]} : vector<8x1024xf32> to vector<8x256xf32>
    %184 = math.tanh %183 : vector<8x256xf32>
    %185 = vector.extract_strided_slice %174 {offsets = [0, 768], sizes = [8, 256], strides = [1, 1]} : vector<8x1024xf32> to vector<8x256xf32>
    %186 = arith.negf %185 : vector<8x256xf32>
    %187 = math.exp %186 : vector<8x256xf32>
    %cst_66 = arith.constant 1.000000e+00 : f32
    %188 = vector.broadcast %cst_66 : f32 to vector<8x256xf32>
    %189 = arith.addf %188, %187 : vector<8x256xf32>
    %190 = arith.divf %188, %189 : vector<8x256xf32>
    %191 = arith.mulf %182, %162 : vector<8x256xf32>
    %192 = arith.mulf %181, %184 : vector<8x256xf32>
    %193 = arith.addf %191, %192 : vector<8x256xf32>
    %194 = math.tanh %193 : vector<8x256xf32>
    %195 = arith.mulf %190, %194 : vector<8x256xf32>
    %196 = arith.index_cast %c5_i32 : i32 to index
    %c0_67 = arith.constant 0 : index
    %c0_68 = arith.constant 0 : index
    %197 = vector.load %arg6[%196, %c0_67, %c0_68] : memref<8x8x256xf32, #tpu.memory_space<vmem>>, vector<1x8x256xf32>
    %198 = vector.shape_cast %197 : vector<1x8x256xf32> to vector<8x256xf32>
    %199 = vector.shape_cast %195 : vector<8x256xf32> to vector<1x8x256xf32>
    tpu.vector_store %arg6[%196, %c0_67, %c0_68], %199 {strides = array<i32>} : memref<8x8x256xf32, #tpu.memory_space<vmem>>, vector<1x8x256xf32>,
    %c6_i32 = arith.constant 6 : i32
    %200 = arith.index_cast %c6_i32 : i32 to index
    %c0_69 = arith.constant 0 : index
    %c0_70 = arith.constant 0 : index
    %201 = vector.load %arg7[%200, %c0_69, %c0_70] : memref<8x8x1024xf32, #tpu.memory_space<vmem>>, vector<1x8x1024xf32>
    %202 = vector.shape_cast %201 : vector<1x8x1024xf32> to vector<8x1024xf32>
    %c0_71 = arith.constant 0 : index
    %c0_72 = arith.constant 0 : index
    %203 = vector.load %arg4[%c0_71, %c0_72] : memref<256x1024xf32, #tpu.memory_space<vmem>>, vector<256x1024xf32>
    %cst_73 = arith.constant dense<0.000000e+00> : vector<8x1024xf32>
    %204 = tpu.matmul %195, %203, %cst_73 {dimension_numbers = #tpu.dot_dimension_numbers<[1], [0], [0], [1], [0, 0, 1, 1], [], []>} : vector<8x256xf32>, vector<256x1024xf32>, vector<8x1024xf32> -> vector<8x1024xf32>
    %205 = arith.addf %202, %204 : vector<8x1024xf32>
    %206 = vector.extract_strided_slice %205 {offsets = [0, 0], sizes = [8, 512], strides = [1, 1]} : vector<8x1024xf32> to vector<8x512xf32>
    %207 = arith.negf %206 : vector<8x512xf32>
    %208 = math.exp %207 : vector<8x512xf32>
    %cst_74 = arith.constant 1.000000e+00 : f32
    %209 = vector.broadcast %cst_74 : f32 to vector<8x512xf32>
    %210 = arith.addf %209, %208 : vector<8x512xf32>
    %211 = arith.divf %209, %210 : vector<8x512xf32>
    %212 = vector.extract_strided_slice %211 {offsets = [0, 0], sizes = [8, 256], strides = [1, 1]} : vector<8x512xf32> to vector<8x256xf32>
    %213 = vector.extract_strided_slice %211 {offsets = [0, 256], sizes = [8, 256], strides = [1, 1]} : vector<8x512xf32> to vector<8x256xf32>
    %214 = vector.extract_strided_slice %205 {offsets = [0, 512], sizes = [8, 256], strides = [1, 1]} : vector<8x1024xf32> to vector<8x256xf32>
    %215 = math.tanh %214 : vector<8x256xf32>
    %216 = vector.extract_strided_slice %205 {offsets = [0, 768], sizes = [8, 256], strides = [1, 1]} : vector<8x1024xf32> to vector<8x256xf32>
    %217 = arith.negf %216 : vector<8x256xf32>
    %218 = math.exp %217 : vector<8x256xf32>
    %cst_75 = arith.constant 1.000000e+00 : f32
    %219 = vector.broadcast %cst_75 : f32 to vector<8x256xf32>
    %220 = arith.addf %219, %218 : vector<8x256xf32>
    %221 = arith.divf %219, %220 : vector<8x256xf32>
    %222 = arith.mulf %213, %193 : vector<8x256xf32>
    %223 = arith.mulf %212, %215 : vector<8x256xf32>
    %224 = arith.addf %222, %223 : vector<8x256xf32>
    %225 = math.tanh %224 : vector<8x256xf32>
    %226 = arith.mulf %221, %225 : vector<8x256xf32>
    %227 = arith.index_cast %c6_i32 : i32 to index
    %c0_76 = arith.constant 0 : index
    %c0_77 = arith.constant 0 : index
    %228 = vector.load %arg6[%227, %c0_76, %c0_77] : memref<8x8x256xf32, #tpu.memory_space<vmem>>, vector<1x8x256xf32>
    %229 = vector.shape_cast %228 : vector<1x8x256xf32> to vector<8x256xf32>
    %230 = vector.shape_cast %226 : vector<8x256xf32> to vector<1x8x256xf32>
    tpu.vector_store %arg6[%227, %c0_76, %c0_77], %230 {strides = array<i32>} : memref<8x8x256xf32, #tpu.memory_space<vmem>>, vector<1x8x256xf32>,
    %c7_i32 = arith.constant 7 : i32
    %231 = arith.index_cast %c7_i32 : i32 to index
    %c0_78 = arith.constant 0 : index
    %c0_79 = arith.constant 0 : index
    %232 = vector.load %arg7[%231, %c0_78, %c0_79] : memref<8x8x1024xf32, #tpu.memory_space<vmem>>, vector<1x8x1024xf32>
    %233 = vector.shape_cast %232 : vector<1x8x1024xf32> to vector<8x1024xf32>
    %c0_80 = arith.constant 0 : index
    %c0_81 = arith.constant 0 : index
    %234 = vector.load %arg4[%c0_80, %c0_81] : memref<256x1024xf32, #tpu.memory_space<vmem>>, vector<256x1024xf32>
    %cst_82 = arith.constant dense<0.000000e+00> : vector<8x1024xf32>
    %235 = tpu.matmul %226, %234, %cst_82 {dimension_numbers = #tpu.dot_dimension_numbers<[1], [0], [0], [1], [0, 0, 1, 1], [], []>} : vector<8x256xf32>, vector<256x1024xf32>, vector<8x1024xf32> -> vector<8x1024xf32>
    %236 = arith.addf %233, %235 : vector<8x1024xf32>
    %237 = vector.extract_strided_slice %236 {offsets = [0, 0], sizes = [8, 512], strides = [1, 1]} : vector<8x1024xf32> to vector<8x512xf32>
    %238 = arith.negf %237 : vector<8x512xf32>
    %239 = math.exp %238 : vector<8x512xf32>
    %cst_83 = arith.constant 1.000000e+00 : f32
    %240 = vector.broadcast %cst_83 : f32 to vector<8x512xf32>
    %241 = arith.addf %240, %239 : vector<8x512xf32>
    %242 = arith.divf %240, %241 : vector<8x512xf32>
    %243 = vector.extract_strided_slice %242 {offsets = [0, 0], sizes = [8, 256], strides = [1, 1]} : vector<8x512xf32> to vector<8x256xf32>
    %244 = vector.extract_strided_slice %242 {offsets = [0, 256], sizes = [8, 256], strides = [1, 1]} : vector<8x512xf32> to vector<8x256xf32>
    %245 = vector.extract_strided_slice %236 {offsets = [0, 512], sizes = [8, 256], strides = [1, 1]} : vector<8x1024xf32> to vector<8x256xf32>
    %246 = math.tanh %245 : vector<8x256xf32>
    %247 = vector.extract_strided_slice %236 {offsets = [0, 768], sizes = [8, 256], strides = [1, 1]} : vector<8x1024xf32> to vector<8x256xf32>
    %248 = arith.negf %247 : vector<8x256xf32>
    %249 = math.exp %248 : vector<8x256xf32>
    %cst_84 = arith.constant 1.000000e+00 : f32
    %250 = vector.broadcast %cst_84 : f32 to vector<8x256xf32>
    %251 = arith.addf %250, %249 : vector<8x256xf32>
    %252 = arith.divf %250, %251 : vector<8x256xf32>
    %253 = arith.mulf %244, %224 : vector<8x256xf32>
    %254 = arith.mulf %243, %246 : vector<8x256xf32>
    %255 = arith.addf %253, %254 : vector<8x256xf32>
    %256 = math.tanh %255 : vector<8x256xf32>
    %257 = arith.mulf %252, %256 : vector<8x256xf32>
    %258 = arith.index_cast %c7_i32 : i32 to index
    %c0_85 = arith.constant 0 : index
    %c0_86 = arith.constant 0 : index
    %259 = vector.load %arg6[%258, %c0_85, %c0_86] : memref<8x8x256xf32, #tpu.memory_space<vmem>>, vector<1x8x256xf32>
    %260 = vector.shape_cast %259 : vector<1x8x256xf32> to vector<8x256xf32>
    %261 = vector.shape_cast %257 : vector<8x256xf32> to vector<1x8x256xf32>
    tpu.vector_store %arg6[%258, %c0_85, %c0_86], %261 {strides = array<i32>} : memref<8x8x256xf32, #tpu.memory_space<vmem>>, vector<1x8x256xf32>,
    %c8_i32 = arith.constant 8 : i32
    %c0_87 = arith.constant 0 : index
    %c0_88 = arith.constant 0 : index
    %262 = vector.load %arg8[%c0_87, %c0_88] : memref<8x256xf32, #tpu.memory_space<vmem>>, vector<8x256xf32>
    tpu.vector_store %arg8[%c0_87, %c0_88], %257 {strides = array<i32>} : memref<8x256xf32, #tpu.memory_space<vmem>>, vector<8x256xf32>,
    %c0_89 = arith.constant 0 : index
    %c0_90 = arith.constant 0 : index
    %263 = vector.load %arg9[%c0_89, %c0_90] : memref<8x256xf32, #tpu.memory_space<vmem>>, vector<8x256xf32>
    tpu.vector_store %arg9[%c0_89, %c0_90], %255 {strides = array<i32>} : memref<8x256xf32, #tpu.memory_space<vmem>>, vector<8x256xf32>,
    return
  }
  func.func @transform_0(%arg0: i32, %arg1: i32) -> (i32, i32, i32) {
    %c0_i32 = arith.constant 0 : i32
    %c0_i32_0 = arith.constant 0 : i32
    return %arg1, %arg0, %c0_i32 : i32, i32, i32
  }
  func.func @transform_1(%arg0: i32, %arg1: i32) -> (i32, i32) {
    %c0_i32 = arith.constant 0 : i32
    %c0_i32_0 = arith.constant 0 : i32
    %c0_i32_1 = arith.constant 0 : i32
    return %c0_i32, %c0_i32_0 : i32, i32
  }
  func.func @transform_2(%arg0: i32, %arg1: i32) -> (i32, i32) {
    %c0_i32 = arith.constant 0 : i32
    %c0_i32_0 = arith.constant 0 : i32
    %c0_i32_1 = arith.constant 0 : i32
    return %c0_i32, %c0_i32_0 : i32, i32
  }
  func.func @transform_3(%arg0: i32, %arg1: i32) -> (i32, i32) {
    %c0_i32 = arith.constant 0 : i32
    %c0_i32_0 = arith.constant 0 : i32
    %c0_i32_1 = arith.constant 0 : i32
    return %c0_i32, %c0_i32_0 : i32, i32
  }
  func.func @transform_4(%arg0: i32, %arg1: i32) -> (i32, i32, i32) {
    %c0_i32 = arith.constant 0 : i32
    %c0_i32_0 = arith.constant 0 : i32
    return %arg1, %arg0, %c0_i32 : i32, i32, i32
  }
}

</mosaic_0001>

<bundles_post_ra>
// kernel: tpu_custom_call.1
= control target key start
LH: loop header
LB: loop body
LE: loop exit
PB: predicated region body
PF: predicated region fallthrough
CT: control target
= control target key end

     0   :  { %9 = vsyncpa [#allocation6], 0  ;;  %s6629_s0 = inlined_call_operand.hbm [shape: f32[8,8,128], index: 0, kind: input, shape index: {}]   ;;  %s6630_s1 = inlined_call_operand.hbm [shape: f32[128,1024], index: 1, kind: input, shape index: {}]   ;;  %s6631_s2 = inlined_call_operand.hbm [shape: f32[256,1024], index: 2, kind: input, shape index: {}]   ;;  %s6632_s3 = inlined_call_operand.hbm [shape: f32[1,1024], index: 3, kind: input, shape index: {}]   ;;  %s6633_s4 = inlined_call_operand.hbm [shape: f32[8,8,256], index: 4, kind: output, shape index: {}]  }
   0x1   :  { %10 = vsyncpa [#allocation9], 0 }
   0x2   :  { %11 = vsyncpa [#allocation12], 0 }
   0x3   :  { %12 = vsyncpa [#allocation7], 0  ;;  %s6086_s15 = smov [#allocation8]  }
   0x4   :  { %s30_s16 = sshll.u32 %s6086_s15, 4  ;;  %s31_s16 = int_to_ptr.vmem [resolvable:$true] %s30_s16 }
   0x5   :  { %s5986_s17 = scalar_lea.vmem %s31_s16, 16384  ;;  %p5991_p1 = scmp.lt.s32.totalorder %s31_s16, %s31_s16 }
   0x6   :  { %p5987_p0 = scmp.ne.s32.totalorder %s31_s16, %s5986_s17  ;;  %p5992_p2 = scmp.lt.s32.totalorder %s5986_s17, %s5986_s17 }
   0x8   :  { %p5993_p3 = por %p5992_p2, %p5991_p1 }
   0xa   :  { %p5994_p4 = pnand %p5993_p3, %p5987_p0 }
   0xc   :  { %5997 = shalt.err (!%p5994_p4)
}
   0xd   :  { %s6087_s18 = smov 1024   ;;  %s6088_s19 = smov 64  }
   0xe   :  { %36 = dma.hbm_to_vmem [thread:$0]  %s6630_s1, 16384, %s31_s16, [#allocation9], %s6087_s18, %s6087_s18, %s6088_s19  }
   0xf   :  { %s6089_s22 = smov [#allocation5]  }
  0x10   :  { %s18_s23 = sshll.u32 %s6089_s22, 4  ;;  %s19_s23 = int_to_ptr.vmem [resolvable:$true] %s18_s23 }
  0x11   :  { %s6006_s24 = scalar_lea.vmem %s19_s23, 1024  ;;  %p6011_p6 = scmp.lt.s32.totalorder %s19_s23, %s19_s23 }
  0x12   :  { %p6007_p5 = scmp.ne.s32.totalorder %s19_s23, %s6006_s24  ;;  %p6012_p7 = scmp.lt.s32.totalorder %s6006_s24, %s6006_s24 }
  0x14   :  { %p6013_p8 = por %p6012_p7, %p6011_p6 }
  0x16   :  { %p6014_p9 = pnand %p6013_p8, %p6007_p5 }
  0x18   :  { %6017 = shalt.err (!%p6014_p9)
}
  0x19   :  { %s6090_s25 = smov 128   ;;  %s6091_s26 = smov 8  }
  0x1a   :  { %24 = dma.hbm_to_vmem [thread:$0]  %s6629_s0, 1024, %s19_s23, [#allocation6], %s6090_s25, %s6090_s25, %s6091_s26  }
  0x1b   :  { %s6092_s29 = smov [#allocation10]   ;;  %s6093_s5 = smov [#allocation11]  }
  0x1c   :  { %s42_s30 = sshll.u32 %s6092_s29, 4  ;;  %s55_s1 = sshll.u32 %s6093_s5, 4  ;;  %s43_s30 = int_to_ptr.vmem [resolvable:$true] %s42_s30  ;;  %s56_s1 = int_to_ptr.vmem [resolvable:$true] %s55_s1 }
  0x1d   :  { %s6026_s6 = scalar_lea.vmem %s43_s30, 32768  ;;  %p6031_p11 = scmp.lt.s32.totalorder %s43_s30, %s43_s30 }
  0x1e   :  { %p6027_p10 = scmp.ne.s32.totalorder %s43_s30, %s6026_s6  ;;  %p6032_p12 = scmp.lt.s32.totalorder %s6026_s6, %s6026_s6 }
  0x20   :  { %p6033_p13 = por %p6032_p12, %p6031_p11 }
  0x22   :  { %p6034_p0 = pnand %p6033_p13, %p6027_p10 }
  0x24   :  { %6037 = shalt.err (!%p6034_p0)
}
  0x25   :  { %48 = dma.hbm_to_vmem [thread:$0]  %s6631_s2, 32768, %s43_s30, [#allocation9], %s6087_s18, %s6087_s18, %s6088_s19  }
  0x26   :  { %s6046_s0 = scalar_lea.vmem %s56_s1, 128  ;;  %p6051_p2 = scmp.lt.s32.totalorder %s56_s1, %s56_s1 }
  0x27   :  { %p6047_p1 = scmp.ne.s32.totalorder %s56_s1, %s6046_s0  ;;  %p6052_p3 = scmp.lt.s32.totalorder %s6046_s0, %s6046_s0 }
  0x29   :  { %p6053_p4 = por %p6052_p3, %p6051_p2 }
  0x2b   :  { %p6054_p5 = pnand %p6053_p4, %p6047_p1 }
  0x2d   :  { %6057 = shalt.err (!%p6054_p5)
}
  0x2e   :  { %58 = dma.hbm_to_vmem [thread:$0]  %s6632_s3, 128, %s56_s1, [#allocation12]  }
  0x2f   :  { %6078 = dma.done.wait [#allocation6], 1024  }
  0x30   :  { %6079 = vsyncadd [#allocation6], 4294966272 }
  0x31   :  { %6080 = dma.done.wait [#allocation9], 49152  }
  0x32   :  { %6081 = vsyncadd [#allocation9], 4294918144 }
  0x33   :  { %6082 = dma.done.wait [#allocation12], 128  }
  0x34   :  { %6083 = vsyncadd [#allocation12], 4294967168  ;;  %v6094_v0 = vmov 0.0   ;;  %v208_v1 = vld [vmem:[#allocation8 + $0x3c8] sm:$0xff]  ;;  %v210_v2 = vld [vmem:[#allocation8 + $0x3d8] sm:$0xff]  ;;  %s6095_s2 = smov [#allocation13]  }
  0x35   :  { %321 = vmatprep.mubr.f32.mxu0 %v6094_v0  ;;  %434 = vmatprep.mubr.f32.mxu1 %v6094_v0  ;;  %v207_v3 = vld [vmem:[#allocation8 + $0x3c0] sm:$0xff]  ;;  %v209_v4 = vld [vmem:[#allocation8 + $0x3d0] sm:$0xff]  ;;  %v200_v5 = vld [vmem:[#allocation8 + $0x388] sm:$0xff]  ;;  %s5648_s3 = sshll.u32 %s6095_s2, 4  ;;  %s5649_s3 = int_to_ptr.vmem [resolvable:$true] %s5648_s3 }
  0x36   :  { %257 = vmatprep.subr.mxu0 %v208_v1  ;;  %370 = vmatprep.subr.mxu1 %v210_v2  ;;  %v202_v6 = vld [vmem:[#allocation8 + $0x398] sm:$0xff]  ;;  %v199_v7 = vld [vmem:[#allocation8 + $0x380] sm:$0xff]  ;;  %v201_v8 = vld [vmem:[#allocation8 + $0x390] sm:$0xff]  ;;  %s6058_s11 = scalar_lea.vmem %s5649_s3, 2048  ;;  %p6063_p7 = scmp.lt.s32.totalorder %s5649_s3, %s5649_s3 }
  0x37   :  { %258 = vmatpush1.msra.mxu0 %v207_v3  ;;  %371 = vmatpush1.msra.mxu1 %v209_v4  ;;  %v192_v9 = vld [vmem:[#allocation8 + $0x348] sm:$0xff]  ;;  %v194_v10 = vld [vmem:[#allocation8 + $0x358] sm:$0xff]  ;;  %v191_v11 = vld [vmem:[#allocation8 + $0x340] sm:$0xff]  ;;  %p6059_p6 = scmp.ne.s32.totalorder %s5649_s3, %s6058_s11  ;;  %p6064_p8 = scmp.lt.s32.totalorder %s6058_s11, %s6058_s11 }
  0x38   :  { %259 = vmatprep.subr.mxu0 %v200_v5  ;;  %372 = vmatprep.subr.mxu1 %v202_v6  ;;  %v193_v12 = vld [vmem:[#allocation8 + $0x350] sm:$0xff]  ;;  %v184_v13 = vld [vmem:[#allocation8 + $0x308] sm:$0xff]  ;;  %v186_v14 = vld [vmem:[#allocation8 + $0x318] sm:$0xff] }
  0x39   :  { %260 = vmatpush1.msra.mxu0 %v199_v7  ;;  %373 = vmatpush1.msra.mxu1 %v201_v8  ;;  %v183_v15 = vld [vmem:[#allocation8 + $0x300] sm:$0xff]  ;;  %v185_v16 = vld [vmem:[#allocation8 + $0x310] sm:$0xff]  ;;  %v176_v17 = vld [vmem:[#allocation8 + $0x2c8] sm:$0xff]  ;;  %p6065_p9 = por %p6064_p8, %p6063_p7 }
  0x3a   :  { %261 = vmatprep.subr.mxu0 %v192_v9  ;;  %374 = vmatprep.subr.mxu1 %v194_v10  ;;  %v178_v18 = vld [vmem:[#allocation8 + $0x2d8] sm:$0xff]  ;;  %v175_v19 = vld [vmem:[#allocation8 + $0x2c0] sm:$0xff]  ;;  %v177_v20 = vld [vmem:[#allocation8 + $0x2d0] sm:$0xff] }
  0x3b   :  { %262 = vmatpush1.msra.mxu0 %v191_v11  ;;  %375 = vmatpush1.msra.mxu1 %v193_v12  ;;  %v168_v21 = vld [vmem:[#allocation8 + $0x288] sm:$0xff]  ;;  %v170_v22 = vld [vmem:[#allocation8 + $0x298] sm:$0xff]  ;;  %v167_v23 = vld [vmem:[#allocation8 + $0x280] sm:$0xff]  ;;  %p6066_p10 = pnand %p6065_p9, %p6059_p6 }
  0x3c   :  { %263 = vmatprep.subr.mxu0 %v184_v13  ;;  %376 = vmatprep.subr.mxu1 %v186_v14  ;;  %v169_v24 = vld [vmem:[#allocation8 + $0x290] sm:$0xff]  ;;  %v160_v25 = vld [vmem:[#allocation8 + $0x248] sm:$0xff]  ;;  %v162_v26 = vld [vmem:[#allocation8 + $0x258] sm:$0xff] }
  0x3d   :  { %264 = vmatpush1.msra.mxu0 %v183_v15  ;;  %377 = vmatpush1.msra.mxu1 %v185_v16  ;;  %v159_v27 = vld [vmem:[#allocation8 + $0x240] sm:$0xff]  ;;  %v161_v28 = vld [vmem:[#allocation8 + $0x250] sm:$0xff]  ;;  %v152_v29 = vld [vmem:[#allocation8 + $0x208] sm:$0xff] }
  0x3e   :  { %265 = vmatprep.subr.mxu0 %v176_v17  ;;  %378 = vmatprep.subr.mxu1 %v178_v18  ;;  %v154_v30 = vld [vmem:[#allocation8 + $0x218] sm:$0xff]  ;;  %v151_v31 = vld [vmem:[#allocation8 + $0x200] sm:$0xff]  ;;  %v153_v32 = vld [vmem:[#allocation8 + $0x210] sm:$0xff] }
  0x3f   :  { %266 = vmatpush1.msra.mxu0 %v175_v19  ;;  %379 = vmatpush1.msra.mxu1 %v177_v20  ;;  %v144_v33 = vld [vmem:[#allocation8 + $0x1c8] sm:$0xff]  ;;  %v146_v34 = vld [vmem:[#allocation8 + $0x1d8] sm:$0xff]  ;;  %v143_v35 = vld [vmem:[#allocation8 + $0x1c0] sm:$0xff] }
  0x40   :  { %267 = vmatprep.subr.mxu0 %v168_v21  ;;  %380 = vmatprep.subr.mxu1 %v170_v22  ;;  %v145_v36 = vld [vmem:[#allocation8 + $0x1d0] sm:$0xff]  ;;  %v136_v37 = vld [vmem:[#allocation8 + $0x188] sm:$0xff]  ;;  %v138_v38 = vld [vmem:[#allocation8 + $0x198] sm:$0xff] }
  0x41   :  { %268 = vmatpush1.msra.mxu0 %v167_v23  ;;  %381 = vmatpush1.msra.mxu1 %v169_v24  ;;  %v135_v39 = vld [vmem:[#allocation8 + $0x180] sm:$0xff]  ;;  %v137_v40 = vld [vmem:[#allocation8 + $0x190] sm:$0xff]  ;;  %v128_v41 = vld [vmem:[#allocation8 + $0x148] sm:$0xff] }
  0x42   :  { %269 = vmatprep.subr.mxu0 %v160_v25  ;;  %382 = vmatprep.subr.mxu1 %v162_v26  ;;  %v130_v42 = vld [vmem:[#allocation8 + $0x158] sm:$0xff]  ;;  %v127_v43 = vld [vmem:[#allocation8 + $0x140] sm:$0xff]  ;;  %v129_v44 = vld [vmem:[#allocation8 + $0x150] sm:$0xff] }
  0x43   :  { %270 = vmatpush1.msra.mxu0 %v159_v27  ;;  %383 = vmatpush1.msra.mxu1 %v161_v28  ;;  %v120_v45 = vld [vmem:[#allocation8 + $0x108] sm:$0xff]  ;;  %v122_v46 = vld [vmem:[#allocation8 + $0x118] sm:$0xff]  ;;  %v119_v47 = vld [vmem:[#allocation8 + $0x100] sm:$0xff] }
  0x44   :  { %271 = vmatprep.subr.mxu0 %v152_v29  ;;  %384 = vmatprep.subr.mxu1 %v154_v30  ;;  %v121_v48 = vld [vmem:[#allocation8 + $0x110] sm:$0xff]  ;;  %v112_v49 = vld [vmem:[#allocation8 + $0xc8] sm:$0xff]  ;;  %v114_v50 = vld [vmem:[#allocation8 + $0xd8] sm:$0xff] }
  0x45   :  { %272 = vmatpush1.msra.mxu0 %v151_v31  ;;  %385 = vmatpush1.msra.mxu1 %v153_v32  ;;  %v111_v51 = vld [vmem:[#allocation8 + $0xc0] sm:$0xff]  ;;  %v113_v52 = vld [vmem:[#allocation8 + $0xd0] sm:$0xff]  ;;  %v104_v53 = vld [vmem:[#allocation8 + $0x88] sm:$0xff] }
  0x46   :  { %273 = vmatprep.subr.mxu0 %v144_v33  ;;  %386 = vmatprep.subr.mxu1 %v146_v34  ;;  %v106_v54 = vld [vmem:[#allocation8 + $0x98] sm:$0xff]  ;;  %v103_v55 = vld [vmem:[#allocation8 + $0x80] sm:$0xff]  ;;  %v105_v56 = vld [vmem:[#allocation8 + $0x90] sm:$0xff] }
  0x47   :  { %274 = vmatpush1.msra.mxu0 %v143_v35  ;;  %387 = vmatpush1.msra.mxu1 %v145_v36  ;;  %v96_v57 = vld [vmem:[#allocation8 + $0x48] sm:$0xff]  ;;  %v98_v58 = vld [vmem:[#allocation8 + $0x58] sm:$0xff]  ;;  %v95_v59 = vld [vmem:[#allocation8 + $0x40] sm:$0xff] }
  0x48   :  { %275 = vmatprep.subr.mxu0 %v136_v37  ;;  %388 = vmatprep.subr.mxu1 %v138_v38  ;;  %v97_v60 = vld [vmem:[#allocation8 + $0x50] sm:$0xff]  ;;  %v88_v61 = vld [vmem:[#allocation8 + $0x8] sm:$0xff]  ;;  %v90_v62 = vld [vmem:[#allocation8 + $0x18] sm:$0xff] }
  0x49   :  { %276 = vmatpush1.msra.mxu0 %v135_v39  ;;  %389 = vmatpush1.msra.mxu1 %v137_v40  ;;  %v87_v63 = vld [vmem:[#allocation8] sm:$0xff]  ;;  %v89_v1 = vld [vmem:[#allocation8 + $0x10] sm:$0xff]  ;;  %v212_v3 = vld [vmem:[#allocation8 + $0x3e8] sm:$0xff] }
  0x4a   :  { %277 = vmatprep.subr.mxu0 %v128_v41  ;;  %390 = vmatprep.subr.mxu1 %v130_v42  ;;  %v6143_v2 = vld [vmem:[#allocation5] sm:$0xff]  ;;  %v214_v4 = vld [vmem:[#allocation8 + $0x3f8] sm:$0xff]  ;;  %v213_v6 = vld [vmem:[#allocation8 + $0x3f0] sm:$0xff] }
  0x4b   :  { %278 = vmatpush1.msra.mxu0 %v127_v43  ;;  %391 = vmatpush1.msra.mxu1 %v129_v44  ;;  %v211_v5 = vld [vmem:[#allocation8 + $0x3e0] sm:$0xff]  ;;  %v204_v7 = vld [vmem:[#allocation8 + $0x3a8] sm:$0xff]  ;;  %v206_v8 = vld [vmem:[#allocation8 + $0x3b8] sm:$0xff] }
  0x4c   :  { %279 = vmatprep.subr.mxu0 %v120_v45  ;;  %392 = vmatprep.subr.mxu1 %v122_v46  ;;  %v203_v9 = vld [vmem:[#allocation8 + $0x3a0] sm:$0xff]  ;;  %v205_v10 = vld [vmem:[#allocation8 + $0x3b0] sm:$0xff]  ;;  %v6147_v11 = vld [vmem:[#allocation5 + $0x8] sm:$0xff] }
  0x4d   :  { %280 = vmatpush1.msra.mxu0 %v119_v47  ;;  %393 = vmatpush1.msra.mxu1 %v121_v48  ;;  %v196_v12 = vld [vmem:[#allocation8 + $0x368] sm:$0xff]  ;;  %v198_v13 = vld [vmem:[#allocation8 + $0x378] sm:$0xff]  ;;  %v195_v14 = vld [vmem:[#allocation8 + $0x360] sm:$0xff] }
  0x4e   :  { %281 = vmatprep.subr.mxu0 %v112_v49  ;;  %394 = vmatprep.subr.mxu1 %v114_v50  ;;  %v197_v15 = vld [vmem:[#allocation8 + $0x370] sm:$0xff]  ;;  %v188_v16 = vld [vmem:[#allocation8 + $0x328] sm:$0xff]  ;;  %v190_v17 = vld [vmem:[#allocation8 + $0x338] sm:$0xff] }
  0x4f   :  { %282 = vmatpush1.msra.mxu0 %v111_v51  ;;  %395 = vmatpush1.msra.mxu1 %v113_v52  ;;  %v187_v18 = vld [vmem:[#allocation8 + $0x320] sm:$0xff]  ;;  %v189_v19 = vld [vmem:[#allocation8 + $0x330] sm:$0xff]  ;;  %v180_v21 = vld [vmem:[#allocation8 + $0x2e8] sm:$0xff] }
  0x50   :  { %283 = vmatprep.subr.mxu0 %v104_v53  ;;  %396 = vmatprep.subr.mxu1 %v106_v54  ;;  %v6153_v20 = vld [vmem:[#allocation5 + $0x10] sm:$0xff]  ;;  %v182_v22 = vld [vmem:[#allocation8 + $0x2f8] sm:$0xff]  ;;  %v179_v23 = vld [vmem:[#allocation8 + $0x2e0] sm:$0xff] }
  0x51   :  { %284 = vmatpush1.msra.mxu0 %v103_v55  ;;  %397 = vmatpush1.msra.mxu1 %v105_v56  ;;  %v181_v24 = vld [vmem:[#allocation8 + $0x2f0] sm:$0xff]  ;;  %v172_v25 = vld [vmem:[#allocation8 + $0x2a8] sm:$0xff]  ;;  %v174_v26 = vld [vmem:[#allocation8 + $0x2b8] sm:$0xff] }
  0x52   :  { %285 = vmatprep.subr.mxu0 %v96_v57  ;;  %398 = vmatprep.subr.mxu1 %v98_v58  ;;  %v171_v27 = vld [vmem:[#allocation8 + $0x2a0] sm:$0xff]  ;;  %v173_v28 = vld [vmem:[#allocation8 + $0x2b0] sm:$0xff]  ;;  %v6159_v29 = vld [vmem:[#allocation5 + $0x18] sm:$0xff] }
  0x53   :  { %286 = vmatpush1.msra.mxu0 %v95_v59  ;;  %399 = vmatpush1.msra.mxu1 %v97_v60  ;;  %v164_v30 = vld [vmem:[#allocation8 + $0x268] sm:$0xff]  ;;  %v166_v31 = vld [vmem:[#allocation8 + $0x278] sm:$0xff]  ;;  %v163_v32 = vld [vmem:[#allocation8 + $0x260] sm:$0xff] }
  0x54   :  { %287 = vmatprep.subr.mxu0 %v88_v61  ;;  %400 = vmatprep.subr.mxu1 %v90_v62  ;;  %v165_v33 = vld [vmem:[#allocation8 + $0x270] sm:$0xff]  ;;  %v156_v34 = vld [vmem:[#allocation8 + $0x228] sm:$0xff]  ;;  %v158_v35 = vld [vmem:[#allocation8 + $0x238] sm:$0xff] }
  0x55   :  { %288 = vmatpush1.msra.mxu0 %v87_v63  ;;  %401 = vmatpush1.msra.mxu1 %v89_v1  ;;  %v155_v36 = vld [vmem:[#allocation8 + $0x220] sm:$0xff]  ;;  %v157_v37 = vld [vmem:[#allocation8 + $0x230] sm:$0xff]  ;;  %v148_v39 = vld [vmem:[#allocation8 + $0x1e8] sm:$0xff] }
  0x56   :  { %322 = vmatmul.mubr.f32.vlgmr.msra.gmra.mxu0 %v6143_v2  ;;  %435 = vmatmul.mubr.f32.vlgmr.msra.gmra.mxu1 %v6143_v2  ;;  %v6165_v38 = vld [vmem:[#allocation5 + $0x20] sm:$0xff]  ;;  %v150_v40 = vld [vmem:[#allocation8 + $0x1f8] sm:$0xff]  ;;  %v149_v42 = vld [vmem:[#allocation8 + $0x1f0] sm:$0xff] }
  0x57   :  { %483 = vmatprep.subr.mxu0 %v212_v3  ;;  %596 = vmatprep.subr.mxu1 %v214_v4  ;;  %v147_v41 = vld [vmem:[#allocation8 + $0x1e0] sm:$0xff]  ;;  %v140_v43 = vld [vmem:[#allocation8 + $0x1a8] sm:$0xff]  ;;  %v142_v44 = vld [vmem:[#allocation8 + $0x1b8] sm:$0xff] }
  0x58   :  { %484 = vmatpush1.msra.mxu0 %v211_v5  ;;  %597 = vmatpush1.msra.mxu1 %v213_v6  ;;  %v139_v45 = vld [vmem:[#allocation8 + $0x1a0] sm:$0xff]  ;;  %v141_v46 = vld [vmem:[#allocation8 + $0x1b0] sm:$0xff]  ;;  %v6171_v47 = vld [vmem:[#allocation5 + $0x28] sm:$0xff] }
  0x59   :  { %485 = vmatprep.subr.mxu0 %v204_v7  ;;  %598 = vmatprep.subr.mxu1 %v206_v8  ;;  %v132_v48 = vld [vmem:[#allocation8 + $0x168] sm:$0xff]  ;;  %v134_v49 = vld [vmem:[#allocation8 + $0x178] sm:$0xff]  ;;  %v131_v50 = vld [vmem:[#allocation8 + $0x160] sm:$0xff] }
  0x5a   :  { %327 = vmatprep.mubr.f32.mxu0 %v6094_v0  ;;  %440 = vmatprep.mubr.f32.mxu1 %v6094_v0  ;;  %v133_v51 = vld [vmem:[#allocation8 + $0x170] sm:$0xff]  ;;  %v124_v52 = vld [vmem:[#allocation8 + $0x128] sm:$0xff]  ;;  %v126_v53 = vld [vmem:[#allocation8 + $0x138] sm:$0xff] }
  0x5b   :  { %486 = vmatpush1.msra.mxu0 %v203_v9  ;;  %599 = vmatpush1.msra.mxu1 %v205_v10  ;;  %v123_v54 = vld [vmem:[#allocation8 + $0x120] sm:$0xff]  ;;  %v125_v55 = vld [vmem:[#allocation8 + $0x130] sm:$0xff]  ;;  %v116_v57 = vld [vmem:[#allocation8 + $0xe8] sm:$0xff] }
  0x5c   :  { %328 = vmatmul.mubr.f32.gmra.mxu0 %v6147_v11  ;;  %441 = vmatmul.mubr.f32.gmra.mxu1 %v6147_v11  ;;  %v6177_v56 = vld [vmem:[#allocation5 + $0x30] sm:$0xff]  ;;  %v118_v58 = vld [vmem:[#allocation8 + $0xf8] sm:$0xff]  ;;  %v115_v59 = vld [vmem:[#allocation8 + $0xe0] sm:$0xff] }
  0x5d   :  { %487 = vmatprep.subr.mxu0 %v196_v12  ;;  %600 = vmatprep.subr.mxu1 %v198_v13  ;;  %v117_v60 = vld [vmem:[#allocation8 + $0xf0] sm:$0xff]  ;;  %v108_v61 = vld [vmem:[#allocation8 + $0xa8] sm:$0xff]  ;;  %v110_v62 = vld [vmem:[#allocation8 + $0xb8] sm:$0xff] }
  0x5e   :  { %488 = vmatpush1.msra.mxu0 %v195_v14  ;;  %601 = vmatpush1.msra.mxu1 %v197_v15  ;;  %v107_v63 = vld [vmem:[#allocation8 + $0xa0] sm:$0xff]  ;;  %v109_v1 = vld [vmem:[#allocation8 + $0xb0] sm:$0xff]  ;;  %v6183_v3 = vld [vmem:[#allocation5 + $0x38] sm:$0xff] }
  0x5f   :  { %489 = vmatprep.subr.mxu0 %v188_v16  ;;  %602 = vmatprep.subr.mxu1 %v190_v17  ;;  %v100_v4 = vld [vmem:[#allocation8 + $0x68] sm:$0xff]  ;;  %v102_v5 = vld [vmem:[#allocation8 + $0x78] sm:$0xff]  ;;  %v99_v6 = vld [vmem:[#allocation8 + $0x60] sm:$0xff] }
  0x60   :  { %333 = vmatprep.mubr.f32.mxu0 %v6094_v0  ;;  %446 = vmatprep.mubr.f32.mxu1 %v6094_v0  ;;  %v101_v7 = vld [vmem:[#allocation8 + $0x70] sm:$0xff]  ;;  %v92_v8 = vld [vmem:[#allocation8 + $0x28] sm:$0xff]  ;;  %v94_v9 = vld [vmem:[#allocation8 + $0x38] sm:$0xff] }
  0x61   :  { %490 = vmatpush1.msra.mxu0 %v187_v18  ;;  %603 = vmatpush1.msra.mxu1 %v189_v19  ;;  %v91_v10 = vld [vmem:[#allocation8 + $0x20] sm:$0xff]  ;;  %v93_v12 = vld [vmem:[#allocation8 + $0x30] sm:$0xff]  ;;  %v906_v13 = vld [vmem:[#allocation10 + $0x3c8] sm:$0xff] }
  0x62   :  { %334 = vmatmul.mubr.f32.gmra.mxu0 %v6153_v20  ;;  %447 = vmatmul.mubr.f32.gmra.mxu1 %v6153_v20  ;;  %v908_v14 = vld [vmem:[#allocation10 + $0x3d8] sm:$0xff]  ;;  %v905_v15 = vld [vmem:[#allocation10 + $0x3c0] sm:$0xff]  ;;  %v907_v16 = vld [vmem:[#allocation10 + $0x3d0] sm:$0xff] }
  0x63   :  { %491 = vmatprep.subr.mxu0 %v180_v21  ;;  %604 = vmatprep.subr.mxu1 %v182_v22  ;;  %v898_v17 = vld [vmem:[#allocation10 + $0x388] sm:$0xff]  ;;  %v900_v18 = vld [vmem:[#allocation10 + $0x398] sm:$0xff]  ;;  %v897_v19 = vld [vmem:[#allocation10 + $0x380] sm:$0xff] }
  0x64   :  { %492 = vmatpush1.msra.mxu0 %v179_v23  ;;  %605 = vmatpush1.msra.mxu1 %v181_v24  ;;  %v899_v21 = vld [vmem:[#allocation10 + $0x390] sm:$0xff]  ;;  %v890_v22 = vld [vmem:[#allocation10 + $0x348] sm:$0xff]  ;;  %v892_v23 = vld [vmem:[#allocation10 + $0x358] sm:$0xff] }
  0x65   :  { %493 = vmatprep.subr.mxu0 %v172_v25  ;;  %606 = vmatprep.subr.mxu1 %v174_v26  ;;  %v889_v24 = vld [vmem:[#allocation10 + $0x340] sm:$0xff]  ;;  %v891_v25 = vld [vmem:[#allocation10 + $0x350] sm:$0xff]  ;;  %v882_v26 = vld [vmem:[#allocation10 + $0x308] sm:$0xff] }
  0x66   :  { %339 = vmatprep.mubr.f32.mxu0 %v6094_v0  ;;  %452 = vmatprep.mubr.f32.mxu1 %v6094_v0 }
  0x67   :  { %494 = vmatpush1.msra.mxu0 %v171_v27  ;;  %607 = vmatpush1.msra.mxu1 %v173_v28  ;;  %v884_v27 = vld [vmem:[#allocation10 + $0x318] sm:$0xff]  ;;  %v883_v28 = vld [vmem:[#allocation10 + $0x310] sm:$0xff] }
  0x68   :  { %340 = vmatmul.mubr.f32.gmra.mxu0 %v6159_v29  ;;  %453 = vmatmul.mubr.f32.gmra.mxu1 %v6159_v29 }
  0x69   :  { %495 = vmatprep.subr.mxu0 %v164_v30  ;;  %608 = vmatprep.subr.mxu1 %v166_v31  ;;  %v874_v30 = vld [vmem:[#allocation10 + $0x2c8] sm:$0xff]  ;;  %v876_v31 = vld [vmem:[#allocation10 + $0x2d8] sm:$0xff] }
  0x6a   :  { %496 = vmatpush1.msra.mxu0 %v163_v32  ;;  %609 = vmatpush1.msra.mxu1 %v165_v33  ;;  %v873_v32 = vld [vmem:[#allocation10 + $0x2c0] sm:$0xff]  ;;  %v875_v33 = vld [vmem:[#allocation10 + $0x2d0] sm:$0xff] }
  0x6b   :  { %497 = vmatprep.subr.mxu0 %v156_v34  ;;  %610 = vmatprep.subr.mxu1 %v158_v35  ;;  %v866_v34 = vld [vmem:[#allocation10 + $0x288] sm:$0xff]  ;;  %v868_v35 = vld [vmem:[#allocation10 + $0x298] sm:$0xff] }
  0x6c   :  { %345 = vmatprep.mubr.f32.mxu0 %v6094_v0  ;;  %458 = vmatprep.mubr.f32.mxu1 %v6094_v0 }
  0x6d   :  { %498 = vmatpush1.msra.mxu0 %v155_v36  ;;  %611 = vmatpush1.msra.mxu1 %v157_v37  ;;  %v865_v36 = vld [vmem:[#allocation10 + $0x280] sm:$0xff]  ;;  %v867_v37 = vld [vmem:[#allocation10 + $0x290] sm:$0xff] }
  0x6e   :  { %346 = vmatmul.mubr.f32.gmra.mxu0 %v6165_v38  ;;  %459 = vmatmul.mubr.f32.gmra.mxu1 %v6165_v38 }
  0x6f   :  { %499 = vmatprep.subr.mxu0 %v148_v39  ;;  %612 = vmatprep.subr.mxu1 %v150_v40  ;;  %v858_v39 = vld [vmem:[#allocation10 + $0x248] sm:$0xff]  ;;  %v860_v40 = vld [vmem:[#allocation10 + $0x258] sm:$0xff] }
  0x70   :  { %500 = vmatpush1.msra.mxu0 %v147_v41  ;;  %613 = vmatpush1.msra.mxu1 %v149_v42  ;;  %v857_v41 = vld [vmem:[#allocation10 + $0x240] sm:$0xff]  ;;  %v859_v42 = vld [vmem:[#allocation10 + $0x250] sm:$0xff] }
  0x71   :  { %501 = vmatprep.subr.mxu0 %v140_v43  ;;  %614 = vmatprep.subr.mxu1 %v142_v44  ;;  %v850_v43 = vld [vmem:[#allocation10 + $0x208] sm:$0xff]  ;;  %v852_v44 = vld [vmem:[#allocation10 + $0x218] sm:$0xff] }
  0x72   :  { %351 = vmatprep.mubr.f32.mxu0 %v6094_v0  ;;  %464 = vmatprep.mubr.f32.mxu1 %v6094_v0 }
  0x73   :  { %502 = vmatpush1.msra.mxu0 %v139_v45  ;;  %615 = vmatpush1.msra.mxu1 %v141_v46  ;;  %v849_v45 = vld [vmem:[#allocation10 + $0x200] sm:$0xff]  ;;  %v851_v46 = vld [vmem:[#allocation10 + $0x210] sm:$0xff] }
  0x74   :  { %352 = vmatmul.mubr.f32.gmra.mxu0 %v6171_v47  ;;  %465 = vmatmul.mubr.f32.gmra.mxu1 %v6171_v47 }
  0x75   :  { %503 = vmatprep.subr.mxu0 %v132_v48  ;;  %616 = vmatprep.subr.mxu1 %v134_v49  ;;  %v842_v48 = vld [vmem:[#allocation10 + $0x1c8] sm:$0xff]  ;;  %v844_v49 = vld [vmem:[#allocation10 + $0x1d8] sm:$0xff] }
  0x76   :  { %504 = vmatpush1.msra.mxu0 %v131_v50  ;;  %617 = vmatpush1.msra.mxu1 %v133_v51  ;;  %v841_v50 = vld [vmem:[#allocation10 + $0x1c0] sm:$0xff]  ;;  %v843_v51 = vld [vmem:[#allocation10 + $0x1d0] sm:$0xff] }
  0x77   :  { %505 = vmatprep.subr.mxu0 %v124_v52  ;;  %618 = vmatprep.subr.mxu1 %v126_v53  ;;  %v834_v52 = vld [vmem:[#allocation10 + $0x188] sm:$0xff]  ;;  %v836_v53 = vld [vmem:[#allocation10 + $0x198] sm:$0xff] }
  0x78   :  { %357 = vmatprep.mubr.f32.mxu0 %v6094_v0  ;;  %470 = vmatprep.mubr.f32.mxu1 %v6094_v0 }
  0x79   :  { %506 = vmatpush1.msra.mxu0 %v123_v54  ;;  %619 = vmatpush1.msra.mxu1 %v125_v55  ;;  %v833_v54 = vld [vmem:[#allocation10 + $0x180] sm:$0xff]  ;;  %v835_v55 = vld [vmem:[#allocation10 + $0x190] sm:$0xff] }
  0x7a   :  { %358 = vmatmul.mubr.f32.gmra.mxu0 %v6177_v56  ;;  %471 = vmatmul.mubr.f32.gmra.mxu1 %v6177_v56 }
  0x7b   :  { %507 = vmatprep.subr.mxu0 %v116_v57  ;;  %620 = vmatprep.subr.mxu1 %v118_v58  ;;  %v826_v57 = vld [vmem:[#allocation10 + $0x148] sm:$0xff]  ;;  %v828_v58 = vld [vmem:[#allocation10 + $0x158] sm:$0xff] }
  0x7c   :  { %508 = vmatpush1.msra.mxu0 %v115_v59  ;;  %621 = vmatpush1.msra.mxu1 %v117_v60  ;;  %v825_v59 = vld [vmem:[#allocation10 + $0x140] sm:$0xff]  ;;  %v827_v60 = vld [vmem:[#allocation10 + $0x150] sm:$0xff] }
  0x7d   :  { %509 = vmatprep.subr.mxu0 %v108_v61  ;;  %622 = vmatprep.subr.mxu1 %v110_v62  ;;  %v818_v61 = vld [vmem:[#allocation10 + $0x108] sm:$0xff]  ;;  %v820_v62 = vld [vmem:[#allocation10 + $0x118] sm:$0xff] }
  0x7e   :  { %363 = vmatprep.mubr.f32.mxu0 %v6094_v0  ;;  %476 = vmatprep.mubr.f32.mxu1 %v6094_v0 }
  0x7f   :  { %510 = vmatpush1.msra.mxu0 %v107_v63  ;;  %623 = vmatpush1.msra.mxu1 %v109_v1  ;;  %v817_v63 = vld [vmem:[#allocation10 + $0x100] sm:$0xff]  ;;  %v819_v1 = vld [vmem:[#allocation10 + $0x110] sm:$0xff] }
  0x80   :  { %364 = vmatmul.mubr.f32.gmra.mxu0 %v6183_v3  ;;  %477 = vmatmul.mubr.f32.gmra.mxu1 %v6183_v3 }
  0x81   :  { %511 = vmatprep.subr.mxu0 %v100_v4  ;;  %624 = vmatprep.subr.mxu1 %v102_v5  ;;  %v810_v4 = vld [vmem:[#allocation10 + $0xc8] sm:$0xff]  ;;  %v812_v5 = vld [vmem:[#allocation10 + $0xd8] sm:$0xff] }
  0x82   :  { %512 = vmatpush1.msra.mxu0 %v99_v6  ;;  %625 = vmatpush1.msra.mxu1 %v101_v7  ;;  %v809_v6 = vld [vmem:[#allocation10 + $0xc0] sm:$0xff]  ;;  %v811_v7 = vld [vmem:[#allocation10 + $0xd0] sm:$0xff] }
  0x83   :  { %513 = vmatprep.subr.mxu0 %v92_v8  ;;  %626 = vmatprep.subr.mxu1 %v94_v9  ;;  %v802_v8 = vld [vmem:[#allocation10 + $0x88] sm:$0xff]  ;;  %v804_v9 = vld [vmem:[#allocation10 + $0x98] sm:$0xff] }
  0x84   :  { %514 = vmatpush1.msra.mxu0 %v91_v10  ;;  %547 = vmatprep.mubr.f32.mxu0 %v6094_v0  ;;  %v801_v10 = vld [vmem:[#allocation10 + $0x80] sm:$0xff] }
  0x85   :  { %627 = vmatpush1.msra.mxu1 %v93_v12  ;;  %660 = vmatprep.mubr.f32.mxu1 %v6094_v0  ;;  %v803_v12 = vld [vmem:[#allocation10 + $0x90] sm:$0xff] }
  0x86   :  { %548 = vmatmul.mubr.f32.vlgmr.msra.gmra.mxu0 %v6143_v2  ;;  %661 = vmatmul.mubr.f32.vlgmr.msra.gmra.mxu1 %v6143_v2  ;;  %v881_v2 = vld [vmem:[#allocation10 + $0x300] sm:$0xff] }
  0x87   :  { %1041 = vmatprep.subr.mxu0 %v906_v13  ;;  %1112 = vmatprep.subr.mxu1 %v908_v14  ;;  %v794_v13 = vld [vmem:[#allocation10 + $0x48] sm:$0xff]  ;;  %v796_v14 = vld [vmem:[#allocation10 + $0x58] sm:$0xff] }
  0x88   :  { %1042 = vmatpush1.msra.mxu0 %v905_v15  ;;  %1113 = vmatpush1.msra.mxu1 %v907_v16  ;;  %v793_v15 = vld [vmem:[#allocation10 + $0x40] sm:$0xff]  ;;  %v795_v16 = vld [vmem:[#allocation10 + $0x50] sm:$0xff] }
  0x89   :  { %1043 = vmatprep.subr.mxu0 %v898_v17  ;;  %1114 = vmatprep.subr.mxu1 %v900_v18  ;;  %v786_v17 = vld [vmem:[#allocation10 + $0x8] sm:$0xff]  ;;  %v788_v18 = vld [vmem:[#allocation10 + $0x18] sm:$0xff] }
  0x8a   :  { %1044 = vmatpush1.msra.mxu0 %v897_v19  ;;  %1115 = vmatpush1.msra.mxu1 %v899_v21  ;;  %v785_v19 = vld [vmem:[#allocation10] sm:$0xff]  ;;  %v787_v21 = vld [vmem:[#allocation10 + $0x10] sm:$0xff] }
  0x8b   :  { %1045 = vmatprep.subr.mxu0 %v890_v22  ;;  %1116 = vmatprep.subr.mxu1 %v892_v23  ;;  %v1034_v22 = vld [vmem:[#allocation10 + $0x7c8] sm:$0xff]  ;;  %v1036_v23 = vld [vmem:[#allocation10 + $0x7d8] sm:$0xff] }
  0x8c   :  { %1046 = vmatpush1.msra.mxu0 %v889_v24  ;;  %1117 = vmatpush1.msra.mxu1 %v891_v25  ;;  %v1033_v24 = vld [vmem:[#allocation10 + $0x7c0] sm:$0xff]  ;;  %v1035_v25 = vld [vmem:[#allocation10 + $0x7d0] sm:$0xff] }
  0x8d   :  { %1047 = vmatprep.subr.mxu0 %v882_v26  ;;  %1118 = vmatprep.subr.mxu1 %v884_v27  ;;  %v1026_v26 = vld [vmem:[#allocation10 + $0x788] sm:$0xff]  ;;  %v1028_v27 = vld [vmem:[#allocation10 + $0x798] sm:$0xff] }
  0x8e   :  { %1048 = vmatpush1.msra.mxu0 %v881_v2  ;;  %1119 = vmatpush1.msra.mxu1 %v883_v28  ;;  %v1025_v2 = vld [vmem:[#allocation10 + $0x780] sm:$0xff]  ;;  %v1027_v28 = vld [vmem:[#allocation10 + $0x790] sm:$0xff] }
  0x8f   :  { %1049 = vmatprep.subr.mxu0 %v874_v30  ;;  %1120 = vmatprep.subr.mxu1 %v876_v31  ;;  %v1018_v30 = vld [vmem:[#allocation10 + $0x748] sm:$0xff]  ;;  %v1020_v31 = vld [vmem:[#allocation10 + $0x758] sm:$0xff] }
  0x90   :  { %1050 = vmatpush1.msra.mxu0 %v873_v32  ;;  %1121 = vmatpush1.msra.mxu1 %v875_v33  ;;  %v1017_v32 = vld [vmem:[#allocation10 + $0x740] sm:$0xff]  ;;  %v1019_v33 = vld [vmem:[#allocation10 + $0x750] sm:$0xff] }
  0x91   :  { %1051 = vmatprep.subr.mxu0 %v866_v34  ;;  %1122 = vmatprep.subr.mxu1 %v868_v35  ;;  %v1010_v34 = vld [vmem:[#allocation10 + $0x708] sm:$0xff]  ;;  %v1012_v35 = vld [vmem:[#allocation10 + $0x718] sm:$0xff] }
  0x92   :  { %1052 = vmatpush1.msra.mxu0 %v865_v36  ;;  %1123 = vmatpush1.msra.mxu1 %v867_v37  ;;  %v1009_v36 = vld [vmem:[#allocation10 + $0x700] sm:$0xff]  ;;  %v1011_v37 = vld [vmem:[#allocation10 + $0x710] sm:$0xff] }
  0x93   :  { %1053 = vmatprep.subr.mxu0 %v858_v39  ;;  %1124 = vmatprep.subr.mxu1 %v860_v40  ;;  %v1002_v39 = vld [vmem:[#allocation10 + $0x6c8] sm:$0xff]  ;;  %v1001_v40 = vld [vmem:[#allocation10 + $0x6c0] sm:$0xff] }
  0x94   :  { %1054 = vmatpush1.msra.mxu0 %v857_v41  ;;  %1125 = vmatpush1.msra.mxu1 %v859_v42  ;;  %v1003_v41 = vld [vmem:[#allocation10 + $0x6d0] sm:$0xff]  ;;  %v994_v42 = vld [vmem:[#allocation10 + $0x688] sm:$0xff] }
  0x95   :  { %1055 = vmatprep.subr.mxu0 %v850_v43  ;;  %1126 = vmatprep.subr.mxu1 %v852_v44  ;;  %v996_v43 = vld [vmem:[#allocation10 + $0x698] sm:$0xff]  ;;  %v993_v44 = vld [vmem:[#allocation10 + $0x680] sm:$0xff] }
  0x96   :  { %1056 = vmatpush1.msra.mxu0 %v849_v45  ;;  %1127 = vmatpush1.msra.mxu1 %v851_v46  ;;  %v995_v45 = vld [vmem:[#allocation10 + $0x690] sm:$0xff]  ;;  %v986_v46 = vld [vmem:[#allocation10 + $0x648] sm:$0xff] }
  0x97   :  { %1057 = vmatprep.subr.mxu0 %v842_v48  ;;  %1128 = vmatprep.subr.mxu1 %v844_v49  ;;  %v985_v48 = vld [vmem:[#allocation10 + $0x640] sm:$0xff]  ;;  %v987_v49 = vld [vmem:[#allocation10 + $0x650] sm:$0xff] }
  0x98   :  { %1058 = vmatpush1.msra.mxu0 %v841_v50  ;;  %1129 = vmatpush1.msra.mxu1 %v843_v51  ;;  %v978_v50 = vld [vmem:[#allocation10 + $0x608] sm:$0xff]  ;;  %v980_v51 = vld [vmem:[#allocation10 + $0x618] sm:$0xff] }
  0x99   :  { %1059 = vmatprep.subr.mxu0 %v834_v52  ;;  %1130 = vmatprep.subr.mxu1 %v836_v53  ;;  %v977_v52 = vld [vmem:[#allocation10 + $0x600] sm:$0xff]  ;;  %v979_v53 = vld [vmem:[#allocation10 + $0x610] sm:$0xff] }
  0x9a   :  { %1060 = vmatpush1.msra.mxu0 %v833_v54  ;;  %1131 = vmatpush1.msra.mxu1 %v835_v55  ;;  %v970_v54 = vld [vmem:[#allocation10 + $0x5c8] sm:$0xff]  ;;  %v969_v55 = vld [vmem:[#allocation10 + $0x5c0] sm:$0xff] }
  0x9b   :  { %1061 = vmatprep.subr.mxu0 %v826_v57  ;;  %1132 = vmatprep.subr.mxu1 %v828_v58  ;;  %v971_v57 = vld [vmem:[#allocation10 + $0x5d0] sm:$0xff]  ;;  %v962_v58 = vld [vmem:[#allocation10 + $0x588] sm:$0xff] }
  0x9c   :  { %1062 = vmatpush1.msra.mxu0 %v825_v59  ;;  %1133 = vmatpush1.msra.mxu1 %v827_v60  ;;  %v964_v59 = vld [vmem:[#allocation10 + $0x598] sm:$0xff]  ;;  %v961_v60 = vld [vmem:[#allocation10 + $0x580] sm:$0xff] }
  0x9d   :  { %1063 = vmatprep.subr.mxu0 %v818_v61  ;;  %1134 = vmatprep.subr.mxu1 %v820_v62  ;;  %v963_v61 = vld [vmem:[#allocation10 + $0x590] sm:$0xff]  ;;  %v954_v62 = vld [vmem:[#allocation10 + $0x548] sm:$0xff] }
  0x9e   :  { %1064 = vmatpush1.msra.mxu0 %v817_v63  ;;  %1135 = vmatpush1.msra.mxu1 %v819_v1  ;;  %v953_v63 = vld [vmem:[#allocation10 + $0x540] sm:$0xff]  ;;  %v955_v1 = vld [vmem:[#allocation10 + $0x550] sm:$0xff] }
  0x9f   :  { %1065 = vmatprep.subr.mxu0 %v810_v4  ;;  %1136 = vmatprep.subr.mxu1 %v812_v5  ;;  %v946_v4 = vld [vmem:[#allocation10 + $0x508] sm:$0xff]  ;;  %v948_v5 = vld [vmem:[#allocation10 + $0x518] sm:$0xff] }
  0xa0   :  { %1066 = vmatpush1.msra.mxu0 %v809_v6  ;;  %1137 = vmatpush1.msra.mxu1 %v811_v7  ;;  %v945_v6 = vld [vmem:[#allocation10 + $0x500] sm:$0xff]  ;;  %v947_v7 = vld [vmem:[#allocation10 + $0x510] sm:$0xff] }
  0xa1   :  { %1067 = vmatprep.subr.mxu0 %v802_v8  ;;  %1138 = vmatprep.subr.mxu1 %v804_v9  ;;  %v938_v8 = vld [vmem:[#allocation10 + $0x4c8] sm:$0xff]  ;;  %v937_v9 = vld [vmem:[#allocation10 + $0x4c0] sm:$0xff] }
  0xa2   :  { %1068 = vmatpush1.msra.mxu0 %v801_v10  ;;  %1139 = vmatpush1.msra.mxu1 %v803_v12  ;;  %v939_v10 = vld [vmem:[#allocation10 + $0x4d0] sm:$0xff]  ;;  %v930_v12 = vld [vmem:[#allocation10 + $0x488] sm:$0xff] }
  0xa3   :  { %1069 = vmatprep.subr.mxu0 %v794_v13  ;;  %1140 = vmatprep.subr.mxu1 %v796_v14  ;;  %v932_v13 = vld [vmem:[#allocation10 + $0x498] sm:$0xff]  ;;  %v929_v14 = vld [vmem:[#allocation10 + $0x480] sm:$0xff] }
  0xa4   :  { %1070 = vmatpush1.msra.mxu0 %v793_v15  ;;  %1141 = vmatpush1.msra.mxu1 %v795_v16  ;;  %v931_v15 = vld [vmem:[#allocation10 + $0x490] sm:$0xff]  ;;  %v922_v16 = vld [vmem:[#allocation10 + $0x448] sm:$0xff] }
  0xa5   :  { %1071 = vmatprep.subr.mxu0 %v786_v17  ;;  %1142 = vmatprep.subr.mxu1 %v788_v18  ;;  %v921_v17 = vld [vmem:[#allocation10 + $0x440] sm:$0xff]  ;;  %v923_v18 = vld [vmem:[#allocation10 + $0x450] sm:$0xff] }
  0xa6   :  { %1072 = vmatpush1.msra.mxu0 %v785_v19  ;;  %1143 = vmatpush1.msra.mxu1 %v787_v21  ;;  %v914_v19 = vld [vmem:[#allocation10 + $0x408] sm:$0xff]  ;;  %v916_v21 = vld [vmem:[#allocation10 + $0x418] sm:$0xff] }
  0xa7   :  { %1073 = vmatprep.subr.mxu0 %v1034_v22  ;;  %1144 = vmatprep.subr.mxu1 %v1036_v23  ;;  %v913_v22 = vld [vmem:[#allocation10 + $0x400] sm:$0xff]  ;;  %v915_v23 = vld [vmem:[#allocation10 + $0x410] sm:$0xff] }
  0xa8   :  { %1074 = vmatpush2.msra.mxu0 %v1033_v24  ;;  %1145 = vmatpush2.msra.mxu1 %v1035_v25  ;;  %v910_v24 = vld [vmem:[#allocation10 + $0x3e8] sm:$0xff]  ;;  %v912_v25 = vld [vmem:[#allocation10 + $0x3f8] sm:$0xff] }
  0xa9   :  { %553 = vmatprep.mubr.f32.mxu0 %v6094_v0  ;;  %666 = vmatprep.mubr.f32.mxu1 %v6094_v0 }
  0xaa   :  { %1075 = vmatprep.subr.mxu0 %v1026_v26  ;;  %1146 = vmatprep.subr.mxu1 %v1028_v27  ;;  %v911_v26 = vld [vmem:[#allocation10 + $0x3f0] sm:$0xff]  ;;  %v902_v27 = vld [vmem:[#allocation10 + $0x3a8] sm:$0xff] }
  0xab   :  { %554 = vmatmul.mubr.f32.gmra.mxu0 %v6147_v11  ;;  %667 = vmatmul.mubr.f32.gmra.mxu1 %v6147_v11  ;;  %v1004_v11 = vld [vmem:[#allocation10 + $0x6d8] sm:$0xff] }
  0xac   :  { %1076 = vmatpush2.msra.mxu0 %v1025_v2  ;;  %1147 = vmatpush2.msra.mxu1 %v1027_v28  ;;  %v904_v2 = vld [vmem:[#allocation10 + $0x3b8] sm:$0xff]  ;;  %v901_v28 = vld [vmem:[#allocation10 + $0x3a0] sm:$0xff] }
  0xad   :  { %1077 = vmatprep.subr.mxu0 %v1018_v30  ;;  %1148 = vmatprep.subr.mxu1 %v1020_v31  ;;  %v903_v30 = vld [vmem:[#allocation10 + $0x3b0] sm:$0xff]  ;;  %v894_v31 = vld [vmem:[#allocation10 + $0x368] sm:$0xff] }
  0xae   :  { %1078 = vmatpush2.msra.mxu0 %v1017_v32  ;;  %1149 = vmatpush2.msra.mxu1 %v1019_v33  ;;  %v896_v32 = vld [vmem:[#allocation10 + $0x378] sm:$0xff]  ;;  %v893_v33 = vld [vmem:[#allocation10 + $0x360] sm:$0xff] }
  0xaf   :  { %559 = vmatprep.mubr.f32.mxu0 %v6094_v0  ;;  %672 = vmatprep.mubr.f32.mxu1 %v6094_v0 }
  0xb0   :  { %1079 = vmatprep.subr.mxu0 %v1010_v34  ;;  %1150 = vmatprep.subr.mxu1 %v1012_v35  ;;  %v895_v34 = vld [vmem:[#allocation10 + $0x370] sm:$0xff]  ;;  %v886_v35 = vld [vmem:[#allocation10 + $0x328] sm:$0xff] }
  0xb1   :  { %560 = vmatmul.mubr.f32.gmra.mxu0 %v6153_v20  ;;  %673 = vmatmul.mubr.f32.gmra.mxu1 %v6153_v20  ;;  %v988_v20 = vld [vmem:[#allocation10 + $0x658] sm:$0xff] }
  0xb2   :  { %1080 = vmatpush2.msra.mxu0 %v1009_v36  ;;  %1151 = vmatpush2.msra.mxu1 %v1011_v37  ;;  %v888_v36 = vld [vmem:[#allocation10 + $0x338] sm:$0xff]  ;;  %v885_v37 = vld [vmem:[#allocation10 + $0x320] sm:$0xff] }
  0xb3   :  { %1081 = vmatprep.subr.mxu0 %v1002_v39  ;;  %1152 = vmatprep.subr.mxu1 %v1004_v11  ;;  %v887_v39 = vld [vmem:[#allocation10 + $0x330] sm:$0xff]  ;;  %v878_v11 = vld [vmem:[#allocation10 + $0x2e8] sm:$0xff] }
  0xb4   :  { %1082 = vmatpush2.msra.mxu0 %v1001_v40  ;;  %1153 = vmatpush2.msra.mxu1 %v1003_v41  ;;  %v880_v40 = vld [vmem:[#allocation10 + $0x2f8] sm:$0xff]  ;;  %v877_v41 = vld [vmem:[#allocation10 + $0x2e0] sm:$0xff] }
  0xb5   :  { %565 = vmatprep.mubr.f32.mxu0 %v6094_v0  ;;  %678 = vmatprep.mubr.f32.mxu1 %v6094_v0 }
  0xb6   :  { %1083 = vmatprep.subr.mxu0 %v994_v42  ;;  %1154 = vmatprep.subr.mxu1 %v996_v43  ;;  %v879_v42 = vld [vmem:[#allocation10 + $0x2f0] sm:$0xff]  ;;  %v870_v43 = vld [vmem:[#allocation10 + $0x2a8] sm:$0xff] }
  0xb7   :  { %566 = vmatmul.mubr.f32.gmra.mxu0 %v6159_v29  ;;  %679 = vmatmul.mubr.f32.gmra.mxu1 %v6159_v29  ;;  %v972_v29 = vld [vmem:[#allocation10 + $0x5d8] sm:$0xff] }
  0xb8   :  { %1084 = vmatpush2.msra.mxu0 %v993_v44  ;;  %1155 = vmatpush2.msra.mxu1 %v995_v45  ;;  %v872_v44 = vld [vmem:[#allocation10 + $0x2b8] sm:$0xff]  ;;  %v869_v45 = vld [vmem:[#allocation10 + $0x2a0] sm:$0xff] }
  0xb9   :  { %1085 = vmatprep.subr.mxu0 %v986_v46  ;;  %1156 = vmatprep.subr.mxu1 %v988_v20  ;;  %v871_v46 = vld [vmem:[#allocation10 + $0x2b0] sm:$0xff]  ;;  %v862_v20 = vld [vmem:[#allocation10 + $0x268] sm:$0xff] }
  0xba   :  { %1086 = vmatpush2.msra.mxu0 %v985_v48  ;;  %1157 = vmatpush2.msra.mxu1 %v987_v49  ;;  %v864_v48 = vld [vmem:[#allocation10 + $0x278] sm:$0xff]  ;;  %v861_v49 = vld [vmem:[#allocation10 + $0x260] sm:$0xff] }
  0xbb   :  { %571 = vmatprep.mubr.f32.mxu0 %v6094_v0  ;;  %684 = vmatprep.mubr.f32.mxu1 %v6094_v0 }
  0xbc   :  { %1087 = vmatprep.subr.mxu0 %v978_v50  ;;  %1158 = vmatprep.subr.mxu1 %v980_v51  ;;  %v863_v50 = vld [vmem:[#allocation10 + $0x270] sm:$0xff]  ;;  %v854_v51 = vld [vmem:[#allocation10 + $0x228] sm:$0xff] }
  0xbd   :  { %572 = vmatmul.mubr.f32.gmra.mxu0 %v6165_v38  ;;  %685 = vmatmul.mubr.f32.gmra.mxu1 %v6165_v38  ;;  %v956_v38 = vld [vmem:[#allocation10 + $0x558] sm:$0xff] }
  0xbe   :  { %1088 = vmatpush2.msra.mxu0 %v977_v52  ;;  %1159 = vmatpush2.msra.mxu1 %v979_v53  ;;  %v856_v52 = vld [vmem:[#allocation10 + $0x238] sm:$0xff]  ;;  %v853_v53 = vld [vmem:[#allocation10 + $0x220] sm:$0xff] }
  0xbf   :  { %1089 = vmatprep.subr.mxu0 %v970_v54  ;;  %1160 = vmatprep.subr.mxu1 %v972_v29  ;;  %v855_v54 = vld [vmem:[#allocation10 + $0x230] sm:$0xff]  ;;  %v846_v29 = vld [vmem:[#allocation10 + $0x1e8] sm:$0xff] }
  0xc0   :  { %1090 = vmatpush2.msra.mxu0 %v969_v55  ;;  %1161 = vmatpush2.msra.mxu1 %v971_v57  ;;  %v848_v55 = vld [vmem:[#allocation10 + $0x1f8] sm:$0xff]  ;;  %v845_v57 = vld [vmem:[#allocation10 + $0x1e0] sm:$0xff] }
  0xc1   :  { %577 = vmatprep.mubr.f32.mxu0 %v6094_v0  ;;  %690 = vmatprep.mubr.f32.mxu1 %v6094_v0 }
  0xc2   :  { %1091 = vmatprep.subr.mxu0 %v962_v58  ;;  %1162 = vmatprep.subr.mxu1 %v964_v59  ;;  %v847_v58 = vld [vmem:[#allocation10 + $0x1f0] sm:$0xff]  ;;  %v838_v59 = vld [vmem:[#allocation10 + $0x1a8] sm:$0xff] }
  0xc3   :  { %578 = vmatmul.mubr.f32.gmra.mxu0 %v6171_v47  ;;  %691 = vmatmul.mubr.f32.gmra.mxu1 %v6171_v47  ;;  %v940_v47 = vld [vmem:[#allocation10 + $0x4d8] sm:$0xff] }
  0xc4   :  { %1092 = vmatpush2.msra.mxu0 %v961_v60  ;;  %1163 = vmatpush2.msra.mxu1 %v963_v61  ;;  %v840_v60 = vld [vmem:[#allocation10 + $0x1b8] sm:$0xff]  ;;  %v837_v61 = vld [vmem:[#allocation10 + $0x1a0] sm:$0xff] }
  0xc5   :  { %1093 = vmatprep.subr.mxu0 %v954_v62  ;;  %1164 = vmatprep.subr.mxu1 %v956_v38  ;;  %v839_v62 = vld [vmem:[#allocation10 + $0x1b0] sm:$0xff]  ;;  %v830_v38 = vld [vmem:[#allocation10 + $0x168] sm:$0xff] }
  0xc6   :  { %1094 = vmatpush2.msra.mxu0 %v953_v63  ;;  %1165 = vmatpush2.msra.mxu1 %v955_v1  ;;  %v832_v63 = vld [vmem:[#allocation10 + $0x178] sm:$0xff]  ;;  %v829_v1 = vld [vmem:[#allocation10 + $0x160] sm:$0xff] }
  0xc7   :  { %583 = vmatprep.mubr.f32.mxu0 %v6094_v0  ;;  %696 = vmatprep.mubr.f32.mxu1 %v6094_v0 }
  0xc8   :  { %1095 = vmatprep.subr.mxu0 %v946_v4  ;;  %1166 = vmatprep.subr.mxu1 %v948_v5  ;;  %v831_v4 = vld [vmem:[#allocation10 + $0x170] sm:$0xff]  ;;  %v822_v5 = vld [vmem:[#allocation10 + $0x128] sm:$0xff] }
  0xc9   :  { %584 = vmatmul.mubr.f32.gmra.mxu0 %v6177_v56  ;;  %697 = vmatmul.mubr.f32.gmra.mxu1 %v6177_v56  ;;  %v924_v56 = vld [vmem:[#allocation10 + $0x458] sm:$0xff] }
  0xca   :  { %1096 = vmatpush2.msra.mxu0 %v945_v6  ;;  %1167 = vmatpush2.msra.mxu1 %v947_v7  ;;  %v824_v6 = vld [vmem:[#allocation10 + $0x138] sm:$0xff]  ;;  %v821_v7 = vld [vmem:[#allocation10 + $0x120] sm:$0xff] }
  0xcb   :  { %1097 = vmatprep.subr.mxu0 %v938_v8  ;;  %1168 = vmatprep.subr.mxu1 %v940_v47  ;;  %v823_v8 = vld [vmem:[#allocation10 + $0x130] sm:$0xff]  ;;  %v814_v47 = vld [vmem:[#allocation10 + $0xe8] sm:$0xff] }
  0xcc   :  { %1098 = vmatpush2.msra.mxu0 %v937_v9  ;;  %1169 = vmatpush2.msra.mxu1 %v939_v10  ;;  %v816_v9 = vld [vmem:[#allocation10 + $0xf8] sm:$0xff]  ;;  %v813_v10 = vld [vmem:[#allocation10 + $0xe0] sm:$0xff] }
  0xcd   :  { %589 = vmatprep.mubr.f32.mxu0 %v6094_v0  ;;  %702 = vmatprep.mubr.f32.mxu1 %v6094_v0 }
  0xce   :  { %1099 = vmatprep.subr.mxu0 %v930_v12  ;;  %1170 = vmatprep.subr.mxu1 %v932_v13  ;;  %v815_v12 = vld [vmem:[#allocation10 + $0xf0] sm:$0xff]  ;;  %v806_v13 = vld [vmem:[#allocation10 + $0xa8] sm:$0xff] }
  0xcf   :  { %590 = vmatmul.mubr.f32.gmra.mxu0 %v6183_v3  ;;  %703 = vmatmul.mubr.f32.gmra.mxu1 %v6183_v3  ;;  %v909_v3 = vld [vmem:[#allocation10 + $0x3e0] sm:$0xff] }
  0xd0   :  { %1100 = vmatpush2.msra.mxu0 %v929_v14  ;;  %1171 = vmatpush2.msra.mxu1 %v931_v15  ;;  %v808_v14 = vld [vmem:[#allocation10 + $0xb8] sm:$0xff]  ;;  %v805_v15 = vld [vmem:[#allocation10 + $0xa0] sm:$0xff] }
  0xd1   :  { %1101 = vmatprep.subr.mxu0 %v922_v16  ;;  %1172 = vmatprep.subr.mxu1 %v924_v56  ;;  %v807_v16 = vld [vmem:[#allocation10 + $0xb0] sm:$0xff]  ;;  %v798_v56 = vld [vmem:[#allocation10 + $0x68] sm:$0xff] }
  0xd2   :  { %1102 = vmatpush2.msra.mxu0 %v921_v17  ;;  %1173 = vmatpush2.msra.mxu1 %v923_v18  ;;  %v800_v17 = vld [vmem:[#allocation10 + $0x78] sm:$0xff]  ;;  %v797_v18 = vld [vmem:[#allocation10 + $0x60] sm:$0xff] }
  0xd3   :  { %1103 = vmatprep.subr.mxu0 %v914_v19  ;;  %1174 = vmatprep.subr.mxu1 %v916_v21  ;;  %v799_v19 = vld [vmem:[#allocation10 + $0x70] sm:$0xff]  ;;  %v790_v21 = vld [vmem:[#allocation10 + $0x28] sm:$0xff] }
  0xd4   :  { %1104 = vmatpush2.msra.mxu0 %v913_v22  ;;  %1105 = vmatprep.mubr.f32.mxu0 %v6094_v0  ;;  %v792_v22 = vld [vmem:[#allocation10 + $0x38] sm:$0xff] }
  0xd5   :  { %1175 = vmatpush2.msra.mxu1 %v915_v23  ;;  %1176 = vmatprep.mubr.f32.mxu1 %v6094_v0  ;;  %v789_v23 = vld [vmem:[#allocation10 + $0x20] sm:$0xff] }
  0xd6   :  { %1106 = vmatmul.mubr.f32.vlgmr.msra.gmra.mxu0 %v6094_v0  ;;  %1177 = vmatmul.mubr.f32.vlgmr.msra.gmra.mxu1 %v6094_v0 }
  0xd7   :  { %1183 = vmatprep.subr.mxu0 %v910_v24  ;;  %1254 = vmatprep.subr.mxu1 %v912_v25  ;;  %v791_v24 = vld [vmem:[#allocation10 + $0x30] sm:$0xff]  ;;  %v1038_v25 = vld [vmem:[#allocation10 + $0x7e8] sm:$0xff] }
  0xd8   :  { %1184 = vmatpush1.msra.mxu0 %v909_v3  ;;  %1255 = vmatpush1.msra.mxu1 %v911_v26  ;;  %v1040_v3 = vld [vmem:[#allocation10 + $0x7f8] sm:$0xff]  ;;  %v1037_v26 = vld [vmem:[#allocation10 + $0x7e0] sm:$0xff] }
  0xd9   :  { %1185 = vmatprep.subr.mxu0 %v902_v27  ;;  %1256 = vmatprep.subr.mxu1 %v904_v2  ;;  %v1039_v27 = vld [vmem:[#allocation10 + $0x7f0] sm:$0xff]  ;;  %v1030_v2 = vld [vmem:[#allocation10 + $0x7a8] sm:$0xff] }
  0xda   :  { %1186 = vmatpush1.msra.mxu0 %v901_v28  ;;  %1257 = vmatpush1.msra.mxu1 %v903_v30  ;;  %v1032_v28 = vld [vmem:[#allocation10 + $0x7b8] sm:$0xff]  ;;  %v1029_v30 = vld [vmem:[#allocation10 + $0x7a0] sm:$0xff] }
  0xdb   :  { %1187 = vmatprep.subr.mxu0 %v894_v31  ;;  %1258 = vmatprep.subr.mxu1 %v896_v32  ;;  %v1031_v31 = vld [vmem:[#allocation10 + $0x7b0] sm:$0xff]  ;;  %v1022_v32 = vld [vmem:[#allocation10 + $0x768] sm:$0xff] }
  0xdc   :  { %1188 = vmatpush1.msra.mxu0 %v893_v33  ;;  %1259 = vmatpush1.msra.mxu1 %v895_v34  ;;  %v1024_v33 = vld [vmem:[#allocation10 + $0x778] sm:$0xff]  ;;  %v1021_v34 = vld [vmem:[#allocation10 + $0x760] sm:$0xff] }
  0xdd   :  { %1189 = vmatprep.subr.mxu0 %v886_v35  ;;  %1260 = vmatprep.subr.mxu1 %v888_v36  ;;  %v1023_v35 = vld [vmem:[#allocation10 + $0x770] sm:$0xff]  ;;  %v1014_v36 = vld [vmem:[#allocation10 + $0x728] sm:$0xff] }
  0xde   :  { %1190 = vmatpush1.msra.mxu0 %v885_v37  ;;  %1261 = vmatpush1.msra.mxu1 %v887_v39  ;;  %v1016_v37 = vld [vmem:[#allocation10 + $0x738] sm:$0xff]  ;;  %v1013_v39 = vld [vmem:[#allocation10 + $0x720] sm:$0xff] }
  0xdf   :  { %1191 = vmatprep.subr.mxu0 %v878_v11  ;;  %1262 = vmatprep.subr.mxu1 %v880_v40  ;;  %v1015_v11 = vld [vmem:[#allocation10 + $0x730] sm:$0xff]  ;;  %v1006_v40 = vld [vmem:[#allocation10 + $0x6e8] sm:$0xff] }
  0xe0   :  { %1192 = vmatpush1.msra.mxu0 %v877_v41  ;;  %1263 = vmatpush1.msra.mxu1 %v879_v42  ;;  %v1008_v41 = vld [vmem:[#allocation10 + $0x6f8] sm:$0xff]  ;;  %v1005_v42 = vld [vmem:[#allocation10 + $0x6e0] sm:$0xff] }
  0xe1   :  { %1193 = vmatprep.subr.mxu0 %v870_v43  ;;  %1264 = vmatprep.subr.mxu1 %v872_v44  ;;  %v1007_v43 = vld [vmem:[#allocation10 + $0x6f0] sm:$0xff]  ;;  %v998_v44 = vld [vmem:[#allocation10 + $0x6a8] sm:$0xff] }
  0xe2   :  { %1194 = vmatpush1.msra.mxu0 %v869_v45  ;;  %1265 = vmatpush1.msra.mxu1 %v871_v46  ;;  %v1000_v45 = vld [vmem:[#allocation10 + $0x6b8] sm:$0xff]  ;;  %v997_v46 = vld [vmem:[#allocation10 + $0x6a0] sm:$0xff] }
  0xe3   :  { %1195 = vmatprep.subr.mxu0 %v862_v20  ;;  %1266 = vmatprep.subr.mxu1 %v864_v48  ;;  %v999_v20 = vld [vmem:[#allocation10 + $0x6b0] sm:$0xff]  ;;  %v990_v48 = vld [vmem:[#allocation10 + $0x668] sm:$0xff] }
  0xe4   :  { %1196 = vmatpush1.msra.mxu0 %v861_v49  ;;  %1267 = vmatpush1.msra.mxu1 %v863_v50  ;;  %v992_v49 = vld [vmem:[#allocation10 + $0x678] sm:$0xff]  ;;  %v989_v50 = vld [vmem:[#allocation10 + $0x660] sm:$0xff] }
  0xe5   :  { %1197 = vmatprep.subr.mxu0 %v854_v51  ;;  %1268 = vmatprep.subr.mxu1 %v856_v52  ;;  %v991_v51 = vld [vmem:[#allocation10 + $0x670] sm:$0xff]  ;;  %v982_v52 = vld [vmem:[#allocation10 + $0x628] sm:$0xff] }
  0xe6   :  { %1198 = vmatpush1.msra.mxu0 %v853_v53  ;;  %1269 = vmatpush1.msra.mxu1 %v855_v54  ;;  %v984_v53 = vld [vmem:[#allocation10 + $0x638] sm:$0xff]  ;;  %v981_v54 = vld [vmem:[#allocation10 + $0x620] sm:$0xff] }
  0xe7   :  { %1199 = vmatprep.subr.mxu0 %v846_v29  ;;  %1270 = vmatprep.subr.mxu1 %v848_v55  ;;  %v983_v29 = vld [vmem:[#allocation10 + $0x630] sm:$0xff]  ;;  %v974_v55 = vld [vmem:[#allocation10 + $0x5e8] sm:$0xff] }
  0xe8   :  { %1200 = vmatpush1.msra.mxu0 %v845_v57  ;;  %1271 = vmatpush1.msra.mxu1 %v847_v58  ;;  %v976_v57 = vld [vmem:[#allocation10 + $0x5f8] sm:$0xff]  ;;  %v973_v58 = vld [vmem:[#allocation10 + $0x5e0] sm:$0xff] }
  0xe9   :  { %1201 = vmatprep.subr.mxu0 %v838_v59  ;;  %1272 = vmatprep.subr.mxu1 %v840_v60  ;;  %v975_v59 = vld [vmem:[#allocation10 + $0x5f0] sm:$0xff]  ;;  %v966_v60 = vld [vmem:[#allocation10 + $0x5a8] sm:$0xff] }
  0xea   :  { %1202 = vmatpush1.msra.mxu0 %v837_v61  ;;  %1273 = vmatpush1.msra.mxu1 %v839_v62  ;;  %v968_v61 = vld [vmem:[#allocation10 + $0x5b8] sm:$0xff]  ;;  %v965_v62 = vld [vmem:[#allocation10 + $0x5a0] sm:$0xff] }
  0xeb   :  { %1203 = vmatprep.subr.mxu0 %v830_v38  ;;  %1274 = vmatprep.subr.mxu1 %v832_v63  ;;  %v967_v38 = vld [vmem:[#allocation10 + $0x5b0] sm:$0xff]  ;;  %v958_v63 = vld [vmem:[#allocation10 + $0x568] sm:$0xff] }
  0xec   :  { %1204 = vmatpush1.msra.mxu0 %v829_v1  ;;  %1275 = vmatpush1.msra.mxu1 %v831_v4  ;;  %v960_v1 = vld [vmem:[#allocation10 + $0x578] sm:$0xff]  ;;  %v957_v4 = vld [vmem:[#allocation10 + $0x560] sm:$0xff] }
  0xed   :  { %1205 = vmatprep.subr.mxu0 %v822_v5  ;;  %1276 = vmatprep.subr.mxu1 %v824_v6  ;;  %v959_v5 = vld [vmem:[#allocation10 + $0x570] sm:$0xff]  ;;  %v950_v6 = vld [vmem:[#allocation10 + $0x528] sm:$0xff] }
  0xee   :  { %1206 = vmatpush1.msra.mxu0 %v821_v7  ;;  %1277 = vmatpush1.msra.mxu1 %v823_v8  ;;  %v952_v7 = vld [vmem:[#allocation10 + $0x538] sm:$0xff]  ;;  %v949_v8 = vld [vmem:[#allocation10 + $0x520] sm:$0xff] }
  0xef   :  { %1207 = vmatprep.subr.mxu0 %v814_v47  ;;  %1278 = vmatprep.subr.mxu1 %v816_v9  ;;  %v951_v47 = vld [vmem:[#allocation10 + $0x530] sm:$0xff]  ;;  %v942_v9 = vld [vmem:[#allocation10 + $0x4e8] sm:$0xff] }
  0xf0   :  { %1208 = vmatpush1.msra.mxu0 %v813_v10  ;;  %1279 = vmatpush1.msra.mxu1 %v815_v12  ;;  %v944_v10 = vld [vmem:[#allocation10 + $0x4f8] sm:$0xff]  ;;  %v941_v12 = vld [vmem:[#allocation10 + $0x4e0] sm:$0xff] }
  0xf1   :  { %1209 = vmatprep.subr.mxu0 %v806_v13  ;;  %1280 = vmatprep.subr.mxu1 %v808_v14  ;;  %v943_v13 = vld [vmem:[#allocation10 + $0x4f0] sm:$0xff]  ;;  %v934_v14 = vld [vmem:[#allocation10 + $0x4a8] sm:$0xff] }
  0xf2   :  { %1210 = vmatpush1.msra.mxu0 %v805_v15  ;;  %1281 = vmatpush1.msra.mxu1 %v807_v16  ;;  %v936_v15 = vld [vmem:[#allocation10 + $0x4b8] sm:$0xff]  ;;  %v933_v16 = vld [vmem:[#allocation10 + $0x4a0] sm:$0xff] }
  0xf3   :  { %1211 = vmatprep.subr.mxu0 %v798_v56  ;;  %1282 = vmatprep.subr.mxu1 %v800_v17  ;;  %v935_v56 = vld [vmem:[#allocation10 + $0x4b0] sm:$0xff]  ;;  %v217_v17 = vlaneseq }
  0xf4   :  { %1212 = vmatpush1.msra.mxu0 %v797_v18  ;;  %1283 = vmatpush1.msra.mxu1 %v799_v19  ;;  %v926_v18 = vld [vmem:[#allocation10 + $0x468] sm:$0xff]  ;;  %v928_v19 = vld [vmem:[#allocation10 + $0x478] sm:$0xff] }
  0xf5   :  { %1213 = vmatprep.subr.mxu0 %v790_v21  ;;  %1284 = vmatprep.subr.mxu1 %v792_v22  ;;  %v925_v21 = vld [vmem:[#allocation10 + $0x460] sm:$0xff]  ;;  %v927_v22 = vld [vmem:[#allocation10 + $0x470] sm:$0xff] }
  0xf6   :  { %1214 = vmatpush1.msra.mxu0 %v789_v23  ;;  %1285 = vmatpush1.msra.mxu1 %v791_v24  ;;  %v918_v23 = vld [vmem:[#allocation10 + $0x428] sm:$0xff]  ;;  %v920_v24 = vld [vmem:[#allocation10 + $0x438] sm:$0xff] }
  0xf7   :  { %1215 = vmatprep.subr.mxu0 %v1038_v25  ;;  %1286 = vmatprep.subr.mxu1 %v1040_v3  ;;  %v917_v25 = vld [vmem:[#allocation10 + $0x420] sm:$0xff]  ;;  %v6225_v3 = vshrl.u32 %v217_v17, 7 }
  0xf8   :  { %1216 = vmatpush2.msra.mxu0 %v1037_v26  ;;  %1287 = vmatpush2.msra.mxu1 %v1039_v27  ;;  %v919_v26 = vld [vmem:[#allocation10 + $0x430] sm:$0xff] }
  0xf9   :  { %1217 = vmatprep.subr.mxu0 %v1030_v2  ;;  %1288 = vmatprep.subr.mxu1 %v1032_v28  ;;  %v219_v28 = vsub.s32 0, %v6225_v3 }
  0xfa   :  { %1218 = vmatpush2.msra.mxu0 %v1029_v30  ;;  %1289 = vmatpush2.msra.mxu1 %v1031_v31  ;;  %v227_v30 = vsub.s32 2, %v6225_v3  ;;  %v6237_v31 = vld [vmem:[#allocation11] sm:$0xff] }
  0xfb   :  { %1219 = vmatprep.subr.mxu0 %v1022_v32  ;;  %1290 = vmatprep.subr.mxu1 %v1024_v33 }
  0xfc   :  { %1220 = vmatpush2.msra.mxu0 %v1021_v34  ;;  %1291 = vmatpush2.msra.mxu1 %v1023_v35  ;;  %v223_v34 = vsub.s32 1, %v6225_v3  ;;  %v231_v35 = vsub.s32 3, %v6225_v3 }
  0xfd   :  { %1221 = vmatprep.subr.mxu0 %v1014_v36  ;;  %1292 = vmatprep.subr.mxu1 %v1016_v37  ;;  %v6246_v36 = vrot.slane %v6237_v31, %v219_v28  ;;  %v6249_v37 = vrot.slane %v6237_v31, %v227_v30  ;;  %v1514_v30 = vld [vmem:[#allocation10 + $0x3d0] sm:$0xff] }
  0xfe   :  { %1222 = vmatpush2.msra.mxu0 %v1013_v39  ;;  %1293 = vmatpush2.msra.mxu1 %v1015_v11 }
  0xff   :  { %1223 = vmatprep.subr.mxu0 %v1006_v40  ;;  %1294 = vmatprep.subr.mxu1 %v1008_v41  ;;  %v6255_v40 = vrot.slane %v6237_v31, %v231_v35  ;;  %v1507_v35 = vld [vmem:[#allocation10 + $0x398] sm:$0xff] }
 0x100   :  { %1224 = vmatpush2.msra.mxu0 %v1005_v42  ;;  %1295 = vmatpush2.msra.mxu1 %v1007_v43 }
 0x101   :  { %1225 = vmatprep.subr.mxu0 %v998_v44  ;;  %1296 = vmatprep.subr.mxu1 %v1000_v45 }
 0x102   :  { %1226 = vmatpush2.msra.mxu0 %v997_v46  ;;  %1297 = vmatpush2.msra.mxu1 %v999_v20 }
 0x103   :  { %1227 = vmatprep.subr.mxu0 %v990_v48  ;;  %1298 = vmatprep.subr.mxu1 %v992_v49 }
 0x104   :  { %1228 = vmatpush2.msra.mxu0 %v989_v50  ;;  %1299 = vmatpush2.msra.mxu1 %v991_v51 }
 0x105   :  { %1229 = vmatprep.subr.mxu0 %v982_v52  ;;  %1300 = vmatprep.subr.mxu1 %v984_v53 }
 0x106   :  { %1230 = vmatpush2.msra.mxu0 %v981_v54  ;;  %1301 = vmatpush2.msra.mxu1 %v983_v29 }
 0x107   :  { %1231 = vmatprep.subr.mxu0 %v974_v55  ;;  %1302 = vmatprep.subr.mxu1 %v976_v57 }
 0x108   :  { %1232 = vmatpush2.msra.mxu0 %v973_v58  ;;  %1303 = vmatpush2.msra.mxu1 %v975_v59 }
 0x109   :  { %1233 = vmatprep.subr.mxu0 %v966_v60  ;;  %1304 = vmatprep.subr.mxu1 %v968_v61 }
 0x10a   :  { %1234 = vmatpush2.msra.mxu0 %v965_v62  ;;  %1305 = vmatpush2.msra.mxu1 %v967_v38 }
 0x10b   :  { %1235 = vmatprep.subr.mxu0 %v958_v63  ;;  %1306 = vmatprep.subr.mxu1 %v960_v1 }
 0x10c   :  { %1236 = vmatpush2.msra.mxu0 %v957_v4  ;;  %1307 = vmatpush2.msra.mxu1 %v959_v5 }
 0x10d   :  { %1237 = vmatprep.subr.mxu0 %v950_v6  ;;  %1308 = vmatprep.subr.mxu1 %v952_v7 }
 0x10e   :  { %1238 = vmatpush2.msra.mxu0 %v949_v8  ;;  %1309 = vmatpush2.msra.mxu1 %v951_v47 }
 0x10f   :  { %1239 = vmatprep.subr.mxu0 %v942_v9  ;;  %1310 = vmatprep.subr.mxu1 %v944_v10 }
 0x110   :  { %1240 = vmatpush2.msra.mxu0 %v941_v12  ;;  %1311 = vmatpush2.msra.mxu1 %v943_v13 }
 0x111   :  { %1241 = vmatprep.subr.mxu0 %v934_v14  ;;  %1312 = vmatprep.subr.mxu1 %v936_v15 }
 0x112   :  { %1242 = vmatpush2.msra.mxu0 %v933_v16  ;;  %1313 = vmatpush2.msra.mxu1 %v935_v56 }
 0x113   :  { %1243 = vmatprep.subr.mxu0 %v926_v18  ;;  %1314 = vmatprep.subr.mxu1 %v928_v19 }
 0x114   :  { %1244 = vmatpush2.msra.mxu0 %v925_v21  ;;  %1315 = vmatpush2.msra.mxu1 %v927_v22 }
 0x115   :  { %1245 = vmatprep.subr.mxu0 %v918_v23  ;;  %1316 = vmatprep.subr.mxu1 %v920_v24  ;;  %v1513_v23 = vld [vmem:[#allocation10 + $0x3c8] sm:$0xff]  ;;  %v1515_v24 = vld [vmem:[#allocation10 + $0x3d8] sm:$0xff] }
 0x116   :  { %1246 = vmatpush2.msra.mxu0 %v917_v25  ;;  %1247 = vmatprep.mubr.f32.mxu0 %v6094_v0  ;;  %v6228_v27 = vpop.f32.mrf.mxu0  ;;  %v6230_v2 = vpop.f32.mrf.mxu1  ;;  %v1512_v25 = vld [vmem:[#allocation10 + $0x3c0] sm:$0xff] }
 0x117   :  { %1317 = vmatpush2.msra.mxu1 %v919_v26  ;;  %1318 = vmatprep.mubr.f32.mxu1 %v6094_v0 }
 0x118   :  { %1248 = vmatmul.mubr.f32.vlgmr.msra.gmra.mxu0 %v6094_v0  ;;  %1319 = vmatmul.mubr.f32.vlgmr.msra.gmra.mxu1 %v6094_v0  ;;  %v6239_v32 = vpop.f32.mrf.mxu0  ;;  %v6241_v33 = vpop.f32.mrf.mxu1  ;;  %v6252_v0 = vrot.slane %v6237_v31, %v223_v34  ;;  %v1505_v34 = vld [vmem:[#allocation10 + $0x388] sm:$0xff] }
 0x119   :  { %1648 = vmatprep.subr.mxu0 %v1513_v23  ;;  %1719 = vmatprep.subr.mxu1 %v1515_v24  ;;  %v1472_v23 = vld [vmem:[#allocation10 + $0x280] sm:$0xff]  ;;  %v1474_v24 = vld [vmem:[#allocation10 + $0x290] sm:$0xff] }
 0x11a   :  { %1649 = vmatpush1.msra.mxu0 %v1512_v25  ;;  %1720 = vmatpush1.msra.mxu1 %v1514_v30  ;;  %v1465_v25 = vld [vmem:[#allocation10 + $0x248] sm:$0xff]  ;;  %v1467_v30 = vld [vmem:[#allocation10 + $0x258] sm:$0xff] }
 0x11b   :  { %1650 = vmatprep.subr.mxu0 %v1505_v34  ;;  %1721 = vmatprep.subr.mxu1 %v1507_v35  ;;  %v1464_v34 = vld [vmem:[#allocation10 + $0x240] sm:$0xff]  ;;  %v1466_v35 = vld [vmem:[#allocation10 + $0x250] sm:$0xff] }
 0x11c   :  { %v329_v39 = vpop.f32.mrf.mxu0  ;;  %v442_v11 = vpop.f32.mrf.mxu1 }
 0x11d   :  { %v6258_v41 = vadd.f32 %v329_v39, %v6246_v36  ;;  %v6261_v42 = vadd.f32 %v442_v11, %v6249_v37  ;;  %v1504_v39 = vld [vmem:[#allocation10 + $0x380] sm:$0xff]  ;;  %v1506_v11 = vld [vmem:[#allocation10 + $0x390] sm:$0xff] }
 0x11e   :  { %v331_v43 = vpop.f32.mrf.mxu0  ;;  %v444_v44 = vpop.f32.mrf.mxu1  ;;  %1651 = vmatpush1.msra.mxu0 %v1504_v39  ;;  %1722 = vmatpush1.msra.mxu1 %v1506_v11  ;;  %v1457_v39 = vld [vmem:[#allocation10 + $0x208] sm:$0xff]  ;;  %v1459_v11 = vld [vmem:[#allocation10 + $0x218] sm:$0xff] }
 0x11f   :  { %v6264_v45 = vadd.f32 %v331_v43, %v6252_v0  ;;  %v6267_v46 = vadd.f32 %v444_v44, %v6255_v40  ;;  %v1497_v43 = vld [vmem:[#allocation10 + $0x348] sm:$0xff]  ;;  %v1499_v44 = vld [vmem:[#allocation10 + $0x358] sm:$0xff] }
 0x120   :  { %1652 = vmatprep.subr.mxu0 %v1497_v43  ;;  %1723 = vmatprep.subr.mxu1 %v1499_v44  ;;  %v1456_v43 = vld [vmem:[#allocation10 + $0x200] sm:$0xff]  ;;  %v1458_v44 = vld [vmem:[#allocation10 + $0x210] sm:$0xff] }
 0x122   :  { %v335_v20 = vpop.f32.mrf.mxu0  ;;  %v448_v48 = vpop.f32.mrf.mxu1 }
 0x123   :  { %v6270_v49 = vadd.f32 %v335_v20, %v6246_v36  ;;  %v6273_v50 = vadd.f32 %v448_v48, %v6249_v37  ;;  %v1496_v20 = vld [vmem:[#allocation10 + $0x340] sm:$0xff]  ;;  %v1498_v48 = vld [vmem:[#allocation10 + $0x350] sm:$0xff] }
 0x124   :  { %v337_v51 = vpop.f32.mrf.mxu0  ;;  %v450_v52 = vpop.f32.mrf.mxu1  ;;  %1653 = vmatpush1.msra.mxu0 %v1496_v20  ;;  %1724 = vmatpush1.msra.mxu1 %v1498_v48  ;;  %v1449_v20 = vld [vmem:[#allocation10 + $0x1c8] sm:$0xff]  ;;  %v1451_v48 = vld [vmem:[#allocation10 + $0x1d8] sm:$0xff] }
 0x125   :  { %v6276_v53 = vadd.f32 %v337_v51, %v6252_v0  ;;  %v6279_v54 = vadd.f32 %v450_v52, %v6255_v40 }
 0x128   :  { %v341_v29 = vpop.f32.mrf.mxu0  ;;  %v454_v55 = vpop.f32.mrf.mxu1 }
 0x129   :  { %v6282_v57 = vadd.f32 %v341_v29, %v6246_v36  ;;  %v6285_v58 = vadd.f32 %v454_v55, %v6249_v37  ;;  %v1489_v29 = vld [vmem:[#allocation10 + $0x308] sm:$0xff]  ;;  %v1491_v55 = vld [vmem:[#allocation10 + $0x318] sm:$0xff] }
 0x12a   :  { %v343_v59 = vpop.f32.mrf.mxu0  ;;  %v456_v60 = vpop.f32.mrf.mxu1  ;;  %1654 = vmatprep.subr.mxu0 %v1489_v29  ;;  %1725 = vmatprep.subr.mxu1 %v1491_v55  ;;  %v1441_v29 = vld [vmem:[#allocation10 + $0x188] sm:$0xff]  ;;  %v1443_v55 = vld [vmem:[#allocation10 + $0x198] sm:$0xff] }
 0x12b   :  { %v6288_v61 = vadd.f32 %v343_v59, %v6252_v0  ;;  %v6291_v62 = vadd.f32 %v456_v60, %v6255_v40 }
 0x12e   :  { %v347_v38 = vpop.f32.mrf.mxu0  ;;  %v460_v63 = vpop.f32.mrf.mxu1 }
 0x12f   :  { %v6294_v1 = vadd.f32 %v347_v38, %v6246_v36  ;;  %v6297_v4 = vadd.f32 %v460_v63, %v6249_v37  ;;  %v1488_v38 = vld [vmem:[#allocation10 + $0x300] sm:$0xff]  ;;  %v1490_v63 = vld [vmem:[#allocation10 + $0x310] sm:$0xff] }
 0x130   :  { %v349_v5 = vpop.f32.mrf.mxu0  ;;  %v462_v6 = vpop.f32.mrf.mxu1  ;;  %1655 = vmatpush1.msra.mxu0 %v1488_v38  ;;  %1726 = vmatpush1.msra.mxu1 %v1490_v63  ;;  %v1440_v38 = vld [vmem:[#allocation10 + $0x180] sm:$0xff]  ;;  %v1442_v63 = vld [vmem:[#allocation10 + $0x190] sm:$0xff] }
 0x131   :  { %v6300_v7 = vadd.f32 %v349_v5, %v6252_v0  ;;  %v6303_v8 = vadd.f32 %v462_v6, %v6255_v40 }
 0x134   :  { %v353_v47 = vpop.f32.mrf.mxu0  ;;  %v466_v9 = vpop.f32.mrf.mxu1 }
 0x135   :  { %v6306_v10 = vadd.f32 %v353_v47, %v6246_v36  ;;  %v6309_v12 = vadd.f32 %v466_v9, %v6249_v37  ;;  %v1481_v47 = vld [vmem:[#allocation10 + $0x2c8] sm:$0xff]  ;;  %v1483_v9 = vld [vmem:[#allocation10 + $0x2d8] sm:$0xff] }
 0x136   :  { %v355_v13 = vpop.f32.mrf.mxu0  ;;  %v468_v14 = vpop.f32.mrf.mxu1  ;;  %1656 = vmatprep.subr.mxu0 %v1481_v47  ;;  %1727 = vmatprep.subr.mxu1 %v1483_v9  ;;  %v1432_v47 = vld [vmem:[#allocation10 + $0x140] sm:$0xff]  ;;  %v1434_v9 = vld [vmem:[#allocation10 + $0x150] sm:$0xff] }
 0x137   :  { %v6312_v15 = vadd.f32 %v355_v13, %v6252_v0  ;;  %v6315_v16 = vadd.f32 %v468_v14, %v6255_v40 }
 0x139   :  { %6634 = vst [vmem:[#allocation18_spill] sm:$0xff] %v6315_v16 }
 0x13a   :  { %v359_v56 = vpop.f32.mrf.mxu0  ;;  %v472_v17 = vpop.f32.mrf.mxu1 }
 0x13b   :  { %v6318_v18 = vadd.f32 %v359_v56, %v6246_v36  ;;  %v6321_v19 = vadd.f32 %v472_v17, %v6249_v37  ;;  %v1480_v56 = vld [vmem:[#allocation10 + $0x2c0] sm:$0xff]  ;;  %v1482_v17 = vld [vmem:[#allocation10 + $0x2d0] sm:$0xff] }
 0x13c   :  { %v361_v21 = vpop.f32.mrf.mxu0  ;;  %v474_v22 = vpop.f32.mrf.mxu1  ;;  %1657 = vmatpush1.msra.mxu0 %v1480_v56  ;;  %1728 = vmatpush1.msra.mxu1 %v1482_v17  ;;  %v1425_v56 = vld [vmem:[#allocation10 + $0x108] sm:$0xff]  ;;  %v1427_v17 = vld [vmem:[#allocation10 + $0x118] sm:$0xff] }
 0x13d   :  { %6635 = vst [vmem:[#allocation19_spill] sm:$0xff] %v6318_v18  ;;  %6636 = vst [vmem:[#allocation20_spill] sm:$0xff] %v6321_v19  ;;  %v6324_v26 = vadd.f32 %v361_v21, %v6252_v0  ;;  %v6327_v28 = vadd.f32 %v474_v22, %v6255_v40  ;;  %v1473_v21 = vld [vmem:[#allocation10 + $0x288] sm:$0xff]  ;;  %v1475_v22 = vld [vmem:[#allocation10 + $0x298] sm:$0xff] }
 0x13e   :  { %1658 = vmatprep.subr.mxu0 %v1473_v21  ;;  %1729 = vmatprep.subr.mxu1 %v1475_v22  ;;  %v1424_v21 = vld [vmem:[#allocation10 + $0x100] sm:$0xff]  ;;  %v1426_v22 = vld [vmem:[#allocation10 + $0x110] sm:$0xff] }
 0x13f   :  { %6637 = vst [vmem:[#allocation21_spill] sm:$0xff] %v6324_v26  ;;  %6638 = vst [vmem:[#allocation22_spill] sm:$0xff] %v6327_v28  ;;  %1659 = vmatpush1.msra.mxu0 %v1472_v23  ;;  %1730 = vmatpush1.msra.mxu1 %v1474_v24  ;;  %v1417_v23 = vld [vmem:[#allocation10 + $0xc8] sm:$0xff]  ;;  %v1419_v24 = vld [vmem:[#allocation10 + $0xd8] sm:$0xff] }
 0x140   :  { %v365_v51 = vpop.f32.mrf.mxu0  ;;  %v478_v52 = vpop.f32.mrf.mxu1  ;;  %1660 = vmatprep.subr.mxu0 %v1465_v25  ;;  %1731 = vmatprep.subr.mxu1 %v1467_v30  ;;  %v1416_v25 = vld [vmem:[#allocation10 + $0xc0] sm:$0xff]  ;;  %v1418_v30 = vld [vmem:[#allocation10 + $0xd0] sm:$0xff] }
 0x141   :  { %v6330_v59 = vadd.f32 %v365_v51, %v6246_v36  ;;  %v6333_v60 = vadd.f32 %v478_v52, %v6249_v37  ;;  %1661 = vmatpush1.msra.mxu0 %v1464_v34  ;;  %1732 = vmatpush1.msra.mxu1 %v1466_v35  ;;  %v1448_v51 = vld [vmem:[#allocation10 + $0x1c0] sm:$0xff]  ;;  %v1450_v52 = vld [vmem:[#allocation10 + $0x1d0] sm:$0xff]  ;;  %v1409_v34 = vld [vmem:[#allocation10 + $0x88] sm:$0xff] }
 0x142   :  { %v367_v5 = vpop.f32.mrf.mxu0  ;;  %v480_v6 = vpop.f32.mrf.mxu1  ;;  %1662 = vmatprep.subr.mxu0 %v1457_v39  ;;  %1733 = vmatprep.subr.mxu1 %v1459_v11  ;;  %v1411_v35 = vld [vmem:[#allocation10 + $0x98] sm:$0xff]  ;;  %v1408_v39 = vld [vmem:[#allocation10 + $0x80] sm:$0xff]  ;;  %v1410_v11 = vld [vmem:[#allocation10 + $0x90] sm:$0xff] }
 0x143   :  { %6639 = vst [vmem:[#allocation23_spill] sm:$0xff] %v6330_v59  ;;  %6640 = vst [vmem:[#allocation24_spill] sm:$0xff] %v6333_v60  ;;  %v6336_v13 = vadd.f32 %v367_v5, %v6252_v0  ;;  %v6339_v14 = vadd.f32 %v480_v6, %v6255_v40  ;;  %1663 = vmatpush1.msra.mxu0 %v1456_v43  ;;  %1734 = vmatpush1.msra.mxu1 %v1458_v44  ;;  %v1433_v5 = vld [vmem:[#allocation10 + $0x148] sm:$0xff]  ;;  %v1435_v6 = vld [vmem:[#allocation10 + $0x158] sm:$0xff] }
 0x144   :  { %1664 = vmatprep.subr.mxu0 %v1449_v20  ;;  %1735 = vmatprep.subr.mxu1 %v1451_v48  ;;  %v1401_v43 = vld [vmem:[#allocation10 + $0x48] sm:$0xff]  ;;  %v1403_v44 = vld [vmem:[#allocation10 + $0x58] sm:$0xff]  ;;  %v1400_v20 = vld [vmem:[#allocation10 + $0x40] sm:$0xff] }
 0x145   :  { %6641 = vst [vmem:[#allocation25_spill] sm:$0xff] %v6336_v13  ;;  %6642 = vst [vmem:[#allocation26_spill] sm:$0xff] %v6339_v14  ;;  %1665 = vmatpush1.msra.mxu0 %v1448_v51  ;;  %1736 = vmatpush1.msra.mxu1 %v1450_v52  ;;  %v1402_v48 = vld [vmem:[#allocation10 + $0x50] sm:$0xff]  ;;  %v1393_v51 = vld [vmem:[#allocation10 + $0x8] sm:$0xff] }
 0x146   :  { %1666 = vmatprep.subr.mxu0 %v1441_v29  ;;  %1737 = vmatprep.subr.mxu1 %v1443_v55  ;;  %v1395_v52 = vld [vmem:[#allocation10 + $0x18] sm:$0xff]  ;;  %v1392_v29 = vld [vmem:[#allocation10] sm:$0xff]  ;;  %v1394_v55 = vld [vmem:[#allocation10 + $0x10] sm:$0xff] }
 0x147   :  { %1667 = vmatpush1.msra.mxu0 %v1440_v38  ;;  %1738 = vmatpush1.msra.mxu1 %v1442_v63  ;;  %v1641_v38 = vld [vmem:[#allocation10 + $0x7c8] sm:$0xff]  ;;  %v1643_v63 = vld [vmem:[#allocation10 + $0x7d8] sm:$0xff] }
 0x148   :  { %1668 = vmatprep.subr.mxu0 %v1433_v5  ;;  %1739 = vmatprep.subr.mxu1 %v1435_v6  ;;  %v1640_v5 = vld [vmem:[#allocation10 + $0x7c0] sm:$0xff]  ;;  %v1642_v6 = vld [vmem:[#allocation10 + $0x7d0] sm:$0xff] }
 0x149   :  { %1669 = vmatpush1.msra.mxu0 %v1432_v47  ;;  %1740 = vmatpush1.msra.mxu1 %v1434_v9  ;;  %v1633_v47 = vld [vmem:[#allocation10 + $0x788] sm:$0xff]  ;;  %v1635_v9 = vld [vmem:[#allocation10 + $0x798] sm:$0xff] }
 0x14a   :  { %1670 = vmatprep.subr.mxu0 %v1425_v56  ;;  %1741 = vmatprep.subr.mxu1 %v1427_v17  ;;  %v1632_v56 = vld [vmem:[#allocation10 + $0x780] sm:$0xff]  ;;  %v1634_v17 = vld [vmem:[#allocation10 + $0x790] sm:$0xff] }
 0x14b   :  { %1671 = vmatpush1.msra.mxu0 %v1424_v21  ;;  %1742 = vmatpush1.msra.mxu1 %v1426_v22  ;;  %v1625_v21 = vld [vmem:[#allocation10 + $0x748] sm:$0xff]  ;;  %v1627_v22 = vld [vmem:[#allocation10 + $0x758] sm:$0xff] }
 0x14c   :  { %1672 = vmatprep.subr.mxu0 %v1417_v23  ;;  %1743 = vmatprep.subr.mxu1 %v1419_v24  ;;  %v1624_v23 = vld [vmem:[#allocation10 + $0x740] sm:$0xff]  ;;  %v1626_v24 = vld [vmem:[#allocation10 + $0x750] sm:$0xff] }
 0x14d   :  { %1673 = vmatpush1.msra.mxu0 %v1416_v25  ;;  %1744 = vmatpush1.msra.mxu1 %v1418_v30  ;;  %v1617_v25 = vld [vmem:[#allocation10 + $0x708] sm:$0xff]  ;;  %v1619_v30 = vld [vmem:[#allocation10 + $0x718] sm:$0xff] }
 0x14e   :  { %1674 = vmatprep.subr.mxu0 %v1409_v34  ;;  %1745 = vmatprep.subr.mxu1 %v1411_v35  ;;  %v1616_v34 = vld [vmem:[#allocation10 + $0x700] sm:$0xff]  ;;  %v1618_v35 = vld [vmem:[#allocation10 + $0x710] sm:$0xff] }
 0x14f   :  { %1675 = vmatpush1.msra.mxu0 %v1408_v39  ;;  %1746 = vmatpush1.msra.mxu1 %v1410_v11  ;;  %v1609_v39 = vld [vmem:[#allocation10 + $0x6c8] sm:$0xff]  ;;  %v1611_v11 = vld [vmem:[#allocation10 + $0x6d8] sm:$0xff] }
 0x150   :  { %1676 = vmatprep.subr.mxu0 %v1401_v43  ;;  %1747 = vmatprep.subr.mxu1 %v1403_v44  ;;  %v1608_v43 = vld [vmem:[#allocation10 + $0x6c0] sm:$0xff]  ;;  %v1610_v44 = vld [vmem:[#allocation10 + $0x6d0] sm:$0xff] }
 0x151   :  { %1677 = vmatpush1.msra.mxu0 %v1400_v20  ;;  %1748 = vmatpush1.msra.mxu1 %v1402_v48  ;;  %v1601_v20 = vld [vmem:[#allocation10 + $0x688] sm:$0xff]  ;;  %v1603_v48 = vld [vmem:[#allocation10 + $0x698] sm:$0xff] }
 0x152   :  { %1678 = vmatprep.subr.mxu0 %v1393_v51  ;;  %1749 = vmatprep.subr.mxu1 %v1395_v52  ;;  %v1600_v51 = vld [vmem:[#allocation10 + $0x680] sm:$0xff]  ;;  %v1602_v52 = vld [vmem:[#allocation10 + $0x690] sm:$0xff] }
 0x153   :  { %1679 = vmatpush1.msra.mxu0 %v1392_v29  ;;  %1750 = vmatpush1.msra.mxu1 %v1394_v55  ;;  %v1593_v29 = vld [vmem:[#allocation10 + $0x648] sm:$0xff]  ;;  %v1595_v55 = vld [vmem:[#allocation10 + $0x658] sm:$0xff] }
 0x154   :  { %1680 = vmatprep.subr.mxu0 %v1641_v38  ;;  %1751 = vmatprep.subr.mxu1 %v1643_v63  ;;  %v1592_v38 = vld [vmem:[#allocation10 + $0x640] sm:$0xff]  ;;  %v1594_v63 = vld [vmem:[#allocation10 + $0x650] sm:$0xff] }
 0x155   :  { %1681 = vmatpush2.msra.mxu0 %v1640_v5  ;;  %1752 = vmatpush2.msra.mxu1 %v1642_v6  ;;  %v1585_v5 = vld [vmem:[#allocation10 + $0x608] sm:$0xff]  ;;  %v1587_v6 = vld [vmem:[#allocation10 + $0x618] sm:$0xff] }
 0x156   :  { %1682 = vmatprep.subr.mxu0 %v1633_v47  ;;  %1753 = vmatprep.subr.mxu1 %v1635_v9  ;;  %v1584_v47 = vld [vmem:[#allocation10 + $0x600] sm:$0xff]  ;;  %v1586_v9 = vld [vmem:[#allocation10 + $0x610] sm:$0xff] }
 0x157   :  { %1683 = vmatpush2.msra.mxu0 %v1632_v56  ;;  %1754 = vmatpush2.msra.mxu1 %v1634_v17  ;;  %v1577_v56 = vld [vmem:[#allocation10 + $0x5c8] sm:$0xff]  ;;  %v1579_v17 = vld [vmem:[#allocation10 + $0x5d8] sm:$0xff] }
 0x158   :  { %1684 = vmatprep.subr.mxu0 %v1625_v21  ;;  %1755 = vmatprep.subr.mxu1 %v1627_v22  ;;  %v1576_v21 = vld [vmem:[#allocation10 + $0x5c0] sm:$0xff]  ;;  %v1578_v22 = vld [vmem:[#allocation10 + $0x5d0] sm:$0xff] }
 0x159   :  { %1685 = vmatpush2.msra.mxu0 %v1624_v23  ;;  %1756 = vmatpush2.msra.mxu1 %v1626_v24  ;;  %v1569_v23 = vld [vmem:[#allocation10 + $0x588] sm:$0xff]  ;;  %v1571_v24 = vld [vmem:[#allocation10 + $0x598] sm:$0xff] }
 0x15a   :  { %1686 = vmatprep.subr.mxu0 %v1617_v25  ;;  %1757 = vmatprep.subr.mxu1 %v1619_v30  ;;  %v1568_v25 = vld [vmem:[#allocation10 + $0x580] sm:$0xff]  ;;  %v1570_v30 = vld [vmem:[#allocation10 + $0x590] sm:$0xff] }
 0x15b   :  { %1687 = vmatpush2.msra.mxu0 %v1616_v34  ;;  %1758 = vmatpush2.msra.mxu1 %v1618_v35  ;;  %v1561_v34 = vld [vmem:[#allocation10 + $0x548] sm:$0xff]  ;;  %v1563_v35 = vld [vmem:[#allocation10 + $0x558] sm:$0xff] }
 0x15c   :  { %1688 = vmatprep.subr.mxu0 %v1609_v39  ;;  %1759 = vmatprep.subr.mxu1 %v1611_v11  ;;  %v1560_v39 = vld [vmem:[#allocation10 + $0x540] sm:$0xff]  ;;  %v1562_v11 = vld [vmem:[#allocation10 + $0x550] sm:$0xff] }
 0x15d   :  { %1689 = vmatpush2.msra.mxu0 %v1608_v43  ;;  %1760 = vmatpush2.msra.mxu1 %v1610_v44  ;;  %v1553_v43 = vld [vmem:[#allocation10 + $0x508] sm:$0xff]  ;;  %v1555_v44 = vld [vmem:[#allocation10 + $0x518] sm:$0xff] }
 0x15e   :  { %1690 = vmatprep.subr.mxu0 %v1601_v20  ;;  %1761 = vmatprep.subr.mxu1 %v1603_v48  ;;  %v1552_v20 = vld [vmem:[#allocation10 + $0x500] sm:$0xff]  ;;  %v1554_v48 = vld [vmem:[#allocation10 + $0x510] sm:$0xff] }
 0x15f   :  { %1691 = vmatpush2.msra.mxu0 %v1600_v51  ;;  %1762 = vmatpush2.msra.mxu1 %v1602_v52  ;;  %v1545_v51 = vld [vmem:[#allocation10 + $0x4c8] sm:$0xff]  ;;  %v1547_v52 = vld [vmem:[#allocation10 + $0x4d8] sm:$0xff] }
 0x160   :  { %1692 = vmatprep.subr.mxu0 %v1593_v29  ;;  %1763 = vmatprep.subr.mxu1 %v1595_v55  ;;  %v1544_v29 = vld [vmem:[#allocation10 + $0x4c0] sm:$0xff]  ;;  %v1546_v55 = vld [vmem:[#allocation10 + $0x4d0] sm:$0xff] }
 0x161   :  { %1693 = vmatpush2.msra.mxu0 %v1592_v38  ;;  %1764 = vmatpush2.msra.mxu1 %v1594_v63  ;;  %v1537_v38 = vld [vmem:[#allocation10 + $0x488] sm:$0xff]  ;;  %v1539_v63 = vld [vmem:[#allocation10 + $0x498] sm:$0xff] }
 0x162   :  { %1694 = vmatprep.subr.mxu0 %v1585_v5  ;;  %1765 = vmatprep.subr.mxu1 %v1587_v6  ;;  %v1536_v5 = vld [vmem:[#allocation10 + $0x480] sm:$0xff]  ;;  %v1538_v6 = vld [vmem:[#allocation10 + $0x490] sm:$0xff] }
 0x163   :  { %1695 = vmatpush2.msra.mxu0 %v1584_v47  ;;  %1766 = vmatpush2.msra.mxu1 %v1586_v9  ;;  %v6341_v47 = vpop.f32.mrf.mxu0  ;;  %v1529_v9 = vld [vmem:[#allocation10 + $0x448] sm:$0xff] }
 0x164   :  { %1696 = vmatprep.subr.mxu0 %v1577_v56  ;;  %1767 = vmatprep.subr.mxu1 %v1579_v17  ;;  %v1531_v56 = vld [vmem:[#allocation10 + $0x458] sm:$0xff]  ;;  %v1528_v17 = vld [vmem:[#allocation10 + $0x440] sm:$0xff] }
 0x165   :  { %1697 = vmatpush2.msra.mxu0 %v1576_v21  ;;  %1768 = vmatpush2.msra.mxu1 %v1578_v22  ;;  %v1530_v21 = vld [vmem:[#allocation10 + $0x450] sm:$0xff]  ;;  %v6343_v22 = vpop.f32.mrf.mxu1 }
 0x166   :  { %1698 = vmatprep.subr.mxu0 %v1569_v23  ;;  %1769 = vmatprep.subr.mxu1 %v1571_v24  ;;  %v1521_v23 = vld [vmem:[#allocation10 + $0x408] sm:$0xff]  ;;  %v1523_v24 = vld [vmem:[#allocation10 + $0x418] sm:$0xff] }
 0x167   :  { %1699 = vmatpush2.msra.mxu0 %v1568_v25  ;;  %1770 = vmatpush2.msra.mxu1 %v1570_v30  ;;  %v1520_v25 = vld [vmem:[#allocation10 + $0x400] sm:$0xff]  ;;  %v1522_v30 = vld [vmem:[#allocation10 + $0x410] sm:$0xff] }
 0x168   :  { %1700 = vmatprep.subr.mxu0 %v1561_v34  ;;  %1771 = vmatprep.subr.mxu1 %v1563_v35  ;;  %v6345_v34 = vpop.f32.mrf.mxu0  ;;  %v6347_v35 = vpop.f32.mrf.mxu1 }
 0x169   :  { %1701 = vmatpush2.msra.mxu0 %v1560_v39  ;;  %1772 = vmatpush2.msra.mxu1 %v1562_v11  ;;  %v1517_v11 = vld [vmem:[#allocation10 + $0x3e8] sm:$0xff] }
 0x16a   :  { %1702 = vmatprep.subr.mxu0 %v1553_v43  ;;  %1773 = vmatprep.subr.mxu1 %v1555_v44  ;;  %v1519_v43 = vld [vmem:[#allocation10 + $0x3f8] sm:$0xff] }
 0x16b   :  { %1703 = vmatpush2.msra.mxu0 %v1552_v20  ;;  %1774 = vmatpush2.msra.mxu1 %v1554_v48  ;;  %v6349_v39 = vpop.f32.mrf.mxu0  ;;  %v6351_v44 = vpop.f32.mrf.mxu1 }
 0x16c   :  { %1704 = vmatprep.subr.mxu0 %v1545_v51  ;;  %1775 = vmatprep.subr.mxu1 %v1547_v52 }
 0x16d   :  { %1705 = vmatpush2.msra.mxu0 %v1544_v29  ;;  %1776 = vmatpush2.msra.mxu1 %v1546_v55  ;;  %v6353_v20 = vpop.f32.mrf.mxu0  ;;  %v6355_v48 = vpop.f32.mrf.mxu1 }
 0x16e   :  { %1706 = vmatprep.subr.mxu0 %v1537_v38  ;;  %1777 = vmatprep.subr.mxu1 %v1539_v63 }
 0x16f   :  { %1707 = vmatpush2.msra.mxu0 %v1536_v5  ;;  %1778 = vmatpush2.msra.mxu1 %v1538_v6 }
 0x170   :  { %1708 = vmatprep.subr.mxu0 %v1529_v9  ;;  %1779 = vmatprep.subr.mxu1 %v1531_v56 }
 0x171   :  { %1709 = vmatpush2.msra.mxu0 %v1528_v17  ;;  %1780 = vmatpush2.msra.mxu1 %v1530_v21  ;;  %v6357_v51 = vpop.f32.mrf.mxu0  ;;  %v6359_v52 = vpop.f32.mrf.mxu1 }
 0x172   :  { %1710 = vmatprep.subr.mxu0 %v1521_v23  ;;  %1781 = vmatprep.subr.mxu1 %v1523_v24 }
 0x173   :  { %1711 = vmatpush2.msra.mxu0 %v1520_v25  ;;  %1782 = vmatpush2.msra.mxu1 %v1522_v30  ;;  %v6361_v29 = vpop.f32.mrf.mxu0  ;;  %v6363_v55 = vpop.f32.mrf.mxu1 }
 0x174   :  { %1790 = vmatprep.subr.mxu0 %v1517_v11  ;;  %1861 = vmatprep.subr.mxu1 %v1519_v43 }
 0x177   :  { %v6365_v38 = vpop.f32.mrf.mxu0  ;;  %v6367_v63 = vpop.f32.mrf.mxu1 }
 0x179   :  { %v6369_v5 = vpop.f32.mrf.mxu0  ;;  %v6371_v6 = vpop.f32.mrf.mxu1 }
 0x17d   :  { %v6373_v9 = vpop.f32.mrf.mxu0  ;;  %v6375_v56 = vpop.f32.mrf.mxu1 }
 0x17f   :  { %v6377_v17 = vpop.f32.mrf.mxu0  ;;  %v6379_v21 = vpop.f32.mrf.mxu1 }
 0x183   :  { %v6381_v23 = vpop.f32.mrf.mxu0  ;;  %v6383_v24 = vpop.f32.mrf.mxu1 }
 0x184   :  { %6643 = vst [vmem:[#allocation27_spill] sm:$0xff] %v6381_v23  ;;  %6644 = vst [vmem:[#allocation28_spill] sm:$0xff] %v6383_v24 }
 0x185   :  { %v6385_v25 = vpop.f32.mrf.mxu0  ;;  %v6387_v30 = vpop.f32.mrf.mxu1 }
 0x186   :  { %6645 = vst [vmem:[#allocation29_spill] sm:$0xff] %v6385_v25  ;;  %6646 = vst [vmem:[#allocation30_spill] sm:$0xff] %v6387_v30  ;;  %v324_v30 = vadd.f32 %v6228_v27, %v6246_v36  ;;  %v239_v36 = vsub.s32 5, %v6225_v3 }
 0x189   :  { %v6389_v11 = vpop.f32.mrf.mxu0  ;;  %v6391_v43 = vpop.f32.mrf.mxu1 }
 0x18a   :  { %6647 = vst [vmem:[#allocation31_spill] sm:$0xff] %v6389_v11  ;;  %6648 = vst [vmem:[#allocation32_spill] sm:$0xff] %v6391_v43  ;;  %v437_v43 = vadd.f32 %v6230_v2, %v6249_v37  ;;  %v235_v2 = vsub.s32 4, %v6225_v3 }
 0x18b   :  { %v6393_v14 = vpop.f32.mrf.mxu0  ;;  %v6395_v13 = vpop.f32.mrf.mxu1 }
 0x18c   :  { %6649 = vst [vmem:[#allocation33_spill] sm:$0xff] %v6393_v14  ;;  %6650 = vst [vmem:[#allocation34_spill] sm:$0xff] %v6395_v13  ;;  %v326_v13 = vadd.f32 %v6239_v32, %v6252_v0  ;;  %v243_v32 = vsub.s32 6, %v6225_v3  ;;  %v247_v0 = vsub.s32 7, %v6225_v3 }
 0x18f   :  { %v6397_v60 = vpop.f32.mrf.mxu0  ;;  %v6399_v59 = vpop.f32.mrf.mxu1 }
 0x190   :  { %6651 = vst [vmem:[#allocation35_spill] sm:$0xff] %v6397_v60  ;;  %6652 = vst [vmem:[#allocation36_spill] sm:$0xff] %v6399_v59 }
 0x191   :  { %v6401_v28 = vpop.f32.mrf.mxu0  ;;  %v6403_v26 = vpop.f32.mrf.mxu1 }
 0x192   :  { %6653 = vst [vmem:[#allocation37_spill] sm:$0xff] %v6401_v28  ;;  %6654 = vst [vmem:[#allocation38_spill] sm:$0xff] %v6403_v26  ;;  %v439_v28 = vadd.f32 %v6241_v33, %v6255_v40 }
 0x196   :  { %v1107_v19 = vpop.f32.mrf.mxu0  ;;  %v1178_v18 = vpop.f32.mrf.mxu1 }
 0x197   :  { %v1325_v14 = vadd.f32 %v1107_v19, %v324_v30  ;;  %v1327_v60 = vadd.f32 %v1178_v18, %v437_v43  ;;  %v6418_v18 = vrot.slane %v6237_v31, %v235_v2  ;;  %v6421_v19 = vrot.slane %v6237_v31, %v243_v32 }
 0x198   :  { %v1109_v11 = vpop.f32.mrf.mxu0  ;;  %v1180_v25 = vpop.f32.mrf.mxu1 }
 0x199   :  { %v1326_v59 = vadd.f32 %v1109_v11, %v326_v13  ;;  %v5662_v26 = vmul.f32 -1.442695, %v1325_v14  ;;  %v1328_v24 = vadd.f32 %v1180_v25, %v439_v28  ;;  %v5664_v23 = vmul.f32 -1.442695, %v1327_v60 }
 0x19a   :  { %v550_v3 = vadd.f32 %v6341_v47, %v6418_v18  ;;  %v663_v14 = vadd.f32 %v6343_v22, %v6421_v19 }
 0x19b   :  { %v5663_v16 = vmul.f32 -1.442695, %v1326_v59  ;;  %5722 = vpow2.f32 %v5662_v26  ;;  %v5665_v27 = vmul.f32 -1.442695, %v1328_v24  ;;  %v6427_v59 = vrot.slane %v6237_v31, %v247_v0 }
 0x19c   :  { %5724 = vpow2.f32 %v5664_v23 }
 0x19d   :  { %5726 = vpow2.f32 %v5663_v16  ;;  %v6424_v16 = vrot.slane %v6237_v31, %v239_v36  ;;  %v665_v11 = vadd.f32 %v6347_v35, %v6427_v59 }
 0x19e   :  { %5728 = vpow2.f32 %v5665_v27 }
 0x19f   :  { %v552_v23 = vadd.f32 %v6345_v34, %v6424_v16 }
 0x1a8   :  { %v5723_v37 = vpop.eup %5722 }
 0x1a9   :  { %v5725_v33 = vpop.eup %5724  ;;  %v1345_v26 = vadd.f32 1.0, %v5723_v37 }
 0x1aa   :  { %v5727_v40 = vpop.eup %5726  ;;  %v1347_v60 = vadd.f32 1.0, %v5725_v33 }
 0x1ab   :  { %v5729_v28 = vpop.eup %5728  ;;  %v1346_v13 = vadd.f32 1.0, %v5727_v40  ;;  %5730 = vrcp.f32 %v1345_v26 }
 0x1ac   :  { %v1348_v24 = vadd.f32 1.0, %v5729_v28  ;;  %5732 = vrcp.f32 %v1347_v60 }
 0x1ad   :  { %5734 = vrcp.f32 %v1346_v13 }
 0x1b8   :  { %v5731_v36 = vpop.eup %5730 }
 0x1b9   :  { %v5733_v37 = vpop.eup %5732 }
 0x1ba   :  { %v5735_v0 = vpop.eup %5734  ;;  %v1371_v40 = vmul.f32 0.0, %v5733_v37  ;;  %v1508_v37 = vld [vmem:[#allocation10 + $0x3a0] sm:$0xff] }
 0x1d8   :  { %v1249_v25 = vpop.f32.mrf.mxu0  ;;  %v1320_v30 = vpop.f32.mrf.mxu1 }
 0x1d9   :  { %v1329_v31 = vadd.f32 %v1249_v25, %v550_v3  ;;  %v1331_v43 = vadd.f32 %v1320_v30, %v663_v14 }
 0x1da   :  { %v1251_v27 = vpop.f32.mrf.mxu0  ;;  %v1322_v2 = vpop.f32.mrf.mxu1 }
 0x1db   :  { %5736 = vtanh.f32 %v1329_v31  ;;  %v5666_v47 = vmul.f32 -1.442695, %v1331_v43  ;;  %v1330_v32 = vadd.f32 %v1251_v27, %v552_v23  ;;  %v1332_v22 = vadd.f32 %v1322_v2, %v665_v11 }
 0x1dc   :  { %5738 = vrcp.f32 %v1348_v24 }
 0x1dd   :  { %5740 = vpow2.f32 %v5666_v47  ;;  %v5667_v34 = vmul.f32 -1.442695, %v1332_v22  ;;  %v1518_v22 = vld [vmem:[#allocation10 + $0x3f0] sm:$0xff] }
 0x1de   :  { %5742 = vtanh.f32 %v1330_v32  ;;  %v1516_v32 = vld [vmem:[#allocation10 + $0x3e0] sm:$0xff] }
 0x1df   :  { %5744 = vpow2.f32 %v5667_v34  ;;  %v1509_v34 = vld [vmem:[#allocation10 + $0x3a8] sm:$0xff] }
 0x1e8   :  { %v5737_v33 = vpop.eup %5736 }
 0x1e9   :  { %v5739_v35 = vpop.eup %5738  ;;  %v1373_v26 = vmul.f32 %v5737_v33, %v5731_v36  ;;  %v1511_v36 = vld [vmem:[#allocation10 + $0x3b8] sm:$0xff]  ;;  %v1501_v33 = vld [vmem:[#allocation10 + $0x368] sm:$0xff] }
 0x1ea   :  { %v5741_v28 = vpop.eup %5740  ;;  %v1372_v23 = vmul.f32 0.0, %v5739_v35  ;;  %v1503_v35 = vld [vmem:[#allocation10 + $0x378] sm:$0xff] }
 0x1eb   :  { %v5743_v60 = vpop.eup %5742  ;;  %v6437_v13 = vadd.f32 %v1373_v26, %v1371_v40  ;;  %v1365_v3 = vadd.f32 1.0, %v5741_v28  ;;  %v1500_v40 = vld [vmem:[#allocation10 + $0x360] sm:$0xff]  ;;  %v1502_v26 = vld [vmem:[#allocation10 + $0x370] sm:$0xff]  ;;  %v1493_v28 = vld [vmem:[#allocation10 + $0x328] sm:$0xff] }
 0x1ec   :  { %v5745_v14 = vpop.eup %5744  ;;  %v1374_v25 = vmul.f32 %v5743_v60, %v5735_v0  ;;  %v1510_v0 = vld [vmem:[#allocation10 + $0x3b0] sm:$0xff]  ;;  %v1495_v60 = vld [vmem:[#allocation10 + $0x338] sm:$0xff] }
 0x1ed   :  { %5746 = vtanh.f32 %v6437_v13  ;;  %v1366_v24 = vadd.f32 1.0, %v5745_v14  ;;  %v1494_v14 = vld [vmem:[#allocation10 + $0x330] sm:$0xff] }
 0x1ee   :  { %5748 = vrcp.f32 %v1365_v3  ;;  %v6440_v30 = vadd.f32 %v1374_v25, %v1372_v23  ;;  %v1492_v3 = vld [vmem:[#allocation10 + $0x320] sm:$0xff]  ;;  %v1485_v23 = vld [vmem:[#allocation10 + $0x2e8] sm:$0xff]  ;;  %v1487_v25 = vld [vmem:[#allocation10 + $0x2f8] sm:$0xff] }
 0x1ef   :  { %5750 = vrcp.f32 %v1366_v24  ;;  %v1484_v24 = vld [vmem:[#allocation10 + $0x2e0] sm:$0xff] }
 0x1f0   :  { %5752 = vtanh.f32 %v6440_v30 }
 0x1fa   :  { %v5747_v11 = vpop.eup %5746 }
 0x1fb   :  { %v5749_v31 = vpop.eup %5748 }
 0x1fc   :  { %v5751_v43 = vpop.eup %5750  ;;  %v6443_v27 = vmul.f32 %v5749_v31, %v5747_v11  ;;  %v1486_v11 = vld [vmem:[#allocation10 + $0x2f0] sm:$0xff]  ;;  %v1477_v31 = vld [vmem:[#allocation10 + $0x2a8] sm:$0xff] }
 0x1fd   :  { %v5753_v2 = vpop.eup %5752 }
 0x1fe   :  { %v1380_v47 = vmul.f32 %v5753_v2, %v5751_v43  ;;  %1381 = vst [vmem:[#allocation13] sm:$0xff] %v6443_v27  ;;  %v1479_v43 = vld [vmem:[#allocation10 + $0x2b8] sm:$0xff]  ;;  %v1476_v2 = vld [vmem:[#allocation10 + $0x2a0] sm:$0xff] }
 0x200   :  { %1382 = vst [vmem:[#allocation13 + $0x8] sm:$0xff] %v1380_v47  ;;  %1712 = vmatprep.mubr.f32.mxu0 %v1380_v47  ;;  %1783 = vmatprep.mubr.f32.mxu1 %v1380_v47 }
 0x201   :  { %1713 = vmatmul.mubr.f32.vlgmr.msra.gmra.mxu0 %v6443_v27  ;;  %1784 = vmatmul.mubr.f32.vlgmr.msra.gmra.mxu1 %v6443_v27 }
 0x202   :  { %1791 = vmatpush1.msra.mxu0 %v1516_v32  ;;  %1862 = vmatpush1.msra.mxu1 %v1518_v22  ;;  %v1469_v32 = vld [vmem:[#allocation10 + $0x268] sm:$0xff]  ;;  %v1471_v22 = vld [vmem:[#allocation10 + $0x278] sm:$0xff] }
 0x203   :  { %1792 = vmatprep.subr.mxu0 %v1509_v34  ;;  %1854 = vmatprep.mubr.f32.mxu0 %v1380_v47  ;;  %v1468_v34 = vld [vmem:[#allocation10 + $0x260] sm:$0xff] }
 0x204   :  { %1863 = vmatprep.subr.mxu1 %v1511_v36  ;;  %1925 = vmatprep.mubr.f32.mxu1 %v1380_v47  ;;  %v1478_v47 = vld [vmem:[#allocation10 + $0x2b0] sm:$0xff] }
 0x205   :  { %1793 = vmatpush1.msra.mxu0 %v1508_v37  ;;  %1864 = vmatpush1.msra.mxu1 %v1510_v0  ;;  %v1470_v36 = vld [vmem:[#allocation10 + $0x270] sm:$0xff]  ;;  %v1461_v37 = vld [vmem:[#allocation10 + $0x228] sm:$0xff]  ;;  %v1463_v0 = vld [vmem:[#allocation10 + $0x238] sm:$0xff] }
 0x206   :  { %1794 = vmatprep.subr.mxu0 %v1501_v33  ;;  %1865 = vmatprep.subr.mxu1 %v1503_v35  ;;  %v1460_v33 = vld [vmem:[#allocation10 + $0x220] sm:$0xff]  ;;  %v1462_v35 = vld [vmem:[#allocation10 + $0x230] sm:$0xff] }
 0x207   :  { %1795 = vmatpush1.msra.mxu0 %v1500_v40  ;;  %1866 = vmatpush1.msra.mxu1 %v1502_v26  ;;  %v1453_v40 = vld [vmem:[#allocation10 + $0x1e8] sm:$0xff]  ;;  %v1455_v26 = vld [vmem:[#allocation10 + $0x1f8] sm:$0xff] }
 0x208   :  { %1796 = vmatprep.subr.mxu0 %v1493_v28  ;;  %1867 = vmatprep.subr.mxu1 %v1495_v60  ;;  %v1452_v28 = vld [vmem:[#allocation10 + $0x1e0] sm:$0xff]  ;;  %v1454_v60 = vld [vmem:[#allocation10 + $0x1f0] sm:$0xff] }
 0x209   :  { %1797 = vmatpush1.msra.mxu0 %v1492_v3  ;;  %1868 = vmatpush1.msra.mxu1 %v1494_v14  ;;  %v1445_v3 = vld [vmem:[#allocation10 + $0x1a8] sm:$0xff]  ;;  %v1447_v14 = vld [vmem:[#allocation10 + $0x1b8] sm:$0xff] }
 0x20a   :  { %1798 = vmatprep.subr.mxu0 %v1485_v23  ;;  %1869 = vmatprep.subr.mxu1 %v1487_v25  ;;  %v1444_v23 = vld [vmem:[#allocation10 + $0x1a0] sm:$0xff]  ;;  %v1446_v25 = vld [vmem:[#allocation10 + $0x1b0] sm:$0xff] }
 0x20b   :  { %1799 = vmatpush1.msra.mxu0 %v1484_v24  ;;  %1870 = vmatpush1.msra.mxu1 %v1486_v11  ;;  %v1437_v24 = vld [vmem:[#allocation10 + $0x168] sm:$0xff]  ;;  %v1439_v11 = vld [vmem:[#allocation10 + $0x178] sm:$0xff] }
 0x20c   :  { %1800 = vmatprep.subr.mxu0 %v1477_v31  ;;  %1871 = vmatprep.subr.mxu1 %v1479_v43  ;;  %v1436_v31 = vld [vmem:[#allocation10 + $0x160] sm:$0xff]  ;;  %v1438_v43 = vld [vmem:[#allocation10 + $0x170] sm:$0xff] }
 0x20d   :  { %1801 = vmatpush1.msra.mxu0 %v1476_v2  ;;  %1872 = vmatpush1.msra.mxu1 %v1478_v47  ;;  %v1429_v2 = vld [vmem:[#allocation10 + $0x128] sm:$0xff]  ;;  %v1431_v47 = vld [vmem:[#allocation10 + $0x138] sm:$0xff] }
 0x20e   :  { %1802 = vmatprep.subr.mxu0 %v1469_v32  ;;  %1873 = vmatprep.subr.mxu1 %v1471_v22  ;;  %v1428_v32 = vld [vmem:[#allocation10 + $0x120] sm:$0xff]  ;;  %v1430_v22 = vld [vmem:[#allocation10 + $0x130] sm:$0xff] }
 0x20f   :  { %1803 = vmatpush1.msra.mxu0 %v1468_v34  ;;  %1874 = vmatpush1.msra.mxu1 %v1470_v36  ;;  %v1421_v34 = vld [vmem:[#allocation10 + $0xe8] sm:$0xff]  ;;  %v1423_v36 = vld [vmem:[#allocation10 + $0xf8] sm:$0xff] }
 0x210   :  { %1804 = vmatprep.subr.mxu0 %v1461_v37  ;;  %1875 = vmatprep.subr.mxu1 %v1463_v0  ;;  %v1420_v37 = vld [vmem:[#allocation10 + $0xe0] sm:$0xff]  ;;  %v1422_v0 = vld [vmem:[#allocation10 + $0xf0] sm:$0xff] }
 0x211   :  { %1805 = vmatpush1.msra.mxu0 %v1460_v33  ;;  %1876 = vmatpush1.msra.mxu1 %v1462_v35  ;;  %v1413_v33 = vld [vmem:[#allocation10 + $0xa8] sm:$0xff]  ;;  %v1415_v35 = vld [vmem:[#allocation10 + $0xb8] sm:$0xff] }
 0x212   :  { %1806 = vmatprep.subr.mxu0 %v1453_v40  ;;  %1877 = vmatprep.subr.mxu1 %v1455_v26  ;;  %v1412_v40 = vld [vmem:[#allocation10 + $0xa0] sm:$0xff]  ;;  %v1414_v26 = vld [vmem:[#allocation10 + $0xb0] sm:$0xff] }
 0x213   :  { %1807 = vmatpush1.msra.mxu0 %v1452_v28  ;;  %1878 = vmatpush1.msra.mxu1 %v1454_v60  ;;  %v1405_v28 = vld [vmem:[#allocation10 + $0x68] sm:$0xff]  ;;  %v1407_v60 = vld [vmem:[#allocation10 + $0x78] sm:$0xff] }
 0x214   :  { %1808 = vmatprep.subr.mxu0 %v1445_v3  ;;  %1879 = vmatprep.subr.mxu1 %v1447_v14  ;;  %v1404_v3 = vld [vmem:[#allocation10 + $0x60] sm:$0xff]  ;;  %v1406_v14 = vld [vmem:[#allocation10 + $0x70] sm:$0xff] }
 0x215   :  { %1809 = vmatpush1.msra.mxu0 %v1444_v23  ;;  %1880 = vmatpush1.msra.mxu1 %v1446_v25  ;;  %v1397_v23 = vld [vmem:[#allocation10 + $0x28] sm:$0xff]  ;;  %v1399_v25 = vld [vmem:[#allocation10 + $0x38] sm:$0xff] }
 0x216   :  { %1810 = vmatprep.subr.mxu0 %v1437_v24  ;;  %1881 = vmatprep.subr.mxu1 %v1439_v11  ;;  %v1396_v24 = vld [vmem:[#allocation10 + $0x20] sm:$0xff]  ;;  %v1398_v11 = vld [vmem:[#allocation10 + $0x30] sm:$0xff] }
 0x217   :  { %1811 = vmatpush1.msra.mxu0 %v1436_v31  ;;  %1882 = vmatpush1.msra.mxu1 %v1438_v43  ;;  %v1645_v31 = vld [vmem:[#allocation10 + $0x7e8] sm:$0xff]  ;;  %v1647_v43 = vld [vmem:[#allocation10 + $0x7f8] sm:$0xff] }
 0x218   :  { %1812 = vmatprep.subr.mxu0 %v1429_v2  ;;  %1883 = vmatprep.subr.mxu1 %v1431_v47  ;;  %v1644_v2 = vld [vmem:[#allocation10 + $0x7e0] sm:$0xff]  ;;  %v1646_v47 = vld [vmem:[#allocation10 + $0x7f0] sm:$0xff] }
 0x219   :  { %1813 = vmatpush1.msra.mxu0 %v1428_v32  ;;  %1884 = vmatpush1.msra.mxu1 %v1430_v22  ;;  %v1637_v32 = vld [vmem:[#allocation10 + $0x7a8] sm:$0xff]  ;;  %v1639_v22 = vld [vmem:[#allocation10 + $0x7b8] sm:$0xff] }
 0x21a   :  { %1814 = vmatprep.subr.mxu0 %v1421_v34  ;;  %1885 = vmatprep.subr.mxu1 %v1423_v36  ;;  %v1636_v34 = vld [vmem:[#allocation10 + $0x7a0] sm:$0xff]  ;;  %v1638_v36 = vld [vmem:[#allocation10 + $0x7b0] sm:$0xff] }
 0x21b   :  { %1815 = vmatpush1.msra.mxu0 %v1420_v37  ;;  %1886 = vmatpush1.msra.mxu1 %v1422_v0  ;;  %v1629_v37 = vld [vmem:[#allocation10 + $0x768] sm:$0xff]  ;;  %v1631_v0 = vld [vmem:[#allocation10 + $0x778] sm:$0xff] }
 0x21c   :  { %1816 = vmatprep.subr.mxu0 %v1413_v33  ;;  %1887 = vmatprep.subr.mxu1 %v1415_v35  ;;  %v1628_v33 = vld [vmem:[#allocation10 + $0x760] sm:$0xff]  ;;  %v1630_v35 = vld [vmem:[#allocation10 + $0x770] sm:$0xff] }
 0x21d   :  { %1817 = vmatpush1.msra.mxu0 %v1412_v40  ;;  %1888 = vmatpush1.msra.mxu1 %v1414_v26  ;;  %v1621_v40 = vld [vmem:[#allocation10 + $0x728] sm:$0xff]  ;;  %v1623_v26 = vld [vmem:[#allocation10 + $0x738] sm:$0xff] }
 0x21e   :  { %1818 = vmatprep.subr.mxu0 %v1405_v28  ;;  %1889 = vmatprep.subr.mxu1 %v1407_v60  ;;  %v1620_v28 = vld [vmem:[#allocation10 + $0x720] sm:$0xff]  ;;  %v1622_v60 = vld [vmem:[#allocation10 + $0x730] sm:$0xff] }
 0x21f   :  { %1819 = vmatpush1.msra.mxu0 %v1404_v3  ;;  %1890 = vmatpush1.msra.mxu1 %v1406_v14  ;;  %v1613_v3 = vld [vmem:[#allocation10 + $0x6e8] sm:$0xff]  ;;  %v1615_v14 = vld [vmem:[#allocation10 + $0x6f8] sm:$0xff] }
 0x220   :  { %1820 = vmatprep.subr.mxu0 %v1397_v23  ;;  %1891 = vmatprep.subr.mxu1 %v1399_v25  ;;  %v1612_v23 = vld [vmem:[#allocation10 + $0x6e0] sm:$0xff]  ;;  %v1614_v25 = vld [vmem:[#allocation10 + $0x6f0] sm:$0xff] }
 0x221   :  { %1821 = vmatpush1.msra.mxu0 %v1396_v24  ;;  %1892 = vmatpush1.msra.mxu1 %v1398_v11  ;;  %v1605_v24 = vld [vmem:[#allocation10 + $0x6a8] sm:$0xff]  ;;  %v1607_v11 = vld [vmem:[#allocation10 + $0x6b8] sm:$0xff] }
 0x222   :  { %1822 = vmatprep.subr.mxu0 %v1645_v31  ;;  %1893 = vmatprep.subr.mxu1 %v1647_v43  ;;  %v1604_v31 = vld [vmem:[#allocation10 + $0x6a0] sm:$0xff]  ;;  %v1606_v43 = vld [vmem:[#allocation10 + $0x6b0] sm:$0xff] }
 0x223   :  { %1823 = vmatpush2.msra.mxu0 %v1644_v2  ;;  %1894 = vmatpush2.msra.mxu1 %v1646_v47  ;;  %v1597_v2 = vld [vmem:[#allocation10 + $0x668] sm:$0xff]  ;;  %v1599_v47 = vld [vmem:[#allocation10 + $0x678] sm:$0xff] }
 0x224   :  { %1824 = vmatprep.subr.mxu0 %v1637_v32  ;;  %1895 = vmatprep.subr.mxu1 %v1639_v22  ;;  %v1596_v32 = vld [vmem:[#allocation10 + $0x660] sm:$0xff]  ;;  %v1598_v22 = vld [vmem:[#allocation10 + $0x670] sm:$0xff] }
 0x225   :  { %1825 = vmatpush2.msra.mxu0 %v1636_v34  ;;  %1896 = vmatpush2.msra.mxu1 %v1638_v36  ;;  %v1589_v34 = vld [vmem:[#allocation10 + $0x628] sm:$0xff]  ;;  %v1591_v36 = vld [vmem:[#allocation10 + $0x638] sm:$0xff] }
 0x226   :  { %1826 = vmatprep.subr.mxu0 %v1629_v37  ;;  %1897 = vmatprep.subr.mxu1 %v1631_v0  ;;  %v1588_v37 = vld [vmem:[#allocation10 + $0x620] sm:$0xff]  ;;  %v1590_v0 = vld [vmem:[#allocation10 + $0x630] sm:$0xff] }
 0x227   :  { %1827 = vmatpush2.msra.mxu0 %v1628_v33  ;;  %1898 = vmatpush2.msra.mxu1 %v1630_v35  ;;  %v1581_v33 = vld [vmem:[#allocation10 + $0x5e8] sm:$0xff]  ;;  %v1583_v35 = vld [vmem:[#allocation10 + $0x5f8] sm:$0xff] }
 0x228   :  { %1828 = vmatprep.subr.mxu0 %v1621_v40  ;;  %1899 = vmatprep.subr.mxu1 %v1623_v26  ;;  %v1580_v40 = vld [vmem:[#allocation10 + $0x5e0] sm:$0xff]  ;;  %v1582_v26 = vld [vmem:[#allocation10 + $0x5f0] sm:$0xff] }
 0x229   :  { %1829 = vmatpush2.msra.mxu0 %v1620_v28  ;;  %1900 = vmatpush2.msra.mxu1 %v1622_v60  ;;  %v1573_v28 = vld [vmem:[#allocation10 + $0x5a8] sm:$0xff]  ;;  %v1575_v60 = vld [vmem:[#allocation10 + $0x5b8] sm:$0xff] }
 0x22a   :  { %1830 = vmatprep.subr.mxu0 %v1613_v3  ;;  %1901 = vmatprep.subr.mxu1 %v1615_v14  ;;  %v1572_v3 = vld [vmem:[#allocation10 + $0x5a0] sm:$0xff]  ;;  %v1574_v14 = vld [vmem:[#allocation10 + $0x5b0] sm:$0xff] }
 0x22b   :  { %1831 = vmatpush2.msra.mxu0 %v1612_v23  ;;  %1902 = vmatpush2.msra.mxu1 %v1614_v25  ;;  %v1565_v23 = vld [vmem:[#allocation10 + $0x568] sm:$0xff]  ;;  %v1567_v25 = vld [vmem:[#allocation10 + $0x578] sm:$0xff] }
 0x22c   :  { %1832 = vmatprep.subr.mxu0 %v1605_v24  ;;  %1903 = vmatprep.subr.mxu1 %v1607_v11  ;;  %v1564_v24 = vld [vmem:[#allocation10 + $0x560] sm:$0xff]  ;;  %v1566_v11 = vld [vmem:[#allocation10 + $0x570] sm:$0xff] }
 0x22d   :  { %1833 = vmatpush2.msra.mxu0 %v1604_v31  ;;  %1904 = vmatpush2.msra.mxu1 %v1606_v43  ;;  %v1557_v31 = vld [vmem:[#allocation10 + $0x528] sm:$0xff]  ;;  %v1559_v43 = vld [vmem:[#allocation10 + $0x538] sm:$0xff] }
 0x22e   :  { %1834 = vmatprep.subr.mxu0 %v1597_v2  ;;  %1905 = vmatprep.subr.mxu1 %v1599_v47  ;;  %v1556_v2 = vld [vmem:[#allocation10 + $0x520] sm:$0xff]  ;;  %v1558_v47 = vld [vmem:[#allocation10 + $0x530] sm:$0xff] }
 0x22f   :  { %1835 = vmatpush2.msra.mxu0 %v1596_v32  ;;  %1906 = vmatpush2.msra.mxu1 %v1598_v22  ;;  %v1549_v32 = vld [vmem:[#allocation10 + $0x4e8] sm:$0xff]  ;;  %v1551_v22 = vld [vmem:[#allocation10 + $0x4f8] sm:$0xff] }
 0x230   :  { %1836 = vmatprep.subr.mxu0 %v1589_v34  ;;  %1907 = vmatprep.subr.mxu1 %v1591_v36  ;;  %v1548_v34 = vld [vmem:[#allocation10 + $0x4e0] sm:$0xff]  ;;  %v1550_v36 = vld [vmem:[#allocation10 + $0x4f0] sm:$0xff] }
 0x231   :  { %1837 = vmatpush2.msra.mxu0 %v1588_v37  ;;  %1908 = vmatpush2.msra.mxu1 %v1590_v0  ;;  %v1541_v37 = vld [vmem:[#allocation10 + $0x4a8] sm:$0xff]  ;;  %v1543_v0 = vld [vmem:[#allocation10 + $0x4b8] sm:$0xff] }
 0x232   :  { %1838 = vmatprep.subr.mxu0 %v1581_v33  ;;  %1909 = vmatprep.subr.mxu1 %v1583_v35  ;;  %v1540_v33 = vld [vmem:[#allocation10 + $0x4a0] sm:$0xff]  ;;  %v1542_v35 = vld [vmem:[#allocation10 + $0x4b0] sm:$0xff] }
 0x233   :  { %1839 = vmatpush2.msra.mxu0 %v1580_v40  ;;  %1910 = vmatpush2.msra.mxu1 %v1582_v26  ;;  %v1533_v40 = vld [vmem:[#allocation10 + $0x468] sm:$0xff]  ;;  %v1535_v26 = vld [vmem:[#allocation10 + $0x478] sm:$0xff] }
 0x234   :  { %1840 = vmatprep.subr.mxu0 %v1573_v28  ;;  %1911 = vmatprep.subr.mxu1 %v1575_v60  ;;  %v1532_v28 = vld [vmem:[#allocation10 + $0x460] sm:$0xff]  ;;  %v1534_v60 = vld [vmem:[#allocation10 + $0x470] sm:$0xff] }
 0x235   :  { %1841 = vmatpush2.msra.mxu0 %v1572_v3  ;;  %1912 = vmatpush2.msra.mxu1 %v1574_v14  ;;  %v1525_v3 = vld [vmem:[#allocation10 + $0x428] sm:$0xff]  ;;  %v1527_v14 = vld [vmem:[#allocation10 + $0x438] sm:$0xff] }
 0x236   :  { %1842 = vmatprep.subr.mxu0 %v1565_v23  ;;  %1913 = vmatprep.subr.mxu1 %v1567_v25  ;;  %v1524_v23 = vld [vmem:[#allocation10 + $0x420] sm:$0xff]  ;;  %v1526_v25 = vld [vmem:[#allocation10 + $0x430] sm:$0xff] }
 0x237   :  { %1843 = vmatpush2.msra.mxu0 %v1564_v24  ;;  %1914 = vmatpush2.msra.mxu1 %v1566_v11  ;;  %v2121_v24 = vld [vmem:[#allocation10 + $0x3c8] sm:$0xff]  ;;  %v2123_v11 = vld [vmem:[#allocation10 + $0x3d8] sm:$0xff] }
 0x238   :  { %1844 = vmatprep.subr.mxu0 %v1557_v31  ;;  %1915 = vmatprep.subr.mxu1 %v1559_v43  ;;  %v2120_v31 = vld [vmem:[#allocation10 + $0x3c0] sm:$0xff]  ;;  %v2122_v43 = vld [vmem:[#allocation10 + $0x3d0] sm:$0xff] }
 0x239   :  { %1845 = vmatpush2.msra.mxu0 %v1556_v2  ;;  %1916 = vmatpush2.msra.mxu1 %v1558_v47  ;;  %v2113_v2 = vld [vmem:[#allocation10 + $0x388] sm:$0xff]  ;;  %v2115_v47 = vld [vmem:[#allocation10 + $0x398] sm:$0xff] }
 0x23a   :  { %1846 = vmatprep.subr.mxu0 %v1549_v32  ;;  %1917 = vmatprep.subr.mxu1 %v1551_v22  ;;  %v2112_v32 = vld [vmem:[#allocation10 + $0x380] sm:$0xff]  ;;  %v2114_v22 = vld [vmem:[#allocation10 + $0x390] sm:$0xff] }
 0x23b   :  { %1847 = vmatpush2.msra.mxu0 %v1548_v34  ;;  %1918 = vmatpush2.msra.mxu1 %v1550_v36  ;;  %v2105_v34 = vld [vmem:[#allocation10 + $0x348] sm:$0xff]  ;;  %v2107_v36 = vld [vmem:[#allocation10 + $0x358] sm:$0xff] }
 0x23c   :  { %1848 = vmatprep.subr.mxu0 %v1541_v37  ;;  %1919 = vmatprep.subr.mxu1 %v1543_v0  ;;  %v2104_v37 = vld [vmem:[#allocation10 + $0x340] sm:$0xff]  ;;  %v2106_v0 = vld [vmem:[#allocation10 + $0x350] sm:$0xff] }
 0x23d   :  { %1849 = vmatpush2.msra.mxu0 %v1540_v33  ;;  %1920 = vmatpush2.msra.mxu1 %v1542_v35  ;;  %v2099_v33 = vld [vmem:[#allocation10 + $0x318] sm:$0xff]  ;;  %v2096_v35 = vld [vmem:[#allocation10 + $0x300] sm:$0xff] }
 0x23e   :  { %1850 = vmatprep.subr.mxu0 %v1533_v40  ;;  %1921 = vmatprep.subr.mxu1 %v1535_v26  ;;  %v2098_v40 = vld [vmem:[#allocation10 + $0x310] sm:$0xff]  ;;  %v2089_v26 = vld [vmem:[#allocation10 + $0x2c8] sm:$0xff] }
 0x23f   :  { %1851 = vmatpush2.msra.mxu0 %v1532_v28  ;;  %1922 = vmatpush2.msra.mxu1 %v1534_v60  ;;  %v2091_v28 = vld [vmem:[#allocation10 + $0x2d8] sm:$0xff]  ;;  %v2088_v60 = vld [vmem:[#allocation10 + $0x2c0] sm:$0xff] }
 0x240   :  { %1852 = vmatprep.subr.mxu0 %v1525_v3  ;;  %1923 = vmatprep.subr.mxu1 %v1527_v14  ;;  %v2090_v3 = vld [vmem:[#allocation10 + $0x2d0] sm:$0xff]  ;;  %v2081_v14 = vld [vmem:[#allocation10 + $0x288] sm:$0xff] }
 0x241   :  { %1853 = vmatpush2.msra.mxu0 %v1524_v23  ;;  %1924 = vmatpush2.msra.mxu1 %v1526_v25  ;;  %v2083_v23 = vld [vmem:[#allocation10 + $0x298] sm:$0xff]  ;;  %v2080_v25 = vld [vmem:[#allocation10 + $0x280] sm:$0xff] }
 0x242   :  { %1855 = vmatmul.mubr.f32.vlgmr.msra.gmra.mxu0 %v6443_v27  ;;  %1926 = vmatmul.mubr.f32.vlgmr.msra.gmra.mxu1 %v6443_v27  ;;  %v2097_v27 = vld [vmem:[#allocation10 + $0x308] sm:$0xff] }
 0x243   :  { %2256 = vmatprep.subr.mxu0 %v2121_v24  ;;  %2327 = vmatprep.subr.mxu1 %v2123_v11  ;;  %v2082_v24 = vld [vmem:[#allocation10 + $0x290] sm:$0xff]  ;;  %v2073_v11 = vld [vmem:[#allocation10 + $0x248] sm:$0xff] }
 0x244   :  { %2257 = vmatpush1.msra.mxu0 %v2120_v31  ;;  %2328 = vmatpush1.msra.mxu1 %v2122_v43  ;;  %v2075_v31 = vld [vmem:[#allocation10 + $0x258] sm:$0xff]  ;;  %v2072_v43 = vld [vmem:[#allocation10 + $0x240] sm:$0xff] }
 0x245   :  { %2258 = vmatprep.subr.mxu0 %v2113_v2  ;;  %2329 = vmatprep.subr.mxu1 %v2115_v47  ;;  %v2074_v2 = vld [vmem:[#allocation10 + $0x250] sm:$0xff]  ;;  %v2065_v47 = vld [vmem:[#allocation10 + $0x208] sm:$0xff] }
 0x246   :  { %2259 = vmatpush1.msra.mxu0 %v2112_v32  ;;  %2330 = vmatpush1.msra.mxu1 %v2114_v22  ;;  %v2067_v32 = vld [vmem:[#allocation10 + $0x218] sm:$0xff]  ;;  %v2064_v22 = vld [vmem:[#allocation10 + $0x200] sm:$0xff] }
 0x247   :  { %2260 = vmatprep.subr.mxu0 %v2105_v34  ;;  %2331 = vmatprep.subr.mxu1 %v2107_v36  ;;  %v2066_v34 = vld [vmem:[#allocation10 + $0x210] sm:$0xff]  ;;  %v2057_v36 = vld [vmem:[#allocation10 + $0x1c8] sm:$0xff] }
 0x248   :  { %2261 = vmatpush1.msra.mxu0 %v2104_v37  ;;  %2332 = vmatpush1.msra.mxu1 %v2106_v0  ;;  %v2059_v37 = vld [vmem:[#allocation10 + $0x1d8] sm:$0xff]  ;;  %v2056_v0 = vld [vmem:[#allocation10 + $0x1c0] sm:$0xff] }
 0x249   :  { %2262 = vmatprep.subr.mxu0 %v2097_v27  ;;  %2333 = vmatprep.subr.mxu1 %v2099_v33  ;;  %v2058_v27 = vld [vmem:[#allocation10 + $0x1d0] sm:$0xff]  ;;  %v2049_v33 = vld [vmem:[#allocation10 + $0x188] sm:$0xff] }
 0x24a   :  { %2263 = vmatpush1.msra.mxu0 %v2096_v35  ;;  %2334 = vmatpush1.msra.mxu1 %v2098_v40  ;;  %v2051_v35 = vld [vmem:[#allocation10 + $0x198] sm:$0xff]  ;;  %v2048_v40 = vld [vmem:[#allocation10 + $0x180] sm:$0xff] }
 0x24b   :  { %2264 = vmatprep.subr.mxu0 %v2089_v26  ;;  %2335 = vmatprep.subr.mxu1 %v2091_v28  ;;  %v2050_v26 = vld [vmem:[#allocation10 + $0x190] sm:$0xff]  ;;  %v2041_v28 = vld [vmem:[#allocation10 + $0x148] sm:$0xff] }
 0x24c   :  { %2265 = vmatpush1.msra.mxu0 %v2088_v60  ;;  %2336 = vmatpush1.msra.mxu1 %v2090_v3  ;;  %v2043_v60 = vld [vmem:[#allocation10 + $0x158] sm:$0xff]  ;;  %v2040_v3 = vld [vmem:[#allocation10 + $0x140] sm:$0xff] }
 0x24d   :  { %2266 = vmatprep.subr.mxu0 %v2081_v14  ;;  %2337 = vmatprep.subr.mxu1 %v2083_v23  ;;  %v2042_v14 = vld [vmem:[#allocation10 + $0x150] sm:$0xff]  ;;  %v2033_v23 = vld [vmem:[#allocation10 + $0x108] sm:$0xff] }
 0x24e   :  { %2267 = vmatpush1.msra.mxu0 %v2080_v25  ;;  %2338 = vmatpush1.msra.mxu1 %v2082_v24  ;;  %v2035_v25 = vld [vmem:[#allocation10 + $0x118] sm:$0xff]  ;;  %v2032_v24 = vld [vmem:[#allocation10 + $0x100] sm:$0xff] }
 0x24f   :  { %2268 = vmatprep.subr.mxu0 %v2073_v11  ;;  %2339 = vmatprep.subr.mxu1 %v2075_v31  ;;  %v2034_v11 = vld [vmem:[#allocation10 + $0x110] sm:$0xff]  ;;  %v2025_v31 = vld [vmem:[#allocation10 + $0xc8] sm:$0xff] }
 0x250   :  { %2269 = vmatpush1.msra.mxu0 %v2072_v43  ;;  %2340 = vmatpush1.msra.mxu1 %v2074_v2  ;;  %v2027_v43 = vld [vmem:[#allocation10 + $0xd8] sm:$0xff]  ;;  %v2024_v2 = vld [vmem:[#allocation10 + $0xc0] sm:$0xff] }
 0x251   :  { %2270 = vmatprep.subr.mxu0 %v2065_v47  ;;  %2341 = vmatprep.subr.mxu1 %v2067_v32  ;;  %v2026_v47 = vld [vmem:[#allocation10 + $0xd0] sm:$0xff]  ;;  %v2017_v32 = vld [vmem:[#allocation10 + $0x88] sm:$0xff] }
 0x252   :  { %2271 = vmatpush1.msra.mxu0 %v2064_v22  ;;  %2342 = vmatpush1.msra.mxu1 %v2066_v34  ;;  %v2019_v22 = vld [vmem:[#allocation10 + $0x98] sm:$0xff]  ;;  %v2016_v34 = vld [vmem:[#allocation10 + $0x80] sm:$0xff] }
 0x253   :  { %2272 = vmatprep.subr.mxu0 %v2057_v36  ;;  %2343 = vmatprep.subr.mxu1 %v2059_v37  ;;  %v2018_v36 = vld [vmem:[#allocation10 + $0x90] sm:$0xff]  ;;  %v2009_v37 = vld [vmem:[#allocation10 + $0x48] sm:$0xff] }
 0x254   :  { %2273 = vmatpush1.msra.mxu0 %v2056_v0  ;;  %2344 = vmatpush1.msra.mxu1 %v2058_v27  ;;  %v2011_v0 = vld [vmem:[#allocation10 + $0x58] sm:$0xff]  ;;  %v2008_v27 = vld [vmem:[#allocation10 + $0x40] sm:$0xff] }
 0x255   :  { %2274 = vmatprep.subr.mxu0 %v2049_v33  ;;  %2345 = vmatprep.subr.mxu1 %v2051_v35  ;;  %v2010_v33 = vld [vmem:[#allocation10 + $0x50] sm:$0xff]  ;;  %v2001_v35 = vld [vmem:[#allocation10 + $0x8] sm:$0xff] }
 0x256   :  { %2275 = vmatpush1.msra.mxu0 %v2048_v40  ;;  %2346 = vmatpush1.msra.mxu1 %v2050_v26  ;;  %v2003_v40 = vld [vmem:[#allocation10 + $0x18] sm:$0xff]  ;;  %v2000_v26 = vld [vmem:[#allocation10] sm:$0xff] }
 0x257   :  { %2276 = vmatprep.subr.mxu0 %v2041_v28  ;;  %2347 = vmatprep.subr.mxu1 %v2043_v60  ;;  %v2002_v28 = vld [vmem:[#allocation10 + $0x10] sm:$0xff]  ;;  %v2249_v60 = vld [vmem:[#allocation10 + $0x7c8] sm:$0xff] }
 0x258   :  { %2277 = vmatpush1.msra.mxu0 %v2040_v3  ;;  %2348 = vmatpush1.msra.mxu1 %v2042_v14  ;;  %v2251_v3 = vld [vmem:[#allocation10 + $0x7d8] sm:$0xff]  ;;  %v2248_v14 = vld [vmem:[#allocation10 + $0x7c0] sm:$0xff] }
 0x259   :  { %2278 = vmatprep.subr.mxu0 %v2033_v23  ;;  %2349 = vmatprep.subr.mxu1 %v2035_v25  ;;  %v2250_v23 = vld [vmem:[#allocation10 + $0x7d0] sm:$0xff]  ;;  %v2241_v25 = vld [vmem:[#allocation10 + $0x788] sm:$0xff] }
 0x25a   :  { %2279 = vmatpush1.msra.mxu0 %v2032_v24  ;;  %2350 = vmatpush1.msra.mxu1 %v2034_v11  ;;  %v2243_v24 = vld [vmem:[#allocation10 + $0x798] sm:$0xff]  ;;  %v2240_v11 = vld [vmem:[#allocation10 + $0x780] sm:$0xff] }
 0x25b   :  { %2280 = vmatprep.subr.mxu0 %v2025_v31  ;;  %2351 = vmatprep.subr.mxu1 %v2027_v43  ;;  %v2242_v31 = vld [vmem:[#allocation10 + $0x790] sm:$0xff]  ;;  %v2233_v43 = vld [vmem:[#allocation10 + $0x748] sm:$0xff] }
 0x25c   :  { %2281 = vmatpush1.msra.mxu0 %v2024_v2  ;;  %2352 = vmatpush1.msra.mxu1 %v2026_v47  ;;  %v2235_v2 = vld [vmem:[#allocation10 + $0x758] sm:$0xff]  ;;  %v2232_v47 = vld [vmem:[#allocation10 + $0x740] sm:$0xff] }
 0x25d   :  { %2282 = vmatprep.subr.mxu0 %v2017_v32  ;;  %2353 = vmatprep.subr.mxu1 %v2019_v22  ;;  %v2234_v32 = vld [vmem:[#allocation10 + $0x750] sm:$0xff]  ;;  %v2225_v22 = vld [vmem:[#allocation10 + $0x708] sm:$0xff] }
 0x25e   :  { %2283 = vmatpush1.msra.mxu0 %v2016_v34  ;;  %2354 = vmatpush1.msra.mxu1 %v2018_v36  ;;  %v2227_v34 = vld [vmem:[#allocation10 + $0x718] sm:$0xff]  ;;  %v2224_v36 = vld [vmem:[#allocation10 + $0x700] sm:$0xff] }
 0x25f   :  { %2284 = vmatprep.subr.mxu0 %v2009_v37  ;;  %2355 = vmatprep.subr.mxu1 %v2011_v0  ;;  %v2226_v37 = vld [vmem:[#allocation10 + $0x710] sm:$0xff]  ;;  %v2217_v0 = vld [vmem:[#allocation10 + $0x6c8] sm:$0xff] }
 0x260   :  { %2285 = vmatpush1.msra.mxu0 %v2008_v27  ;;  %2356 = vmatpush1.msra.mxu1 %v2010_v33  ;;  %v2219_v27 = vld [vmem:[#allocation10 + $0x6d8] sm:$0xff]  ;;  %v2216_v33 = vld [vmem:[#allocation10 + $0x6c0] sm:$0xff] }
 0x261   :  { %2286 = vmatprep.subr.mxu0 %v2001_v35  ;;  %2357 = vmatprep.subr.mxu1 %v2003_v40  ;;  %v2218_v35 = vld [vmem:[#allocation10 + $0x6d0] sm:$0xff]  ;;  %v2209_v40 = vld [vmem:[#allocation10 + $0x688] sm:$0xff] }
 0x262   :  { %2287 = vmatpush1.msra.mxu0 %v2000_v26  ;;  %2358 = vmatpush1.msra.mxu1 %v2002_v28  ;;  %v2211_v26 = vld [vmem:[#allocation10 + $0x698] sm:$0xff]  ;;  %v2208_v28 = vld [vmem:[#allocation10 + $0x680] sm:$0xff] }
 0x263   :  { %2288 = vmatprep.subr.mxu0 %v2249_v60  ;;  %2359 = vmatprep.subr.mxu1 %v2251_v3  ;;  %v2210_v60 = vld [vmem:[#allocation10 + $0x690] sm:$0xff]  ;;  %v2201_v3 = vld [vmem:[#allocation10 + $0x648] sm:$0xff] }
 0x264   :  { %2289 = vmatpush2.msra.mxu0 %v2248_v14  ;;  %2360 = vmatpush2.msra.mxu1 %v2250_v23  ;;  %v2203_v14 = vld [vmem:[#allocation10 + $0x658] sm:$0xff]  ;;  %v2200_v23 = vld [vmem:[#allocation10 + $0x640] sm:$0xff] }
 0x265   :  { %2290 = vmatprep.subr.mxu0 %v2241_v25  ;;  %2361 = vmatprep.subr.mxu1 %v2243_v24  ;;  %v2202_v25 = vld [vmem:[#allocation10 + $0x650] sm:$0xff]  ;;  %v2193_v24 = vld [vmem:[#allocation10 + $0x608] sm:$0xff] }
 0x266   :  { %2291 = vmatpush2.msra.mxu0 %v2240_v11  ;;  %2362 = vmatpush2.msra.mxu1 %v2242_v31  ;;  %v2195_v11 = vld [vmem:[#allocation10 + $0x618] sm:$0xff]  ;;  %v2192_v31 = vld [vmem:[#allocation10 + $0x600] sm:$0xff] }
 0x267   :  { %2292 = vmatprep.subr.mxu0 %v2233_v43  ;;  %2363 = vmatprep.subr.mxu1 %v2235_v2  ;;  %v2194_v43 = vld [vmem:[#allocation10 + $0x610] sm:$0xff]  ;;  %v2185_v2 = vld [vmem:[#allocation10 + $0x5c8] sm:$0xff] }
 0x268   :  { %2293 = vmatpush2.msra.mxu0 %v2232_v47  ;;  %2364 = vmatpush2.msra.mxu1 %v2234_v32  ;;  %v2187_v47 = vld [vmem:[#allocation10 + $0x5d8] sm:$0xff]  ;;  %v2184_v32 = vld [vmem:[#allocation10 + $0x5c0] sm:$0xff] }
 0x269   :  { %2294 = vmatprep.subr.mxu0 %v2225_v22  ;;  %2365 = vmatprep.subr.mxu1 %v2227_v34  ;;  %v2186_v22 = vld [vmem:[#allocation10 + $0x5d0] sm:$0xff]  ;;  %v2177_v34 = vld [vmem:[#allocation10 + $0x588] sm:$0xff] }
 0x26a   :  { %2295 = vmatpush2.msra.mxu0 %v2224_v36  ;;  %2366 = vmatpush2.msra.mxu1 %v2226_v37  ;;  %v2179_v36 = vld [vmem:[#allocation10 + $0x598] sm:$0xff]  ;;  %v2176_v37 = vld [vmem:[#allocation10 + $0x580] sm:$0xff] }
 0x26b   :  { %2296 = vmatprep.subr.mxu0 %v2217_v0  ;;  %2367 = vmatprep.subr.mxu1 %v2219_v27  ;;  %v2178_v0 = vld [vmem:[#allocation10 + $0x590] sm:$0xff]  ;;  %v2169_v27 = vld [vmem:[#allocation10 + $0x548] sm:$0xff] }
 0x26c   :  { %2297 = vmatpush2.msra.mxu0 %v2216_v33  ;;  %2368 = vmatpush2.msra.mxu1 %v2218_v35  ;;  %v2171_v33 = vld [vmem:[#allocation10 + $0x558] sm:$0xff]  ;;  %v2168_v35 = vld [vmem:[#allocation10 + $0x540] sm:$0xff] }
 0x26d   :  { %2298 = vmatprep.subr.mxu0 %v2209_v40  ;;  %2369 = vmatprep.subr.mxu1 %v2211_v26  ;;  %v2170_v40 = vld [vmem:[#allocation10 + $0x550] sm:$0xff]  ;;  %v2161_v26 = vld [vmem:[#allocation10 + $0x508] sm:$0xff] }
 0x26e   :  { %2299 = vmatpush2.msra.mxu0 %v2208_v28  ;;  %2370 = vmatpush2.msra.mxu1 %v2210_v60  ;;  %v2163_v28 = vld [vmem:[#allocation10 + $0x518] sm:$0xff]  ;;  %v2160_v60 = vld [vmem:[#allocation10 + $0x500] sm:$0xff] }
 0x26f   :  { %2300 = vmatprep.subr.mxu0 %v2201_v3  ;;  %2371 = vmatprep.subr.mxu1 %v2203_v14  ;;  %v2162_v3 = vld [vmem:[#allocation10 + $0x510] sm:$0xff]  ;;  %v2153_v14 = vld [vmem:[#allocation10 + $0x4c8] sm:$0xff] }
 0x270   :  { %2301 = vmatpush2.msra.mxu0 %v2200_v23  ;;  %2372 = vmatpush2.msra.mxu1 %v2202_v25  ;;  %v2155_v23 = vld [vmem:[#allocation10 + $0x4d8] sm:$0xff]  ;;  %v2152_v25 = vld [vmem:[#allocation10 + $0x4c0] sm:$0xff] }
 0x271   :  { %2302 = vmatprep.subr.mxu0 %v2193_v24  ;;  %2373 = vmatprep.subr.mxu1 %v2195_v11  ;;  %v2154_v24 = vld [vmem:[#allocation10 + $0x4d0] sm:$0xff]  ;;  %v2145_v11 = vld [vmem:[#allocation10 + $0x488] sm:$0xff] }
 0x272   :  { %2303 = vmatpush2.msra.mxu0 %v2192_v31  ;;  %2374 = vmatpush2.msra.mxu1 %v2194_v43  ;;  %v2147_v31 = vld [vmem:[#allocation10 + $0x498] sm:$0xff]  ;;  %v2144_v43 = vld [vmem:[#allocation10 + $0x480] sm:$0xff] }
 0x273   :  { %2304 = vmatprep.subr.mxu0 %v2185_v2  ;;  %2375 = vmatprep.subr.mxu1 %v2187_v47  ;;  %v2146_v2 = vld [vmem:[#allocation10 + $0x490] sm:$0xff]  ;;  %v2137_v47 = vld [vmem:[#allocation10 + $0x448] sm:$0xff] }
 0x274   :  { %2305 = vmatpush2.msra.mxu0 %v2184_v32  ;;  %2376 = vmatpush2.msra.mxu1 %v2186_v22  ;;  %v2139_v32 = vld [vmem:[#allocation10 + $0x458] sm:$0xff]  ;;  %v2136_v22 = vld [vmem:[#allocation10 + $0x440] sm:$0xff] }
 0x275   :  { %2306 = vmatprep.subr.mxu0 %v2177_v34  ;;  %2377 = vmatprep.subr.mxu1 %v2179_v36  ;;  %v2138_v34 = vld [vmem:[#allocation10 + $0x450] sm:$0xff]  ;;  %v2129_v36 = vld [vmem:[#allocation10 + $0x408] sm:$0xff] }
 0x276   :  { %2307 = vmatpush2.msra.mxu0 %v2176_v37  ;;  %2378 = vmatpush2.msra.mxu1 %v2178_v0  ;;  %v2131_v37 = vld [vmem:[#allocation10 + $0x418] sm:$0xff]  ;;  %v2128_v0 = vld [vmem:[#allocation10 + $0x400] sm:$0xff] }
 0x277   :  { %2308 = vmatprep.subr.mxu0 %v2169_v27  ;;  %2379 = vmatprep.subr.mxu1 %v2171_v33  ;;  %v2130_v27 = vld [vmem:[#allocation10 + $0x410] sm:$0xff]  ;;  %v2125_v33 = vld [vmem:[#allocation10 + $0x3e8] sm:$0xff] }
 0x278   :  { %2309 = vmatpush2.msra.mxu0 %v2168_v35  ;;  %2380 = vmatpush2.msra.mxu1 %v2170_v40  ;;  %v2127_v35 = vld [vmem:[#allocation10 + $0x3f8] sm:$0xff] }
 0x279   :  { %2310 = vmatprep.subr.mxu0 %v2161_v26  ;;  %2381 = vmatprep.subr.mxu1 %v2163_v28 }
 0x27a   :  { %2311 = vmatpush2.msra.mxu0 %v2160_v60  ;;  %2382 = vmatpush2.msra.mxu1 %v2162_v3 }
 0x27b   :  { %2312 = vmatprep.subr.mxu0 %v2153_v14  ;;  %2383 = vmatprep.subr.mxu1 %v2155_v23 }
 0x27c   :  { %2313 = vmatpush2.msra.mxu0 %v2152_v25  ;;  %2384 = vmatpush2.msra.mxu1 %v2154_v24 }
 0x27d   :  { %2314 = vmatprep.subr.mxu0 %v2145_v11  ;;  %2385 = vmatprep.subr.mxu1 %v2147_v31 }
 0x27e   :  { %2315 = vmatpush2.msra.mxu0 %v2144_v43  ;;  %2386 = vmatpush2.msra.mxu1 %v2146_v2 }
 0x27f   :  { %2316 = vmatprep.subr.mxu0 %v2137_v47  ;;  %2387 = vmatprep.subr.mxu1 %v2139_v32 }
 0x280   :  { %2317 = vmatpush2.msra.mxu0 %v2136_v22  ;;  %2388 = vmatpush2.msra.mxu1 %v2138_v34 }
 0x281   :  { %2318 = vmatprep.subr.mxu0 %v2129_v36  ;;  %2389 = vmatprep.subr.mxu1 %v2131_v37  ;;  %v558_v36 = vadd.f32 %v6353_v20, %v6424_v16 }
 0x282   :  { %2319 = vmatpush2.msra.mxu0 %v2128_v0  ;;  %2390 = vmatpush2.msra.mxu1 %v2130_v27 }
 0x283   :  { %2398 = vmatprep.subr.mxu0 %v2125_v33  ;;  %2469 = vmatprep.subr.mxu1 %v2127_v35  ;;  %v671_v33 = vadd.f32 %v6355_v48, %v6427_v59 }
 0x2c1   :  { %v1714_v40 = vpop.f32.mrf.mxu0  ;;  %v1785_v26 = vpop.f32.mrf.mxu1 }
 0x2c2   :  { %v1932_v60 = vadd.f32 %v1714_v40, %v6258_v41  ;;  %v1934_v3 = vadd.f32 %v1785_v26, %v6261_v42 }
 0x2c3   :  { %v1716_v28 = vpop.f32.mrf.mxu0  ;;  %v1787_v14 = vpop.f32.mrf.mxu1 }
 0x2c4   :  { %v1933_v23 = vadd.f32 %v1716_v28, %v6264_v45  ;;  %v5668_v25 = vmul.f32 -1.442695, %v1932_v60  ;;  %v1935_v24 = vadd.f32 %v1787_v14, %v6267_v46  ;;  %v5670_v11 = vmul.f32 -1.442695, %v1934_v3 }
 0x2c5   :  { %v556_v45 = vadd.f32 %v6349_v39, %v6418_v18  ;;  %v669_v46 = vadd.f32 %v6351_v44, %v6421_v19 }
 0x2c6   :  { %v5669_v31 = vmul.f32 -1.442695, %v1933_v23  ;;  %5754 = vpow2.f32 %v5668_v25  ;;  %v5671_v43 = vmul.f32 -1.442695, %v1935_v24 }
 0x2c7   :  { %5756 = vpow2.f32 %v5670_v11 }
 0x2c8   :  { %5758 = vpow2.f32 %v5669_v31 }
 0x2c9   :  { %5760 = vpow2.f32 %v5671_v43 }
 0x2d3   :  { %v5755_v2 = vpop.eup %5754 }
 0x2d4   :  { %v5757_v47 = vpop.eup %5756  ;;  %v1952_v22 = vadd.f32 1.0, %v5755_v2 }
 0x2d5   :  { %v5759_v32 = vpop.eup %5758  ;;  %v1954_v34 = vadd.f32 1.0, %v5757_v47 }
 0x2d6   :  { %v5761_v41 = vpop.eup %5760  ;;  %v1953_v42 = vadd.f32 1.0, %v5759_v32  ;;  %5762 = vrcp.f32 %v1952_v22 }
 0x2d7   :  { %v1955_v37 = vadd.f32 1.0, %v5761_v41  ;;  %5764 = vrcp.f32 %v1954_v34 }
 0x2d8   :  { %5766 = vrcp.f32 %v1953_v42 }
 0x2e3   :  { %v5763_v3 = vpop.eup %5762 }
 0x2e4   :  { %v5765_v14 = vpop.eup %5764 }
 0x2e5   :  { %v5767_v23 = vpop.eup %5766  ;;  %v1978_v24 = vmul.f32 %v5765_v14, %v6437_v13  ;;  %v2100_v14 = vld [vmem:[#allocation10 + $0x320] sm:$0xff] }
 0x302   :  { %v1856_v0 = vpop.f32.mrf.mxu0  ;;  %v1927_v27 = vpop.f32.mrf.mxu1 }
 0x303   :  { %v1936_v35 = vadd.f32 %v1856_v0, %v556_v45  ;;  %v1938_v40 = vadd.f32 %v1927_v27, %v669_v46  ;;  %v2126_v27 = vld [vmem:[#allocation10 + $0x3f0] sm:$0xff] }
 0x304   :  { %v1858_v26 = vpop.f32.mrf.mxu0  ;;  %v1929_v28 = vpop.f32.mrf.mxu1 }
 0x305   :  { %5768 = vtanh.f32 %v1936_v35  ;;  %v5672_v39 = vmul.f32 -1.442695, %v1938_v40  ;;  %v1937_v60 = vadd.f32 %v1858_v26, %v558_v36  ;;  %v1939_v44 = vadd.f32 %v1929_v28, %v671_v33  ;;  %v2117_v33 = vld [vmem:[#allocation10 + $0x3a8] sm:$0xff]  ;;  %v2119_v35 = vld [vmem:[#allocation10 + $0x3b8] sm:$0xff]  ;;  %v2116_v40 = vld [vmem:[#allocation10 + $0x3a0] sm:$0xff] }
 0x306   :  { %5770 = vrcp.f32 %v1955_v37  ;;  %v2118_v26 = vld [vmem:[#allocation10 + $0x3b0] sm:$0xff]  ;;  %v2109_v28 = vld [vmem:[#allocation10 + $0x368] sm:$0xff] }
 0x307   :  { %5772 = vpow2.f32 %v5672_v39  ;;  %v5673_v20 = vmul.f32 -1.442695, %v1939_v44  ;;  %v2111_v39 = vld [vmem:[#allocation10 + $0x378] sm:$0xff]  ;;  %v2110_v44 = vld [vmem:[#allocation10 + $0x370] sm:$0xff] }
 0x308   :  { %5774 = vtanh.f32 %v1937_v60  ;;  %v2108_v60 = vld [vmem:[#allocation10 + $0x360] sm:$0xff] }
 0x309   :  { %5776 = vpow2.f32 %v5673_v20  ;;  %v2101_v20 = vld [vmem:[#allocation10 + $0x328] sm:$0xff] }
 0x312   :  { %v5769_v25 = vpop.eup %5768 }
 0x313   :  { %v5771_v48 = vpop.eup %5770  ;;  %v1980_v11 = vmul.f32 %v5769_v25, %v5763_v3  ;;  %v2103_v3 = vld [vmem:[#allocation10 + $0x338] sm:$0xff]  ;;  %v2093_v25 = vld [vmem:[#allocation10 + $0x2e8] sm:$0xff] }
 0x314   :  { %v5773_v31 = vpop.eup %5772  ;;  %v1979_v22 = vmul.f32 %v5771_v48, %v6440_v30  ;;  %v2124_v30 = vld [vmem:[#allocation10 + $0x3e0] sm:$0xff]  ;;  %v2095_v48 = vld [vmem:[#allocation10 + $0x2f8] sm:$0xff] }
 0x315   :  { %v5775_v43 = vpop.eup %5774  ;;  %v6463_v2 = vadd.f32 %v1980_v11, %v1978_v24  ;;  %v1972_v47 = vadd.f32 1.0, %v5773_v31  ;;  %v2092_v24 = vld [vmem:[#allocation10 + $0x2e0] sm:$0xff]  ;;  %v2094_v11 = vld [vmem:[#allocation10 + $0x2f0] sm:$0xff]  ;;  %v2085_v31 = vld [vmem:[#allocation10 + $0x2a8] sm:$0xff] }
 0x316   :  { %v5777_v32 = vpop.eup %5776  ;;  %v1981_v41 = vmul.f32 %v5775_v43, %v5767_v23  ;;  %v2102_v23 = vld [vmem:[#allocation10 + $0x330] sm:$0xff]  ;;  %v2087_v43 = vld [vmem:[#allocation10 + $0x2b8] sm:$0xff] }
 0x317   :  { %5778 = vtanh.f32 %v6463_v2  ;;  %v1973_v34 = vadd.f32 1.0, %v5777_v32  ;;  %v2086_v32 = vld [vmem:[#allocation10 + $0x2b0] sm:$0xff] }
 0x318   :  { %5780 = vrcp.f32 %v1972_v47  ;;  %v6467_v42 = vadd.f32 %v1981_v41, %v1979_v22  ;;  %v2084_v47 = vld [vmem:[#allocation10 + $0x2a0] sm:$0xff]  ;;  %v2077_v22 = vld [vmem:[#allocation10 + $0x268] sm:$0xff]  ;;  %v2079_v41 = vld [vmem:[#allocation10 + $0x278] sm:$0xff] }
 0x319   :  { %5782 = vrcp.f32 %v1973_v34  ;;  %v2076_v34 = vld [vmem:[#allocation10 + $0x260] sm:$0xff] }
 0x31a   :  { %5784 = vtanh.f32 %v6467_v42 }
 0x324   :  { %v5779_v13 = vpop.eup %5778 }
 0x325   :  { %v5781_v45 = vpop.eup %5780 }
 0x326   :  { %v5783_v46 = vpop.eup %5782  ;;  %v6470_v36 = vmul.f32 %v5781_v45, %v5779_v13  ;;  %v2078_v13 = vld [vmem:[#allocation10 + $0x270] sm:$0xff]  ;;  %v2069_v45 = vld [vmem:[#allocation10 + $0x228] sm:$0xff] }
 0x327   :  { %v5785_v37 = vpop.eup %5784 }
 0x328   :  { %v1987_v0 = vmul.f32 %v5785_v37, %v5783_v46  ;;  %1989 = vst [vmem:[#allocation13 + $0x10] sm:$0xff] %v6470_v36  ;;  %v2071_v46 = vld [vmem:[#allocation10 + $0x238] sm:$0xff]  ;;  %v2068_v37 = vld [vmem:[#allocation10 + $0x220] sm:$0xff] }
 0x32a   :  { %1990 = vst [vmem:[#allocation13 + $0x18] sm:$0xff] %v1987_v0  ;;  %2320 = vmatprep.mubr.f32.mxu0 %v1987_v0  ;;  %2391 = vmatprep.mubr.f32.mxu1 %v1987_v0 }
 0x32b   :  { %2321 = vmatmul.mubr.f32.vlgmr.msra.gmra.mxu0 %v6470_v36  ;;  %2392 = vmatmul.mubr.f32.vlgmr.msra.gmra.mxu1 %v6470_v36 }
 0x32c   :  { %2399 = vmatpush1.msra.mxu0 %v2124_v30  ;;  %2470 = vmatpush1.msra.mxu1 %v2126_v27  ;;  %v2061_v30 = vld [vmem:[#allocation10 + $0x1e8] sm:$0xff]  ;;  %v2063_v27 = vld [vmem:[#allocation10 + $0x1f8] sm:$0xff] }
 0x32d   :  { %2400 = vmatprep.subr.mxu0 %v2117_v33  ;;  %2462 = vmatprep.mubr.f32.mxu0 %v1987_v0  ;;  %v2060_v33 = vld [vmem:[#allocation10 + $0x1e0] sm:$0xff] }
 0x32e   :  { %2471 = vmatprep.subr.mxu1 %v2119_v35  ;;  %2533 = vmatprep.mubr.f32.mxu1 %v1987_v0  ;;  %v2070_v0 = vld [vmem:[#allocation10 + $0x230] sm:$0xff] }
 0x32f   :  { %2401 = vmatpush1.msra.mxu0 %v2116_v40  ;;  %2472 = vmatpush1.msra.mxu1 %v2118_v26  ;;  %v2062_v35 = vld [vmem:[#allocation10 + $0x1f0] sm:$0xff]  ;;  %v2053_v40 = vld [vmem:[#allocation10 + $0x1a8] sm:$0xff]  ;;  %v2055_v26 = vld [vmem:[#allocation10 + $0x1b8] sm:$0xff] }
 0x330   :  { %2402 = vmatprep.subr.mxu0 %v2109_v28  ;;  %2473 = vmatprep.subr.mxu1 %v2111_v39  ;;  %v2052_v28 = vld [vmem:[#allocation10 + $0x1a0] sm:$0xff]  ;;  %v2054_v39 = vld [vmem:[#allocation10 + $0x1b0] sm:$0xff] }
 0x331   :  { %2403 = vmatpush1.msra.mxu0 %v2108_v60  ;;  %2474 = vmatpush1.msra.mxu1 %v2110_v44  ;;  %v2045_v60 = vld [vmem:[#allocation10 + $0x168] sm:$0xff]  ;;  %v2047_v44 = vld [vmem:[#allocation10 + $0x178] sm:$0xff] }
 0x332   :  { %2404 = vmatprep.subr.mxu0 %v2101_v20  ;;  %2475 = vmatprep.subr.mxu1 %v2103_v3  ;;  %v2044_v20 = vld [vmem:[#allocation10 + $0x160] sm:$0xff]  ;;  %v2046_v3 = vld [vmem:[#allocation10 + $0x170] sm:$0xff] }
 0x333   :  { %2405 = vmatpush1.msra.mxu0 %v2100_v14  ;;  %2476 = vmatpush1.msra.mxu1 %v2102_v23  ;;  %v2037_v14 = vld [vmem:[#allocation10 + $0x128] sm:$0xff]  ;;  %v2039_v23 = vld [vmem:[#allocation10 + $0x138] sm:$0xff] }
 0x334   :  { %2406 = vmatprep.subr.mxu0 %v2093_v25  ;;  %2477 = vmatprep.subr.mxu1 %v2095_v48  ;;  %v2036_v25 = vld [vmem:[#allocation10 + $0x120] sm:$0xff]  ;;  %v2038_v48 = vld [vmem:[#allocation10 + $0x130] sm:$0xff] }
 0x335   :  { %2407 = vmatpush1.msra.mxu0 %v2092_v24  ;;  %2478 = vmatpush1.msra.mxu1 %v2094_v11  ;;  %v2029_v24 = vld [vmem:[#allocation10 + $0xe8] sm:$0xff]  ;;  %v2031_v11 = vld [vmem:[#allocation10 + $0xf8] sm:$0xff] }
 0x336   :  { %2408 = vmatprep.subr.mxu0 %v2085_v31  ;;  %2479 = vmatprep.subr.mxu1 %v2087_v43  ;;  %v2028_v31 = vld [vmem:[#allocation10 + $0xe0] sm:$0xff]  ;;  %v2030_v43 = vld [vmem:[#allocation10 + $0xf0] sm:$0xff] }
 0x337   :  { %2409 = vmatpush1.msra.mxu0 %v2084_v47  ;;  %2480 = vmatpush1.msra.mxu1 %v2086_v32  ;;  %v2021_v47 = vld [vmem:[#allocation10 + $0xa8] sm:$0xff]  ;;  %v2023_v32 = vld [vmem:[#allocation10 + $0xb8] sm:$0xff] }
 0x338   :  { %2410 = vmatprep.subr.mxu0 %v2077_v22  ;;  %2481 = vmatprep.subr.mxu1 %v2079_v41  ;;  %v2020_v22 = vld [vmem:[#allocation10 + $0xa0] sm:$0xff]  ;;  %v2022_v41 = vld [vmem:[#allocation10 + $0xb0] sm:$0xff] }
 0x339   :  { %2411 = vmatpush1.msra.mxu0 %v2076_v34  ;;  %2482 = vmatpush1.msra.mxu1 %v2078_v13  ;;  %v2013_v34 = vld [vmem:[#allocation10 + $0x68] sm:$0xff]  ;;  %v2015_v13 = vld [vmem:[#allocation10 + $0x78] sm:$0xff] }
 0x33a   :  { %2412 = vmatprep.subr.mxu0 %v2069_v45  ;;  %2483 = vmatprep.subr.mxu1 %v2071_v46  ;;  %v2012_v45 = vld [vmem:[#allocation10 + $0x60] sm:$0xff]  ;;  %v2014_v46 = vld [vmem:[#allocation10 + $0x70] sm:$0xff] }
 0x33b   :  { %2413 = vmatpush1.msra.mxu0 %v2068_v37  ;;  %2484 = vmatpush1.msra.mxu1 %v2070_v0  ;;  %v2005_v37 = vld [vmem:[#allocation10 + $0x28] sm:$0xff]  ;;  %v2007_v0 = vld [vmem:[#allocation10 + $0x38] sm:$0xff] }
 0x33c   :  { %2414 = vmatprep.subr.mxu0 %v2061_v30  ;;  %2485 = vmatprep.subr.mxu1 %v2063_v27  ;;  %v2004_v30 = vld [vmem:[#allocation10 + $0x20] sm:$0xff]  ;;  %v2006_v27 = vld [vmem:[#allocation10 + $0x30] sm:$0xff] }
 0x33d   :  { %2415 = vmatpush1.msra.mxu0 %v2060_v33  ;;  %2486 = vmatpush1.msra.mxu1 %v2062_v35  ;;  %v2253_v33 = vld [vmem:[#allocation10 + $0x7e8] sm:$0xff]  ;;  %v2255_v35 = vld [vmem:[#allocation10 + $0x7f8] sm:$0xff] }
 0x33e   :  { %2416 = vmatprep.subr.mxu0 %v2053_v40  ;;  %2487 = vmatprep.subr.mxu1 %v2055_v26  ;;  %v2252_v40 = vld [vmem:[#allocation10 + $0x7e0] sm:$0xff]  ;;  %v2254_v26 = vld [vmem:[#allocation10 + $0x7f0] sm:$0xff] }
 0x33f   :  { %2417 = vmatpush1.msra.mxu0 %v2052_v28  ;;  %2488 = vmatpush1.msra.mxu1 %v2054_v39  ;;  %v2245_v28 = vld [vmem:[#allocation10 + $0x7a8] sm:$0xff]  ;;  %v2247_v39 = vld [vmem:[#allocation10 + $0x7b8] sm:$0xff] }
 0x340   :  { %2418 = vmatprep.subr.mxu0 %v2045_v60  ;;  %2489 = vmatprep.subr.mxu1 %v2047_v44  ;;  %v2244_v60 = vld [vmem:[#allocation10 + $0x7a0] sm:$0xff]  ;;  %v2246_v44 = vld [vmem:[#allocation10 + $0x7b0] sm:$0xff] }
 0x341   :  { %2419 = vmatpush1.msra.mxu0 %v2044_v20  ;;  %2490 = vmatpush1.msra.mxu1 %v2046_v3  ;;  %v2237_v20 = vld [vmem:[#allocation10 + $0x768] sm:$0xff]  ;;  %v2239_v3 = vld [vmem:[#allocation10 + $0x778] sm:$0xff] }
 0x342   :  { %2420 = vmatprep.subr.mxu0 %v2037_v14  ;;  %2491 = vmatprep.subr.mxu1 %v2039_v23  ;;  %v2236_v14 = vld [vmem:[#allocation10 + $0x760] sm:$0xff]  ;;  %v2238_v23 = vld [vmem:[#allocation10 + $0x770] sm:$0xff] }
 0x343   :  { %2421 = vmatpush1.msra.mxu0 %v2036_v25  ;;  %2492 = vmatpush1.msra.mxu1 %v2038_v48  ;;  %v2229_v25 = vld [vmem:[#allocation10 + $0x728] sm:$0xff]  ;;  %v2231_v48 = vld [vmem:[#allocation10 + $0x738] sm:$0xff] }
 0x344   :  { %2422 = vmatprep.subr.mxu0 %v2029_v24  ;;  %2493 = vmatprep.subr.mxu1 %v2031_v11  ;;  %v2228_v24 = vld [vmem:[#allocation10 + $0x720] sm:$0xff]  ;;  %v2230_v11 = vld [vmem:[#allocation10 + $0x730] sm:$0xff] }
 0x345   :  { %2423 = vmatpush1.msra.mxu0 %v2028_v31  ;;  %2494 = vmatpush1.msra.mxu1 %v2030_v43  ;;  %v2221_v31 = vld [vmem:[#allocation10 + $0x6e8] sm:$0xff]  ;;  %v2223_v43 = vld [vmem:[#allocation10 + $0x6f8] sm:$0xff] }
 0x346   :  { %2424 = vmatprep.subr.mxu0 %v2021_v47  ;;  %2495 = vmatprep.subr.mxu1 %v2023_v32  ;;  %v2220_v47 = vld [vmem:[#allocation10 + $0x6e0] sm:$0xff]  ;;  %v2222_v32 = vld [vmem:[#allocation10 + $0x6f0] sm:$0xff] }
 0x347   :  { %2425 = vmatpush1.msra.mxu0 %v2020_v22  ;;  %2496 = vmatpush1.msra.mxu1 %v2022_v41  ;;  %v2213_v22 = vld [vmem:[#allocation10 + $0x6a8] sm:$0xff]  ;;  %v2215_v41 = vld [vmem:[#allocation10 + $0x6b8] sm:$0xff] }
 0x348   :  { %2426 = vmatprep.subr.mxu0 %v2013_v34  ;;  %2497 = vmatprep.subr.mxu1 %v2015_v13  ;;  %v2212_v34 = vld [vmem:[#allocation10 + $0x6a0] sm:$0xff]  ;;  %v2214_v13 = vld [vmem:[#allocation10 + $0x6b0] sm:$0xff] }
 0x349   :  { %2427 = vmatpush1.msra.mxu0 %v2012_v45  ;;  %2498 = vmatpush1.msra.mxu1 %v2014_v46  ;;  %v2205_v45 = vld [vmem:[#allocation10 + $0x668] sm:$0xff]  ;;  %v2207_v46 = vld [vmem:[#allocation10 + $0x678] sm:$0xff] }
 0x34a   :  { %2428 = vmatprep.subr.mxu0 %v2005_v37  ;;  %2499 = vmatprep.subr.mxu1 %v2007_v0  ;;  %v2204_v37 = vld [vmem:[#allocation10 + $0x660] sm:$0xff]  ;;  %v2206_v0 = vld [vmem:[#allocation10 + $0x670] sm:$0xff] }
 0x34b   :  { %2429 = vmatpush1.msra.mxu0 %v2004_v30  ;;  %2500 = vmatpush1.msra.mxu1 %v2006_v27  ;;  %v2197_v30 = vld [vmem:[#allocation10 + $0x628] sm:$0xff]  ;;  %v2199_v27 = vld [vmem:[#allocation10 + $0x638] sm:$0xff] }
 0x34c   :  { %2430 = vmatprep.subr.mxu0 %v2253_v33  ;;  %2501 = vmatprep.subr.mxu1 %v2255_v35  ;;  %v2196_v33 = vld [vmem:[#allocation10 + $0x620] sm:$0xff]  ;;  %v2198_v35 = vld [vmem:[#allocation10 + $0x630] sm:$0xff] }
 0x34d   :  { %2431 = vmatpush2.msra.mxu0 %v2252_v40  ;;  %2502 = vmatpush2.msra.mxu1 %v2254_v26  ;;  %v2189_v40 = vld [vmem:[#allocation10 + $0x5e8] sm:$0xff]  ;;  %v2191_v26 = vld [vmem:[#allocation10 + $0x5f8] sm:$0xff] }
 0x34e   :  { %2432 = vmatprep.subr.mxu0 %v2245_v28  ;;  %2503 = vmatprep.subr.mxu1 %v2247_v39  ;;  %v2188_v28 = vld [vmem:[#allocation10 + $0x5e0] sm:$0xff]  ;;  %v2190_v39 = vld [vmem:[#allocation10 + $0x5f0] sm:$0xff] }
 0x34f   :  { %2433 = vmatpush2.msra.mxu0 %v2244_v60  ;;  %2504 = vmatpush2.msra.mxu1 %v2246_v44  ;;  %v2181_v60 = vld [vmem:[#allocation10 + $0x5a8] sm:$0xff]  ;;  %v2183_v44 = vld [vmem:[#allocation10 + $0x5b8] sm:$0xff] }
 0x350   :  { %2434 = vmatprep.subr.mxu0 %v2237_v20  ;;  %2505 = vmatprep.subr.mxu1 %v2239_v3  ;;  %v2180_v20 = vld [vmem:[#allocation10 + $0x5a0] sm:$0xff]  ;;  %v2182_v3 = vld [vmem:[#allocation10 + $0x5b0] sm:$0xff] }
 0x351   :  { %2435 = vmatpush2.msra.mxu0 %v2236_v14  ;;  %2506 = vmatpush2.msra.mxu1 %v2238_v23  ;;  %v2173_v14 = vld [vmem:[#allocation10 + $0x568] sm:$0xff]  ;;  %v2175_v23 = vld [vmem:[#allocation10 + $0x578] sm:$0xff] }
 0x352   :  { %2436 = vmatprep.subr.mxu0 %v2229_v25  ;;  %2507 = vmatprep.subr.mxu1 %v2231_v48  ;;  %v2172_v25 = vld [vmem:[#allocation10 + $0x560] sm:$0xff]  ;;  %v2174_v48 = vld [vmem:[#allocation10 + $0x570] sm:$0xff] }
 0x353   :  { %2437 = vmatpush2.msra.mxu0 %v2228_v24  ;;  %2508 = vmatpush2.msra.mxu1 %v2230_v11  ;;  %v2165_v24 = vld [vmem:[#allocation10 + $0x528] sm:$0xff]  ;;  %v2167_v11 = vld [vmem:[#allocation10 + $0x538] sm:$0xff] }
 0x354   :  { %2438 = vmatprep.subr.mxu0 %v2221_v31  ;;  %2509 = vmatprep.subr.mxu1 %v2223_v43  ;;  %v2164_v31 = vld [vmem:[#allocation10 + $0x520] sm:$0xff]  ;;  %v2166_v43 = vld [vmem:[#allocation10 + $0x530] sm:$0xff] }
 0x355   :  { %2439 = vmatpush2.msra.mxu0 %v2220_v47  ;;  %2510 = vmatpush2.msra.mxu1 %v2222_v32  ;;  %v2157_v47 = vld [vmem:[#allocation10 + $0x4e8] sm:$0xff]  ;;  %v2159_v32 = vld [vmem:[#allocation10 + $0x4f8] sm:$0xff] }
 0x356   :  { %2440 = vmatprep.subr.mxu0 %v2213_v22  ;;  %2511 = vmatprep.subr.mxu1 %v2215_v41  ;;  %v2156_v22 = vld [vmem:[#allocation10 + $0x4e0] sm:$0xff]  ;;  %v2158_v41 = vld [vmem:[#allocation10 + $0x4f0] sm:$0xff] }
 0x357   :  { %2441 = vmatpush2.msra.mxu0 %v2212_v34  ;;  %2512 = vmatpush2.msra.mxu1 %v2214_v13  ;;  %v2149_v34 = vld [vmem:[#allocation10 + $0x4a8] sm:$0xff]  ;;  %v2151_v13 = vld [vmem:[#allocation10 + $0x4b8] sm:$0xff] }
 0x358   :  { %2442 = vmatprep.subr.mxu0 %v2205_v45  ;;  %2513 = vmatprep.subr.mxu1 %v2207_v46  ;;  %v2148_v45 = vld [vmem:[#allocation10 + $0x4a0] sm:$0xff]  ;;  %v2150_v46 = vld [vmem:[#allocation10 + $0x4b0] sm:$0xff] }
 0x359   :  { %2443 = vmatpush2.msra.mxu0 %v2204_v37  ;;  %2514 = vmatpush2.msra.mxu1 %v2206_v0  ;;  %v2141_v37 = vld [vmem:[#allocation10 + $0x468] sm:$0xff]  ;;  %v2143_v0 = vld [vmem:[#allocation10 + $0x478] sm:$0xff] }
 0x35a   :  { %2444 = vmatprep.subr.mxu0 %v2197_v30  ;;  %2515 = vmatprep.subr.mxu1 %v2199_v27  ;;  %v2140_v30 = vld [vmem:[#allocation10 + $0x460] sm:$0xff]  ;;  %v2142_v27 = vld [vmem:[#allocation10 + $0x470] sm:$0xff] }
 0x35b   :  { %2445 = vmatpush2.msra.mxu0 %v2196_v33  ;;  %2516 = vmatpush2.msra.mxu1 %v2198_v35  ;;  %v2133_v33 = vld [vmem:[#allocation10 + $0x428] sm:$0xff]  ;;  %v2135_v35 = vld [vmem:[#allocation10 + $0x438] sm:$0xff] }
 0x35c   :  { %2446 = vmatprep.subr.mxu0 %v2189_v40  ;;  %2517 = vmatprep.subr.mxu1 %v2191_v26  ;;  %v2132_v40 = vld [vmem:[#allocation10 + $0x420] sm:$0xff]  ;;  %v2134_v26 = vld [vmem:[#allocation10 + $0x430] sm:$0xff] }
 0x35d   :  { %2447 = vmatpush2.msra.mxu0 %v2188_v28  ;;  %2518 = vmatpush2.msra.mxu1 %v2190_v39  ;;  %v2729_v28 = vld [vmem:[#allocation10 + $0x3c8] sm:$0xff]  ;;  %v2731_v39 = vld [vmem:[#allocation10 + $0x3d8] sm:$0xff] }
 0x35e   :  { %2448 = vmatprep.subr.mxu0 %v2181_v60  ;;  %2519 = vmatprep.subr.mxu1 %v2183_v44  ;;  %v2728_v60 = vld [vmem:[#allocation10 + $0x3c0] sm:$0xff]  ;;  %v2730_v44 = vld [vmem:[#allocation10 + $0x3d0] sm:$0xff] }
 0x35f   :  { %2449 = vmatpush2.msra.mxu0 %v2180_v20  ;;  %2520 = vmatpush2.msra.mxu1 %v2182_v3  ;;  %v2721_v20 = vld [vmem:[#allocation10 + $0x388] sm:$0xff]  ;;  %v2723_v3 = vld [vmem:[#allocation10 + $0x398] sm:$0xff] }
 0x360   :  { %2450 = vmatprep.subr.mxu0 %v2173_v14  ;;  %2521 = vmatprep.subr.mxu1 %v2175_v23  ;;  %v2720_v14 = vld [vmem:[#allocation10 + $0x380] sm:$0xff]  ;;  %v2722_v23 = vld [vmem:[#allocation10 + $0x390] sm:$0xff] }
 0x361   :  { %2451 = vmatpush2.msra.mxu0 %v2172_v25  ;;  %2522 = vmatpush2.msra.mxu1 %v2174_v48  ;;  %v2713_v25 = vld [vmem:[#allocation10 + $0x348] sm:$0xff]  ;;  %v2715_v48 = vld [vmem:[#allocation10 + $0x358] sm:$0xff] }
 0x362   :  { %2452 = vmatprep.subr.mxu0 %v2165_v24  ;;  %2523 = vmatprep.subr.mxu1 %v2167_v11  ;;  %v2712_v24 = vld [vmem:[#allocation10 + $0x340] sm:$0xff]  ;;  %v2714_v11 = vld [vmem:[#allocation10 + $0x350] sm:$0xff] }
 0x363   :  { %2453 = vmatpush2.msra.mxu0 %v2164_v31  ;;  %2524 = vmatpush2.msra.mxu1 %v2166_v43  ;;  %v2707_v31 = vld [vmem:[#allocation10 + $0x318] sm:$0xff]  ;;  %v2704_v43 = vld [vmem:[#allocation10 + $0x300] sm:$0xff] }
 0x364   :  { %2454 = vmatprep.subr.mxu0 %v2157_v47  ;;  %2525 = vmatprep.subr.mxu1 %v2159_v32  ;;  %v2706_v47 = vld [vmem:[#allocation10 + $0x310] sm:$0xff]  ;;  %v2697_v32 = vld [vmem:[#allocation10 + $0x2c8] sm:$0xff] }
 0x365   :  { %2455 = vmatpush2.msra.mxu0 %v2156_v22  ;;  %2526 = vmatpush2.msra.mxu1 %v2158_v41  ;;  %v2699_v22 = vld [vmem:[#allocation10 + $0x2d8] sm:$0xff]  ;;  %v2696_v41 = vld [vmem:[#allocation10 + $0x2c0] sm:$0xff] }
 0x366   :  { %2456 = vmatprep.subr.mxu0 %v2149_v34  ;;  %2527 = vmatprep.subr.mxu1 %v2151_v13  ;;  %v2698_v34 = vld [vmem:[#allocation10 + $0x2d0] sm:$0xff]  ;;  %v2689_v13 = vld [vmem:[#allocation10 + $0x288] sm:$0xff] }
 0x367   :  { %2457 = vmatpush2.msra.mxu0 %v2148_v45  ;;  %2528 = vmatpush2.msra.mxu1 %v2150_v46  ;;  %v2691_v45 = vld [vmem:[#allocation10 + $0x298] sm:$0xff]  ;;  %v2688_v46 = vld [vmem:[#allocation10 + $0x280] sm:$0xff] }
 0x368   :  { %2458 = vmatprep.subr.mxu0 %v2141_v37  ;;  %2529 = vmatprep.subr.mxu1 %v2143_v0  ;;  %v2690_v37 = vld [vmem:[#allocation10 + $0x290] sm:$0xff]  ;;  %v2681_v0 = vld [vmem:[#allocation10 + $0x248] sm:$0xff] }
 0x369   :  { %2459 = vmatpush2.msra.mxu0 %v2140_v30  ;;  %2530 = vmatpush2.msra.mxu1 %v2142_v27  ;;  %v2683_v30 = vld [vmem:[#allocation10 + $0x258] sm:$0xff]  ;;  %v2680_v27 = vld [vmem:[#allocation10 + $0x240] sm:$0xff] }
 0x36a   :  { %2460 = vmatprep.subr.mxu0 %v2133_v33  ;;  %2531 = vmatprep.subr.mxu1 %v2135_v35  ;;  %v2682_v33 = vld [vmem:[#allocation10 + $0x250] sm:$0xff]  ;;  %v2673_v35 = vld [vmem:[#allocation10 + $0x208] sm:$0xff] }
 0x36b   :  { %2461 = vmatpush2.msra.mxu0 %v2132_v40  ;;  %2532 = vmatpush2.msra.mxu1 %v2134_v26  ;;  %v2675_v40 = vld [vmem:[#allocation10 + $0x218] sm:$0xff]  ;;  %v2672_v26 = vld [vmem:[#allocation10 + $0x200] sm:$0xff] }
 0x36c   :  { %2463 = vmatmul.mubr.f32.vlgmr.msra.gmra.mxu0 %v6470_v36  ;;  %2534 = vmatmul.mubr.f32.vlgmr.msra.gmra.mxu1 %v6470_v36  ;;  %v2705_v36 = vld [vmem:[#allocation10 + $0x308] sm:$0xff] }
 0x36d   :  { %2864 = vmatprep.subr.mxu0 %v2729_v28  ;;  %2935 = vmatprep.subr.mxu1 %v2731_v39  ;;  %v2674_v28 = vld [vmem:[#allocation10 + $0x210] sm:$0xff]  ;;  %v2665_v39 = vld [vmem:[#allocation10 + $0x1c8] sm:$0xff] }
 0x36e   :  { %2865 = vmatpush1.msra.mxu0 %v2728_v60  ;;  %2936 = vmatpush1.msra.mxu1 %v2730_v44  ;;  %v2667_v60 = vld [vmem:[#allocation10 + $0x1d8] sm:$0xff]  ;;  %v2664_v44 = vld [vmem:[#allocation10 + $0x1c0] sm:$0xff] }
 0x36f   :  { %2866 = vmatprep.subr.mxu0 %v2721_v20  ;;  %2937 = vmatprep.subr.mxu1 %v2723_v3  ;;  %v2666_v20 = vld [vmem:[#allocation10 + $0x1d0] sm:$0xff]  ;;  %v2657_v3 = vld [vmem:[#allocation10 + $0x188] sm:$0xff] }
 0x370   :  { %2867 = vmatpush1.msra.mxu0 %v2720_v14  ;;  %2938 = vmatpush1.msra.mxu1 %v2722_v23  ;;  %v2659_v14 = vld [vmem:[#allocation10 + $0x198] sm:$0xff]  ;;  %v2656_v23 = vld [vmem:[#allocation10 + $0x180] sm:$0xff] }
 0x371   :  { %2868 = vmatprep.subr.mxu0 %v2713_v25  ;;  %2939 = vmatprep.subr.mxu1 %v2715_v48  ;;  %v2658_v25 = vld [vmem:[#allocation10 + $0x190] sm:$0xff]  ;;  %v2649_v48 = vld [vmem:[#allocation10 + $0x148] sm:$0xff] }
 0x372   :  { %2869 = vmatpush1.msra.mxu0 %v2712_v24  ;;  %2940 = vmatpush1.msra.mxu1 %v2714_v11  ;;  %v2651_v24 = vld [vmem:[#allocation10 + $0x158] sm:$0xff]  ;;  %v2648_v11 = vld [vmem:[#allocation10 + $0x140] sm:$0xff] }
 0x373   :  { %2870 = vmatprep.subr.mxu0 %v2705_v36  ;;  %2941 = vmatprep.subr.mxu1 %v2707_v31  ;;  %v2650_v36 = vld [vmem:[#allocation10 + $0x150] sm:$0xff]  ;;  %v2641_v31 = vld [vmem:[#allocation10 + $0x108] sm:$0xff] }
 0x374   :  { %2871 = vmatpush1.msra.mxu0 %v2704_v43  ;;  %2942 = vmatpush1.msra.mxu1 %v2706_v47  ;;  %v2643_v43 = vld [vmem:[#allocation10 + $0x118] sm:$0xff]  ;;  %v2640_v47 = vld [vmem:[#allocation10 + $0x100] sm:$0xff] }
 0x375   :  { %2872 = vmatprep.subr.mxu0 %v2697_v32  ;;  %2943 = vmatprep.subr.mxu1 %v2699_v22  ;;  %v2642_v32 = vld [vmem:[#allocation10 + $0x110] sm:$0xff]  ;;  %v2633_v22 = vld [vmem:[#allocation10 + $0xc8] sm:$0xff] }
 0x376   :  { %2873 = vmatpush1.msra.mxu0 %v2696_v41  ;;  %2944 = vmatpush1.msra.mxu1 %v2698_v34  ;;  %v2635_v41 = vld [vmem:[#allocation10 + $0xd8] sm:$0xff]  ;;  %v2632_v34 = vld [vmem:[#allocation10 + $0xc0] sm:$0xff] }
 0x377   :  { %2874 = vmatprep.subr.mxu0 %v2689_v13  ;;  %2945 = vmatprep.subr.mxu1 %v2691_v45  ;;  %v2634_v13 = vld [vmem:[#allocation10 + $0xd0] sm:$0xff]  ;;  %v2625_v45 = vld [vmem:[#allocation10 + $0x88] sm:$0xff] }
 0x378   :  { %2875 = vmatpush1.msra.mxu0 %v2688_v46  ;;  %2946 = vmatpush1.msra.mxu1 %v2690_v37  ;;  %v2627_v46 = vld [vmem:[#allocation10 + $0x98] sm:$0xff]  ;;  %v2624_v37 = vld [vmem:[#allocation10 + $0x80] sm:$0xff] }
 0x379   :  { %2876 = vmatprep.subr.mxu0 %v2681_v0  ;;  %2947 = vmatprep.subr.mxu1 %v2683_v30  ;;  %v2626_v0 = vld [vmem:[#allocation10 + $0x90] sm:$0xff]  ;;  %v2617_v30 = vld [vmem:[#allocation10 + $0x48] sm:$0xff] }
 0x37a   :  { %2877 = vmatpush1.msra.mxu0 %v2680_v27  ;;  %2948 = vmatpush1.msra.mxu1 %v2682_v33  ;;  %v2619_v27 = vld [vmem:[#allocation10 + $0x58] sm:$0xff]  ;;  %v2616_v33 = vld [vmem:[#allocation10 + $0x40] sm:$0xff] }
 0x37b   :  { %2878 = vmatprep.subr.mxu0 %v2673_v35  ;;  %2949 = vmatprep.subr.mxu1 %v2675_v40  ;;  %v2618_v35 = vld [vmem:[#allocation10 + $0x50] sm:$0xff]  ;;  %v2609_v40 = vld [vmem:[#allocation10 + $0x8] sm:$0xff] }
 0x37c   :  { %2879 = vmatpush1.msra.mxu0 %v2672_v26  ;;  %2950 = vmatpush1.msra.mxu1 %v2674_v28  ;;  %v2611_v26 = vld [vmem:[#allocation10 + $0x18] sm:$0xff]  ;;  %v2608_v28 = vld [vmem:[#allocation10] sm:$0xff] }
 0x37d   :  { %2880 = vmatprep.subr.mxu0 %v2665_v39  ;;  %2951 = vmatprep.subr.mxu1 %v2667_v60  ;;  %v2610_v39 = vld [vmem:[#allocation10 + $0x10] sm:$0xff]  ;;  %v2857_v60 = vld [vmem:[#allocation10 + $0x7c8] sm:$0xff] }
 0x37e   :  { %2881 = vmatpush1.msra.mxu0 %v2664_v44  ;;  %2952 = vmatpush1.msra.mxu1 %v2666_v20  ;;  %v2859_v44 = vld [vmem:[#allocation10 + $0x7d8] sm:$0xff]  ;;  %v2856_v20 = vld [vmem:[#allocation10 + $0x7c0] sm:$0xff] }
 0x37f   :  { %2882 = vmatprep.subr.mxu0 %v2657_v3  ;;  %2953 = vmatprep.subr.mxu1 %v2659_v14  ;;  %v2858_v3 = vld [vmem:[#allocation10 + $0x7d0] sm:$0xff]  ;;  %v2849_v14 = vld [vmem:[#allocation10 + $0x788] sm:$0xff] }
 0x380   :  { %2883 = vmatpush1.msra.mxu0 %v2656_v23  ;;  %2954 = vmatpush1.msra.mxu1 %v2658_v25  ;;  %v2851_v23 = vld [vmem:[#allocation10 + $0x798] sm:$0xff]  ;;  %v2848_v25 = vld [vmem:[#allocation10 + $0x780] sm:$0xff] }
 0x381   :  { %2884 = vmatprep.subr.mxu0 %v2649_v48  ;;  %2955 = vmatprep.subr.mxu1 %v2651_v24  ;;  %v2850_v48 = vld [vmem:[#allocation10 + $0x790] sm:$0xff]  ;;  %v2841_v24 = vld [vmem:[#allocation10 + $0x748] sm:$0xff] }
 0x382   :  { %2885 = vmatpush1.msra.mxu0 %v2648_v11  ;;  %2956 = vmatpush1.msra.mxu1 %v2650_v36  ;;  %v2843_v11 = vld [vmem:[#allocation10 + $0x758] sm:$0xff]  ;;  %v2840_v36 = vld [vmem:[#allocation10 + $0x740] sm:$0xff] }
 0x383   :  { %2886 = vmatprep.subr.mxu0 %v2641_v31  ;;  %2957 = vmatprep.subr.mxu1 %v2643_v43  ;;  %v2842_v31 = vld [vmem:[#allocation10 + $0x750] sm:$0xff]  ;;  %v2833_v43 = vld [vmem:[#allocation10 + $0x708] sm:$0xff] }
 0x384   :  { %2887 = vmatpush1.msra.mxu0 %v2640_v47  ;;  %2958 = vmatpush1.msra.mxu1 %v2642_v32  ;;  %v2835_v47 = vld [vmem:[#allocation10 + $0x718] sm:$0xff]  ;;  %v2832_v32 = vld [vmem:[#allocation10 + $0x700] sm:$0xff] }
 0x385   :  { %2888 = vmatprep.subr.mxu0 %v2633_v22  ;;  %2959 = vmatprep.subr.mxu1 %v2635_v41  ;;  %v2834_v22 = vld [vmem:[#allocation10 + $0x710] sm:$0xff]  ;;  %v2825_v41 = vld [vmem:[#allocation10 + $0x6c8] sm:$0xff] }
 0x386   :  { %2889 = vmatpush1.msra.mxu0 %v2632_v34  ;;  %2960 = vmatpush1.msra.mxu1 %v2634_v13  ;;  %v2827_v34 = vld [vmem:[#allocation10 + $0x6d8] sm:$0xff]  ;;  %v2824_v13 = vld [vmem:[#allocation10 + $0x6c0] sm:$0xff] }
 0x387   :  { %2890 = vmatprep.subr.mxu0 %v2625_v45  ;;  %2961 = vmatprep.subr.mxu1 %v2627_v46  ;;  %v2826_v45 = vld [vmem:[#allocation10 + $0x6d0] sm:$0xff]  ;;  %v2817_v46 = vld [vmem:[#allocation10 + $0x688] sm:$0xff] }
 0x388   :  { %2891 = vmatpush1.msra.mxu0 %v2624_v37  ;;  %2962 = vmatpush1.msra.mxu1 %v2626_v0  ;;  %v2819_v37 = vld [vmem:[#allocation10 + $0x698] sm:$0xff]  ;;  %v2816_v0 = vld [vmem:[#allocation10 + $0x680] sm:$0xff] }
 0x389   :  { %2892 = vmatprep.subr.mxu0 %v2617_v30  ;;  %2963 = vmatprep.subr.mxu1 %v2619_v27  ;;  %v2818_v30 = vld [vmem:[#allocation10 + $0x690] sm:$0xff]  ;;  %v2809_v27 = vld [vmem:[#allocation10 + $0x648] sm:$0xff] }
 0x38a   :  { %2893 = vmatpush1.msra.mxu0 %v2616_v33  ;;  %2964 = vmatpush1.msra.mxu1 %v2618_v35  ;;  %v2811_v33 = vld [vmem:[#allocation10 + $0x658] sm:$0xff]  ;;  %v2808_v35 = vld [vmem:[#allocation10 + $0x640] sm:$0xff] }
 0x38b   :  { %2894 = vmatprep.subr.mxu0 %v2609_v40  ;;  %2965 = vmatprep.subr.mxu1 %v2611_v26  ;;  %v2810_v40 = vld [vmem:[#allocation10 + $0x650] sm:$0xff]  ;;  %v2801_v26 = vld [vmem:[#allocation10 + $0x608] sm:$0xff] }
 0x38c   :  { %2895 = vmatpush1.msra.mxu0 %v2608_v28  ;;  %2966 = vmatpush1.msra.mxu1 %v2610_v39  ;;  %v2803_v28 = vld [vmem:[#allocation10 + $0x618] sm:$0xff]  ;;  %v2800_v39 = vld [vmem:[#allocation10 + $0x600] sm:$0xff] }
 0x38d   :  { %2896 = vmatprep.subr.mxu0 %v2857_v60  ;;  %2967 = vmatprep.subr.mxu1 %v2859_v44  ;;  %v2802_v60 = vld [vmem:[#allocation10 + $0x610] sm:$0xff]  ;;  %v2793_v44 = vld [vmem:[#allocation10 + $0x5c8] sm:$0xff] }
 0x38e   :  { %2897 = vmatpush2.msra.mxu0 %v2856_v20  ;;  %2968 = vmatpush2.msra.mxu1 %v2858_v3  ;;  %v2795_v20 = vld [vmem:[#allocation10 + $0x5d8] sm:$0xff]  ;;  %v2792_v3 = vld [vmem:[#allocation10 + $0x5c0] sm:$0xff] }
 0x38f   :  { %2898 = vmatprep.subr.mxu0 %v2849_v14  ;;  %2969 = vmatprep.subr.mxu1 %v2851_v23  ;;  %v2794_v14 = vld [vmem:[#allocation10 + $0x5d0] sm:$0xff]  ;;  %v2785_v23 = vld [vmem:[#allocation10 + $0x588] sm:$0xff] }
 0x390   :  { %2899 = vmatpush2.msra.mxu0 %v2848_v25  ;;  %2970 = vmatpush2.msra.mxu1 %v2850_v48  ;;  %v2787_v25 = vld [vmem:[#allocation10 + $0x598] sm:$0xff]  ;;  %v2784_v48 = vld [vmem:[#allocation10 + $0x580] sm:$0xff] }
 0x391   :  { %2900 = vmatprep.subr.mxu0 %v2841_v24  ;;  %2971 = vmatprep.subr.mxu1 %v2843_v11  ;;  %v2786_v24 = vld [vmem:[#allocation10 + $0x590] sm:$0xff]  ;;  %v2777_v11 = vld [vmem:[#allocation10 + $0x548] sm:$0xff] }
 0x392   :  { %2901 = vmatpush2.msra.mxu0 %v2840_v36  ;;  %2972 = vmatpush2.msra.mxu1 %v2842_v31  ;;  %v2779_v36 = vld [vmem:[#allocation10 + $0x558] sm:$0xff]  ;;  %v2776_v31 = vld [vmem:[#allocation10 + $0x540] sm:$0xff] }
 0x393   :  { %2902 = vmatprep.subr.mxu0 %v2833_v43  ;;  %2973 = vmatprep.subr.mxu1 %v2835_v47  ;;  %v2778_v43 = vld [vmem:[#allocation10 + $0x550] sm:$0xff]  ;;  %v2769_v47 = vld [vmem:[#allocation10 + $0x508] sm:$0xff] }
 0x394   :  { %2903 = vmatpush2.msra.mxu0 %v2832_v32  ;;  %2974 = vmatpush2.msra.mxu1 %v2834_v22  ;;  %v2771_v32 = vld [vmem:[#allocation10 + $0x518] sm:$0xff]  ;;  %v2768_v22 = vld [vmem:[#allocation10 + $0x500] sm:$0xff] }
 0x395   :  { %2904 = vmatprep.subr.mxu0 %v2825_v41  ;;  %2975 = vmatprep.subr.mxu1 %v2827_v34  ;;  %v2770_v41 = vld [vmem:[#allocation10 + $0x510] sm:$0xff]  ;;  %v2761_v34 = vld [vmem:[#allocation10 + $0x4c8] sm:$0xff] }
 0x396   :  { %2905 = vmatpush2.msra.mxu0 %v2824_v13  ;;  %2976 = vmatpush2.msra.mxu1 %v2826_v45  ;;  %v2763_v13 = vld [vmem:[#allocation10 + $0x4d8] sm:$0xff]  ;;  %v2760_v45 = vld [vmem:[#allocation10 + $0x4c0] sm:$0xff] }
 0x397   :  { %2906 = vmatprep.subr.mxu0 %v2817_v46  ;;  %2977 = vmatprep.subr.mxu1 %v2819_v37  ;;  %v2762_v46 = vld [vmem:[#allocation10 + $0x4d0] sm:$0xff]  ;;  %v2753_v37 = vld [vmem:[#allocation10 + $0x488] sm:$0xff] }
 0x398   :  { %2907 = vmatpush2.msra.mxu0 %v2816_v0  ;;  %2978 = vmatpush2.msra.mxu1 %v2818_v30  ;;  %v2755_v0 = vld [vmem:[#allocation10 + $0x498] sm:$0xff]  ;;  %v2752_v30 = vld [vmem:[#allocation10 + $0x480] sm:$0xff] }
 0x399   :  { %2908 = vmatprep.subr.mxu0 %v2809_v27  ;;  %2979 = vmatprep.subr.mxu1 %v2811_v33  ;;  %v2754_v27 = vld [vmem:[#allocation10 + $0x490] sm:$0xff]  ;;  %v2745_v33 = vld [vmem:[#allocation10 + $0x448] sm:$0xff] }
 0x39a   :  { %2909 = vmatpush2.msra.mxu0 %v2808_v35  ;;  %2980 = vmatpush2.msra.mxu1 %v2810_v40  ;;  %v2747_v35 = vld [vmem:[#allocation10 + $0x458] sm:$0xff]  ;;  %v2744_v40 = vld [vmem:[#allocation10 + $0x440] sm:$0xff] }
 0x39b   :  { %2910 = vmatprep.subr.mxu0 %v2801_v26  ;;  %2981 = vmatprep.subr.mxu1 %v2803_v28  ;;  %v2746_v26 = vld [vmem:[#allocation10 + $0x450] sm:$0xff]  ;;  %v2737_v28 = vld [vmem:[#allocation10 + $0x408] sm:$0xff] }
 0x39c   :  { %2911 = vmatpush2.msra.mxu0 %v2800_v39  ;;  %2982 = vmatpush2.msra.mxu1 %v2802_v60  ;;  %v2739_v39 = vld [vmem:[#allocation10 + $0x418] sm:$0xff]  ;;  %v2736_v60 = vld [vmem:[#allocation10 + $0x400] sm:$0xff] }
 0x39d   :  { %2912 = vmatprep.subr.mxu0 %v2793_v44  ;;  %2983 = vmatprep.subr.mxu1 %v2795_v20  ;;  %v2738_v44 = vld [vmem:[#allocation10 + $0x410] sm:$0xff]  ;;  %v2733_v20 = vld [vmem:[#allocation10 + $0x3e8] sm:$0xff] }
 0x39e   :  { %2913 = vmatpush2.msra.mxu0 %v2792_v3  ;;  %2984 = vmatpush2.msra.mxu1 %v2794_v14  ;;  %v2735_v3 = vld [vmem:[#allocation10 + $0x3f8] sm:$0xff] }
 0x39f   :  { %2914 = vmatprep.subr.mxu0 %v2785_v23  ;;  %2985 = vmatprep.subr.mxu1 %v2787_v25 }
 0x3a0   :  { %2915 = vmatpush2.msra.mxu0 %v2784_v48  ;;  %2986 = vmatpush2.msra.mxu1 %v2786_v24 }
 0x3a1   :  { %2916 = vmatprep.subr.mxu0 %v2777_v11  ;;  %2987 = vmatprep.subr.mxu1 %v2779_v36 }
 0x3a2   :  { %2917 = vmatpush2.msra.mxu0 %v2776_v31  ;;  %2988 = vmatpush2.msra.mxu1 %v2778_v43 }
 0x3a3   :  { %2918 = vmatprep.subr.mxu0 %v2769_v47  ;;  %2989 = vmatprep.subr.mxu1 %v2771_v32 }
 0x3a4   :  { %2919 = vmatpush2.msra.mxu0 %v2768_v22  ;;  %2990 = vmatpush2.msra.mxu1 %v2770_v41 }
 0x3a5   :  { %2920 = vmatprep.subr.mxu0 %v2761_v34  ;;  %2991 = vmatprep.subr.mxu1 %v2763_v13 }
 0x3a6   :  { %2921 = vmatpush2.msra.mxu0 %v2760_v45  ;;  %2992 = vmatpush2.msra.mxu1 %v2762_v46 }
 0x3a7   :  { %2922 = vmatprep.subr.mxu0 %v2753_v37  ;;  %2993 = vmatprep.subr.mxu1 %v2755_v0  ;;  %v564_v37 = vadd.f32 %v6361_v29, %v6424_v16 }
 0x3a8   :  { %2923 = vmatpush2.msra.mxu0 %v2752_v30  ;;  %2994 = vmatpush2.msra.mxu1 %v2754_v27 }
 0x3a9   :  { %2924 = vmatprep.subr.mxu0 %v2745_v33  ;;  %2995 = vmatprep.subr.mxu1 %v2747_v35  ;;  %v677_v33 = vadd.f32 %v6363_v55, %v6427_v59 }
 0x3aa   :  { %2925 = vmatpush2.msra.mxu0 %v2744_v40  ;;  %2996 = vmatpush2.msra.mxu1 %v2746_v26 }
 0x3ab   :  { %2926 = vmatprep.subr.mxu0 %v2737_v28  ;;  %2997 = vmatprep.subr.mxu1 %v2739_v39 }
 0x3ac   :  { %2927 = vmatpush2.msra.mxu0 %v2736_v60  ;;  %2998 = vmatpush2.msra.mxu1 %v2738_v44 }
 0x3ad   :  { %3006 = vmatprep.subr.mxu0 %v2733_v20  ;;  %3077 = vmatprep.subr.mxu1 %v2735_v3 }
 0x3eb   :  { %v2322_v14 = vpop.f32.mrf.mxu0  ;;  %v2393_v23 = vpop.f32.mrf.mxu1 }
 0x3ec   :  { %v2540_v48 = vadd.f32 %v2322_v14, %v6270_v49  ;;  %v2542_v24 = vadd.f32 %v2393_v23, %v6273_v50 }
 0x3ed   :  { %v2324_v25 = vpop.f32.mrf.mxu0  ;;  %v2395_v11 = vpop.f32.mrf.mxu1 }
 0x3ee   :  { %v2541_v36 = vadd.f32 %v2324_v25, %v6276_v53  ;;  %v5674_v31 = vmul.f32 -1.442695, %v2540_v48  ;;  %v2543_v43 = vadd.f32 %v2395_v11, %v6279_v54  ;;  %v5676_v47 = vmul.f32 -1.442695, %v2542_v24 }
 0x3ef   :  { %v562_v53 = vadd.f32 %v6357_v51, %v6418_v18  ;;  %v675_v54 = vadd.f32 %v6359_v52, %v6421_v19 }
 0x3f0   :  { %v5675_v32 = vmul.f32 -1.442695, %v2541_v36  ;;  %5786 = vpow2.f32 %v5674_v31  ;;  %v5677_v22 = vmul.f32 -1.442695, %v2543_v43 }
 0x3f1   :  { %5788 = vpow2.f32 %v5676_v47 }
 0x3f2   :  { %5790 = vpow2.f32 %v5675_v32 }
 0x3f3   :  { %5792 = vpow2.f32 %v5677_v22 }
 0x3fd   :  { %v5787_v41 = vpop.eup %5786 }
 0x3fe   :  { %v5789_v34 = vpop.eup %5788  ;;  %v2560_v45 = vadd.f32 1.0, %v5787_v41 }
 0x3ff   :  { %v5791_v13 = vpop.eup %5790  ;;  %v2562_v46 = vadd.f32 1.0, %v5789_v34 }
 0x400   :  { %v5793_v49 = vpop.eup %5792  ;;  %v2561_v50 = vadd.f32 1.0, %v5791_v13  ;;  %5794 = vrcp.f32 %v2560_v45 }
 0x401   :  { %v2563_v0 = vadd.f32 1.0, %v5793_v49  ;;  %5796 = vrcp.f32 %v2562_v46  ;;  %v2734_v49 = vld [vmem:[#allocation10 + $0x3f0] sm:$0xff]  ;;  %v2725_v46 = vld [vmem:[#allocation10 + $0x3a8] sm:$0xff] }
 0x402   :  { %5798 = vrcp.f32 %v2561_v50  ;;  %v2727_v50 = vld [vmem:[#allocation10 + $0x3b8] sm:$0xff] }
 0x40d   :  { %v5795_v60 = vpop.eup %5794 }
 0x40e   :  { %v5797_v44 = vpop.eup %5796 }
 0x40f   :  { %v5799_v20 = vpop.eup %5798  ;;  %v2586_v14 = vmul.f32 %v5797_v44, %v6463_v2  ;;  %v2692_v44 = vld [vmem:[#allocation10 + $0x2a0] sm:$0xff] }
 0x42c   :  { %v2464_v30 = vpop.f32.mrf.mxu0  ;;  %v2535_v27 = vpop.f32.mrf.mxu1 }
 0x42d   :  { %v2544_v35 = vadd.f32 %v2464_v30, %v562_v53  ;;  %v2546_v40 = vadd.f32 %v2535_v27, %v675_v54  ;;  %v2724_v53 = vld [vmem:[#allocation10 + $0x3a0] sm:$0xff]  ;;  %v2726_v54 = vld [vmem:[#allocation10 + $0x3b0] sm:$0xff] }
 0x42e   :  { %v2466_v26 = vpop.f32.mrf.mxu0  ;;  %v2537_v28 = vpop.f32.mrf.mxu1  ;;  %v2716_v30 = vld [vmem:[#allocation10 + $0x360] sm:$0xff]  ;;  %v2718_v27 = vld [vmem:[#allocation10 + $0x370] sm:$0xff] }
 0x42f   :  { %5800 = vtanh.f32 %v2544_v35  ;;  %v5678_v51 = vmul.f32 -1.442695, %v2546_v40  ;;  %v2545_v39 = vadd.f32 %v2466_v26, %v564_v37  ;;  %v2547_v52 = vadd.f32 %v2537_v28, %v677_v33  ;;  %v2717_v37 = vld [vmem:[#allocation10 + $0x368] sm:$0xff]  ;;  %v2711_v35 = vld [vmem:[#allocation10 + $0x338] sm:$0xff]  ;;  %v2708_v40 = vld [vmem:[#allocation10 + $0x320] sm:$0xff] }
 0x430   :  { %5802 = vrcp.f32 %v2563_v0  ;;  %v2719_v0 = vld [vmem:[#allocation10 + $0x378] sm:$0xff]  ;;  %v2709_v33 = vld [vmem:[#allocation10 + $0x328] sm:$0xff]  ;;  %v2710_v26 = vld [vmem:[#allocation10 + $0x330] sm:$0xff] }
 0x431   :  { %5804 = vpow2.f32 %v5678_v51  ;;  %v5679_v29 = vmul.f32 -1.442695, %v2547_v52  ;;  %v2701_v28 = vld [vmem:[#allocation10 + $0x2e8] sm:$0xff]  ;;  %v2703_v51 = vld [vmem:[#allocation10 + $0x2f8] sm:$0xff]  ;;  %v2702_v52 = vld [vmem:[#allocation10 + $0x2f0] sm:$0xff] }
 0x432   :  { %5806 = vtanh.f32 %v2545_v39  ;;  %v2700_v39 = vld [vmem:[#allocation10 + $0x2e0] sm:$0xff] }
 0x433   :  { %5808 = vpow2.f32 %v5679_v29  ;;  %v2693_v29 = vld [vmem:[#allocation10 + $0x2a8] sm:$0xff] }
 0x43c   :  { %v5801_v3 = vpop.eup %5800 }
 0x43d   :  { %v5803_v55 = vpop.eup %5802  ;;  %v2588_v23 = vmul.f32 %v5801_v3, %v5795_v60  ;;  %v2695_v60 = vld [vmem:[#allocation10 + $0x2b8] sm:$0xff]  ;;  %v2685_v3 = vld [vmem:[#allocation10 + $0x268] sm:$0xff] }
 0x43e   :  { %v5805_v25 = vpop.eup %5804  ;;  %v2587_v31 = vmul.f32 %v5803_v55, %v6467_v42  ;;  %v2732_v42 = vld [vmem:[#allocation10 + $0x3e0] sm:$0xff]  ;;  %v2687_v55 = vld [vmem:[#allocation10 + $0x278] sm:$0xff] }
 0x43f   :  { %v5807_v48 = vpop.eup %5806  ;;  %v6490_v24 = vadd.f32 %v2588_v23, %v2586_v14  ;;  %v2580_v11 = vadd.f32 1.0, %v5805_v25  ;;  %v2684_v14 = vld [vmem:[#allocation10 + $0x260] sm:$0xff]  ;;  %v2686_v23 = vld [vmem:[#allocation10 + $0x270] sm:$0xff]  ;;  %v2677_v25 = vld [vmem:[#allocation10 + $0x228] sm:$0xff] }
 0x440   :  { %v5809_v36 = vpop.eup %5808  ;;  %v2589_v43 = vmul.f32 %v5807_v48, %v5799_v20  ;;  %v2694_v20 = vld [vmem:[#allocation10 + $0x2b0] sm:$0xff]  ;;  %v2679_v48 = vld [vmem:[#allocation10 + $0x238] sm:$0xff] }
 0x441   :  { %5810 = vtanh.f32 %v6490_v24  ;;  %v2581_v47 = vadd.f32 1.0, %v5809_v36  ;;  %v2678_v36 = vld [vmem:[#allocation10 + $0x230] sm:$0xff] }
 0x442   :  { %5812 = vrcp.f32 %v2580_v11  ;;  %v6494_v32 = vadd.f32 %v2589_v43, %v2587_v31  ;;  %v2676_v11 = vld [vmem:[#allocation10 + $0x220] sm:$0xff]  ;;  %v2669_v31 = vld [vmem:[#allocation10 + $0x1e8] sm:$0xff]  ;;  %v2671_v43 = vld [vmem:[#allocation10 + $0x1f8] sm:$0xff] }
 0x443   :  { %5814 = vrcp.f32 %v2581_v47  ;;  %v2668_v47 = vld [vmem:[#allocation10 + $0x1e0] sm:$0xff] }
 0x444   :  { %5816 = vtanh.f32 %v6494_v32 }
 0x44e   :  { %v5811_v2 = vpop.eup %5810 }
 0x44f   :  { %v5813_v22 = vpop.eup %5812 }
 0x450   :  { %v5815_v41 = vpop.eup %5814  ;;  %v6497_v34 = vmul.f32 %v5813_v22, %v5811_v2  ;;  %v2670_v2 = vld [vmem:[#allocation10 + $0x1f0] sm:$0xff]  ;;  %v2661_v22 = vld [vmem:[#allocation10 + $0x1a8] sm:$0xff] }
 0x451   :  { %v5817_v13 = vpop.eup %5816 }
 0x452   :  { %v2595_v45 = vmul.f32 %v5817_v13, %v5815_v41  ;;  %2597 = vst [vmem:[#allocation13 + $0x20] sm:$0xff] %v6497_v34  ;;  %v2663_v41 = vld [vmem:[#allocation10 + $0x1b8] sm:$0xff]  ;;  %v2660_v13 = vld [vmem:[#allocation10 + $0x1a0] sm:$0xff] }
 0x454   :  { %2598 = vst [vmem:[#allocation13 + $0x28] sm:$0xff] %v2595_v45  ;;  %2928 = vmatprep.mubr.f32.mxu0 %v2595_v45  ;;  %2999 = vmatprep.mubr.f32.mxu1 %v2595_v45 }
 0x455   :  { %2929 = vmatmul.mubr.f32.vlgmr.msra.gmra.mxu0 %v6497_v34  ;;  %3000 = vmatmul.mubr.f32.vlgmr.msra.gmra.mxu1 %v6497_v34 }
 0x456   :  { %3007 = vmatpush1.msra.mxu0 %v2732_v42  ;;  %3078 = vmatpush1.msra.mxu1 %v2734_v49  ;;  %v2653_v42 = vld [vmem:[#allocation10 + $0x168] sm:$0xff]  ;;  %v2655_v49 = vld [vmem:[#allocation10 + $0x178] sm:$0xff] }
 0x457   :  { %3008 = vmatprep.subr.mxu0 %v2725_v46  ;;  %3070 = vmatprep.mubr.f32.mxu0 %v2595_v45  ;;  %v2652_v46 = vld [vmem:[#allocation10 + $0x160] sm:$0xff] }
 0x458   :  { %3079 = vmatprep.subr.mxu1 %v2727_v50  ;;  %3141 = vmatprep.mubr.f32.mxu1 %v2595_v45  ;;  %v2662_v45 = vld [vmem:[#allocation10 + $0x1b0] sm:$0xff] }
 0x459   :  { %3009 = vmatpush1.msra.mxu0 %v2724_v53  ;;  %3080 = vmatpush1.msra.mxu1 %v2726_v54  ;;  %v2654_v50 = vld [vmem:[#allocation10 + $0x170] sm:$0xff]  ;;  %v2645_v53 = vld [vmem:[#allocation10 + $0x128] sm:$0xff]  ;;  %v2647_v54 = vld [vmem:[#allocation10 + $0x138] sm:$0xff] }
 0x45a   :  { %3010 = vmatprep.subr.mxu0 %v2717_v37  ;;  %3081 = vmatprep.subr.mxu1 %v2719_v0  ;;  %v2644_v37 = vld [vmem:[#allocation10 + $0x120] sm:$0xff]  ;;  %v2646_v0 = vld [vmem:[#allocation10 + $0x130] sm:$0xff] }
 0x45b   :  { %3011 = vmatpush1.msra.mxu0 %v2716_v30  ;;  %3082 = vmatpush1.msra.mxu1 %v2718_v27  ;;  %v2637_v30 = vld [vmem:[#allocation10 + $0xe8] sm:$0xff]  ;;  %v2639_v27 = vld [vmem:[#allocation10 + $0xf8] sm:$0xff] }
 0x45c   :  { %3012 = vmatprep.subr.mxu0 %v2709_v33  ;;  %3083 = vmatprep.subr.mxu1 %v2711_v35  ;;  %v2636_v33 = vld [vmem:[#allocation10 + $0xe0] sm:$0xff]  ;;  %v2638_v35 = vld [vmem:[#allocation10 + $0xf0] sm:$0xff] }
 0x45d   :  { %3013 = vmatpush1.msra.mxu0 %v2708_v40  ;;  %3084 = vmatpush1.msra.mxu1 %v2710_v26  ;;  %v2629_v40 = vld [vmem:[#allocation10 + $0xa8] sm:$0xff]  ;;  %v2631_v26 = vld [vmem:[#allocation10 + $0xb8] sm:$0xff] }
 0x45e   :  { %3014 = vmatprep.subr.mxu0 %v2701_v28  ;;  %3085 = vmatprep.subr.mxu1 %v2703_v51  ;;  %v2628_v28 = vld [vmem:[#allocation10 + $0xa0] sm:$0xff]  ;;  %v2630_v51 = vld [vmem:[#allocation10 + $0xb0] sm:$0xff] }
 0x45f   :  { %3015 = vmatpush1.msra.mxu0 %v2700_v39  ;;  %3086 = vmatpush1.msra.mxu1 %v2702_v52  ;;  %v2621_v39 = vld [vmem:[#allocation10 + $0x68] sm:$0xff]  ;;  %v2623_v52 = vld [vmem:[#allocation10 + $0x78] sm:$0xff] }
 0x460   :  { %3016 = vmatprep.subr.mxu0 %v2693_v29  ;;  %3087 = vmatprep.subr.mxu1 %v2695_v60  ;;  %v2620_v29 = vld [vmem:[#allocation10 + $0x60] sm:$0xff]  ;;  %v2622_v60 = vld [vmem:[#allocation10 + $0x70] sm:$0xff] }
 0x461   :  { %3017 = vmatpush1.msra.mxu0 %v2692_v44  ;;  %3088 = vmatpush1.msra.mxu1 %v2694_v20  ;;  %v2613_v44 = vld [vmem:[#allocation10 + $0x28] sm:$0xff]  ;;  %v2615_v20 = vld [vmem:[#allocation10 + $0x38] sm:$0xff] }
 0x462   :  { %3018 = vmatprep.subr.mxu0 %v2685_v3  ;;  %3089 = vmatprep.subr.mxu1 %v2687_v55  ;;  %v2612_v3 = vld [vmem:[#allocation10 + $0x20] sm:$0xff]  ;;  %v2614_v55 = vld [vmem:[#allocation10 + $0x30] sm:$0xff] }
 0x463   :  { %3019 = vmatpush1.msra.mxu0 %v2684_v14  ;;  %3090 = vmatpush1.msra.mxu1 %v2686_v23  ;;  %v2861_v14 = vld [vmem:[#allocation10 + $0x7e8] sm:$0xff]  ;;  %v2863_v23 = vld [vmem:[#allocation10 + $0x7f8] sm:$0xff] }
 0x464   :  { %3020 = vmatprep.subr.mxu0 %v2677_v25  ;;  %3091 = vmatprep.subr.mxu1 %v2679_v48  ;;  %v2860_v25 = vld [vmem:[#allocation10 + $0x7e0] sm:$0xff]  ;;  %v2862_v48 = vld [vmem:[#allocation10 + $0x7f0] sm:$0xff] }
 0x465   :  { %3021 = vmatpush1.msra.mxu0 %v2676_v11  ;;  %3092 = vmatpush1.msra.mxu1 %v2678_v36  ;;  %v2853_v11 = vld [vmem:[#allocation10 + $0x7a8] sm:$0xff]  ;;  %v2855_v36 = vld [vmem:[#allocation10 + $0x7b8] sm:$0xff] }
 0x466   :  { %3022 = vmatprep.subr.mxu0 %v2669_v31  ;;  %3093 = vmatprep.subr.mxu1 %v2671_v43  ;;  %v2852_v31 = vld [vmem:[#allocation10 + $0x7a0] sm:$0xff]  ;;  %v2854_v43 = vld [vmem:[#allocation10 + $0x7b0] sm:$0xff] }
 0x467   :  { %3023 = vmatpush1.msra.mxu0 %v2668_v47  ;;  %3094 = vmatpush1.msra.mxu1 %v2670_v2  ;;  %v2845_v47 = vld [vmem:[#allocation10 + $0x768] sm:$0xff]  ;;  %v2847_v2 = vld [vmem:[#allocation10 + $0x778] sm:$0xff] }
 0x468   :  { %3024 = vmatprep.subr.mxu0 %v2661_v22  ;;  %3095 = vmatprep.subr.mxu1 %v2663_v41  ;;  %v2844_v22 = vld [vmem:[#allocation10 + $0x760] sm:$0xff]  ;;  %v2846_v41 = vld [vmem:[#allocation10 + $0x770] sm:$0xff] }
 0x469   :  { %3025 = vmatpush1.msra.mxu0 %v2660_v13  ;;  %3096 = vmatpush1.msra.mxu1 %v2662_v45  ;;  %v2837_v13 = vld [vmem:[#allocation10 + $0x728] sm:$0xff]  ;;  %v2839_v45 = vld [vmem:[#allocation10 + $0x738] sm:$0xff] }
 0x46a   :  { %3026 = vmatprep.subr.mxu0 %v2653_v42  ;;  %3097 = vmatprep.subr.mxu1 %v2655_v49  ;;  %v2836_v42 = vld [vmem:[#allocation10 + $0x720] sm:$0xff]  ;;  %v2838_v49 = vld [vmem:[#allocation10 + $0x730] sm:$0xff] }
 0x46b   :  { %3027 = vmatpush1.msra.mxu0 %v2652_v46  ;;  %3098 = vmatpush1.msra.mxu1 %v2654_v50  ;;  %v2829_v46 = vld [vmem:[#allocation10 + $0x6e8] sm:$0xff]  ;;  %v2831_v50 = vld [vmem:[#allocation10 + $0x6f8] sm:$0xff] }
 0x46c   :  { %3028 = vmatprep.subr.mxu0 %v2645_v53  ;;  %3099 = vmatprep.subr.mxu1 %v2647_v54  ;;  %v2828_v53 = vld [vmem:[#allocation10 + $0x6e0] sm:$0xff]  ;;  %v2830_v54 = vld [vmem:[#allocation10 + $0x6f0] sm:$0xff] }
 0x46d   :  { %3029 = vmatpush1.msra.mxu0 %v2644_v37  ;;  %3100 = vmatpush1.msra.mxu1 %v2646_v0  ;;  %v2821_v37 = vld [vmem:[#allocation10 + $0x6a8] sm:$0xff]  ;;  %v2823_v0 = vld [vmem:[#allocation10 + $0x6b8] sm:$0xff] }
 0x46e   :  { %3030 = vmatprep.subr.mxu0 %v2637_v30  ;;  %3101 = vmatprep.subr.mxu1 %v2639_v27  ;;  %v2820_v30 = vld [vmem:[#allocation10 + $0x6a0] sm:$0xff]  ;;  %v2822_v27 = vld [vmem:[#allocation10 + $0x6b0] sm:$0xff] }
 0x46f   :  { %3031 = vmatpush1.msra.mxu0 %v2636_v33  ;;  %3102 = vmatpush1.msra.mxu1 %v2638_v35  ;;  %v2813_v33 = vld [vmem:[#allocation10 + $0x668] sm:$0xff]  ;;  %v2815_v35 = vld [vmem:[#allocation10 + $0x678] sm:$0xff] }
 0x470   :  { %3032 = vmatprep.subr.mxu0 %v2629_v40  ;;  %3103 = vmatprep.subr.mxu1 %v2631_v26  ;;  %v2812_v40 = vld [vmem:[#allocation10 + $0x660] sm:$0xff]  ;;  %v2814_v26 = vld [vmem:[#allocation10 + $0x670] sm:$0xff] }
 0x471   :  { %3033 = vmatpush1.msra.mxu0 %v2628_v28  ;;  %3104 = vmatpush1.msra.mxu1 %v2630_v51  ;;  %v2805_v28 = vld [vmem:[#allocation10 + $0x628] sm:$0xff]  ;;  %v2807_v51 = vld [vmem:[#allocation10 + $0x638] sm:$0xff] }
 0x472   :  { %3034 = vmatprep.subr.mxu0 %v2621_v39  ;;  %3105 = vmatprep.subr.mxu1 %v2623_v52  ;;  %v2804_v39 = vld [vmem:[#allocation10 + $0x620] sm:$0xff]  ;;  %v2806_v52 = vld [vmem:[#allocation10 + $0x630] sm:$0xff] }
 0x473   :  { %3035 = vmatpush1.msra.mxu0 %v2620_v29  ;;  %3106 = vmatpush1.msra.mxu1 %v2622_v60  ;;  %v2797_v29 = vld [vmem:[#allocation10 + $0x5e8] sm:$0xff]  ;;  %v2799_v60 = vld [vmem:[#allocation10 + $0x5f8] sm:$0xff] }
 0x474   :  { %3036 = vmatprep.subr.mxu0 %v2613_v44  ;;  %3107 = vmatprep.subr.mxu1 %v2615_v20  ;;  %v2796_v44 = vld [vmem:[#allocation10 + $0x5e0] sm:$0xff]  ;;  %v2798_v20 = vld [vmem:[#allocation10 + $0x5f0] sm:$0xff] }
 0x475   :  { %3037 = vmatpush1.msra.mxu0 %v2612_v3  ;;  %3108 = vmatpush1.msra.mxu1 %v2614_v55  ;;  %v2789_v3 = vld [vmem:[#allocation10 + $0x5a8] sm:$0xff]  ;;  %v2791_v55 = vld [vmem:[#allocation10 + $0x5b8] sm:$0xff] }
 0x476   :  { %3038 = vmatprep.subr.mxu0 %v2861_v14  ;;  %3109 = vmatprep.subr.mxu1 %v2863_v23  ;;  %v2788_v14 = vld [vmem:[#allocation10 + $0x5a0] sm:$0xff]  ;;  %v2790_v23 = vld [vmem:[#allocation10 + $0x5b0] sm:$0xff] }
 0x477   :  { %3039 = vmatpush2.msra.mxu0 %v2860_v25  ;;  %3110 = vmatpush2.msra.mxu1 %v2862_v48  ;;  %v2781_v25 = vld [vmem:[#allocation10 + $0x568] sm:$0xff]  ;;  %v2783_v48 = vld [vmem:[#allocation10 + $0x578] sm:$0xff] }
 0x478   :  { %3040 = vmatprep.subr.mxu0 %v2853_v11  ;;  %3111 = vmatprep.subr.mxu1 %v2855_v36  ;;  %v2780_v11 = vld [vmem:[#allocation10 + $0x560] sm:$0xff]  ;;  %v2782_v36 = vld [vmem:[#allocation10 + $0x570] sm:$0xff] }
 0x479   :  { %3041 = vmatpush2.msra.mxu0 %v2852_v31  ;;  %3112 = vmatpush2.msra.mxu1 %v2854_v43  ;;  %v2773_v31 = vld [vmem:[#allocation10 + $0x528] sm:$0xff]  ;;  %v2775_v43 = vld [vmem:[#allocation10 + $0x538] sm:$0xff] }
 0x47a   :  { %3042 = vmatprep.subr.mxu0 %v2845_v47  ;;  %3113 = vmatprep.subr.mxu1 %v2847_v2  ;;  %v2772_v47 = vld [vmem:[#allocation10 + $0x520] sm:$0xff]  ;;  %v2774_v2 = vld [vmem:[#allocation10 + $0x530] sm:$0xff] }
 0x47b   :  { %3043 = vmatpush2.msra.mxu0 %v2844_v22  ;;  %3114 = vmatpush2.msra.mxu1 %v2846_v41  ;;  %v2765_v22 = vld [vmem:[#allocation10 + $0x4e8] sm:$0xff]  ;;  %v2767_v41 = vld [vmem:[#allocation10 + $0x4f8] sm:$0xff] }
 0x47c   :  { %3044 = vmatprep.subr.mxu0 %v2837_v13  ;;  %3115 = vmatprep.subr.mxu1 %v2839_v45  ;;  %v2764_v13 = vld [vmem:[#allocation10 + $0x4e0] sm:$0xff]  ;;  %v2766_v45 = vld [vmem:[#allocation10 + $0x4f0] sm:$0xff] }
 0x47d   :  { %3045 = vmatpush2.msra.mxu0 %v2836_v42  ;;  %3116 = vmatpush2.msra.mxu1 %v2838_v49  ;;  %v2757_v42 = vld [vmem:[#allocation10 + $0x4a8] sm:$0xff]  ;;  %v2759_v49 = vld [vmem:[#allocation10 + $0x4b8] sm:$0xff] }
 0x47e   :  { %3046 = vmatprep.subr.mxu0 %v2829_v46  ;;  %3117 = vmatprep.subr.mxu1 %v2831_v50  ;;  %v2756_v46 = vld [vmem:[#allocation10 + $0x4a0] sm:$0xff]  ;;  %v2758_v50 = vld [vmem:[#allocation10 + $0x4b0] sm:$0xff] }
 0x47f   :  { %3047 = vmatpush2.msra.mxu0 %v2828_v53  ;;  %3118 = vmatpush2.msra.mxu1 %v2830_v54  ;;  %v2749_v53 = vld [vmem:[#allocation10 + $0x468] sm:$0xff]  ;;  %v2751_v54 = vld [vmem:[#allocation10 + $0x478] sm:$0xff] }
 0x480   :  { %3048 = vmatprep.subr.mxu0 %v2821_v37  ;;  %3119 = vmatprep.subr.mxu1 %v2823_v0  ;;  %v2748_v37 = vld [vmem:[#allocation10 + $0x460] sm:$0xff]  ;;  %v2750_v0 = vld [vmem:[#allocation10 + $0x470] sm:$0xff] }
 0x481   :  { %3049 = vmatpush2.msra.mxu0 %v2820_v30  ;;  %3120 = vmatpush2.msra.mxu1 %v2822_v27  ;;  %v2741_v30 = vld [vmem:[#allocation10 + $0x428] sm:$0xff]  ;;  %v2743_v27 = vld [vmem:[#allocation10 + $0x438] sm:$0xff] }
 0x482   :  { %3050 = vmatprep.subr.mxu0 %v2813_v33  ;;  %3121 = vmatprep.subr.mxu1 %v2815_v35  ;;  %v2740_v33 = vld [vmem:[#allocation10 + $0x420] sm:$0xff]  ;;  %v2742_v35 = vld [vmem:[#allocation10 + $0x430] sm:$0xff] }
 0x483   :  { %3051 = vmatpush2.msra.mxu0 %v2812_v40  ;;  %3122 = vmatpush2.msra.mxu1 %v2814_v26  ;;  %v3337_v40 = vld [vmem:[#allocation10 + $0x3c8] sm:$0xff]  ;;  %v3339_v26 = vld [vmem:[#allocation10 + $0x3d8] sm:$0xff] }
 0x484   :  { %3052 = vmatprep.subr.mxu0 %v2805_v28  ;;  %3123 = vmatprep.subr.mxu1 %v2807_v51  ;;  %v3336_v28 = vld [vmem:[#allocation10 + $0x3c0] sm:$0xff]  ;;  %v3338_v51 = vld [vmem:[#allocation10 + $0x3d0] sm:$0xff] }
 0x485   :  { %3053 = vmatpush2.msra.mxu0 %v2804_v39  ;;  %3124 = vmatpush2.msra.mxu1 %v2806_v52  ;;  %v3329_v39 = vld [vmem:[#allocation10 + $0x388] sm:$0xff]  ;;  %v3331_v52 = vld [vmem:[#allocation10 + $0x398] sm:$0xff] }
 0x486   :  { %3054 = vmatprep.subr.mxu0 %v2797_v29  ;;  %3125 = vmatprep.subr.mxu1 %v2799_v60  ;;  %v3328_v29 = vld [vmem:[#allocation10 + $0x380] sm:$0xff]  ;;  %v3330_v60 = vld [vmem:[#allocation10 + $0x390] sm:$0xff] }
 0x487   :  { %3055 = vmatpush2.msra.mxu0 %v2796_v44  ;;  %3126 = vmatpush2.msra.mxu1 %v2798_v20  ;;  %v3321_v44 = vld [vmem:[#allocation10 + $0x348] sm:$0xff]  ;;  %v3323_v20 = vld [vmem:[#allocation10 + $0x358] sm:$0xff] }
 0x488   :  { %3056 = vmatprep.subr.mxu0 %v2789_v3  ;;  %3127 = vmatprep.subr.mxu1 %v2791_v55  ;;  %v3320_v3 = vld [vmem:[#allocation10 + $0x340] sm:$0xff]  ;;  %v3322_v55 = vld [vmem:[#allocation10 + $0x350] sm:$0xff] }
 0x489   :  { %3057 = vmatpush2.msra.mxu0 %v2788_v14  ;;  %3128 = vmatpush2.msra.mxu1 %v2790_v23  ;;  %v3315_v14 = vld [vmem:[#allocation10 + $0x318] sm:$0xff]  ;;  %v3312_v23 = vld [vmem:[#allocation10 + $0x300] sm:$0xff] }
 0x48a   :  { %3058 = vmatprep.subr.mxu0 %v2781_v25  ;;  %3129 = vmatprep.subr.mxu1 %v2783_v48  ;;  %v3314_v25 = vld [vmem:[#allocation10 + $0x310] sm:$0xff]  ;;  %v3305_v48 = vld [vmem:[#allocation10 + $0x2c8] sm:$0xff] }
 0x48b   :  { %3059 = vmatpush2.msra.mxu0 %v2780_v11  ;;  %3130 = vmatpush2.msra.mxu1 %v2782_v36  ;;  %v3307_v11 = vld [vmem:[#allocation10 + $0x2d8] sm:$0xff]  ;;  %v3304_v36 = vld [vmem:[#allocation10 + $0x2c0] sm:$0xff] }
 0x48c   :  { %3060 = vmatprep.subr.mxu0 %v2773_v31  ;;  %3131 = vmatprep.subr.mxu1 %v2775_v43  ;;  %v3306_v31 = vld [vmem:[#allocation10 + $0x2d0] sm:$0xff]  ;;  %v3297_v43 = vld [vmem:[#allocation10 + $0x288] sm:$0xff] }
 0x48d   :  { %3061 = vmatpush2.msra.mxu0 %v2772_v47  ;;  %3132 = vmatpush2.msra.mxu1 %v2774_v2  ;;  %v3299_v47 = vld [vmem:[#allocation10 + $0x298] sm:$0xff]  ;;  %v3296_v2 = vld [vmem:[#allocation10 + $0x280] sm:$0xff] }
 0x48e   :  { %3062 = vmatprep.subr.mxu0 %v2765_v22  ;;  %3133 = vmatprep.subr.mxu1 %v2767_v41  ;;  %v3298_v22 = vld [vmem:[#allocation10 + $0x290] sm:$0xff]  ;;  %v3289_v41 = vld [vmem:[#allocation10 + $0x248] sm:$0xff] }
 0x48f   :  { %3063 = vmatpush2.msra.mxu0 %v2764_v13  ;;  %3134 = vmatpush2.msra.mxu1 %v2766_v45  ;;  %v3291_v13 = vld [vmem:[#allocation10 + $0x258] sm:$0xff]  ;;  %v3288_v45 = vld [vmem:[#allocation10 + $0x240] sm:$0xff] }
 0x490   :  { %3064 = vmatprep.subr.mxu0 %v2757_v42  ;;  %3135 = vmatprep.subr.mxu1 %v2759_v49  ;;  %v3290_v42 = vld [vmem:[#allocation10 + $0x250] sm:$0xff]  ;;  %v3281_v49 = vld [vmem:[#allocation10 + $0x208] sm:$0xff] }
 0x491   :  { %3065 = vmatpush2.msra.mxu0 %v2756_v46  ;;  %3136 = vmatpush2.msra.mxu1 %v2758_v50  ;;  %v3283_v46 = vld [vmem:[#allocation10 + $0x218] sm:$0xff]  ;;  %v3280_v50 = vld [vmem:[#allocation10 + $0x200] sm:$0xff] }
 0x492   :  { %3066 = vmatprep.subr.mxu0 %v2749_v53  ;;  %3137 = vmatprep.subr.mxu1 %v2751_v54  ;;  %v3282_v53 = vld [vmem:[#allocation10 + $0x210] sm:$0xff]  ;;  %v3273_v54 = vld [vmem:[#allocation10 + $0x1c8] sm:$0xff] }
 0x493   :  { %3067 = vmatpush2.msra.mxu0 %v2748_v37  ;;  %3138 = vmatpush2.msra.mxu1 %v2750_v0  ;;  %v3275_v37 = vld [vmem:[#allocation10 + $0x1d8] sm:$0xff]  ;;  %v3272_v0 = vld [vmem:[#allocation10 + $0x1c0] sm:$0xff] }
 0x494   :  { %3068 = vmatprep.subr.mxu0 %v2741_v30  ;;  %3139 = vmatprep.subr.mxu1 %v2743_v27  ;;  %v3274_v30 = vld [vmem:[#allocation10 + $0x1d0] sm:$0xff]  ;;  %v3265_v27 = vld [vmem:[#allocation10 + $0x188] sm:$0xff] }
 0x495   :  { %3069 = vmatpush2.msra.mxu0 %v2740_v33  ;;  %3140 = vmatpush2.msra.mxu1 %v2742_v35  ;;  %v3267_v33 = vld [vmem:[#allocation10 + $0x198] sm:$0xff]  ;;  %v3264_v35 = vld [vmem:[#allocation10 + $0x180] sm:$0xff] }
 0x496   :  { %3071 = vmatmul.mubr.f32.vlgmr.msra.gmra.mxu0 %v6497_v34  ;;  %3142 = vmatmul.mubr.f32.vlgmr.msra.gmra.mxu1 %v6497_v34  ;;  %v3313_v34 = vld [vmem:[#allocation10 + $0x308] sm:$0xff] }
 0x497   :  { %3472 = vmatprep.subr.mxu0 %v3337_v40  ;;  %3543 = vmatprep.subr.mxu1 %v3339_v26  ;;  %v3266_v40 = vld [vmem:[#allocation10 + $0x190] sm:$0xff]  ;;  %v3257_v26 = vld [vmem:[#allocation10 + $0x148] sm:$0xff] }
 0x498   :  { %3473 = vmatpush1.msra.mxu0 %v3336_v28  ;;  %3544 = vmatpush1.msra.mxu1 %v3338_v51  ;;  %v3259_v28 = vld [vmem:[#allocation10 + $0x158] sm:$0xff]  ;;  %v3256_v51 = vld [vmem:[#allocation10 + $0x140] sm:$0xff] }
 0x499   :  { %3474 = vmatprep.subr.mxu0 %v3329_v39  ;;  %3545 = vmatprep.subr.mxu1 %v3331_v52  ;;  %v3258_v39 = vld [vmem:[#allocation10 + $0x150] sm:$0xff]  ;;  %v3249_v52 = vld [vmem:[#allocation10 + $0x108] sm:$0xff] }
 0x49a   :  { %3475 = vmatpush1.msra.mxu0 %v3328_v29  ;;  %3546 = vmatpush1.msra.mxu1 %v3330_v60  ;;  %v3251_v29 = vld [vmem:[#allocation10 + $0x118] sm:$0xff]  ;;  %v3248_v60 = vld [vmem:[#allocation10 + $0x100] sm:$0xff] }
 0x49b   :  { %3476 = vmatprep.subr.mxu0 %v3321_v44  ;;  %3547 = vmatprep.subr.mxu1 %v3323_v20  ;;  %v3250_v44 = vld [vmem:[#allocation10 + $0x110] sm:$0xff]  ;;  %v3241_v20 = vld [vmem:[#allocation10 + $0xc8] sm:$0xff] }
 0x49c   :  { %3477 = vmatpush1.msra.mxu0 %v3320_v3  ;;  %3548 = vmatpush1.msra.mxu1 %v3322_v55  ;;  %v3243_v3 = vld [vmem:[#allocation10 + $0xd8] sm:$0xff]  ;;  %v3240_v55 = vld [vmem:[#allocation10 + $0xc0] sm:$0xff] }
 0x49d   :  { %3478 = vmatprep.subr.mxu0 %v3313_v34  ;;  %3549 = vmatprep.subr.mxu1 %v3315_v14  ;;  %v3242_v34 = vld [vmem:[#allocation10 + $0xd0] sm:$0xff]  ;;  %v3233_v14 = vld [vmem:[#allocation10 + $0x88] sm:$0xff] }
 0x49e   :  { %3479 = vmatpush1.msra.mxu0 %v3312_v23  ;;  %3550 = vmatpush1.msra.mxu1 %v3314_v25  ;;  %v3235_v23 = vld [vmem:[#allocation10 + $0x98] sm:$0xff]  ;;  %v3232_v25 = vld [vmem:[#allocation10 + $0x80] sm:$0xff] }
 0x49f   :  { %3480 = vmatprep.subr.mxu0 %v3305_v48  ;;  %3551 = vmatprep.subr.mxu1 %v3307_v11  ;;  %v3234_v48 = vld [vmem:[#allocation10 + $0x90] sm:$0xff]  ;;  %v3225_v11 = vld [vmem:[#allocation10 + $0x48] sm:$0xff] }
 0x4a0   :  { %3481 = vmatpush1.msra.mxu0 %v3304_v36  ;;  %3552 = vmatpush1.msra.mxu1 %v3306_v31  ;;  %v3227_v36 = vld [vmem:[#allocation10 + $0x58] sm:$0xff]  ;;  %v3224_v31 = vld [vmem:[#allocation10 + $0x40] sm:$0xff] }
 0x4a1   :  { %3482 = vmatprep.subr.mxu0 %v3297_v43  ;;  %3553 = vmatprep.subr.mxu1 %v3299_v47  ;;  %v3226_v43 = vld [vmem:[#allocation10 + $0x50] sm:$0xff]  ;;  %v3217_v47 = vld [vmem:[#allocation10 + $0x8] sm:$0xff] }
 0x4a2   :  { %3483 = vmatpush1.msra.mxu0 %v3296_v2  ;;  %3554 = vmatpush1.msra.mxu1 %v3298_v22  ;;  %v3219_v2 = vld [vmem:[#allocation10 + $0x18] sm:$0xff]  ;;  %v3216_v22 = vld [vmem:[#allocation10] sm:$0xff] }
 0x4a3   :  { %3484 = vmatprep.subr.mxu0 %v3289_v41  ;;  %3555 = vmatprep.subr.mxu1 %v3291_v13  ;;  %v3218_v41 = vld [vmem:[#allocation10 + $0x10] sm:$0xff]  ;;  %v3465_v13 = vld [vmem:[#allocation10 + $0x7c8] sm:$0xff] }
 0x4a4   :  { %3485 = vmatpush1.msra.mxu0 %v3288_v45  ;;  %3556 = vmatpush1.msra.mxu1 %v3290_v42  ;;  %v3467_v45 = vld [vmem:[#allocation10 + $0x7d8] sm:$0xff]  ;;  %v3464_v42 = vld [vmem:[#allocation10 + $0x7c0] sm:$0xff] }
 0x4a5   :  { %3486 = vmatprep.subr.mxu0 %v3281_v49  ;;  %3557 = vmatprep.subr.mxu1 %v3283_v46  ;;  %v3466_v49 = vld [vmem:[#allocation10 + $0x7d0] sm:$0xff]  ;;  %v3457_v46 = vld [vmem:[#allocation10 + $0x788] sm:$0xff] }
 0x4a6   :  { %3487 = vmatpush1.msra.mxu0 %v3280_v50  ;;  %3558 = vmatpush1.msra.mxu1 %v3282_v53  ;;  %v3459_v50 = vld [vmem:[#allocation10 + $0x798] sm:$0xff]  ;;  %v3456_v53 = vld [vmem:[#allocation10 + $0x780] sm:$0xff] }
 0x4a7   :  { %3488 = vmatprep.subr.mxu0 %v3273_v54  ;;  %3559 = vmatprep.subr.mxu1 %v3275_v37  ;;  %v3458_v54 = vld [vmem:[#allocation10 + $0x790] sm:$0xff]  ;;  %v3449_v37 = vld [vmem:[#allocation10 + $0x748] sm:$0xff] }
 0x4a8   :  { %3489 = vmatpush1.msra.mxu0 %v3272_v0  ;;  %3560 = vmatpush1.msra.mxu1 %v3274_v30  ;;  %v3451_v0 = vld [vmem:[#allocation10 + $0x758] sm:$0xff]  ;;  %v3448_v30 = vld [vmem:[#allocation10 + $0x740] sm:$0xff] }
 0x4a9   :  { %3490 = vmatprep.subr.mxu0 %v3265_v27  ;;  %3561 = vmatprep.subr.mxu1 %v3267_v33  ;;  %v3450_v27 = vld [vmem:[#allocation10 + $0x750] sm:$0xff]  ;;  %v3441_v33 = vld [vmem:[#allocation10 + $0x708] sm:$0xff] }
 0x4aa   :  { %3491 = vmatpush1.msra.mxu0 %v3264_v35  ;;  %3562 = vmatpush1.msra.mxu1 %v3266_v40  ;;  %v3443_v35 = vld [vmem:[#allocation10 + $0x718] sm:$0xff]  ;;  %v3440_v40 = vld [vmem:[#allocation10 + $0x700] sm:$0xff] }
 0x4ab   :  { %3492 = vmatprep.subr.mxu0 %v3257_v26  ;;  %3563 = vmatprep.subr.mxu1 %v3259_v28  ;;  %v3442_v26 = vld [vmem:[#allocation10 + $0x710] sm:$0xff]  ;;  %v3433_v28 = vld [vmem:[#allocation10 + $0x6c8] sm:$0xff] }
 0x4ac   :  { %3493 = vmatpush1.msra.mxu0 %v3256_v51  ;;  %3564 = vmatpush1.msra.mxu1 %v3258_v39  ;;  %v3435_v51 = vld [vmem:[#allocation10 + $0x6d8] sm:$0xff]  ;;  %v3432_v39 = vld [vmem:[#allocation10 + $0x6c0] sm:$0xff] }
 0x4ad   :  { %3494 = vmatprep.subr.mxu0 %v3249_v52  ;;  %3565 = vmatprep.subr.mxu1 %v3251_v29  ;;  %v3434_v52 = vld [vmem:[#allocation10 + $0x6d0] sm:$0xff]  ;;  %v3425_v29 = vld [vmem:[#allocation10 + $0x688] sm:$0xff] }
 0x4ae   :  { %3495 = vmatpush1.msra.mxu0 %v3248_v60  ;;  %3566 = vmatpush1.msra.mxu1 %v3250_v44  ;;  %v3427_v60 = vld [vmem:[#allocation10 + $0x698] sm:$0xff]  ;;  %v3424_v44 = vld [vmem:[#allocation10 + $0x680] sm:$0xff] }
 0x4af   :  { %3496 = vmatprep.subr.mxu0 %v3241_v20  ;;  %3567 = vmatprep.subr.mxu1 %v3243_v3  ;;  %v3426_v20 = vld [vmem:[#allocation10 + $0x690] sm:$0xff]  ;;  %v3417_v3 = vld [vmem:[#allocation10 + $0x648] sm:$0xff] }
 0x4b0   :  { %3497 = vmatpush1.msra.mxu0 %v3240_v55  ;;  %3568 = vmatpush1.msra.mxu1 %v3242_v34  ;;  %v3419_v55 = vld [vmem:[#allocation10 + $0x658] sm:$0xff]  ;;  %v3416_v34 = vld [vmem:[#allocation10 + $0x640] sm:$0xff] }
 0x4b1   :  { %3498 = vmatprep.subr.mxu0 %v3233_v14  ;;  %3569 = vmatprep.subr.mxu1 %v3235_v23  ;;  %v3418_v14 = vld [vmem:[#allocation10 + $0x650] sm:$0xff]  ;;  %v3409_v23 = vld [vmem:[#allocation10 + $0x608] sm:$0xff] }
 0x4b2   :  { %3499 = vmatpush1.msra.mxu0 %v3232_v25  ;;  %3570 = vmatpush1.msra.mxu1 %v3234_v48  ;;  %v3411_v25 = vld [vmem:[#allocation10 + $0x618] sm:$0xff]  ;;  %v3408_v48 = vld [vmem:[#allocation10 + $0x600] sm:$0xff] }
 0x4b3   :  { %3500 = vmatprep.subr.mxu0 %v3225_v11  ;;  %3571 = vmatprep.subr.mxu1 %v3227_v36  ;;  %v3410_v11 = vld [vmem:[#allocation10 + $0x610] sm:$0xff]  ;;  %v3401_v36 = vld [vmem:[#allocation10 + $0x5c8] sm:$0xff] }
 0x4b4   :  { %3501 = vmatpush1.msra.mxu0 %v3224_v31  ;;  %3572 = vmatpush1.msra.mxu1 %v3226_v43  ;;  %v3403_v31 = vld [vmem:[#allocation10 + $0x5d8] sm:$0xff]  ;;  %v3400_v43 = vld [vmem:[#allocation10 + $0x5c0] sm:$0xff] }
 0x4b5   :  { %3502 = vmatprep.subr.mxu0 %v3217_v47  ;;  %3573 = vmatprep.subr.mxu1 %v3219_v2  ;;  %v3402_v47 = vld [vmem:[#allocation10 + $0x5d0] sm:$0xff]  ;;  %v3393_v2 = vld [vmem:[#allocation10 + $0x588] sm:$0xff] }
 0x4b6   :  { %3503 = vmatpush1.msra.mxu0 %v3216_v22  ;;  %3574 = vmatpush1.msra.mxu1 %v3218_v41  ;;  %v3395_v22 = vld [vmem:[#allocation10 + $0x598] sm:$0xff]  ;;  %v3392_v41 = vld [vmem:[#allocation10 + $0x580] sm:$0xff] }
 0x4b7   :  { %3504 = vmatprep.subr.mxu0 %v3465_v13  ;;  %3575 = vmatprep.subr.mxu1 %v3467_v45  ;;  %v3394_v13 = vld [vmem:[#allocation10 + $0x590] sm:$0xff]  ;;  %v3385_v45 = vld [vmem:[#allocation10 + $0x548] sm:$0xff] }
 0x4b8   :  { %3505 = vmatpush2.msra.mxu0 %v3464_v42  ;;  %3576 = vmatpush2.msra.mxu1 %v3466_v49  ;;  %v3387_v42 = vld [vmem:[#allocation10 + $0x558] sm:$0xff]  ;;  %v3384_v49 = vld [vmem:[#allocation10 + $0x540] sm:$0xff] }
 0x4b9   :  { %3506 = vmatprep.subr.mxu0 %v3457_v46  ;;  %3577 = vmatprep.subr.mxu1 %v3459_v50  ;;  %v3386_v46 = vld [vmem:[#allocation10 + $0x550] sm:$0xff]  ;;  %v3377_v50 = vld [vmem:[#allocation10 + $0x508] sm:$0xff] }
 0x4ba   :  { %3507 = vmatpush2.msra.mxu0 %v3456_v53  ;;  %3578 = vmatpush2.msra.mxu1 %v3458_v54  ;;  %v3379_v53 = vld [vmem:[#allocation10 + $0x518] sm:$0xff]  ;;  %v3376_v54 = vld [vmem:[#allocation10 + $0x500] sm:$0xff] }
 0x4bb   :  { %3508 = vmatprep.subr.mxu0 %v3449_v37  ;;  %3579 = vmatprep.subr.mxu1 %v3451_v0  ;;  %v3378_v37 = vld [vmem:[#allocation10 + $0x510] sm:$0xff]  ;;  %v3369_v0 = vld [vmem:[#allocation10 + $0x4c8] sm:$0xff] }
 0x4bc   :  { %3509 = vmatpush2.msra.mxu0 %v3448_v30  ;;  %3580 = vmatpush2.msra.mxu1 %v3450_v27  ;;  %v3371_v30 = vld [vmem:[#allocation10 + $0x4d8] sm:$0xff]  ;;  %v3368_v27 = vld [vmem:[#allocation10 + $0x4c0] sm:$0xff] }
 0x4bd   :  { %3510 = vmatprep.subr.mxu0 %v3441_v33  ;;  %3581 = vmatprep.subr.mxu1 %v3443_v35  ;;  %v3370_v33 = vld [vmem:[#allocation10 + $0x4d0] sm:$0xff]  ;;  %v3361_v35 = vld [vmem:[#allocation10 + $0x488] sm:$0xff] }
 0x4be   :  { %3511 = vmatpush2.msra.mxu0 %v3440_v40  ;;  %3582 = vmatpush2.msra.mxu1 %v3442_v26  ;;  %v3363_v40 = vld [vmem:[#allocation10 + $0x498] sm:$0xff]  ;;  %v3360_v26 = vld [vmem:[#allocation10 + $0x480] sm:$0xff] }
 0x4bf   :  { %3512 = vmatprep.subr.mxu0 %v3433_v28  ;;  %3583 = vmatprep.subr.mxu1 %v3435_v51  ;;  %v3362_v28 = vld [vmem:[#allocation10 + $0x490] sm:$0xff]  ;;  %v3353_v51 = vld [vmem:[#allocation10 + $0x448] sm:$0xff] }
 0x4c0   :  { %3513 = vmatpush2.msra.mxu0 %v3432_v39  ;;  %3584 = vmatpush2.msra.mxu1 %v3434_v52  ;;  %v3355_v39 = vld [vmem:[#allocation10 + $0x458] sm:$0xff]  ;;  %v3352_v52 = vld [vmem:[#allocation10 + $0x440] sm:$0xff] }
 0x4c1   :  { %3514 = vmatprep.subr.mxu0 %v3425_v29  ;;  %3585 = vmatprep.subr.mxu1 %v3427_v60  ;;  %v3354_v29 = vld [vmem:[#allocation10 + $0x450] sm:$0xff]  ;;  %v3345_v60 = vld [vmem:[#allocation10 + $0x408] sm:$0xff] }
 0x4c2   :  { %3515 = vmatpush2.msra.mxu0 %v3424_v44  ;;  %3586 = vmatpush2.msra.mxu1 %v3426_v20  ;;  %v3347_v44 = vld [vmem:[#allocation10 + $0x418] sm:$0xff]  ;;  %v3344_v20 = vld [vmem:[#allocation10 + $0x400] sm:$0xff] }
 0x4c3   :  { %3516 = vmatprep.subr.mxu0 %v3417_v3  ;;  %3587 = vmatprep.subr.mxu1 %v3419_v55  ;;  %v3346_v3 = vld [vmem:[#allocation10 + $0x410] sm:$0xff]  ;;  %v3341_v55 = vld [vmem:[#allocation10 + $0x3e8] sm:$0xff] }
 0x4c4   :  { %3517 = vmatpush2.msra.mxu0 %v3416_v34  ;;  %3588 = vmatpush2.msra.mxu1 %v3418_v14  ;;  %v3343_v34 = vld [vmem:[#allocation10 + $0x3f8] sm:$0xff] }
 0x4c5   :  { %3518 = vmatprep.subr.mxu0 %v3409_v23  ;;  %3589 = vmatprep.subr.mxu1 %v3411_v25 }
 0x4c6   :  { %3519 = vmatpush2.msra.mxu0 %v3408_v48  ;;  %3590 = vmatpush2.msra.mxu1 %v3410_v11 }
 0x4c7   :  { %3520 = vmatprep.subr.mxu0 %v3401_v36  ;;  %3591 = vmatprep.subr.mxu1 %v3403_v31 }
 0x4c8   :  { %3521 = vmatpush2.msra.mxu0 %v3400_v43  ;;  %3592 = vmatpush2.msra.mxu1 %v3402_v47 }
 0x4c9   :  { %3522 = vmatprep.subr.mxu0 %v3393_v2  ;;  %3593 = vmatprep.subr.mxu1 %v3395_v22 }
 0x4ca   :  { %3523 = vmatpush2.msra.mxu0 %v3392_v41  ;;  %3594 = vmatpush2.msra.mxu1 %v3394_v13 }
 0x4cb   :  { %3524 = vmatprep.subr.mxu0 %v3385_v45  ;;  %3595 = vmatprep.subr.mxu1 %v3387_v42 }
 0x4cc   :  { %3525 = vmatpush2.msra.mxu0 %v3384_v49  ;;  %3596 = vmatpush2.msra.mxu1 %v3386_v46 }
 0x4cd   :  { %3526 = vmatprep.subr.mxu0 %v3377_v50  ;;  %3597 = vmatprep.subr.mxu1 %v3379_v53  ;;  %v570_v50 = vadd.f32 %v6369_v5, %v6424_v16 }
 0x4ce   :  { %3527 = vmatpush2.msra.mxu0 %v3376_v54  ;;  %3598 = vmatpush2.msra.mxu1 %v3378_v37 }
 0x4cf   :  { %3528 = vmatprep.subr.mxu0 %v3369_v0  ;;  %3599 = vmatprep.subr.mxu1 %v3371_v30  ;;  %v683_v0 = vadd.f32 %v6371_v6, %v6427_v59 }
 0x4d0   :  { %3529 = vmatpush2.msra.mxu0 %v3368_v27  ;;  %3600 = vmatpush2.msra.mxu1 %v3370_v33 }
 0x4d1   :  { %3530 = vmatprep.subr.mxu0 %v3361_v35  ;;  %3601 = vmatprep.subr.mxu1 %v3363_v40 }
 0x4d2   :  { %3531 = vmatpush2.msra.mxu0 %v3360_v26  ;;  %3602 = vmatpush2.msra.mxu1 %v3362_v28 }
 0x4d3   :  { %3532 = vmatprep.subr.mxu0 %v3353_v51  ;;  %3603 = vmatprep.subr.mxu1 %v3355_v39 }
 0x4d4   :  { %3533 = vmatpush2.msra.mxu0 %v3352_v52  ;;  %3604 = vmatpush2.msra.mxu1 %v3354_v29 }
 0x4d5   :  { %3534 = vmatprep.subr.mxu0 %v3345_v60  ;;  %3605 = vmatprep.subr.mxu1 %v3347_v44 }
 0x4d6   :  { %3535 = vmatpush2.msra.mxu0 %v3344_v20  ;;  %3606 = vmatpush2.msra.mxu1 %v3346_v3 }
 0x4d7   :  { %3614 = vmatprep.subr.mxu0 %v3341_v55  ;;  %3685 = vmatprep.subr.mxu1 %v3343_v34 }
 0x515   :  { %v2930_v14 = vpop.f32.mrf.mxu0  ;;  %v3001_v23 = vpop.f32.mrf.mxu1 }
 0x516   :  { %v3148_v48 = vadd.f32 %v2930_v14, %v6282_v57  ;;  %v3150_v11 = vadd.f32 %v3001_v23, %v6285_v58 }
 0x517   :  { %v2932_v25 = vpop.f32.mrf.mxu0  ;;  %v3003_v36 = vpop.f32.mrf.mxu1 }
 0x518   :  { %v3149_v31 = vadd.f32 %v2932_v25, %v6288_v61  ;;  %v5680_v43 = vmul.f32 -1.442695, %v3148_v48  ;;  %v3151_v47 = vadd.f32 %v3003_v36, %v6291_v62  ;;  %v5682_v2 = vmul.f32 -1.442695, %v3150_v11 }
 0x519   :  { %v568_v61 = vadd.f32 %v6365_v38, %v6418_v18  ;;  %v681_v62 = vadd.f32 %v6367_v63, %v6421_v19 }
 0x51a   :  { %v5681_v22 = vmul.f32 -1.442695, %v3149_v31  ;;  %5818 = vpow2.f32 %v5680_v43  ;;  %v5683_v41 = vmul.f32 -1.442695, %v3151_v47  ;;  %v3342_v47 = vld [vmem:[#allocation10 + $0x3f0] sm:$0xff] }
 0x51b   :  { %5820 = vpow2.f32 %v5682_v2  ;;  %v3333_v2 = vld [vmem:[#allocation10 + $0x3a8] sm:$0xff] }
 0x51c   :  { %5822 = vpow2.f32 %v5681_v22  ;;  %v3335_v22 = vld [vmem:[#allocation10 + $0x3b8] sm:$0xff] }
 0x51d   :  { %5824 = vpow2.f32 %v5683_v41  ;;  %v3332_v41 = vld [vmem:[#allocation10 + $0x3a0] sm:$0xff] }
 0x527   :  { %v5819_v13 = vpop.eup %5818 }
 0x528   :  { %v5821_v45 = vpop.eup %5820  ;;  %v3168_v49 = vadd.f32 1.0, %v5819_v13  ;;  %v3334_v13 = vld [vmem:[#allocation10 + $0x3b0] sm:$0xff] }
 0x529   :  { %v5823_v42 = vpop.eup %5822  ;;  %v3170_v46 = vadd.f32 1.0, %v5821_v45  ;;  %v3325_v45 = vld [vmem:[#allocation10 + $0x368] sm:$0xff] }
 0x52a   :  { %v5825_v57 = vpop.eup %5824  ;;  %v3169_v58 = vadd.f32 1.0, %v5823_v42  ;;  %5826 = vrcp.f32 %v3168_v49  ;;  %v3327_v42 = vld [vmem:[#allocation10 + $0x378] sm:$0xff]  ;;  %v3324_v49 = vld [vmem:[#allocation10 + $0x360] sm:$0xff] }
 0x52b   :  { %v3171_v53 = vadd.f32 1.0, %v5825_v57  ;;  %5828 = vrcp.f32 %v3170_v46  ;;  %v3326_v57 = vld [vmem:[#allocation10 + $0x370] sm:$0xff]  ;;  %v3317_v46 = vld [vmem:[#allocation10 + $0x328] sm:$0xff] }
 0x52c   :  { %5830 = vrcp.f32 %v3169_v58  ;;  %v3319_v58 = vld [vmem:[#allocation10 + $0x338] sm:$0xff] }
 0x537   :  { %v5827_v26 = vpop.eup %5826 }
 0x538   :  { %v5829_v28 = vpop.eup %5828 }
 0x539   :  { %v5831_v51 = vpop.eup %5830  ;;  %v3194_v52 = vmul.f32 %v5829_v28, %v6490_v24  ;;  %v3284_v28 = vld [vmem:[#allocation10 + $0x220] sm:$0xff] }
 0x556   :  { %v3072_v54 = vpop.f32.mrf.mxu0  ;;  %v3143_v37 = vpop.f32.mrf.mxu1 }
 0x557   :  { %v3152_v30 = vadd.f32 %v3072_v54, %v568_v61  ;;  %v3154_v27 = vadd.f32 %v3143_v37, %v681_v62  ;;  %v3316_v61 = vld [vmem:[#allocation10 + $0x320] sm:$0xff]  ;;  %v3318_v62 = vld [vmem:[#allocation10 + $0x330] sm:$0xff] }
 0x558   :  { %v3074_v33 = vpop.f32.mrf.mxu0  ;;  %v3145_v35 = vpop.f32.mrf.mxu1  ;;  %v3308_v54 = vld [vmem:[#allocation10 + $0x2e0] sm:$0xff]  ;;  %v3310_v37 = vld [vmem:[#allocation10 + $0x2f0] sm:$0xff] }
 0x559   :  { %5832 = vtanh.f32 %v3152_v30  ;;  %v5684_v38 = vmul.f32 -1.442695, %v3154_v27  ;;  %v3153_v40 = vadd.f32 %v3074_v33, %v570_v50  ;;  %v3155_v63 = vadd.f32 %v3145_v35, %v683_v0  ;;  %v3309_v50 = vld [vmem:[#allocation10 + $0x2e8] sm:$0xff]  ;;  %v3303_v30 = vld [vmem:[#allocation10 + $0x2b8] sm:$0xff]  ;;  %v3300_v27 = vld [vmem:[#allocation10 + $0x2a0] sm:$0xff] }
 0x55a   :  { %5834 = vrcp.f32 %v3171_v53  ;;  %v3311_v53 = vld [vmem:[#allocation10 + $0x2f8] sm:$0xff]  ;;  %v3301_v0 = vld [vmem:[#allocation10 + $0x2a8] sm:$0xff]  ;;  %v3302_v33 = vld [vmem:[#allocation10 + $0x2b0] sm:$0xff] }
 0x55b   :  { %5836 = vpow2.f32 %v5684_v38  ;;  %v5685_v5 = vmul.f32 -1.442695, %v3155_v63  ;;  %v3293_v35 = vld [vmem:[#allocation10 + $0x268] sm:$0xff]  ;;  %v3295_v38 = vld [vmem:[#allocation10 + $0x278] sm:$0xff]  ;;  %v3294_v63 = vld [vmem:[#allocation10 + $0x270] sm:$0xff] }
 0x55c   :  { %5838 = vtanh.f32 %v3153_v40  ;;  %v3292_v40 = vld [vmem:[#allocation10 + $0x260] sm:$0xff] }
 0x55d   :  { %5840 = vpow2.f32 %v5685_v5  ;;  %v3285_v5 = vld [vmem:[#allocation10 + $0x228] sm:$0xff] }
 0x566   :  { %v5833_v39 = vpop.eup %5832 }
 0x567   :  { %v5835_v6 = vpop.eup %5834  ;;  %v3196_v29 = vmul.f32 %v5833_v39, %v5827_v26  ;;  %v3287_v26 = vld [vmem:[#allocation10 + $0x238] sm:$0xff]  ;;  %v3277_v39 = vld [vmem:[#allocation10 + $0x1e8] sm:$0xff] }
 0x568   :  { %v5837_v60 = vpop.eup %5836  ;;  %v3195_v34 = vmul.f32 %v5835_v6, %v6494_v32  ;;  %v3340_v32 = vld [vmem:[#allocation10 + $0x3e0] sm:$0xff]  ;;  %v3279_v6 = vld [vmem:[#allocation10 + $0x1f8] sm:$0xff] }
 0x569   :  { %v5839_v44 = vpop.eup %5838  ;;  %v6517_v20 = vadd.f32 %v3196_v29, %v3194_v52  ;;  %v3188_v3 = vadd.f32 1.0, %v5837_v60  ;;  %v3276_v52 = vld [vmem:[#allocation10 + $0x1e0] sm:$0xff]  ;;  %v3278_v29 = vld [vmem:[#allocation10 + $0x1f0] sm:$0xff]  ;;  %v3269_v60 = vld [vmem:[#allocation10 + $0x1a8] sm:$0xff] }
 0x56a   :  { %v5841_v55 = vpop.eup %5840  ;;  %v3197_v14 = vmul.f32 %v5839_v44, %v5831_v51  ;;  %v3286_v51 = vld [vmem:[#allocation10 + $0x230] sm:$0xff]  ;;  %v3271_v44 = vld [vmem:[#allocation10 + $0x1b8] sm:$0xff] }
 0x56b   :  { %5842 = vtanh.f32 %v6517_v20  ;;  %v3189_v23 = vadd.f32 1.0, %v5841_v55  ;;  %v3270_v55 = vld [vmem:[#allocation10 + $0x1b0] sm:$0xff] }
 0x56c   :  { %5844 = vrcp.f32 %v3188_v3  ;;  %v6521_v25 = vadd.f32 %v3197_v14, %v3195_v34  ;;  %v3268_v3 = vld [vmem:[#allocation10 + $0x1a0] sm:$0xff]  ;;  %v3261_v34 = vld [vmem:[#allocation10 + $0x168] sm:$0xff]  ;;  %v3263_v14 = vld [vmem:[#allocation10 + $0x178] sm:$0xff] }
 0x56d   :  { %5846 = vrcp.f32 %v3189_v23  ;;  %v3260_v23 = vld [vmem:[#allocation10 + $0x160] sm:$0xff] }
 0x56e   :  { %5848 = vtanh.f32 %v6521_v25 }
 0x578   :  { %v5843_v24 = vpop.eup %5842 }
 0x579   :  { %v5845_v48 = vpop.eup %5844 }
 0x57a   :  { %v5847_v11 = vpop.eup %5846  ;;  %v6524_v36 = vmul.f32 %v5845_v48, %v5843_v24  ;;  %v3262_v24 = vld [vmem:[#allocation10 + $0x170] sm:$0xff]  ;;  %v3253_v48 = vld [vmem:[#allocation10 + $0x128] sm:$0xff] }
 0x57b   :  { %v5849_v31 = vpop.eup %5848 }
 0x57c   :  { %v3203_v43 = vmul.f32 %v5849_v31, %v5847_v11  ;;  %3205 = vst [vmem:[#allocation13 + $0x30] sm:$0xff] %v6524_v36  ;;  %v3255_v11 = vld [vmem:[#allocation10 + $0x138] sm:$0xff]  ;;  %v3252_v31 = vld [vmem:[#allocation10 + $0x120] sm:$0xff] }
 0x57e   :  { %3206 = vst [vmem:[#allocation13 + $0x38] sm:$0xff] %v3203_v43  ;;  %3536 = vmatprep.mubr.f32.mxu0 %v3203_v43  ;;  %3607 = vmatprep.mubr.f32.mxu1 %v3203_v43 }
 0x57f   :  { %3537 = vmatmul.mubr.f32.vlgmr.msra.gmra.mxu0 %v6524_v36  ;;  %3608 = vmatmul.mubr.f32.vlgmr.msra.gmra.mxu1 %v6524_v36 }
 0x580   :  { %3615 = vmatpush1.msra.mxu0 %v3340_v32  ;;  %3686 = vmatpush1.msra.mxu1 %v3342_v47  ;;  %v3245_v32 = vld [vmem:[#allocation10 + $0xe8] sm:$0xff]  ;;  %v3247_v47 = vld [vmem:[#allocation10 + $0xf8] sm:$0xff] }
 0x581   :  { %3616 = vmatprep.subr.mxu0 %v3333_v2  ;;  %3678 = vmatprep.mubr.f32.mxu0 %v3203_v43  ;;  %v3244_v2 = vld [vmem:[#allocation10 + $0xe0] sm:$0xff] }
 0x582   :  { %3687 = vmatprep.subr.mxu1 %v3335_v22  ;;  %3749 = vmatprep.mubr.f32.mxu1 %v3203_v43  ;;  %v3254_v43 = vld [vmem:[#allocation10 + $0x130] sm:$0xff] }
 0x583   :  { %3617 = vmatpush1.msra.mxu0 %v3332_v41  ;;  %3688 = vmatpush1.msra.mxu1 %v3334_v13  ;;  %v3246_v22 = vld [vmem:[#allocation10 + $0xf0] sm:$0xff]  ;;  %v3237_v41 = vld [vmem:[#allocation10 + $0xa8] sm:$0xff]  ;;  %v3239_v13 = vld [vmem:[#allocation10 + $0xb8] sm:$0xff] }
 0x584   :  { %3618 = vmatprep.subr.mxu0 %v3325_v45  ;;  %3689 = vmatprep.subr.mxu1 %v3327_v42  ;;  %v3236_v45 = vld [vmem:[#allocation10 + $0xa0] sm:$0xff]  ;;  %v3238_v42 = vld [vmem:[#allocation10 + $0xb0] sm:$0xff] }
 0x585   :  { %3619 = vmatpush1.msra.mxu0 %v3324_v49  ;;  %3690 = vmatpush1.msra.mxu1 %v3326_v57  ;;  %v3229_v49 = vld [vmem:[#allocation10 + $0x68] sm:$0xff]  ;;  %v3231_v57 = vld [vmem:[#allocation10 + $0x78] sm:$0xff] }
 0x586   :  { %3620 = vmatprep.subr.mxu0 %v3317_v46  ;;  %3691 = vmatprep.subr.mxu1 %v3319_v58  ;;  %v3228_v46 = vld [vmem:[#allocation10 + $0x60] sm:$0xff]  ;;  %v3230_v58 = vld [vmem:[#allocation10 + $0x70] sm:$0xff] }
 0x587   :  { %3621 = vmatpush1.msra.mxu0 %v3316_v61  ;;  %3692 = vmatpush1.msra.mxu1 %v3318_v62  ;;  %v3221_v61 = vld [vmem:[#allocation10 + $0x28] sm:$0xff]  ;;  %v3223_v62 = vld [vmem:[#allocation10 + $0x38] sm:$0xff] }
 0x588   :  { %3622 = vmatprep.subr.mxu0 %v3309_v50  ;;  %3693 = vmatprep.subr.mxu1 %v3311_v53  ;;  %v3220_v50 = vld [vmem:[#allocation10 + $0x20] sm:$0xff]  ;;  %v3222_v53 = vld [vmem:[#allocation10 + $0x30] sm:$0xff] }
 0x589   :  { %3623 = vmatpush1.msra.mxu0 %v3308_v54  ;;  %3694 = vmatpush1.msra.mxu1 %v3310_v37  ;;  %v3469_v54 = vld [vmem:[#allocation10 + $0x7e8] sm:$0xff]  ;;  %v3471_v37 = vld [vmem:[#allocation10 + $0x7f8] sm:$0xff] }
 0x58a   :  { %3624 = vmatprep.subr.mxu0 %v3301_v0  ;;  %3695 = vmatprep.subr.mxu1 %v3303_v30  ;;  %v3468_v0 = vld [vmem:[#allocation10 + $0x7e0] sm:$0xff]  ;;  %v3470_v30 = vld [vmem:[#allocation10 + $0x7f0] sm:$0xff] }
 0x58b   :  { %3625 = vmatpush1.msra.mxu0 %v3300_v27  ;;  %3696 = vmatpush1.msra.mxu1 %v3302_v33  ;;  %v3461_v27 = vld [vmem:[#allocation10 + $0x7a8] sm:$0xff]  ;;  %v3463_v33 = vld [vmem:[#allocation10 + $0x7b8] sm:$0xff] }
 0x58c   :  { %3626 = vmatprep.subr.mxu0 %v3293_v35  ;;  %3697 = vmatprep.subr.mxu1 %v3295_v38  ;;  %v3460_v35 = vld [vmem:[#allocation10 + $0x7a0] sm:$0xff]  ;;  %v3462_v38 = vld [vmem:[#allocation10 + $0x7b0] sm:$0xff] }
 0x58d   :  { %3627 = vmatpush1.msra.mxu0 %v3292_v40  ;;  %3698 = vmatpush1.msra.mxu1 %v3294_v63  ;;  %v3453_v40 = vld [vmem:[#allocation10 + $0x768] sm:$0xff]  ;;  %v3455_v63 = vld [vmem:[#allocation10 + $0x778] sm:$0xff] }
 0x58e   :  { %3628 = vmatprep.subr.mxu0 %v3285_v5  ;;  %3699 = vmatprep.subr.mxu1 %v3287_v26  ;;  %v3452_v5 = vld [vmem:[#allocation10 + $0x760] sm:$0xff]  ;;  %v3454_v26 = vld [vmem:[#allocation10 + $0x770] sm:$0xff] }
 0x58f   :  { %3629 = vmatpush1.msra.mxu0 %v3284_v28  ;;  %3700 = vmatpush1.msra.mxu1 %v3286_v51  ;;  %v3445_v28 = vld [vmem:[#allocation10 + $0x728] sm:$0xff]  ;;  %v3447_v51 = vld [vmem:[#allocation10 + $0x738] sm:$0xff] }
 0x590   :  { %3630 = vmatprep.subr.mxu0 %v3277_v39  ;;  %3701 = vmatprep.subr.mxu1 %v3279_v6  ;;  %v3444_v39 = vld [vmem:[#allocation10 + $0x720] sm:$0xff]  ;;  %v3446_v6 = vld [vmem:[#allocation10 + $0x730] sm:$0xff] }
 0x591   :  { %3631 = vmatpush1.msra.mxu0 %v3276_v52  ;;  %3702 = vmatpush1.msra.mxu1 %v3278_v29  ;;  %v3437_v52 = vld [vmem:[#allocation10 + $0x6e8] sm:$0xff]  ;;  %v3439_v29 = vld [vmem:[#allocation10 + $0x6f8] sm:$0xff] }
 0x592   :  { %3632 = vmatprep.subr.mxu0 %v3269_v60  ;;  %3703 = vmatprep.subr.mxu1 %v3271_v44  ;;  %v3436_v60 = vld [vmem:[#allocation10 + $0x6e0] sm:$0xff]  ;;  %v3438_v44 = vld [vmem:[#allocation10 + $0x6f0] sm:$0xff] }
 0x593   :  { %3633 = vmatpush1.msra.mxu0 %v3268_v3  ;;  %3704 = vmatpush1.msra.mxu1 %v3270_v55  ;;  %v3429_v3 = vld [vmem:[#allocation10 + $0x6a8] sm:$0xff]  ;;  %v3431_v55 = vld [vmem:[#allocation10 + $0x6b8] sm:$0xff] }
 0x594   :  { %3634 = vmatprep.subr.mxu0 %v3261_v34  ;;  %3705 = vmatprep.subr.mxu1 %v3263_v14  ;;  %v3428_v34 = vld [vmem:[#allocation10 + $0x6a0] sm:$0xff]  ;;  %v3430_v14 = vld [vmem:[#allocation10 + $0x6b0] sm:$0xff] }
 0x595   :  { %3635 = vmatpush1.msra.mxu0 %v3260_v23  ;;  %3706 = vmatpush1.msra.mxu1 %v3262_v24  ;;  %v3421_v23 = vld [vmem:[#allocation10 + $0x668] sm:$0xff]  ;;  %v3423_v24 = vld [vmem:[#allocation10 + $0x678] sm:$0xff] }
 0x596   :  { %3636 = vmatprep.subr.mxu0 %v3253_v48  ;;  %3707 = vmatprep.subr.mxu1 %v3255_v11  ;;  %v3420_v48 = vld [vmem:[#allocation10 + $0x660] sm:$0xff]  ;;  %v3422_v11 = vld [vmem:[#allocation10 + $0x670] sm:$0xff] }
 0x597   :  { %3637 = vmatpush1.msra.mxu0 %v3252_v31  ;;  %3708 = vmatpush1.msra.mxu1 %v3254_v43  ;;  %v3413_v31 = vld [vmem:[#allocation10 + $0x628] sm:$0xff]  ;;  %v3415_v43 = vld [vmem:[#allocation10 + $0x638] sm:$0xff] }
 0x598   :  { %3638 = vmatprep.subr.mxu0 %v3245_v32  ;;  %3709 = vmatprep.subr.mxu1 %v3247_v47  ;;  %v3412_v32 = vld [vmem:[#allocation10 + $0x620] sm:$0xff]  ;;  %v3414_v47 = vld [vmem:[#allocation10 + $0x630] sm:$0xff] }
 0x599   :  { %3639 = vmatpush1.msra.mxu0 %v3244_v2  ;;  %3710 = vmatpush1.msra.mxu1 %v3246_v22  ;;  %v3405_v2 = vld [vmem:[#allocation10 + $0x5e8] sm:$0xff]  ;;  %v3407_v22 = vld [vmem:[#allocation10 + $0x5f8] sm:$0xff] }
 0x59a   :  { %3640 = vmatprep.subr.mxu0 %v3237_v41  ;;  %3711 = vmatprep.subr.mxu1 %v3239_v13  ;;  %v3404_v41 = vld [vmem:[#allocation10 + $0x5e0] sm:$0xff]  ;;  %v3406_v13 = vld [vmem:[#allocation10 + $0x5f0] sm:$0xff] }
 0x59b   :  { %3641 = vmatpush1.msra.mxu0 %v3236_v45  ;;  %3712 = vmatpush1.msra.mxu1 %v3238_v42  ;;  %v3397_v45 = vld [vmem:[#allocation10 + $0x5a8] sm:$0xff]  ;;  %v3399_v42 = vld [vmem:[#allocation10 + $0x5b8] sm:$0xff] }
 0x59c   :  { %3642 = vmatprep.subr.mxu0 %v3229_v49  ;;  %3713 = vmatprep.subr.mxu1 %v3231_v57  ;;  %v3396_v49 = vld [vmem:[#allocation10 + $0x5a0] sm:$0xff]  ;;  %v3398_v57 = vld [vmem:[#allocation10 + $0x5b0] sm:$0xff] }
 0x59d   :  { %3643 = vmatpush1.msra.mxu0 %v3228_v46  ;;  %3714 = vmatpush1.msra.mxu1 %v3230_v58  ;;  %v3389_v46 = vld [vmem:[#allocation10 + $0x568] sm:$0xff]  ;;  %v3391_v58 = vld [vmem:[#allocation10 + $0x578] sm:$0xff] }
 0x59e   :  { %3644 = vmatprep.subr.mxu0 %v3221_v61  ;;  %3715 = vmatprep.subr.mxu1 %v3223_v62  ;;  %v3388_v61 = vld [vmem:[#allocation10 + $0x560] sm:$0xff]  ;;  %v3390_v62 = vld [vmem:[#allocation10 + $0x570] sm:$0xff] }
 0x59f   :  { %3645 = vmatpush1.msra.mxu0 %v3220_v50  ;;  %3716 = vmatpush1.msra.mxu1 %v3222_v53  ;;  %v3381_v50 = vld [vmem:[#allocation10 + $0x528] sm:$0xff]  ;;  %v3383_v53 = vld [vmem:[#allocation10 + $0x538] sm:$0xff] }
 0x5a0   :  { %3646 = vmatprep.subr.mxu0 %v3469_v54  ;;  %3717 = vmatprep.subr.mxu1 %v3471_v37  ;;  %v3380_v54 = vld [vmem:[#allocation10 + $0x520] sm:$0xff]  ;;  %v3382_v37 = vld [vmem:[#allocation10 + $0x530] sm:$0xff] }
 0x5a1   :  { %3647 = vmatpush2.msra.mxu0 %v3468_v0  ;;  %3718 = vmatpush2.msra.mxu1 %v3470_v30  ;;  %v3373_v0 = vld [vmem:[#allocation10 + $0x4e8] sm:$0xff]  ;;  %v3375_v30 = vld [vmem:[#allocation10 + $0x4f8] sm:$0xff] }
 0x5a2   :  { %3648 = vmatprep.subr.mxu0 %v3461_v27  ;;  %3719 = vmatprep.subr.mxu1 %v3463_v33  ;;  %v3372_v27 = vld [vmem:[#allocation10 + $0x4e0] sm:$0xff]  ;;  %v3374_v33 = vld [vmem:[#allocation10 + $0x4f0] sm:$0xff] }
 0x5a3   :  { %3649 = vmatpush2.msra.mxu0 %v3460_v35  ;;  %3720 = vmatpush2.msra.mxu1 %v3462_v38  ;;  %v3365_v35 = vld [vmem:[#allocation10 + $0x4a8] sm:$0xff]  ;;  %v3367_v38 = vld [vmem:[#allocation10 + $0x4b8] sm:$0xff] }
 0x5a4   :  { %3650 = vmatprep.subr.mxu0 %v3453_v40  ;;  %3721 = vmatprep.subr.mxu1 %v3455_v63  ;;  %v3364_v40 = vld [vmem:[#allocation10 + $0x4a0] sm:$0xff]  ;;  %v3366_v63 = vld [vmem:[#allocation10 + $0x4b0] sm:$0xff] }
 0x5a5   :  { %3651 = vmatpush2.msra.mxu0 %v3452_v5  ;;  %3722 = vmatpush2.msra.mxu1 %v3454_v26  ;;  %v3357_v5 = vld [vmem:[#allocation10 + $0x468] sm:$0xff]  ;;  %v3359_v26 = vld [vmem:[#allocation10 + $0x478] sm:$0xff] }
 0x5a6   :  { %3652 = vmatprep.subr.mxu0 %v3445_v28  ;;  %3723 = vmatprep.subr.mxu1 %v3447_v51  ;;  %v3356_v28 = vld [vmem:[#allocation10 + $0x460] sm:$0xff]  ;;  %v3358_v51 = vld [vmem:[#allocation10 + $0x470] sm:$0xff] }
 0x5a7   :  { %3653 = vmatpush2.msra.mxu0 %v3444_v39  ;;  %3724 = vmatpush2.msra.mxu1 %v3446_v6  ;;  %v3349_v39 = vld [vmem:[#allocation10 + $0x428] sm:$0xff]  ;;  %v3351_v6 = vld [vmem:[#allocation10 + $0x438] sm:$0xff] }
 0x5a8   :  { %3654 = vmatprep.subr.mxu0 %v3437_v52  ;;  %3725 = vmatprep.subr.mxu1 %v3439_v29  ;;  %v3348_v52 = vld [vmem:[#allocation10 + $0x420] sm:$0xff]  ;;  %v3350_v29 = vld [vmem:[#allocation10 + $0x430] sm:$0xff] }
 0x5a9   :  { %3655 = vmatpush2.msra.mxu0 %v3436_v60  ;;  %3726 = vmatpush2.msra.mxu1 %v3438_v44  ;;  %v3945_v60 = vld [vmem:[#allocation10 + $0x3c8] sm:$0xff]  ;;  %v3947_v44 = vld [vmem:[#allocation10 + $0x3d8] sm:$0xff] }
 0x5aa   :  { %3656 = vmatprep.subr.mxu0 %v3429_v3  ;;  %3727 = vmatprep.subr.mxu1 %v3431_v55  ;;  %v3944_v3 = vld [vmem:[#allocation10 + $0x3c0] sm:$0xff]  ;;  %v3946_v55 = vld [vmem:[#allocation10 + $0x3d0] sm:$0xff] }
 0x5ab   :  { %3657 = vmatpush2.msra.mxu0 %v3428_v34  ;;  %3728 = vmatpush2.msra.mxu1 %v3430_v14  ;;  %v3937_v34 = vld [vmem:[#allocation10 + $0x388] sm:$0xff]  ;;  %v3939_v14 = vld [vmem:[#allocation10 + $0x398] sm:$0xff] }
 0x5ac   :  { %3658 = vmatprep.subr.mxu0 %v3421_v23  ;;  %3729 = vmatprep.subr.mxu1 %v3423_v24  ;;  %v3936_v23 = vld [vmem:[#allocation10 + $0x380] sm:$0xff]  ;;  %v3938_v24 = vld [vmem:[#allocation10 + $0x390] sm:$0xff] }
 0x5ad   :  { %3659 = vmatpush2.msra.mxu0 %v3420_v48  ;;  %3730 = vmatpush2.msra.mxu1 %v3422_v11  ;;  %v3929_v48 = vld [vmem:[#allocation10 + $0x348] sm:$0xff]  ;;  %v3931_v11 = vld [vmem:[#allocation10 + $0x358] sm:$0xff] }
 0x5ae   :  { %3660 = vmatprep.subr.mxu0 %v3413_v31  ;;  %3731 = vmatprep.subr.mxu1 %v3415_v43  ;;  %v3928_v31 = vld [vmem:[#allocation10 + $0x340] sm:$0xff]  ;;  %v3930_v43 = vld [vmem:[#allocation10 + $0x350] sm:$0xff] }
 0x5af   :  { %3661 = vmatpush2.msra.mxu0 %v3412_v32  ;;  %3732 = vmatpush2.msra.mxu1 %v3414_v47  ;;  %v3923_v32 = vld [vmem:[#allocation10 + $0x318] sm:$0xff]  ;;  %v3920_v47 = vld [vmem:[#allocation10 + $0x300] sm:$0xff] }
 0x5b0   :  { %3662 = vmatprep.subr.mxu0 %v3405_v2  ;;  %3733 = vmatprep.subr.mxu1 %v3407_v22  ;;  %v3922_v2 = vld [vmem:[#allocation10 + $0x310] sm:$0xff]  ;;  %v3913_v22 = vld [vmem:[#allocation10 + $0x2c8] sm:$0xff] }
 0x5b1   :  { %3663 = vmatpush2.msra.mxu0 %v3404_v41  ;;  %3734 = vmatpush2.msra.mxu1 %v3406_v13  ;;  %v3915_v41 = vld [vmem:[#allocation10 + $0x2d8] sm:$0xff]  ;;  %v3912_v13 = vld [vmem:[#allocation10 + $0x2c0] sm:$0xff] }
 0x5b2   :  { %3664 = vmatprep.subr.mxu0 %v3397_v45  ;;  %3735 = vmatprep.subr.mxu1 %v3399_v42  ;;  %v3914_v45 = vld [vmem:[#allocation10 + $0x2d0] sm:$0xff]  ;;  %v3905_v42 = vld [vmem:[#allocation10 + $0x288] sm:$0xff] }
 0x5b3   :  { %3665 = vmatpush2.msra.mxu0 %v3396_v49  ;;  %3736 = vmatpush2.msra.mxu1 %v3398_v57  ;;  %v3907_v49 = vld [vmem:[#allocation10 + $0x298] sm:$0xff]  ;;  %v3904_v57 = vld [vmem:[#allocation10 + $0x280] sm:$0xff] }
 0x5b4   :  { %3666 = vmatprep.subr.mxu0 %v3389_v46  ;;  %3737 = vmatprep.subr.mxu1 %v3391_v58  ;;  %v3906_v46 = vld [vmem:[#allocation10 + $0x290] sm:$0xff]  ;;  %v3897_v58 = vld [vmem:[#allocation10 + $0x248] sm:$0xff] }
 0x5b5   :  { %3667 = vmatpush2.msra.mxu0 %v3388_v61  ;;  %3738 = vmatpush2.msra.mxu1 %v3390_v62  ;;  %v3899_v61 = vld [vmem:[#allocation10 + $0x258] sm:$0xff]  ;;  %v3896_v62 = vld [vmem:[#allocation10 + $0x240] sm:$0xff] }
 0x5b6   :  { %3668 = vmatprep.subr.mxu0 %v3381_v50  ;;  %3739 = vmatprep.subr.mxu1 %v3383_v53  ;;  %v3898_v50 = vld [vmem:[#allocation10 + $0x250] sm:$0xff]  ;;  %v3889_v53 = vld [vmem:[#allocation10 + $0x208] sm:$0xff] }
 0x5b7   :  { %3669 = vmatpush2.msra.mxu0 %v3380_v54  ;;  %3740 = vmatpush2.msra.mxu1 %v3382_v37  ;;  %v3891_v54 = vld [vmem:[#allocation10 + $0x218] sm:$0xff]  ;;  %v3888_v37 = vld [vmem:[#allocation10 + $0x200] sm:$0xff] }
 0x5b8   :  { %3670 = vmatprep.subr.mxu0 %v3373_v0  ;;  %3741 = vmatprep.subr.mxu1 %v3375_v30  ;;  %v3890_v0 = vld [vmem:[#allocation10 + $0x210] sm:$0xff]  ;;  %v3881_v30 = vld [vmem:[#allocation10 + $0x1c8] sm:$0xff] }
 0x5b9   :  { %3671 = vmatpush2.msra.mxu0 %v3372_v27  ;;  %3742 = vmatpush2.msra.mxu1 %v3374_v33  ;;  %v3883_v27 = vld [vmem:[#allocation10 + $0x1d8] sm:$0xff]  ;;  %v3880_v33 = vld [vmem:[#allocation10 + $0x1c0] sm:$0xff] }
 0x5ba   :  { %3672 = vmatprep.subr.mxu0 %v3365_v35  ;;  %3743 = vmatprep.subr.mxu1 %v3367_v38  ;;  %v3882_v35 = vld [vmem:[#allocation10 + $0x1d0] sm:$0xff]  ;;  %v3873_v38 = vld [vmem:[#allocation10 + $0x188] sm:$0xff] }
 0x5bb   :  { %3673 = vmatpush2.msra.mxu0 %v3364_v40  ;;  %3744 = vmatpush2.msra.mxu1 %v3366_v63  ;;  %v3875_v40 = vld [vmem:[#allocation10 + $0x198] sm:$0xff]  ;;  %v3872_v63 = vld [vmem:[#allocation10 + $0x180] sm:$0xff] }
 0x5bc   :  { %3674 = vmatprep.subr.mxu0 %v3357_v5  ;;  %3745 = vmatprep.subr.mxu1 %v3359_v26  ;;  %v3874_v5 = vld [vmem:[#allocation10 + $0x190] sm:$0xff]  ;;  %v3865_v26 = vld [vmem:[#allocation10 + $0x148] sm:$0xff] }
 0x5bd   :  { %3675 = vmatpush2.msra.mxu0 %v3356_v28  ;;  %3746 = vmatpush2.msra.mxu1 %v3358_v51  ;;  %v3867_v28 = vld [vmem:[#allocation10 + $0x158] sm:$0xff]  ;;  %v3864_v51 = vld [vmem:[#allocation10 + $0x140] sm:$0xff] }
 0x5be   :  { %3676 = vmatprep.subr.mxu0 %v3349_v39  ;;  %3747 = vmatprep.subr.mxu1 %v3351_v6  ;;  %v3866_v39 = vld [vmem:[#allocation10 + $0x150] sm:$0xff]  ;;  %v3857_v6 = vld [vmem:[#allocation10 + $0x108] sm:$0xff] }
 0x5bf   :  { %3677 = vmatpush2.msra.mxu0 %v3348_v52  ;;  %3748 = vmatpush2.msra.mxu1 %v3350_v29  ;;  %v3859_v52 = vld [vmem:[#allocation10 + $0x118] sm:$0xff]  ;;  %v3856_v29 = vld [vmem:[#allocation10 + $0x100] sm:$0xff] }
 0x5c0   :  { %3679 = vmatmul.mubr.f32.vlgmr.msra.gmra.mxu0 %v6524_v36  ;;  %3750 = vmatmul.mubr.f32.vlgmr.msra.gmra.mxu1 %v6524_v36  ;;  %v3921_v36 = vld [vmem:[#allocation10 + $0x308] sm:$0xff] }
 0x5c1   :  { %4080 = vmatprep.subr.mxu0 %v3945_v60  ;;  %4151 = vmatprep.subr.mxu1 %v3947_v44  ;;  %v3858_v60 = vld [vmem:[#allocation10 + $0x110] sm:$0xff]  ;;  %v3849_v44 = vld [vmem:[#allocation10 + $0xc8] sm:$0xff] }
 0x5c2   :  { %4081 = vmatpush1.msra.mxu0 %v3944_v3  ;;  %4152 = vmatpush1.msra.mxu1 %v3946_v55  ;;  %v3851_v3 = vld [vmem:[#allocation10 + $0xd8] sm:$0xff]  ;;  %v3848_v55 = vld [vmem:[#allocation10 + $0xc0] sm:$0xff] }
 0x5c3   :  { %4082 = vmatprep.subr.mxu0 %v3937_v34  ;;  %4153 = vmatprep.subr.mxu1 %v3939_v14  ;;  %v3850_v34 = vld [vmem:[#allocation10 + $0xd0] sm:$0xff]  ;;  %v3841_v14 = vld [vmem:[#allocation10 + $0x88] sm:$0xff] }
 0x5c4   :  { %4083 = vmatpush1.msra.mxu0 %v3936_v23  ;;  %4154 = vmatpush1.msra.mxu1 %v3938_v24  ;;  %v3843_v23 = vld [vmem:[#allocation10 + $0x98] sm:$0xff]  ;;  %v3840_v24 = vld [vmem:[#allocation10 + $0x80] sm:$0xff] }
 0x5c5   :  { %4084 = vmatprep.subr.mxu0 %v3929_v48  ;;  %4155 = vmatprep.subr.mxu1 %v3931_v11  ;;  %v3842_v48 = vld [vmem:[#allocation10 + $0x90] sm:$0xff]  ;;  %v3833_v11 = vld [vmem:[#allocation10 + $0x48] sm:$0xff] }
 0x5c6   :  { %4085 = vmatpush1.msra.mxu0 %v3928_v31  ;;  %4156 = vmatpush1.msra.mxu1 %v3930_v43  ;;  %v3835_v31 = vld [vmem:[#allocation10 + $0x58] sm:$0xff]  ;;  %v3832_v43 = vld [vmem:[#allocation10 + $0x40] sm:$0xff] }
 0x5c7   :  { %4086 = vmatprep.subr.mxu0 %v3921_v36  ;;  %4157 = vmatprep.subr.mxu1 %v3923_v32  ;;  %v3834_v36 = vld [vmem:[#allocation10 + $0x50] sm:$0xff]  ;;  %v3825_v32 = vld [vmem:[#allocation10 + $0x8] sm:$0xff] }
 0x5c8   :  { %4087 = vmatpush1.msra.mxu0 %v3920_v47  ;;  %4158 = vmatpush1.msra.mxu1 %v3922_v2  ;;  %v3827_v47 = vld [vmem:[#allocation10 + $0x18] sm:$0xff]  ;;  %v3824_v2 = vld [vmem:[#allocation10] sm:$0xff] }
 0x5c9   :  { %4088 = vmatprep.subr.mxu0 %v3913_v22  ;;  %4159 = vmatprep.subr.mxu1 %v3915_v41  ;;  %v3826_v22 = vld [vmem:[#allocation10 + $0x10] sm:$0xff]  ;;  %v4073_v41 = vld [vmem:[#allocation10 + $0x7c8] sm:$0xff] }
 0x5ca   :  { %4089 = vmatpush1.msra.mxu0 %v3912_v13  ;;  %4160 = vmatpush1.msra.mxu1 %v3914_v45  ;;  %v4075_v13 = vld [vmem:[#allocation10 + $0x7d8] sm:$0xff]  ;;  %v4072_v45 = vld [vmem:[#allocation10 + $0x7c0] sm:$0xff] }
 0x5cb   :  { %4090 = vmatprep.subr.mxu0 %v3905_v42  ;;  %4161 = vmatprep.subr.mxu1 %v3907_v49  ;;  %v4074_v42 = vld [vmem:[#allocation10 + $0x7d0] sm:$0xff]  ;;  %v4065_v49 = vld [vmem:[#allocation10 + $0x788] sm:$0xff] }
 0x5cc   :  { %4091 = vmatpush1.msra.mxu0 %v3904_v57  ;;  %4162 = vmatpush1.msra.mxu1 %v3906_v46  ;;  %v4067_v57 = vld [vmem:[#allocation10 + $0x798] sm:$0xff]  ;;  %v4064_v46 = vld [vmem:[#allocation10 + $0x780] sm:$0xff] }
 0x5cd   :  { %4092 = vmatprep.subr.mxu0 %v3897_v58  ;;  %4163 = vmatprep.subr.mxu1 %v3899_v61  ;;  %v4066_v58 = vld [vmem:[#allocation10 + $0x790] sm:$0xff]  ;;  %v4057_v61 = vld [vmem:[#allocation10 + $0x748] sm:$0xff] }
 0x5ce   :  { %4093 = vmatpush1.msra.mxu0 %v3896_v62  ;;  %4164 = vmatpush1.msra.mxu1 %v3898_v50  ;;  %v4059_v62 = vld [vmem:[#allocation10 + $0x758] sm:$0xff]  ;;  %v4056_v50 = vld [vmem:[#allocation10 + $0x740] sm:$0xff] }
 0x5cf   :  { %4094 = vmatprep.subr.mxu0 %v3889_v53  ;;  %4165 = vmatprep.subr.mxu1 %v3891_v54  ;;  %v4058_v53 = vld [vmem:[#allocation10 + $0x750] sm:$0xff]  ;;  %v4049_v54 = vld [vmem:[#allocation10 + $0x708] sm:$0xff] }
 0x5d0   :  { %4095 = vmatpush1.msra.mxu0 %v3888_v37  ;;  %4166 = vmatpush1.msra.mxu1 %v3890_v0  ;;  %v4051_v37 = vld [vmem:[#allocation10 + $0x718] sm:$0xff]  ;;  %v4048_v0 = vld [vmem:[#allocation10 + $0x700] sm:$0xff] }
 0x5d1   :  { %4096 = vmatprep.subr.mxu0 %v3881_v30  ;;  %4167 = vmatprep.subr.mxu1 %v3883_v27  ;;  %v4050_v30 = vld [vmem:[#allocation10 + $0x710] sm:$0xff]  ;;  %v4041_v27 = vld [vmem:[#allocation10 + $0x6c8] sm:$0xff] }
 0x5d2   :  { %4097 = vmatpush1.msra.mxu0 %v3880_v33  ;;  %4168 = vmatpush1.msra.mxu1 %v3882_v35  ;;  %v4043_v33 = vld [vmem:[#allocation10 + $0x6d8] sm:$0xff]  ;;  %v4040_v35 = vld [vmem:[#allocation10 + $0x6c0] sm:$0xff] }
 0x5d3   :  { %4098 = vmatprep.subr.mxu0 %v3873_v38  ;;  %4169 = vmatprep.subr.mxu1 %v3875_v40  ;;  %v4042_v38 = vld [vmem:[#allocation10 + $0x6d0] sm:$0xff]  ;;  %v4033_v40 = vld [vmem:[#allocation10 + $0x688] sm:$0xff] }
 0x5d4   :  { %4099 = vmatpush1.msra.mxu0 %v3872_v63  ;;  %4170 = vmatpush1.msra.mxu1 %v3874_v5  ;;  %v4035_v63 = vld [vmem:[#allocation10 + $0x698] sm:$0xff]  ;;  %v4032_v5 = vld [vmem:[#allocation10 + $0x680] sm:$0xff] }
 0x5d5   :  { %4100 = vmatprep.subr.mxu0 %v3865_v26  ;;  %4171 = vmatprep.subr.mxu1 %v3867_v28  ;;  %v4034_v26 = vld [vmem:[#allocation10 + $0x690] sm:$0xff]  ;;  %v4025_v28 = vld [vmem:[#allocation10 + $0x648] sm:$0xff] }
 0x5d6   :  { %4101 = vmatpush1.msra.mxu0 %v3864_v51  ;;  %4172 = vmatpush1.msra.mxu1 %v3866_v39  ;;  %v4027_v51 = vld [vmem:[#allocation10 + $0x658] sm:$0xff]  ;;  %v4024_v39 = vld [vmem:[#allocation10 + $0x640] sm:$0xff] }
 0x5d7   :  { %4102 = vmatprep.subr.mxu0 %v3857_v6  ;;  %4173 = vmatprep.subr.mxu1 %v3859_v52  ;;  %v4026_v6 = vld [vmem:[#allocation10 + $0x650] sm:$0xff]  ;;  %v4017_v52 = vld [vmem:[#allocation10 + $0x608] sm:$0xff] }
 0x5d8   :  { %4103 = vmatpush1.msra.mxu0 %v3856_v29  ;;  %4174 = vmatpush1.msra.mxu1 %v3858_v60  ;;  %v4019_v29 = vld [vmem:[#allocation10 + $0x618] sm:$0xff]  ;;  %v4016_v60 = vld [vmem:[#allocation10 + $0x600] sm:$0xff] }
 0x5d9   :  { %4104 = vmatprep.subr.mxu0 %v3849_v44  ;;  %4175 = vmatprep.subr.mxu1 %v3851_v3  ;;  %v4018_v44 = vld [vmem:[#allocation10 + $0x610] sm:$0xff]  ;;  %v4009_v3 = vld [vmem:[#allocation10 + $0x5c8] sm:$0xff] }
 0x5da   :  { %4105 = vmatpush1.msra.mxu0 %v3848_v55  ;;  %4176 = vmatpush1.msra.mxu1 %v3850_v34  ;;  %v4011_v55 = vld [vmem:[#allocation10 + $0x5d8] sm:$0xff]  ;;  %v4008_v34 = vld [vmem:[#allocation10 + $0x5c0] sm:$0xff] }
 0x5db   :  { %4106 = vmatprep.subr.mxu0 %v3841_v14  ;;  %4177 = vmatprep.subr.mxu1 %v3843_v23  ;;  %v4010_v14 = vld [vmem:[#allocation10 + $0x5d0] sm:$0xff]  ;;  %v4001_v23 = vld [vmem:[#allocation10 + $0x588] sm:$0xff] }
 0x5dc   :  { %4107 = vmatpush1.msra.mxu0 %v3840_v24  ;;  %4178 = vmatpush1.msra.mxu1 %v3842_v48  ;;  %v4003_v24 = vld [vmem:[#allocation10 + $0x598] sm:$0xff]  ;;  %v4000_v48 = vld [vmem:[#allocation10 + $0x580] sm:$0xff] }
 0x5dd   :  { %4108 = vmatprep.subr.mxu0 %v3833_v11  ;;  %4179 = vmatprep.subr.mxu1 %v3835_v31  ;;  %v4002_v11 = vld [vmem:[#allocation10 + $0x590] sm:$0xff]  ;;  %v3993_v31 = vld [vmem:[#allocation10 + $0x548] sm:$0xff] }
 0x5de   :  { %4109 = vmatpush1.msra.mxu0 %v3832_v43  ;;  %4180 = vmatpush1.msra.mxu1 %v3834_v36  ;;  %v3995_v43 = vld [vmem:[#allocation10 + $0x558] sm:$0xff]  ;;  %v3992_v36 = vld [vmem:[#allocation10 + $0x540] sm:$0xff] }
 0x5df   :  { %4110 = vmatprep.subr.mxu0 %v3825_v32  ;;  %4181 = vmatprep.subr.mxu1 %v3827_v47  ;;  %v3994_v32 = vld [vmem:[#allocation10 + $0x550] sm:$0xff]  ;;  %v3985_v47 = vld [vmem:[#allocation10 + $0x508] sm:$0xff] }
 0x5e0   :  { %4111 = vmatpush1.msra.mxu0 %v3824_v2  ;;  %4182 = vmatpush1.msra.mxu1 %v3826_v22  ;;  %v3987_v2 = vld [vmem:[#allocation10 + $0x518] sm:$0xff]  ;;  %v3984_v22 = vld [vmem:[#allocation10 + $0x500] sm:$0xff] }
 0x5e1   :  { %4112 = vmatprep.subr.mxu0 %v4073_v41  ;;  %4183 = vmatprep.subr.mxu1 %v4075_v13  ;;  %v3986_v41 = vld [vmem:[#allocation10 + $0x510] sm:$0xff]  ;;  %v3977_v13 = vld [vmem:[#allocation10 + $0x4c8] sm:$0xff] }
 0x5e2   :  { %4113 = vmatpush2.msra.mxu0 %v4072_v45  ;;  %4184 = vmatpush2.msra.mxu1 %v4074_v42  ;;  %v3979_v45 = vld [vmem:[#allocation10 + $0x4d8] sm:$0xff]  ;;  %v3976_v42 = vld [vmem:[#allocation10 + $0x4c0] sm:$0xff] }
 0x5e3   :  { %4114 = vmatprep.subr.mxu0 %v4065_v49  ;;  %4185 = vmatprep.subr.mxu1 %v4067_v57  ;;  %v3978_v49 = vld [vmem:[#allocation10 + $0x4d0] sm:$0xff]  ;;  %v3969_v57 = vld [vmem:[#allocation10 + $0x488] sm:$0xff] }
 0x5e4   :  { %4115 = vmatpush2.msra.mxu0 %v4064_v46  ;;  %4186 = vmatpush2.msra.mxu1 %v4066_v58  ;;  %v3971_v46 = vld [vmem:[#allocation10 + $0x498] sm:$0xff]  ;;  %v3968_v58 = vld [vmem:[#allocation10 + $0x480] sm:$0xff] }
 0x5e5   :  { %4116 = vmatprep.subr.mxu0 %v4057_v61  ;;  %4187 = vmatprep.subr.mxu1 %v4059_v62  ;;  %v3970_v61 = vld [vmem:[#allocation10 + $0x490] sm:$0xff]  ;;  %v3961_v62 = vld [vmem:[#allocation10 + $0x448] sm:$0xff] }
 0x5e6   :  { %4117 = vmatpush2.msra.mxu0 %v4056_v50  ;;  %4188 = vmatpush2.msra.mxu1 %v4058_v53  ;;  %v3963_v50 = vld [vmem:[#allocation10 + $0x458] sm:$0xff]  ;;  %v3960_v53 = vld [vmem:[#allocation10 + $0x440] sm:$0xff] }
 0x5e7   :  { %4118 = vmatprep.subr.mxu0 %v4049_v54  ;;  %4189 = vmatprep.subr.mxu1 %v4051_v37  ;;  %v3962_v54 = vld [vmem:[#allocation10 + $0x450] sm:$0xff]  ;;  %v3953_v37 = vld [vmem:[#allocation10 + $0x408] sm:$0xff] }
 0x5e8   :  { %4119 = vmatpush2.msra.mxu0 %v4048_v0  ;;  %4190 = vmatpush2.msra.mxu1 %v4050_v30  ;;  %v3955_v0 = vld [vmem:[#allocation10 + $0x418] sm:$0xff]  ;;  %v3952_v30 = vld [vmem:[#allocation10 + $0x400] sm:$0xff] }
 0x5e9   :  { %4120 = vmatprep.subr.mxu0 %v4041_v27  ;;  %4191 = vmatprep.subr.mxu1 %v4043_v33  ;;  %v3954_v27 = vld [vmem:[#allocation10 + $0x410] sm:$0xff]  ;;  %v3949_v33 = vld [vmem:[#allocation10 + $0x3e8] sm:$0xff] }
 0x5ea   :  { %4121 = vmatpush2.msra.mxu0 %v4040_v35  ;;  %4192 = vmatpush2.msra.mxu1 %v4042_v38  ;;  %v3951_v35 = vld [vmem:[#allocation10 + $0x3f8] sm:$0xff] }
 0x5eb   :  { %4122 = vmatprep.subr.mxu0 %v4033_v40  ;;  %4193 = vmatprep.subr.mxu1 %v4035_v63 }
 0x5ec   :  { %4123 = vmatpush2.msra.mxu0 %v4032_v5  ;;  %4194 = vmatpush2.msra.mxu1 %v4034_v26 }
 0x5ed   :  { %4124 = vmatprep.subr.mxu0 %v4025_v28  ;;  %4195 = vmatprep.subr.mxu1 %v4027_v51 }
 0x5ee   :  { %4125 = vmatpush2.msra.mxu0 %v4024_v39  ;;  %4196 = vmatpush2.msra.mxu1 %v4026_v6 }
 0x5ef   :  { %4126 = vmatprep.subr.mxu0 %v4017_v52  ;;  %4197 = vmatprep.subr.mxu1 %v4019_v29 }
 0x5f0   :  { %4127 = vmatpush2.msra.mxu0 %v4016_v60  ;;  %4198 = vmatpush2.msra.mxu1 %v4018_v44 }
 0x5f1   :  { %4128 = vmatprep.subr.mxu0 %v4009_v3  ;;  %4199 = vmatprep.subr.mxu1 %v4011_v55 }
 0x5f2   :  { %4129 = vmatpush2.msra.mxu0 %v4008_v34  ;;  %4200 = vmatpush2.msra.mxu1 %v4010_v14 }
 0x5f3   :  { %4130 = vmatprep.subr.mxu0 %v4001_v23  ;;  %4201 = vmatprep.subr.mxu1 %v4003_v24  ;;  %v576_v23 = vadd.f32 %v6377_v17, %v6424_v16 }
 0x5f4   :  { %4131 = vmatpush2.msra.mxu0 %v4000_v48  ;;  %4202 = vmatpush2.msra.mxu1 %v4002_v11 }
 0x5f5   :  { %4132 = vmatprep.subr.mxu0 %v3993_v31  ;;  %4203 = vmatprep.subr.mxu1 %v3995_v43  ;;  %v689_v31 = vadd.f32 %v6379_v21, %v6427_v59 }
 0x5f6   :  { %4133 = vmatpush2.msra.mxu0 %v3992_v36  ;;  %4204 = vmatpush2.msra.mxu1 %v3994_v32 }
 0x5f7   :  { %4134 = vmatprep.subr.mxu0 %v3985_v47  ;;  %4205 = vmatprep.subr.mxu1 %v3987_v2 }
 0x5f8   :  { %4135 = vmatpush2.msra.mxu0 %v3984_v22  ;;  %4206 = vmatpush2.msra.mxu1 %v3986_v41 }
 0x5f9   :  { %4136 = vmatprep.subr.mxu0 %v3977_v13  ;;  %4207 = vmatprep.subr.mxu1 %v3979_v45 }
 0x5fa   :  { %4137 = vmatpush2.msra.mxu0 %v3976_v42  ;;  %4208 = vmatpush2.msra.mxu1 %v3978_v49 }
 0x5fb   :  { %4138 = vmatprep.subr.mxu0 %v3969_v57  ;;  %4209 = vmatprep.subr.mxu1 %v3971_v46 }
 0x5fc   :  { %4139 = vmatpush2.msra.mxu0 %v3968_v58  ;;  %4210 = vmatpush2.msra.mxu1 %v3970_v61 }
 0x5fd   :  { %4140 = vmatprep.subr.mxu0 %v3961_v62  ;;  %4211 = vmatprep.subr.mxu1 %v3963_v50 }
 0x5fe   :  { %4141 = vmatpush2.msra.mxu0 %v3960_v53  ;;  %4212 = vmatpush2.msra.mxu1 %v3962_v54 }
 0x5ff   :  { %4142 = vmatprep.subr.mxu0 %v3953_v37  ;;  %4213 = vmatprep.subr.mxu1 %v3955_v0 }
 0x600   :  { %4143 = vmatpush2.msra.mxu0 %v3952_v30  ;;  %4214 = vmatpush2.msra.mxu1 %v3954_v27 }
 0x601   :  { %4222 = vmatprep.subr.mxu0 %v3949_v33  ;;  %4293 = vmatprep.subr.mxu1 %v3951_v35 }
 0x63f   :  { %v3538_v38 = vpop.f32.mrf.mxu0  ;;  %v3609_v40 = vpop.f32.mrf.mxu1 }
 0x640   :  { %v3756_v5 = vadd.f32 %v3538_v38, %v6294_v1  ;;  %v3758_v26 = vadd.f32 %v3609_v40, %v6297_v4  ;;  %v3950_v38 = vld [vmem:[#allocation10 + $0x3f0] sm:$0xff]  ;;  %v3941_v40 = vld [vmem:[#allocation10 + $0x3a8] sm:$0xff] }
 0x641   :  { %v3540_v63 = vpop.f32.mrf.mxu0  ;;  %v3611_v28 = vpop.f32.mrf.mxu1 }
 0x642   :  { %v3757_v51 = vadd.f32 %v3540_v63, %v6300_v7  ;;  %v5686_v39 = vmul.f32 -1.442695, %v3756_v5  ;;  %v3759_v6 = vadd.f32 %v3611_v28, %v6303_v8  ;;  %v5688_v52 = vmul.f32 -1.442695, %v3758_v26  ;;  %v3943_v63 = vld [vmem:[#allocation10 + $0x3b8] sm:$0xff]  ;;  %v3940_v5 = vld [vmem:[#allocation10 + $0x3a0] sm:$0xff] }
 0x643   :  { %v574_v7 = vadd.f32 %v6373_v9, %v6418_v18  ;;  %v687_v8 = vadd.f32 %v6375_v56, %v6421_v19  ;;  %v3942_v26 = vld [vmem:[#allocation10 + $0x3b0] sm:$0xff]  ;;  %v3933_v28 = vld [vmem:[#allocation10 + $0x368] sm:$0xff] }
 0x644   :  { %v5687_v29 = vmul.f32 -1.442695, %v3757_v51  ;;  %5850 = vpow2.f32 %v5686_v39  ;;  %v5689_v60 = vmul.f32 -1.442695, %v3759_v6  ;;  %v3935_v51 = vld [vmem:[#allocation10 + $0x378] sm:$0xff]  ;;  %v3932_v39 = vld [vmem:[#allocation10 + $0x360] sm:$0xff] }
 0x645   :  { %5852 = vpow2.f32 %v5688_v52  ;;  %v3934_v6 = vld [vmem:[#allocation10 + $0x370] sm:$0xff]  ;;  %v3925_v52 = vld [vmem:[#allocation10 + $0x328] sm:$0xff] }
 0x646   :  { %5854 = vpow2.f32 %v5687_v29  ;;  %v3927_v29 = vld [vmem:[#allocation10 + $0x338] sm:$0xff] }
 0x647   :  { %5856 = vpow2.f32 %v5689_v60  ;;  %v3924_v60 = vld [vmem:[#allocation10 + $0x320] sm:$0xff] }
 0x651   :  { %v5851_v44 = vpop.eup %5850 }
 0x652   :  { %v5853_v3 = vpop.eup %5852  ;;  %v3776_v34 = vadd.f32 1.0, %v5851_v44  ;;  %v3926_v44 = vld [vmem:[#allocation10 + $0x330] sm:$0xff] }
 0x653   :  { %v5855_v55 = vpop.eup %5854  ;;  %v3778_v14 = vadd.f32 1.0, %v5853_v3  ;;  %v3917_v3 = vld [vmem:[#allocation10 + $0x2e8] sm:$0xff] }
 0x654   :  { %v5857_v1 = vpop.eup %5856  ;;  %v3777_v4 = vadd.f32 1.0, %v5855_v55  ;;  %5858 = vrcp.f32 %v3776_v34  ;;  %v3919_v55 = vld [vmem:[#allocation10 + $0x2f8] sm:$0xff]  ;;  %v3916_v34 = vld [vmem:[#allocation10 + $0x2e0] sm:$0xff] }
 0x655   :  { %v3779_v24 = vadd.f32 1.0, %v5857_v1  ;;  %5860 = vrcp.f32 %v3778_v14  ;;  %v3918_v1 = vld [vmem:[#allocation10 + $0x2f0] sm:$0xff]  ;;  %v3909_v14 = vld [vmem:[#allocation10 + $0x2a8] sm:$0xff] }
 0x656   :  { %5862 = vrcp.f32 %v3777_v4  ;;  %v3911_v4 = vld [vmem:[#allocation10 + $0x2b8] sm:$0xff] }
 0x661   :  { %v5859_v22 = vpop.eup %5858 }
 0x662   :  { %v5861_v41 = vpop.eup %5860 }
 0x663   :  { %v5863_v13 = vpop.eup %5862  ;;  %v3802_v42 = vmul.f32 %v5861_v41, %v6517_v20  ;;  %v3876_v41 = vld [vmem:[#allocation10 + $0x1a0] sm:$0xff] }
 0x680   :  { %v3680_v48 = vpop.f32.mrf.mxu0  ;;  %v3751_v11 = vpop.f32.mrf.mxu1 }
 0x681   :  { %v3760_v43 = vadd.f32 %v3680_v48, %v574_v7  ;;  %v3762_v36 = vadd.f32 %v3751_v11, %v687_v8  ;;  %v3908_v7 = vld [vmem:[#allocation10 + $0x2a0] sm:$0xff]  ;;  %v3910_v8 = vld [vmem:[#allocation10 + $0x2b0] sm:$0xff] }
 0x682   :  { %v3682_v32 = vpop.f32.mrf.mxu0  ;;  %v3753_v47 = vpop.f32.mrf.mxu1  ;;  %v3900_v48 = vld [vmem:[#allocation10 + $0x260] sm:$0xff]  ;;  %v3902_v11 = vld [vmem:[#allocation10 + $0x270] sm:$0xff] }
 0x683   :  { %5864 = vtanh.f32 %v3760_v43  ;;  %v5690_v9 = vmul.f32 -1.442695, %v3762_v36  ;;  %v3761_v2 = vadd.f32 %v3682_v32, %v576_v23  ;;  %v3763_v56 = vadd.f32 %v3753_v47, %v689_v31  ;;  %v3901_v23 = vld [vmem:[#allocation10 + $0x268] sm:$0xff]  ;;  %v3895_v43 = vld [vmem:[#allocation10 + $0x238] sm:$0xff]  ;;  %v3892_v36 = vld [vmem:[#allocation10 + $0x220] sm:$0xff] }
 0x684   :  { %5866 = vrcp.f32 %v3779_v24  ;;  %v3903_v24 = vld [vmem:[#allocation10 + $0x278] sm:$0xff]  ;;  %v3893_v31 = vld [vmem:[#allocation10 + $0x228] sm:$0xff]  ;;  %v3894_v32 = vld [vmem:[#allocation10 + $0x230] sm:$0xff] }
 0x685   :  { %5868 = vpow2.f32 %v5690_v9  ;;  %v5691_v17 = vmul.f32 -1.442695, %v3763_v56  ;;  %v3885_v47 = vld [vmem:[#allocation10 + $0x1e8] sm:$0xff]  ;;  %v3887_v9 = vld [vmem:[#allocation10 + $0x1f8] sm:$0xff]  ;;  %v3886_v56 = vld [vmem:[#allocation10 + $0x1f0] sm:$0xff] }
 0x686   :  { %5870 = vtanh.f32 %v3761_v2  ;;  %v3884_v2 = vld [vmem:[#allocation10 + $0x1e0] sm:$0xff] }
 0x687   :  { %5872 = vpow2.f32 %v5691_v17  ;;  %v3877_v17 = vld [vmem:[#allocation10 + $0x1a8] sm:$0xff] }
 0x690   :  { %v5865_v45 = vpop.eup %5864 }
 0x691   :  { %v5867_v21 = vpop.eup %5866  ;;  %v3804_v49 = vmul.f32 %v5865_v45, %v5859_v22  ;;  %v3879_v22 = vld [vmem:[#allocation10 + $0x1b8] sm:$0xff]  ;;  %v3869_v45 = vld [vmem:[#allocation10 + $0x168] sm:$0xff] }
 0x692   :  { %v5869_v57 = vpop.eup %5868  ;;  %v3803_v50 = vmul.f32 %v5867_v21, %v6521_v25  ;;  %v3948_v25 = vld [vmem:[#allocation10 + $0x3e0] sm:$0xff]  ;;  %v3871_v21 = vld [vmem:[#allocation10 + $0x178] sm:$0xff] }
 0x693   :  { %v5871_v46 = vpop.eup %5870  ;;  %v6544_v58 = vadd.f32 %v3804_v49, %v3802_v42  ;;  %v3796_v61 = vadd.f32 1.0, %v5869_v57  ;;  %v3868_v42 = vld [vmem:[#allocation10 + $0x160] sm:$0xff]  ;;  %v3870_v49 = vld [vmem:[#allocation10 + $0x170] sm:$0xff]  ;;  %v3861_v57 = vld [vmem:[#allocation10 + $0x128] sm:$0xff] }
 0x694   :  { %v5873_v62 = vpop.eup %5872  ;;  %v3805_v53 = vmul.f32 %v5871_v46, %v5863_v13  ;;  %v3878_v13 = vld [vmem:[#allocation10 + $0x1b0] sm:$0xff]  ;;  %v3863_v46 = vld [vmem:[#allocation10 + $0x138] sm:$0xff] }
 0x695   :  { %5874 = vtanh.f32 %v6544_v58  ;;  %v3797_v54 = vadd.f32 1.0, %v5873_v62  ;;  %v3862_v62 = vld [vmem:[#allocation10 + $0x130] sm:$0xff] }
 0x696   :  { %5876 = vrcp.f32 %v3796_v61  ;;  %v6548_v37 = vadd.f32 %v3805_v53, %v3803_v50  ;;  %v3860_v61 = vld [vmem:[#allocation10 + $0x120] sm:$0xff]  ;;  %v3853_v50 = vld [vmem:[#allocation10 + $0xe8] sm:$0xff]  ;;  %v3855_v53 = vld [vmem:[#allocation10 + $0xf8] sm:$0xff] }
 0x697   :  { %5878 = vrcp.f32 %v3797_v54  ;;  %v3852_v54 = vld [vmem:[#allocation10 + $0xe0] sm:$0xff] }
 0x698   :  { %5880 = vtanh.f32 %v6548_v37 }
 0x6a2   :  { %v5875_v20 = vpop.eup %5874 }
 0x6a3   :  { %v5877_v0 = vpop.eup %5876 }
 0x6a4   :  { %v5879_v30 = vpop.eup %5878  ;;  %v6551_v27 = vmul.f32 %v5877_v0, %v5875_v20  ;;  %v3854_v20 = vld [vmem:[#allocation10 + $0xf0] sm:$0xff]  ;;  %v3845_v0 = vld [vmem:[#allocation10 + $0xa8] sm:$0xff] }
 0x6a5   :  { %v5881_v33 = vpop.eup %5880 }
 0x6a6   :  { %v3811_v35 = vmul.f32 %v5881_v33, %v5879_v30  ;;  %3813 = vst [vmem:[#allocation13 + $0x40] sm:$0xff] %v6551_v27  ;;  %v3847_v30 = vld [vmem:[#allocation10 + $0xb8] sm:$0xff]  ;;  %v3844_v33 = vld [vmem:[#allocation10 + $0xa0] sm:$0xff] }
 0x6a8   :  { %3814 = vst [vmem:[#allocation13 + $0x48] sm:$0xff] %v3811_v35  ;;  %4144 = vmatprep.mubr.f32.mxu0 %v3811_v35  ;;  %4215 = vmatprep.mubr.f32.mxu1 %v3811_v35 }
 0x6a9   :  { %4145 = vmatmul.mubr.f32.vlgmr.msra.gmra.mxu0 %v6551_v27  ;;  %4216 = vmatmul.mubr.f32.vlgmr.msra.gmra.mxu1 %v6551_v27 }
 0x6aa   :  { %4223 = vmatpush1.msra.mxu0 %v3948_v25  ;;  %4294 = vmatpush1.msra.mxu1 %v3950_v38  ;;  %v3837_v25 = vld [vmem:[#allocation10 + $0x68] sm:$0xff]  ;;  %v3839_v38 = vld [vmem:[#allocation10 + $0x78] sm:$0xff] }
 0x6ab   :  { %4224 = vmatprep.subr.mxu0 %v3941_v40  ;;  %4286 = vmatprep.mubr.f32.mxu0 %v3811_v35  ;;  %v3836_v40 = vld [vmem:[#allocation10 + $0x60] sm:$0xff] }
 0x6ac   :  { %4295 = vmatprep.subr.mxu1 %v3943_v63  ;;  %4357 = vmatprep.mubr.f32.mxu1 %v3811_v35  ;;  %v3846_v35 = vld [vmem:[#allocation10 + $0xb0] sm:$0xff] }
 0x6ad   :  { %4225 = vmatpush1.msra.mxu0 %v3940_v5  ;;  %4296 = vmatpush1.msra.mxu1 %v3942_v26  ;;  %v3838_v63 = vld [vmem:[#allocation10 + $0x70] sm:$0xff]  ;;  %v3829_v5 = vld [vmem:[#allocation10 + $0x28] sm:$0xff]  ;;  %v3831_v26 = vld [vmem:[#allocation10 + $0x38] sm:$0xff] }
 0x6ae   :  { %4226 = vmatprep.subr.mxu0 %v3933_v28  ;;  %4297 = vmatprep.subr.mxu1 %v3935_v51  ;;  %v3828_v28 = vld [vmem:[#allocation10 + $0x20] sm:$0xff]  ;;  %v3830_v51 = vld [vmem:[#allocation10 + $0x30] sm:$0xff] }
 0x6af   :  { %4227 = vmatpush1.msra.mxu0 %v3932_v39  ;;  %4298 = vmatpush1.msra.mxu1 %v3934_v6  ;;  %v4077_v39 = vld [vmem:[#allocation10 + $0x7e8] sm:$0xff]  ;;  %v4079_v6 = vld [vmem:[#allocation10 + $0x7f8] sm:$0xff] }
 0x6b0   :  { %4228 = vmatprep.subr.mxu0 %v3925_v52  ;;  %4299 = vmatprep.subr.mxu1 %v3927_v29  ;;  %v4076_v52 = vld [vmem:[#allocation10 + $0x7e0] sm:$0xff]  ;;  %v4078_v29 = vld [vmem:[#allocation10 + $0x7f0] sm:$0xff] }
 0x6b1   :  { %4229 = vmatpush1.msra.mxu0 %v3924_v60  ;;  %4300 = vmatpush1.msra.mxu1 %v3926_v44  ;;  %v4069_v60 = vld [vmem:[#allocation10 + $0x7a8] sm:$0xff]  ;;  %v4071_v44 = vld [vmem:[#allocation10 + $0x7b8] sm:$0xff] }
 0x6b2   :  { %4230 = vmatprep.subr.mxu0 %v3917_v3  ;;  %4301 = vmatprep.subr.mxu1 %v3919_v55  ;;  %v4068_v3 = vld [vmem:[#allocation10 + $0x7a0] sm:$0xff]  ;;  %v4070_v55 = vld [vmem:[#allocation10 + $0x7b0] sm:$0xff] }
 0x6b3   :  { %4231 = vmatpush1.msra.mxu0 %v3916_v34  ;;  %4302 = vmatpush1.msra.mxu1 %v3918_v1  ;;  %v4061_v34 = vld [vmem:[#allocation10 + $0x768] sm:$0xff]  ;;  %v4063_v1 = vld [vmem:[#allocation10 + $0x778] sm:$0xff] }
 0x6b4   :  { %4232 = vmatprep.subr.mxu0 %v3909_v14  ;;  %4303 = vmatprep.subr.mxu1 %v3911_v4  ;;  %v4060_v14 = vld [vmem:[#allocation10 + $0x760] sm:$0xff]  ;;  %v4062_v4 = vld [vmem:[#allocation10 + $0x770] sm:$0xff] }
 0x6b5   :  { %4233 = vmatpush1.msra.mxu0 %v3908_v7  ;;  %4304 = vmatpush1.msra.mxu1 %v3910_v8  ;;  %v4053_v7 = vld [vmem:[#allocation10 + $0x728] sm:$0xff]  ;;  %v4055_v8 = vld [vmem:[#allocation10 + $0x738] sm:$0xff] }
 0x6b6   :  { %4234 = vmatprep.subr.mxu0 %v3901_v23  ;;  %4305 = vmatprep.subr.mxu1 %v3903_v24  ;;  %v4052_v23 = vld [vmem:[#allocation10 + $0x720] sm:$0xff]  ;;  %v4054_v24 = vld [vmem:[#allocation10 + $0x730] sm:$0xff] }
 0x6b7   :  { %4235 = vmatpush1.msra.mxu0 %v3900_v48  ;;  %4306 = vmatpush1.msra.mxu1 %v3902_v11  ;;  %v4045_v48 = vld [vmem:[#allocation10 + $0x6e8] sm:$0xff]  ;;  %v4047_v11 = vld [vmem:[#allocation10 + $0x6f8] sm:$0xff] }
 0x6b8   :  { %4236 = vmatprep.subr.mxu0 %v3893_v31  ;;  %4307 = vmatprep.subr.mxu1 %v3895_v43  ;;  %v4044_v31 = vld [vmem:[#allocation10 + $0x6e0] sm:$0xff]  ;;  %v4046_v43 = vld [vmem:[#allocation10 + $0x6f0] sm:$0xff] }
 0x6b9   :  { %4237 = vmatpush1.msra.mxu0 %v3892_v36  ;;  %4308 = vmatpush1.msra.mxu1 %v3894_v32  ;;  %v4037_v36 = vld [vmem:[#allocation10 + $0x6a8] sm:$0xff]  ;;  %v4039_v32 = vld [vmem:[#allocation10 + $0x6b8] sm:$0xff] }
 0x6ba   :  { %4238 = vmatprep.subr.mxu0 %v3885_v47  ;;  %4309 = vmatprep.subr.mxu1 %v3887_v9  ;;  %v4036_v47 = vld [vmem:[#allocation10 + $0x6a0] sm:$0xff]  ;;  %v4038_v9 = vld [vmem:[#allocation10 + $0x6b0] sm:$0xff] }
 0x6bb   :  { %4239 = vmatpush1.msra.mxu0 %v3884_v2  ;;  %4310 = vmatpush1.msra.mxu1 %v3886_v56  ;;  %v4029_v2 = vld [vmem:[#allocation10 + $0x668] sm:$0xff]  ;;  %v4031_v56 = vld [vmem:[#allocation10 + $0x678] sm:$0xff] }
 0x6bc   :  { %4240 = vmatprep.subr.mxu0 %v3877_v17  ;;  %4311 = vmatprep.subr.mxu1 %v3879_v22  ;;  %v4028_v17 = vld [vmem:[#allocation10 + $0x660] sm:$0xff]  ;;  %v4030_v22 = vld [vmem:[#allocation10 + $0x670] sm:$0xff] }
 0x6bd   :  { %4241 = vmatpush1.msra.mxu0 %v3876_v41  ;;  %4312 = vmatpush1.msra.mxu1 %v3878_v13  ;;  %v4021_v41 = vld [vmem:[#allocation10 + $0x628] sm:$0xff]  ;;  %v4023_v13 = vld [vmem:[#allocation10 + $0x638] sm:$0xff] }
 0x6be   :  { %4242 = vmatprep.subr.mxu0 %v3869_v45  ;;  %4313 = vmatprep.subr.mxu1 %v3871_v21  ;;  %v4020_v45 = vld [vmem:[#allocation10 + $0x620] sm:$0xff]  ;;  %v4022_v21 = vld [vmem:[#allocation10 + $0x630] sm:$0xff] }
 0x6bf   :  { %4243 = vmatpush1.msra.mxu0 %v3868_v42  ;;  %4314 = vmatpush1.msra.mxu1 %v3870_v49  ;;  %v4013_v42 = vld [vmem:[#allocation10 + $0x5e8] sm:$0xff]  ;;  %v4015_v49 = vld [vmem:[#allocation10 + $0x5f8] sm:$0xff] }
 0x6c0   :  { %4244 = vmatprep.subr.mxu0 %v3861_v57  ;;  %4315 = vmatprep.subr.mxu1 %v3863_v46  ;;  %v4012_v57 = vld [vmem:[#allocation10 + $0x5e0] sm:$0xff]  ;;  %v4014_v46 = vld [vmem:[#allocation10 + $0x5f0] sm:$0xff] }
 0x6c1   :  { %4245 = vmatpush1.msra.mxu0 %v3860_v61  ;;  %4316 = vmatpush1.msra.mxu1 %v3862_v62  ;;  %v4005_v61 = vld [vmem:[#allocation10 + $0x5a8] sm:$0xff]  ;;  %v4007_v62 = vld [vmem:[#allocation10 + $0x5b8] sm:$0xff] }
 0x6c2   :  { %4246 = vmatprep.subr.mxu0 %v3853_v50  ;;  %4317 = vmatprep.subr.mxu1 %v3855_v53  ;;  %v4004_v50 = vld [vmem:[#allocation10 + $0x5a0] sm:$0xff]  ;;  %v4006_v53 = vld [vmem:[#allocation10 + $0x5b0] sm:$0xff] }
 0x6c3   :  { %4247 = vmatpush1.msra.mxu0 %v3852_v54  ;;  %4318 = vmatpush1.msra.mxu1 %v3854_v20  ;;  %v3997_v54 = vld [vmem:[#allocation10 + $0x568] sm:$0xff]  ;;  %v3999_v20 = vld [vmem:[#allocation10 + $0x578] sm:$0xff] }
 0x6c4   :  { %4248 = vmatprep.subr.mxu0 %v3845_v0  ;;  %4319 = vmatprep.subr.mxu1 %v3847_v30  ;;  %v3996_v0 = vld [vmem:[#allocation10 + $0x560] sm:$0xff]  ;;  %v3998_v30 = vld [vmem:[#allocation10 + $0x570] sm:$0xff] }
 0x6c5   :  { %4249 = vmatpush1.msra.mxu0 %v3844_v33  ;;  %4320 = vmatpush1.msra.mxu1 %v3846_v35  ;;  %v3989_v33 = vld [vmem:[#allocation10 + $0x528] sm:$0xff]  ;;  %v3991_v35 = vld [vmem:[#allocation10 + $0x538] sm:$0xff] }
 0x6c6   :  { %4250 = vmatprep.subr.mxu0 %v3837_v25  ;;  %4321 = vmatprep.subr.mxu1 %v3839_v38  ;;  %v3988_v25 = vld [vmem:[#allocation10 + $0x520] sm:$0xff]  ;;  %v3990_v38 = vld [vmem:[#allocation10 + $0x530] sm:$0xff] }
 0x6c7   :  { %4251 = vmatpush1.msra.mxu0 %v3836_v40  ;;  %4322 = vmatpush1.msra.mxu1 %v3838_v63  ;;  %v3981_v40 = vld [vmem:[#allocation10 + $0x4e8] sm:$0xff]  ;;  %v3983_v63 = vld [vmem:[#allocation10 + $0x4f8] sm:$0xff] }
 0x6c8   :  { %4252 = vmatprep.subr.mxu0 %v3829_v5  ;;  %4323 = vmatprep.subr.mxu1 %v3831_v26  ;;  %v3980_v5 = vld [vmem:[#allocation10 + $0x4e0] sm:$0xff]  ;;  %v3982_v26 = vld [vmem:[#allocation10 + $0x4f0] sm:$0xff] }
 0x6c9   :  { %4253 = vmatpush1.msra.mxu0 %v3828_v28  ;;  %4324 = vmatpush1.msra.mxu1 %v3830_v51  ;;  %v3973_v28 = vld [vmem:[#allocation10 + $0x4a8] sm:$0xff]  ;;  %v3975_v51 = vld [vmem:[#allocation10 + $0x4b8] sm:$0xff] }
 0x6ca   :  { %4254 = vmatprep.subr.mxu0 %v4077_v39  ;;  %4325 = vmatprep.subr.mxu1 %v4079_v6  ;;  %v3972_v39 = vld [vmem:[#allocation10 + $0x4a0] sm:$0xff]  ;;  %v3974_v6 = vld [vmem:[#allocation10 + $0x4b0] sm:$0xff] }
 0x6cb   :  { %4255 = vmatpush2.msra.mxu0 %v4076_v52  ;;  %4326 = vmatpush2.msra.mxu1 %v4078_v29  ;;  %v3965_v52 = vld [vmem:[#allocation10 + $0x468] sm:$0xff]  ;;  %v3967_v29 = vld [vmem:[#allocation10 + $0x478] sm:$0xff] }
 0x6cc   :  { %4256 = vmatprep.subr.mxu0 %v4069_v60  ;;  %4327 = vmatprep.subr.mxu1 %v4071_v44  ;;  %v3964_v60 = vld [vmem:[#allocation10 + $0x460] sm:$0xff]  ;;  %v3966_v44 = vld [vmem:[#allocation10 + $0x470] sm:$0xff] }
 0x6cd   :  { %4257 = vmatpush2.msra.mxu0 %v4068_v3  ;;  %4328 = vmatpush2.msra.mxu1 %v4070_v55  ;;  %v3957_v3 = vld [vmem:[#allocation10 + $0x428] sm:$0xff]  ;;  %v3959_v55 = vld [vmem:[#allocation10 + $0x438] sm:$0xff] }
 0x6ce   :  { %4258 = vmatprep.subr.mxu0 %v4061_v34  ;;  %4329 = vmatprep.subr.mxu1 %v4063_v1  ;;  %v3956_v34 = vld [vmem:[#allocation10 + $0x420] sm:$0xff]  ;;  %v3958_v1 = vld [vmem:[#allocation10 + $0x430] sm:$0xff] }
 0x6cf   :  { %4259 = vmatpush2.msra.mxu0 %v4060_v14  ;;  %4330 = vmatpush2.msra.mxu1 %v4062_v4  ;;  %v4553_v14 = vld [vmem:[#allocation10 + $0x3c8] sm:$0xff]  ;;  %v4555_v4 = vld [vmem:[#allocation10 + $0x3d8] sm:$0xff] }
 0x6d0   :  { %4260 = vmatprep.subr.mxu0 %v4053_v7  ;;  %4331 = vmatprep.subr.mxu1 %v4055_v8  ;;  %v4552_v7 = vld [vmem:[#allocation10 + $0x3c0] sm:$0xff]  ;;  %v4554_v8 = vld [vmem:[#allocation10 + $0x3d0] sm:$0xff] }
 0x6d1   :  { %4261 = vmatpush2.msra.mxu0 %v4052_v23  ;;  %4332 = vmatpush2.msra.mxu1 %v4054_v24  ;;  %v4545_v23 = vld [vmem:[#allocation10 + $0x388] sm:$0xff]  ;;  %v4547_v24 = vld [vmem:[#allocation10 + $0x398] sm:$0xff] }
 0x6d2   :  { %4262 = vmatprep.subr.mxu0 %v4045_v48  ;;  %4333 = vmatprep.subr.mxu1 %v4047_v11  ;;  %v4544_v48 = vld [vmem:[#allocation10 + $0x380] sm:$0xff]  ;;  %v4546_v11 = vld [vmem:[#allocation10 + $0x390] sm:$0xff] }
 0x6d3   :  { %4263 = vmatpush2.msra.mxu0 %v4044_v31  ;;  %4334 = vmatpush2.msra.mxu1 %v4046_v43  ;;  %v4537_v31 = vld [vmem:[#allocation10 + $0x348] sm:$0xff]  ;;  %v4539_v43 = vld [vmem:[#allocation10 + $0x358] sm:$0xff] }
 0x6d4   :  { %4264 = vmatprep.subr.mxu0 %v4037_v36  ;;  %4335 = vmatprep.subr.mxu1 %v4039_v32  ;;  %v4536_v36 = vld [vmem:[#allocation10 + $0x340] sm:$0xff]  ;;  %v4538_v32 = vld [vmem:[#allocation10 + $0x350] sm:$0xff] }
 0x6d5   :  { %4265 = vmatpush2.msra.mxu0 %v4036_v47  ;;  %4336 = vmatpush2.msra.mxu1 %v4038_v9  ;;  %v4531_v47 = vld [vmem:[#allocation10 + $0x318] sm:$0xff]  ;;  %v4528_v9 = vld [vmem:[#allocation10 + $0x300] sm:$0xff] }
 0x6d6   :  { %4266 = vmatprep.subr.mxu0 %v4029_v2  ;;  %4337 = vmatprep.subr.mxu1 %v4031_v56  ;;  %v4530_v2 = vld [vmem:[#allocation10 + $0x310] sm:$0xff]  ;;  %v4521_v56 = vld [vmem:[#allocation10 + $0x2c8] sm:$0xff] }
 0x6d7   :  { %4267 = vmatpush2.msra.mxu0 %v4028_v17  ;;  %4338 = vmatpush2.msra.mxu1 %v4030_v22  ;;  %v4523_v17 = vld [vmem:[#allocation10 + $0x2d8] sm:$0xff]  ;;  %v4520_v22 = vld [vmem:[#allocation10 + $0x2c0] sm:$0xff] }
 0x6d8   :  { %4268 = vmatprep.subr.mxu0 %v4021_v41  ;;  %4339 = vmatprep.subr.mxu1 %v4023_v13  ;;  %v4522_v41 = vld [vmem:[#allocation10 + $0x2d0] sm:$0xff]  ;;  %v4513_v13 = vld [vmem:[#allocation10 + $0x288] sm:$0xff] }
 0x6d9   :  { %4269 = vmatpush2.msra.mxu0 %v4020_v45  ;;  %4340 = vmatpush2.msra.mxu1 %v4022_v21  ;;  %v4515_v45 = vld [vmem:[#allocation10 + $0x298] sm:$0xff]  ;;  %v4512_v21 = vld [vmem:[#allocation10 + $0x280] sm:$0xff] }
 0x6da   :  { %4270 = vmatprep.subr.mxu0 %v4013_v42  ;;  %4341 = vmatprep.subr.mxu1 %v4015_v49  ;;  %v4514_v42 = vld [vmem:[#allocation10 + $0x290] sm:$0xff]  ;;  %v4505_v49 = vld [vmem:[#allocation10 + $0x248] sm:$0xff] }
 0x6db   :  { %4271 = vmatpush2.msra.mxu0 %v4012_v57  ;;  %4342 = vmatpush2.msra.mxu1 %v4014_v46  ;;  %v4507_v57 = vld [vmem:[#allocation10 + $0x258] sm:$0xff]  ;;  %v4504_v46 = vld [vmem:[#allocation10 + $0x240] sm:$0xff] }
 0x6dc   :  { %4272 = vmatprep.subr.mxu0 %v4005_v61  ;;  %4343 = vmatprep.subr.mxu1 %v4007_v62  ;;  %v4506_v61 = vld [vmem:[#allocation10 + $0x250] sm:$0xff]  ;;  %v4497_v62 = vld [vmem:[#allocation10 + $0x208] sm:$0xff] }
 0x6dd   :  { %4273 = vmatpush2.msra.mxu0 %v4004_v50  ;;  %4344 = vmatpush2.msra.mxu1 %v4006_v53  ;;  %v4499_v50 = vld [vmem:[#allocation10 + $0x218] sm:$0xff]  ;;  %v4496_v53 = vld [vmem:[#allocation10 + $0x200] sm:$0xff] }
 0x6de   :  { %4274 = vmatprep.subr.mxu0 %v3997_v54  ;;  %4345 = vmatprep.subr.mxu1 %v3999_v20  ;;  %v4498_v54 = vld [vmem:[#allocation10 + $0x210] sm:$0xff]  ;;  %v4489_v20 = vld [vmem:[#allocation10 + $0x1c8] sm:$0xff] }
 0x6df   :  { %4275 = vmatpush2.msra.mxu0 %v3996_v0  ;;  %4346 = vmatpush2.msra.mxu1 %v3998_v30  ;;  %v4491_v0 = vld [vmem:[#allocation10 + $0x1d8] sm:$0xff]  ;;  %v4488_v30 = vld [vmem:[#allocation10 + $0x1c0] sm:$0xff] }
 0x6e0   :  { %4276 = vmatprep.subr.mxu0 %v3989_v33  ;;  %4347 = vmatprep.subr.mxu1 %v3991_v35  ;;  %v4490_v33 = vld [vmem:[#allocation10 + $0x1d0] sm:$0xff]  ;;  %v4481_v35 = vld [vmem:[#allocation10 + $0x188] sm:$0xff] }
 0x6e1   :  { %4277 = vmatpush2.msra.mxu0 %v3988_v25  ;;  %4348 = vmatpush2.msra.mxu1 %v3990_v38  ;;  %v4483_v25 = vld [vmem:[#allocation10 + $0x198] sm:$0xff]  ;;  %v4480_v38 = vld [vmem:[#allocation10 + $0x180] sm:$0xff] }
 0x6e2   :  { %4278 = vmatprep.subr.mxu0 %v3981_v40  ;;  %4349 = vmatprep.subr.mxu1 %v3983_v63  ;;  %v4482_v40 = vld [vmem:[#allocation10 + $0x190] sm:$0xff]  ;;  %v4473_v63 = vld [vmem:[#allocation10 + $0x148] sm:$0xff] }
 0x6e3   :  { %4279 = vmatpush2.msra.mxu0 %v3980_v5  ;;  %4350 = vmatpush2.msra.mxu1 %v3982_v26  ;;  %v4475_v5 = vld [vmem:[#allocation10 + $0x158] sm:$0xff]  ;;  %v4472_v26 = vld [vmem:[#allocation10 + $0x140] sm:$0xff] }
 0x6e4   :  { %4280 = vmatprep.subr.mxu0 %v3973_v28  ;;  %4351 = vmatprep.subr.mxu1 %v3975_v51  ;;  %v4474_v28 = vld [vmem:[#allocation10 + $0x150] sm:$0xff]  ;;  %v4465_v51 = vld [vmem:[#allocation10 + $0x108] sm:$0xff] }
 0x6e5   :  { %4281 = vmatpush2.msra.mxu0 %v3972_v39  ;;  %4352 = vmatpush2.msra.mxu1 %v3974_v6  ;;  %v4467_v39 = vld [vmem:[#allocation10 + $0x118] sm:$0xff]  ;;  %v4464_v6 = vld [vmem:[#allocation10 + $0x100] sm:$0xff] }
 0x6e6   :  { %4282 = vmatprep.subr.mxu0 %v3965_v52  ;;  %4353 = vmatprep.subr.mxu1 %v3967_v29  ;;  %v4466_v52 = vld [vmem:[#allocation10 + $0x110] sm:$0xff]  ;;  %v4457_v29 = vld [vmem:[#allocation10 + $0xc8] sm:$0xff] }
 0x6e7   :  { %4283 = vmatpush2.msra.mxu0 %v3964_v60  ;;  %4354 = vmatpush2.msra.mxu1 %v3966_v44  ;;  %v4459_v60 = vld [vmem:[#allocation10 + $0xd8] sm:$0xff]  ;;  %v4456_v44 = vld [vmem:[#allocation10 + $0xc0] sm:$0xff] }
 0x6e8   :  { %4284 = vmatprep.subr.mxu0 %v3957_v3  ;;  %4355 = vmatprep.subr.mxu1 %v3959_v55  ;;  %v4458_v3 = vld [vmem:[#allocation10 + $0xd0] sm:$0xff]  ;;  %v4449_v55 = vld [vmem:[#allocation10 + $0x88] sm:$0xff] }
 0x6e9   :  { %4285 = vmatpush2.msra.mxu0 %v3956_v34  ;;  %4356 = vmatpush2.msra.mxu1 %v3958_v1  ;;  %v4451_v34 = vld [vmem:[#allocation10 + $0x98] sm:$0xff]  ;;  %v4448_v1 = vld [vmem:[#allocation10 + $0x80] sm:$0xff] }
 0x6ea   :  { %4287 = vmatmul.mubr.f32.vlgmr.msra.gmra.mxu0 %v6551_v27  ;;  %4358 = vmatmul.mubr.f32.vlgmr.msra.gmra.mxu1 %v6551_v27  ;;  %v4529_v27 = vld [vmem:[#allocation10 + $0x308] sm:$0xff] }
 0x6eb   :  { %4688 = vmatprep.subr.mxu0 %v4553_v14  ;;  %4759 = vmatprep.subr.mxu1 %v4555_v4  ;;  %v4450_v14 = vld [vmem:[#allocation10 + $0x90] sm:$0xff]  ;;  %v4441_v4 = vld [vmem:[#allocation10 + $0x48] sm:$0xff] }
 0x6ec   :  { %4689 = vmatpush1.msra.mxu0 %v4552_v7  ;;  %4760 = vmatpush1.msra.mxu1 %v4554_v8  ;;  %v4443_v7 = vld [vmem:[#allocation10 + $0x58] sm:$0xff]  ;;  %v4440_v8 = vld [vmem:[#allocation10 + $0x40] sm:$0xff] }
 0x6ed   :  { %4690 = vmatprep.subr.mxu0 %v4545_v23  ;;  %4761 = vmatprep.subr.mxu1 %v4547_v24  ;;  %v4442_v23 = vld [vmem:[#allocation10 + $0x50] sm:$0xff]  ;;  %v4433_v24 = vld [vmem:[#allocation10 + $0x8] sm:$0xff] }
 0x6ee   :  { %4691 = vmatpush1.msra.mxu0 %v4544_v48  ;;  %4762 = vmatpush1.msra.mxu1 %v4546_v11  ;;  %v4435_v48 = vld [vmem:[#allocation10 + $0x18] sm:$0xff]  ;;  %v4432_v11 = vld [vmem:[#allocation10] sm:$0xff] }
 0x6ef   :  { %4692 = vmatprep.subr.mxu0 %v4537_v31  ;;  %4763 = vmatprep.subr.mxu1 %v4539_v43  ;;  %v4434_v31 = vld [vmem:[#allocation10 + $0x10] sm:$0xff]  ;;  %v4681_v43 = vld [vmem:[#allocation10 + $0x7c8] sm:$0xff] }
 0x6f0   :  { %4693 = vmatpush1.msra.mxu0 %v4536_v36  ;;  %4764 = vmatpush1.msra.mxu1 %v4538_v32  ;;  %v4683_v36 = vld [vmem:[#allocation10 + $0x7d8] sm:$0xff]  ;;  %v4680_v32 = vld [vmem:[#allocation10 + $0x7c0] sm:$0xff] }
 0x6f1   :  { %4694 = vmatprep.subr.mxu0 %v4529_v27  ;;  %4765 = vmatprep.subr.mxu1 %v4531_v47  ;;  %v4682_v27 = vld [vmem:[#allocation10 + $0x7d0] sm:$0xff]  ;;  %v4673_v47 = vld [vmem:[#allocation10 + $0x788] sm:$0xff] }
 0x6f2   :  { %4695 = vmatpush1.msra.mxu0 %v4528_v9  ;;  %4766 = vmatpush1.msra.mxu1 %v4530_v2  ;;  %v4675_v9 = vld [vmem:[#allocation10 + $0x798] sm:$0xff]  ;;  %v4672_v2 = vld [vmem:[#allocation10 + $0x780] sm:$0xff] }
 0x6f3   :  { %4696 = vmatprep.subr.mxu0 %v4521_v56  ;;  %4767 = vmatprep.subr.mxu1 %v4523_v17  ;;  %v4674_v56 = vld [vmem:[#allocation10 + $0x790] sm:$0xff]  ;;  %v4665_v17 = vld [vmem:[#allocation10 + $0x748] sm:$0xff] }
 0x6f4   :  { %4697 = vmatpush1.msra.mxu0 %v4520_v22  ;;  %4768 = vmatpush1.msra.mxu1 %v4522_v41  ;;  %v4667_v22 = vld [vmem:[#allocation10 + $0x758] sm:$0xff]  ;;  %v4664_v41 = vld [vmem:[#allocation10 + $0x740] sm:$0xff] }
 0x6f5   :  { %4698 = vmatprep.subr.mxu0 %v4513_v13  ;;  %4769 = vmatprep.subr.mxu1 %v4515_v45  ;;  %v4666_v13 = vld [vmem:[#allocation10 + $0x750] sm:$0xff]  ;;  %v4657_v45 = vld [vmem:[#allocation10 + $0x708] sm:$0xff] }
 0x6f6   :  { %4699 = vmatpush1.msra.mxu0 %v4512_v21  ;;  %4770 = vmatpush1.msra.mxu1 %v4514_v42  ;;  %v4659_v21 = vld [vmem:[#allocation10 + $0x718] sm:$0xff]  ;;  %v4656_v42 = vld [vmem:[#allocation10 + $0x700] sm:$0xff] }
 0x6f7   :  { %4700 = vmatprep.subr.mxu0 %v4505_v49  ;;  %4771 = vmatprep.subr.mxu1 %v4507_v57  ;;  %v4658_v49 = vld [vmem:[#allocation10 + $0x710] sm:$0xff]  ;;  %v4649_v57 = vld [vmem:[#allocation10 + $0x6c8] sm:$0xff] }
 0x6f8   :  { %4701 = vmatpush1.msra.mxu0 %v4504_v46  ;;  %4772 = vmatpush1.msra.mxu1 %v4506_v61  ;;  %v4651_v46 = vld [vmem:[#allocation10 + $0x6d8] sm:$0xff]  ;;  %v4648_v61 = vld [vmem:[#allocation10 + $0x6c0] sm:$0xff] }
 0x6f9   :  { %4702 = vmatprep.subr.mxu0 %v4497_v62  ;;  %4773 = vmatprep.subr.mxu1 %v4499_v50  ;;  %v4650_v62 = vld [vmem:[#allocation10 + $0x6d0] sm:$0xff]  ;;  %v4641_v50 = vld [vmem:[#allocation10 + $0x688] sm:$0xff] }
 0x6fa   :  { %4703 = vmatpush1.msra.mxu0 %v4496_v53  ;;  %4774 = vmatpush1.msra.mxu1 %v4498_v54  ;;  %v4643_v53 = vld [vmem:[#allocation10 + $0x698] sm:$0xff]  ;;  %v4640_v54 = vld [vmem:[#allocation10 + $0x680] sm:$0xff] }
 0x6fb   :  { %4704 = vmatprep.subr.mxu0 %v4489_v20  ;;  %4775 = vmatprep.subr.mxu1 %v4491_v0  ;;  %v4642_v20 = vld [vmem:[#allocation10 + $0x690] sm:$0xff]  ;;  %v4633_v0 = vld [vmem:[#allocation10 + $0x648] sm:$0xff] }
 0x6fc   :  { %4705 = vmatpush1.msra.mxu0 %v4488_v30  ;;  %4776 = vmatpush1.msra.mxu1 %v4490_v33  ;;  %v4635_v30 = vld [vmem:[#allocation10 + $0x658] sm:$0xff]  ;;  %v4632_v33 = vld [vmem:[#allocation10 + $0x640] sm:$0xff] }
 0x6fd   :  { %4706 = vmatprep.subr.mxu0 %v4481_v35  ;;  %4777 = vmatprep.subr.mxu1 %v4483_v25  ;;  %v4634_v35 = vld [vmem:[#allocation10 + $0x650] sm:$0xff]  ;;  %v4625_v25 = vld [vmem:[#allocation10 + $0x608] sm:$0xff] }
 0x6fe   :  { %4707 = vmatpush1.msra.mxu0 %v4480_v38  ;;  %4778 = vmatpush1.msra.mxu1 %v4482_v40  ;;  %v4627_v38 = vld [vmem:[#allocation10 + $0x618] sm:$0xff]  ;;  %v4624_v40 = vld [vmem:[#allocation10 + $0x600] sm:$0xff] }
 0x6ff   :  { %4708 = vmatprep.subr.mxu0 %v4473_v63  ;;  %4779 = vmatprep.subr.mxu1 %v4475_v5  ;;  %v4626_v63 = vld [vmem:[#allocation10 + $0x610] sm:$0xff]  ;;  %v4617_v5 = vld [vmem:[#allocation10 + $0x5c8] sm:$0xff] }
 0x700   :  { %4709 = vmatpush1.msra.mxu0 %v4472_v26  ;;  %4780 = vmatpush1.msra.mxu1 %v4474_v28  ;;  %v4619_v26 = vld [vmem:[#allocation10 + $0x5d8] sm:$0xff]  ;;  %v4616_v28 = vld [vmem:[#allocation10 + $0x5c0] sm:$0xff] }
 0x701   :  { %4710 = vmatprep.subr.mxu0 %v4465_v51  ;;  %4781 = vmatprep.subr.mxu1 %v4467_v39  ;;  %v4618_v51 = vld [vmem:[#allocation10 + $0x5d0] sm:$0xff]  ;;  %v4609_v39 = vld [vmem:[#allocation10 + $0x588] sm:$0xff] }
 0x702   :  { %4711 = vmatpush1.msra.mxu0 %v4464_v6  ;;  %4782 = vmatpush1.msra.mxu1 %v4466_v52  ;;  %v4611_v6 = vld [vmem:[#allocation10 + $0x598] sm:$0xff]  ;;  %v4608_v52 = vld [vmem:[#allocation10 + $0x580] sm:$0xff] }
 0x703   :  { %4712 = vmatprep.subr.mxu0 %v4457_v29  ;;  %4783 = vmatprep.subr.mxu1 %v4459_v60  ;;  %v4610_v29 = vld [vmem:[#allocation10 + $0x590] sm:$0xff]  ;;  %v4601_v60 = vld [vmem:[#allocation10 + $0x548] sm:$0xff] }
 0x704   :  { %4713 = vmatpush1.msra.mxu0 %v4456_v44  ;;  %4784 = vmatpush1.msra.mxu1 %v4458_v3  ;;  %v4603_v44 = vld [vmem:[#allocation10 + $0x558] sm:$0xff]  ;;  %v4600_v3 = vld [vmem:[#allocation10 + $0x540] sm:$0xff] }
 0x705   :  { %4714 = vmatprep.subr.mxu0 %v4449_v55  ;;  %4785 = vmatprep.subr.mxu1 %v4451_v34  ;;  %v4602_v55 = vld [vmem:[#allocation10 + $0x550] sm:$0xff]  ;;  %v4593_v34 = vld [vmem:[#allocation10 + $0x508] sm:$0xff] }
 0x706   :  { %4715 = vmatpush1.msra.mxu0 %v4448_v1  ;;  %4786 = vmatpush1.msra.mxu1 %v4450_v14  ;;  %v4595_v1 = vld [vmem:[#allocation10 + $0x518] sm:$0xff]  ;;  %v4592_v14 = vld [vmem:[#allocation10 + $0x500] sm:$0xff] }
 0x707   :  { %4716 = vmatprep.subr.mxu0 %v4441_v4  ;;  %4787 = vmatprep.subr.mxu1 %v4443_v7  ;;  %v4594_v4 = vld [vmem:[#allocation10 + $0x510] sm:$0xff]  ;;  %v4585_v7 = vld [vmem:[#allocation10 + $0x4c8] sm:$0xff] }
 0x708   :  { %4717 = vmatpush1.msra.mxu0 %v4440_v8  ;;  %4788 = vmatpush1.msra.mxu1 %v4442_v23  ;;  %v4587_v8 = vld [vmem:[#allocation10 + $0x4d8] sm:$0xff]  ;;  %v4584_v23 = vld [vmem:[#allocation10 + $0x4c0] sm:$0xff] }
 0x709   :  { %4718 = vmatprep.subr.mxu0 %v4433_v24  ;;  %4789 = vmatprep.subr.mxu1 %v4435_v48  ;;  %v4586_v24 = vld [vmem:[#allocation10 + $0x4d0] sm:$0xff]  ;;  %v4577_v48 = vld [vmem:[#allocation10 + $0x488] sm:$0xff] }
 0x70a   :  { %4719 = vmatpush1.msra.mxu0 %v4432_v11  ;;  %4790 = vmatpush1.msra.mxu1 %v4434_v31  ;;  %v4579_v11 = vld [vmem:[#allocation10 + $0x498] sm:$0xff]  ;;  %v4576_v31 = vld [vmem:[#allocation10 + $0x480] sm:$0xff] }
 0x70b   :  { %4720 = vmatprep.subr.mxu0 %v4681_v43  ;;  %4791 = vmatprep.subr.mxu1 %v4683_v36  ;;  %v4578_v43 = vld [vmem:[#allocation10 + $0x490] sm:$0xff]  ;;  %v4569_v36 = vld [vmem:[#allocation10 + $0x448] sm:$0xff] }
 0x70c   :  { %4721 = vmatpush2.msra.mxu0 %v4680_v32  ;;  %4792 = vmatpush2.msra.mxu1 %v4682_v27  ;;  %v4571_v32 = vld [vmem:[#allocation10 + $0x458] sm:$0xff]  ;;  %v4568_v27 = vld [vmem:[#allocation10 + $0x440] sm:$0xff] }
 0x70d   :  { %4722 = vmatprep.subr.mxu0 %v4673_v47  ;;  %4793 = vmatprep.subr.mxu1 %v4675_v9  ;;  %v4570_v47 = vld [vmem:[#allocation10 + $0x450] sm:$0xff]  ;;  %v4561_v9 = vld [vmem:[#allocation10 + $0x408] sm:$0xff] }
 0x70e   :  { %4723 = vmatpush2.msra.mxu0 %v4672_v2  ;;  %4794 = vmatpush2.msra.mxu1 %v4674_v56  ;;  %v4563_v2 = vld [vmem:[#allocation10 + $0x418] sm:$0xff]  ;;  %v4560_v56 = vld [vmem:[#allocation10 + $0x400] sm:$0xff] }
 0x70f   :  { %4724 = vmatprep.subr.mxu0 %v4665_v17  ;;  %4795 = vmatprep.subr.mxu1 %v4667_v22  ;;  %v4562_v17 = vld [vmem:[#allocation10 + $0x410] sm:$0xff]  ;;  %v4557_v22 = vld [vmem:[#allocation10 + $0x3e8] sm:$0xff] }
 0x710   :  { %4725 = vmatpush2.msra.mxu0 %v4664_v41  ;;  %4796 = vmatpush2.msra.mxu1 %v4666_v13  ;;  %v4559_v41 = vld [vmem:[#allocation10 + $0x3f8] sm:$0xff] }
 0x711   :  { %4726 = vmatprep.subr.mxu0 %v4657_v45  ;;  %4797 = vmatprep.subr.mxu1 %v4659_v21 }
 0x712   :  { %4727 = vmatpush2.msra.mxu0 %v4656_v42  ;;  %4798 = vmatpush2.msra.mxu1 %v4658_v49 }
 0x713   :  { %4728 = vmatprep.subr.mxu0 %v4649_v57  ;;  %4799 = vmatprep.subr.mxu1 %v4651_v46 }
 0x714   :  { %4729 = vmatpush2.msra.mxu0 %v4648_v61  ;;  %4800 = vmatpush2.msra.mxu1 %v4650_v62  ;;  %v6655_v62 = vld [vmem:[#allocation18_spill] sm:$0xff] }
 0x715   :  { %4730 = vmatprep.subr.mxu0 %v4641_v50  ;;  %4801 = vmatprep.subr.mxu1 %v4643_v53 }
 0x716   :  { %4731 = vmatpush2.msra.mxu0 %v4640_v54  ;;  %4802 = vmatpush2.msra.mxu1 %v4642_v20 }
 0x717   :  { %4732 = vmatprep.subr.mxu0 %v4633_v0  ;;  %4803 = vmatprep.subr.mxu1 %v4635_v30 }
 0x718   :  { %4733 = vmatpush2.msra.mxu0 %v4632_v33  ;;  %4804 = vmatpush2.msra.mxu1 %v4634_v35 }
 0x719   :  { %4734 = vmatprep.subr.mxu0 %v4625_v25  ;;  %4805 = vmatprep.subr.mxu1 %v4627_v38  ;;  %v6656_v38 = vld [vmem:[#allocation27_spill] sm:$0xff] }
 0x71a   :  { %4735 = vmatpush2.msra.mxu0 %v4624_v40  ;;  %4806 = vmatpush2.msra.mxu1 %v4626_v63  ;;  %v6657_v40 = vld [vmem:[#allocation28_spill] sm:$0xff] }
 0x71b   :  { %4736 = vmatprep.subr.mxu0 %v4617_v5  ;;  %4807 = vmatprep.subr.mxu1 %v4619_v26  ;;  %v693_v63 = vadd.f32 %v6657_v40, %v6421_v19  ;;  %v6658_v5 = vld [vmem:[#allocation29_spill] sm:$0xff]  ;;  %v4518_v40 = vld [vmem:[#allocation10 + $0x2b0] sm:$0xff] }
 0x71c   :  { %4737 = vmatpush2.msra.mxu0 %v4616_v28  ;;  %4808 = vmatpush2.msra.mxu1 %v4618_v51  ;;  %v582_v26 = vadd.f32 %v6658_v5, %v6424_v16  ;;  %v4511_v5 = vld [vmem:[#allocation10 + $0x278] sm:$0xff] }
 0x71d   :  { %4738 = vmatprep.subr.mxu0 %v4609_v39  ;;  %4809 = vmatprep.subr.mxu1 %v4611_v6  ;;  %v6659_v6 = vld [vmem:[#allocation30_spill] sm:$0xff] }
 0x71e   :  { %4739 = vmatpush2.msra.mxu0 %v4608_v52  ;;  %4810 = vmatpush2.msra.mxu1 %v4610_v29  ;;  %v695_v52 = vadd.f32 %v6659_v6, %v6427_v59  ;;  %v4500_v6 = vld [vmem:[#allocation10 + $0x220] sm:$0xff] }
 0x71f   :  { %4740 = vmatprep.subr.mxu0 %v4601_v60  ;;  %4811 = vmatprep.subr.mxu1 %v4603_v44 }
 0x720   :  { %4741 = vmatpush2.msra.mxu0 %v4600_v3  ;;  %4812 = vmatpush2.msra.mxu1 %v4602_v55 }
 0x721   :  { %4742 = vmatprep.subr.mxu0 %v4593_v34  ;;  %4813 = vmatprep.subr.mxu1 %v4595_v1 }
 0x722   :  { %4743 = vmatpush2.msra.mxu0 %v4592_v14  ;;  %4814 = vmatpush2.msra.mxu1 %v4594_v4 }
 0x723   :  { %4744 = vmatprep.subr.mxu0 %v4585_v7  ;;  %4815 = vmatprep.subr.mxu1 %v4587_v8 }
 0x724   :  { %4745 = vmatpush2.msra.mxu0 %v4584_v23  ;;  %4816 = vmatpush2.msra.mxu1 %v4586_v24 }
 0x725   :  { %4746 = vmatprep.subr.mxu0 %v4577_v48  ;;  %4817 = vmatprep.subr.mxu1 %v4579_v11 }
 0x726   :  { %4747 = vmatpush2.msra.mxu0 %v4576_v31  ;;  %4818 = vmatpush2.msra.mxu1 %v4578_v43 }
 0x727   :  { %4748 = vmatprep.subr.mxu0 %v4569_v36  ;;  %4819 = vmatprep.subr.mxu1 %v4571_v32 }
 0x728   :  { %4749 = vmatpush2.msra.mxu0 %v4568_v27  ;;  %4820 = vmatpush2.msra.mxu1 %v4570_v47 }
 0x729   :  { %4750 = vmatprep.subr.mxu0 %v4561_v9  ;;  %4821 = vmatprep.subr.mxu1 %v4563_v2 }
 0x72a   :  { %4751 = vmatpush2.msra.mxu0 %v4560_v56  ;;  %4822 = vmatpush2.msra.mxu1 %v4562_v17 }
 0x72b   :  { %4830 = vmatprep.subr.mxu0 %v4557_v22  ;;  %4901 = vmatprep.subr.mxu1 %v4559_v41 }
 0x769   :  { %v4146_v13 = vpop.f32.mrf.mxu0  ;;  %v4217_v45 = vpop.f32.mrf.mxu1 }
 0x76a   :  { %v4364_v42 = vadd.f32 %v4146_v13, %v6306_v10  ;;  %v4366_v49 = vadd.f32 %v4217_v45, %v6309_v12 }
 0x76b   :  { %v4148_v21 = vpop.f32.mrf.mxu0  ;;  %v4219_v57 = vpop.f32.mrf.mxu1 }
 0x76c   :  { %v4365_v46 = vadd.f32 %v4148_v21, %v6312_v15  ;;  %v5692_v61 = vmul.f32 -1.442695, %v4364_v42  ;;  %v4367_v50 = vadd.f32 %v4219_v57, %v6655_v62  ;;  %v5694_v53 = vmul.f32 -1.442695, %v4366_v49  ;;  %v4558_v21 = vld [vmem:[#allocation10 + $0x3f0] sm:$0xff]  ;;  %v4549_v42 = vld [vmem:[#allocation10 + $0x3a8] sm:$0xff] }
 0x76d   :  { %v580_v15 = vadd.f32 %v6656_v38, %v6418_v18  ;;  %v4551_v49 = vld [vmem:[#allocation10 + $0x3b8] sm:$0xff]  ;;  %v4548_v57 = vld [vmem:[#allocation10 + $0x3a0] sm:$0xff] }
 0x76e   :  { %v5693_v54 = vmul.f32 -1.442695, %v4365_v46  ;;  %5882 = vpow2.f32 %v5692_v61  ;;  %v5695_v20 = vmul.f32 -1.442695, %v4367_v50  ;;  %v4550_v46 = vld [vmem:[#allocation10 + $0x3b0] sm:$0xff]  ;;  %v4541_v61 = vld [vmem:[#allocation10 + $0x368] sm:$0xff] }
 0x76f   :  { %5884 = vpow2.f32 %v5694_v53  ;;  %v4543_v62 = vld [vmem:[#allocation10 + $0x378] sm:$0xff]  ;;  %v4540_v50 = vld [vmem:[#allocation10 + $0x360] sm:$0xff]  ;;  %v4542_v53 = vld [vmem:[#allocation10 + $0x370] sm:$0xff] }
 0x770   :  { %5886 = vpow2.f32 %v5693_v54  ;;  %v4533_v54 = vld [vmem:[#allocation10 + $0x328] sm:$0xff]  ;;  %v4519_v38 = vld [vmem:[#allocation10 + $0x2b8] sm:$0xff] }
 0x771   :  { %5888 = vpow2.f32 %v5695_v20  ;;  %v4535_v20 = vld [vmem:[#allocation10 + $0x338] sm:$0xff] }
 0x77b   :  { %v5883_v0 = vpop.eup %5882 }
 0x77c   :  { %v5885_v30 = vpop.eup %5884  ;;  %v4384_v35 = vadd.f32 1.0, %v5883_v0  ;;  %v4532_v0 = vld [vmem:[#allocation10 + $0x320] sm:$0xff] }
 0x77d   :  { %v5887_v33 = vpop.eup %5886  ;;  %v4386_v25 = vadd.f32 1.0, %v5885_v30  ;;  %v4534_v30 = vld [vmem:[#allocation10 + $0x330] sm:$0xff] }
 0x77e   :  { %v5889_v10 = vpop.eup %5888  ;;  %v4385_v12 = vadd.f32 1.0, %v5887_v33  ;;  %5890 = vrcp.f32 %v4384_v35  ;;  %v4525_v33 = vld [vmem:[#allocation10 + $0x2e8] sm:$0xff]  ;;  %v4527_v35 = vld [vmem:[#allocation10 + $0x2f8] sm:$0xff] }
 0x77f   :  { %v4387_v28 = vadd.f32 1.0, %v5889_v10  ;;  %5892 = vrcp.f32 %v4386_v25  ;;  %v4524_v10 = vld [vmem:[#allocation10 + $0x2e0] sm:$0xff]  ;;  %v4526_v25 = vld [vmem:[#allocation10 + $0x2f0] sm:$0xff] }
 0x780   :  { %5894 = vrcp.f32 %v4385_v12  ;;  %v4517_v12 = vld [vmem:[#allocation10 + $0x2a8] sm:$0xff] }
 0x78b   :  { %v5891_v4 = vpop.eup %5890 }
 0x78c   :  { %v5893_v7 = vpop.eup %5892 }
 0x78d   :  { %v5895_v8 = vpop.eup %5894  ;;  %v4410_v48 = vmul.f32 %v5893_v7, %v6544_v58  ;;  %v4479_v7 = vld [vmem:[#allocation10 + $0x178] sm:$0xff] }
 0x7aa   :  { %v4288_v51 = vpop.f32.mrf.mxu0  ;;  %v4359_v39 = vpop.f32.mrf.mxu1 }
 0x7ab   :  { %v4368_v29 = vadd.f32 %v4288_v51, %v580_v15  ;;  %v4370_v60 = vadd.f32 %v4359_v39, %v693_v63  ;;  %v4516_v15 = vld [vmem:[#allocation10 + $0x2a0] sm:$0xff]  ;;  %v4509_v63 = vld [vmem:[#allocation10 + $0x268] sm:$0xff]  ;;  %v4503_v39 = vld [vmem:[#allocation10 + $0x238] sm:$0xff] }
 0x7ac   :  { %v4290_v44 = vpop.f32.mrf.mxu0  ;;  %v4361_v3 = vpop.f32.mrf.mxu1  ;;  %v4501_v51 = vld [vmem:[#allocation10 + $0x228] sm:$0xff] }
 0x7ad   :  { %5896 = vtanh.f32 %v4368_v29  ;;  %v5696_v55 = vmul.f32 -1.442695, %v4370_v60  ;;  %v4369_v34 = vadd.f32 %v4290_v44, %v582_v26  ;;  %v4371_v1 = vadd.f32 %v4361_v3, %v695_v52  ;;  %v4508_v26 = vld [vmem:[#allocation10 + $0x260] sm:$0xff]  ;;  %v4502_v52 = vld [vmem:[#allocation10 + $0x230] sm:$0xff]  ;;  %v4493_v29 = vld [vmem:[#allocation10 + $0x1e8] sm:$0xff] }
 0x7ae   :  { %5898 = vrcp.f32 %v4387_v28  ;;  %v4510_v28 = vld [vmem:[#allocation10 + $0x270] sm:$0xff]  ;;  %v4495_v60 = vld [vmem:[#allocation10 + $0x1f8] sm:$0xff]  ;;  %v4492_v44 = vld [vmem:[#allocation10 + $0x1e0] sm:$0xff] }
 0x7af   :  { %5900 = vpow2.f32 %v5696_v55  ;;  %v5697_v14 = vmul.f32 -1.442695, %v4371_v1  ;;  %v4494_v3 = vld [vmem:[#allocation10 + $0x1f0] sm:$0xff]  ;;  %v4485_v55 = vld [vmem:[#allocation10 + $0x1a8] sm:$0xff]  ;;  %v4484_v1 = vld [vmem:[#allocation10 + $0x1a0] sm:$0xff] }
 0x7b0   :  { %5902 = vtanh.f32 %v4369_v34  ;;  %v4487_v34 = vld [vmem:[#allocation10 + $0x1b8] sm:$0xff] }
 0x7b1   :  { %5904 = vpow2.f32 %v5697_v14  ;;  %v4486_v14 = vld [vmem:[#allocation10 + $0x1b0] sm:$0xff] }
 0x7ba   :  { %v5897_v23 = vpop.eup %5896 }
 0x7bb   :  { %v5899_v24 = vpop.eup %5898  ;;  %v4412_v11 = vmul.f32 %v5897_v23, %v5891_v4  ;;  %v4477_v4 = vld [vmem:[#allocation10 + $0x168] sm:$0xff]  ;;  %v4478_v23 = vld [vmem:[#allocation10 + $0x170] sm:$0xff] }
 0x7bc   :  { %v5901_v31 = vpop.eup %5900  ;;  %v4411_v47 = vmul.f32 %v5899_v24, %v6548_v37  ;;  %v4556_v37 = vld [vmem:[#allocation10 + $0x3e0] sm:$0xff]  ;;  %v4469_v24 = vld [vmem:[#allocation10 + $0x128] sm:$0xff] }
 0x7bd   :  { %v5903_v43 = vpop.eup %5902  ;;  %v6571_v36 = vadd.f32 %v4412_v11, %v4410_v48  ;;  %v4404_v32 = vadd.f32 1.0, %v5901_v31  ;;  %v4471_v48 = vld [vmem:[#allocation10 + $0x138] sm:$0xff]  ;;  %v4468_v11 = vld [vmem:[#allocation10 + $0x120] sm:$0xff]  ;;  %v4470_v31 = vld [vmem:[#allocation10 + $0x130] sm:$0xff] }
 0x7be   :  { %v5905_v27 = vpop.eup %5904  ;;  %v4413_v9 = vmul.f32 %v5903_v43, %v5895_v8  ;;  %v4476_v8 = vld [vmem:[#allocation10 + $0x160] sm:$0xff]  ;;  %v4461_v43 = vld [vmem:[#allocation10 + $0xe8] sm:$0xff] }
 0x7bf   :  { %5906 = vtanh.f32 %v6571_v36  ;;  %v4405_v2 = vadd.f32 1.0, %v5905_v27  ;;  %v4460_v27 = vld [vmem:[#allocation10 + $0xe0] sm:$0xff] }
 0x7c0   :  { %5908 = vrcp.f32 %v4404_v32  ;;  %v6575_v56 = vadd.f32 %v4413_v9, %v4411_v47  ;;  %v4463_v32 = vld [vmem:[#allocation10 + $0xf8] sm:$0xff]  ;;  %v4462_v47 = vld [vmem:[#allocation10 + $0xf0] sm:$0xff]  ;;  %v4453_v9 = vld [vmem:[#allocation10 + $0xa8] sm:$0xff] }
 0x7c1   :  { %5910 = vrcp.f32 %v4405_v2  ;;  %v4455_v2 = vld [vmem:[#allocation10 + $0xb8] sm:$0xff] }
 0x7c2   :  { %5912 = vtanh.f32 %v6575_v56 }
 0x7cc   :  { %v5907_v58 = vpop.eup %5906 }
 0x7cd   :  { %v5909_v17 = vpop.eup %5908 }
 0x7ce   :  { %v5911_v22 = vpop.eup %5910  ;;  %v6578_v41 = vmul.f32 %v5909_v17, %v5907_v58  ;;  %v4452_v58 = vld [vmem:[#allocation10 + $0xa0] sm:$0xff]  ;;  %v4454_v17 = vld [vmem:[#allocation10 + $0xb0] sm:$0xff] }
 0x7cf   :  { %v5913_v13 = vpop.eup %5912 }
 0x7d0   :  { %v4419_v45 = vmul.f32 %v5913_v13, %v5911_v22  ;;  %4421 = vst [vmem:[#allocation13 + $0x50] sm:$0xff] %v6578_v41  ;;  %v4445_v22 = vld [vmem:[#allocation10 + $0x68] sm:$0xff]  ;;  %v4447_v13 = vld [vmem:[#allocation10 + $0x78] sm:$0xff] }
 0x7d2   :  { %4422 = vst [vmem:[#allocation13 + $0x58] sm:$0xff] %v4419_v45  ;;  %4752 = vmatprep.mubr.f32.mxu0 %v4419_v45  ;;  %4823 = vmatprep.mubr.f32.mxu1 %v4419_v45 }
 0x7d3   :  { %4753 = vmatmul.mubr.f32.vlgmr.msra.gmra.mxu0 %v6578_v41  ;;  %4824 = vmatmul.mubr.f32.vlgmr.msra.gmra.mxu1 %v6578_v41 }
 0x7d4   :  { %4831 = vmatpush1.msra.mxu0 %v4556_v37  ;;  %4902 = vmatpush1.msra.mxu1 %v4558_v21  ;;  %v4446_v37 = vld [vmem:[#allocation10 + $0x70] sm:$0xff]  ;;  %v4437_v21 = vld [vmem:[#allocation10 + $0x28] sm:$0xff] }
 0x7d5   :  { %4832 = vmatprep.subr.mxu0 %v4549_v42  ;;  %4894 = vmatprep.mubr.f32.mxu0 %v4419_v45  ;;  %v4439_v42 = vld [vmem:[#allocation10 + $0x38] sm:$0xff] }
 0x7d6   :  { %4903 = vmatprep.subr.mxu1 %v4551_v49  ;;  %4965 = vmatprep.mubr.f32.mxu1 %v4419_v45  ;;  %v4444_v45 = vld [vmem:[#allocation10 + $0x60] sm:$0xff] }
 0x7d7   :  { %4833 = vmatpush1.msra.mxu0 %v4548_v57  ;;  %4904 = vmatpush1.msra.mxu1 %v4550_v46  ;;  %v4436_v49 = vld [vmem:[#allocation10 + $0x20] sm:$0xff]  ;;  %v4438_v57 = vld [vmem:[#allocation10 + $0x30] sm:$0xff]  ;;  %v4685_v46 = vld [vmem:[#allocation10 + $0x7e8] sm:$0xff] }
 0x7d8   :  { %4834 = vmatprep.subr.mxu0 %v4541_v61  ;;  %4905 = vmatprep.subr.mxu1 %v4543_v62  ;;  %v4687_v61 = vld [vmem:[#allocation10 + $0x7f8] sm:$0xff]  ;;  %v4684_v62 = vld [vmem:[#allocation10 + $0x7e0] sm:$0xff] }
 0x7d9   :  { %4835 = vmatpush1.msra.mxu0 %v4540_v50  ;;  %4906 = vmatpush1.msra.mxu1 %v4542_v53  ;;  %v4686_v50 = vld [vmem:[#allocation10 + $0x7f0] sm:$0xff]  ;;  %v4677_v53 = vld [vmem:[#allocation10 + $0x7a8] sm:$0xff] }
 0x7da   :  { %4836 = vmatprep.subr.mxu0 %v4533_v54  ;;  %4907 = vmatprep.subr.mxu1 %v4535_v20  ;;  %v4679_v54 = vld [vmem:[#allocation10 + $0x7b8] sm:$0xff]  ;;  %v4676_v20 = vld [vmem:[#allocation10 + $0x7a0] sm:$0xff] }
 0x7db   :  { %4837 = vmatpush1.msra.mxu0 %v4532_v0  ;;  %4908 = vmatpush1.msra.mxu1 %v4534_v30  ;;  %v4678_v0 = vld [vmem:[#allocation10 + $0x7b0] sm:$0xff]  ;;  %v4669_v30 = vld [vmem:[#allocation10 + $0x768] sm:$0xff] }
 0x7dc   :  { %4838 = vmatprep.subr.mxu0 %v4525_v33  ;;  %4909 = vmatprep.subr.mxu1 %v4527_v35  ;;  %v4671_v33 = vld [vmem:[#allocation10 + $0x778] sm:$0xff]  ;;  %v4668_v35 = vld [vmem:[#allocation10 + $0x760] sm:$0xff] }
 0x7dd   :  { %4839 = vmatpush1.msra.mxu0 %v4524_v10  ;;  %4910 = vmatpush1.msra.mxu1 %v4526_v25  ;;  %v4670_v10 = vld [vmem:[#allocation10 + $0x770] sm:$0xff]  ;;  %v4661_v25 = vld [vmem:[#allocation10 + $0x728] sm:$0xff] }
 0x7de   :  { %4840 = vmatprep.subr.mxu0 %v4517_v12  ;;  %4911 = vmatprep.subr.mxu1 %v4519_v38  ;;  %v4663_v12 = vld [vmem:[#allocation10 + $0x738] sm:$0xff]  ;;  %v4660_v38 = vld [vmem:[#allocation10 + $0x720] sm:$0xff] }
 0x7df   :  { %4841 = vmatpush1.msra.mxu0 %v4516_v15  ;;  %4912 = vmatpush1.msra.mxu1 %v4518_v40  ;;  %v4662_v15 = vld [vmem:[#allocation10 + $0x730] sm:$0xff]  ;;  %v4653_v40 = vld [vmem:[#allocation10 + $0x6e8] sm:$0xff] }
 0x7e0   :  { %4842 = vmatprep.subr.mxu0 %v4509_v63  ;;  %4913 = vmatprep.subr.mxu1 %v4511_v5  ;;  %v4655_v63 = vld [vmem:[#allocation10 + $0x6f8] sm:$0xff]  ;;  %v4652_v5 = vld [vmem:[#allocation10 + $0x6e0] sm:$0xff] }
 0x7e1   :  { %4843 = vmatpush1.msra.mxu0 %v4508_v26  ;;  %4914 = vmatpush1.msra.mxu1 %v4510_v28  ;;  %v4654_v26 = vld [vmem:[#allocation10 + $0x6f0] sm:$0xff]  ;;  %v4645_v28 = vld [vmem:[#allocation10 + $0x6a8] sm:$0xff] }
 0x7e2   :  { %4844 = vmatprep.subr.mxu0 %v4501_v51  ;;  %4915 = vmatprep.subr.mxu1 %v4503_v39  ;;  %v4647_v51 = vld [vmem:[#allocation10 + $0x6b8] sm:$0xff]  ;;  %v4644_v39 = vld [vmem:[#allocation10 + $0x6a0] sm:$0xff] }
 0x7e3   :  { %4845 = vmatpush1.msra.mxu0 %v4500_v6  ;;  %4916 = vmatpush1.msra.mxu1 %v4502_v52  ;;  %v4646_v6 = vld [vmem:[#allocation10 + $0x6b0] sm:$0xff]  ;;  %v4637_v52 = vld [vmem:[#allocation10 + $0x668] sm:$0xff] }
 0x7e4   :  { %4846 = vmatprep.subr.mxu0 %v4493_v29  ;;  %4917 = vmatprep.subr.mxu1 %v4495_v60  ;;  %v4639_v29 = vld [vmem:[#allocation10 + $0x678] sm:$0xff]  ;;  %v4636_v60 = vld [vmem:[#allocation10 + $0x660] sm:$0xff] }
 0x7e5   :  { %4847 = vmatpush1.msra.mxu0 %v4492_v44  ;;  %4918 = vmatpush1.msra.mxu1 %v4494_v3  ;;  %v4638_v44 = vld [vmem:[#allocation10 + $0x670] sm:$0xff]  ;;  %v4629_v3 = vld [vmem:[#allocation10 + $0x628] sm:$0xff] }
 0x7e6   :  { %4848 = vmatprep.subr.mxu0 %v4485_v55  ;;  %4919 = vmatprep.subr.mxu1 %v4487_v34  ;;  %v4631_v55 = vld [vmem:[#allocation10 + $0x638] sm:$0xff]  ;;  %v4628_v34 = vld [vmem:[#allocation10 + $0x620] sm:$0xff] }
 0x7e7   :  { %4849 = vmatpush1.msra.mxu0 %v4484_v1  ;;  %4920 = vmatpush1.msra.mxu1 %v4486_v14  ;;  %v4630_v1 = vld [vmem:[#allocation10 + $0x630] sm:$0xff]  ;;  %v4621_v14 = vld [vmem:[#allocation10 + $0x5e8] sm:$0xff] }
 0x7e8   :  { %4850 = vmatprep.subr.mxu0 %v4477_v4  ;;  %4921 = vmatprep.subr.mxu1 %v4479_v7  ;;  %v4623_v4 = vld [vmem:[#allocation10 + $0x5f8] sm:$0xff]  ;;  %v4620_v7 = vld [vmem:[#allocation10 + $0x5e0] sm:$0xff] }
 0x7e9   :  { %4851 = vmatpush1.msra.mxu0 %v4476_v8  ;;  %4922 = vmatpush1.msra.mxu1 %v4478_v23  ;;  %v4622_v8 = vld [vmem:[#allocation10 + $0x5f0] sm:$0xff]  ;;  %v4613_v23 = vld [vmem:[#allocation10 + $0x5a8] sm:$0xff] }
 0x7ea   :  { %4852 = vmatprep.subr.mxu0 %v4469_v24  ;;  %4923 = vmatprep.subr.mxu1 %v4471_v48  ;;  %v4615_v24 = vld [vmem:[#allocation10 + $0x5b8] sm:$0xff]  ;;  %v4612_v48 = vld [vmem:[#allocation10 + $0x5a0] sm:$0xff] }
 0x7eb   :  { %4853 = vmatpush1.msra.mxu0 %v4468_v11  ;;  %4924 = vmatpush1.msra.mxu1 %v4470_v31  ;;  %v4614_v11 = vld [vmem:[#allocation10 + $0x5b0] sm:$0xff]  ;;  %v4605_v31 = vld [vmem:[#allocation10 + $0x568] sm:$0xff] }
 0x7ec   :  { %4854 = vmatprep.subr.mxu0 %v4461_v43  ;;  %4925 = vmatprep.subr.mxu1 %v4463_v32  ;;  %v4607_v43 = vld [vmem:[#allocation10 + $0x578] sm:$0xff]  ;;  %v4604_v32 = vld [vmem:[#allocation10 + $0x560] sm:$0xff] }
 0x7ed   :  { %4855 = vmatpush1.msra.mxu0 %v4460_v27  ;;  %4926 = vmatpush1.msra.mxu1 %v4462_v47  ;;  %v4606_v27 = vld [vmem:[#allocation10 + $0x570] sm:$0xff]  ;;  %v4597_v47 = vld [vmem:[#allocation10 + $0x528] sm:$0xff] }
 0x7ee   :  { %4856 = vmatprep.subr.mxu0 %v4453_v9  ;;  %4927 = vmatprep.subr.mxu1 %v4455_v2  ;;  %v4599_v9 = vld [vmem:[#allocation10 + $0x538] sm:$0xff]  ;;  %v4596_v2 = vld [vmem:[#allocation10 + $0x520] sm:$0xff] }
 0x7ef   :  { %4857 = vmatpush1.msra.mxu0 %v4452_v58  ;;  %4928 = vmatpush1.msra.mxu1 %v4454_v17  ;;  %v4598_v58 = vld [vmem:[#allocation10 + $0x530] sm:$0xff]  ;;  %v4589_v17 = vld [vmem:[#allocation10 + $0x4e8] sm:$0xff] }
 0x7f0   :  { %4858 = vmatprep.subr.mxu0 %v4445_v22  ;;  %4929 = vmatprep.subr.mxu1 %v4447_v13  ;;  %v4591_v22 = vld [vmem:[#allocation10 + $0x4f8] sm:$0xff]  ;;  %v4588_v13 = vld [vmem:[#allocation10 + $0x4e0] sm:$0xff] }
 0x7f1   :  { %4859 = vmatpush1.msra.mxu0 %v4444_v45  ;;  %4930 = vmatpush1.msra.mxu1 %v4446_v37  ;;  %v4590_v45 = vld [vmem:[#allocation10 + $0x4f0] sm:$0xff]  ;;  %v4581_v37 = vld [vmem:[#allocation10 + $0x4a8] sm:$0xff] }
 0x7f2   :  { %4860 = vmatprep.subr.mxu0 %v4437_v21  ;;  %4931 = vmatprep.subr.mxu1 %v4439_v42  ;;  %v4583_v21 = vld [vmem:[#allocation10 + $0x4b8] sm:$0xff]  ;;  %v4580_v42 = vld [vmem:[#allocation10 + $0x4a0] sm:$0xff] }
 0x7f3   :  { %4861 = vmatpush1.msra.mxu0 %v4436_v49  ;;  %4932 = vmatpush1.msra.mxu1 %v4438_v57  ;;  %v4582_v49 = vld [vmem:[#allocation10 + $0x4b0] sm:$0xff]  ;;  %v4573_v57 = vld [vmem:[#allocation10 + $0x468] sm:$0xff] }
 0x7f4   :  { %4862 = vmatprep.subr.mxu0 %v4685_v46  ;;  %4933 = vmatprep.subr.mxu1 %v4687_v61  ;;  %v4575_v46 = vld [vmem:[#allocation10 + $0x478] sm:$0xff]  ;;  %v4572_v61 = vld [vmem:[#allocation10 + $0x460] sm:$0xff] }
 0x7f5   :  { %4863 = vmatpush2.msra.mxu0 %v4684_v62  ;;  %4934 = vmatpush2.msra.mxu1 %v4686_v50  ;;  %v4574_v62 = vld [vmem:[#allocation10 + $0x470] sm:$0xff]  ;;  %v4565_v50 = vld [vmem:[#allocation10 + $0x428] sm:$0xff] }
 0x7f6   :  { %4864 = vmatprep.subr.mxu0 %v4677_v53  ;;  %4935 = vmatprep.subr.mxu1 %v4679_v54  ;;  %v4567_v53 = vld [vmem:[#allocation10 + $0x438] sm:$0xff]  ;;  %v4564_v54 = vld [vmem:[#allocation10 + $0x420] sm:$0xff] }
 0x7f7   :  { %4865 = vmatpush2.msra.mxu0 %v4676_v20  ;;  %4936 = vmatpush2.msra.mxu1 %v4678_v0  ;;  %v4566_v20 = vld [vmem:[#allocation10 + $0x430] sm:$0xff]  ;;  %v5161_v0 = vld [vmem:[#allocation10 + $0x3c8] sm:$0xff] }
 0x7f8   :  { %4866 = vmatprep.subr.mxu0 %v4669_v30  ;;  %4937 = vmatprep.subr.mxu1 %v4671_v33  ;;  %v5163_v30 = vld [vmem:[#allocation10 + $0x3d8] sm:$0xff]  ;;  %v5160_v33 = vld [vmem:[#allocation10 + $0x3c0] sm:$0xff] }
 0x7f9   :  { %4867 = vmatpush2.msra.mxu0 %v4668_v35  ;;  %4938 = vmatpush2.msra.mxu1 %v4670_v10  ;;  %v5162_v35 = vld [vmem:[#allocation10 + $0x3d0] sm:$0xff]  ;;  %v5153_v10 = vld [vmem:[#allocation10 + $0x388] sm:$0xff] }
 0x7fa   :  { %4868 = vmatprep.subr.mxu0 %v4661_v25  ;;  %4939 = vmatprep.subr.mxu1 %v4663_v12  ;;  %v5155_v25 = vld [vmem:[#allocation10 + $0x398] sm:$0xff]  ;;  %v5152_v12 = vld [vmem:[#allocation10 + $0x380] sm:$0xff] }
 0x7fb   :  { %4869 = vmatpush2.msra.mxu0 %v4660_v38  ;;  %4940 = vmatpush2.msra.mxu1 %v4662_v15  ;;  %v5154_v38 = vld [vmem:[#allocation10 + $0x390] sm:$0xff]  ;;  %v5145_v15 = vld [vmem:[#allocation10 + $0x348] sm:$0xff] }
 0x7fc   :  { %4870 = vmatprep.subr.mxu0 %v4653_v40  ;;  %4941 = vmatprep.subr.mxu1 %v4655_v63  ;;  %v5147_v40 = vld [vmem:[#allocation10 + $0x358] sm:$0xff]  ;;  %v5144_v63 = vld [vmem:[#allocation10 + $0x340] sm:$0xff] }
 0x7fd   :  { %4871 = vmatpush2.msra.mxu0 %v4652_v5  ;;  %4942 = vmatpush2.msra.mxu1 %v4654_v26  ;;  %v5146_v5 = vld [vmem:[#allocation10 + $0x350] sm:$0xff]  ;;  %v5139_v26 = vld [vmem:[#allocation10 + $0x318] sm:$0xff] }
 0x7fe   :  { %4872 = vmatprep.subr.mxu0 %v4645_v28  ;;  %4943 = vmatprep.subr.mxu1 %v4647_v51  ;;  %v5136_v28 = vld [vmem:[#allocation10 + $0x300] sm:$0xff]  ;;  %v5138_v51 = vld [vmem:[#allocation10 + $0x310] sm:$0xff] }
 0x7ff   :  { %4873 = vmatpush2.msra.mxu0 %v4644_v39  ;;  %4944 = vmatpush2.msra.mxu1 %v4646_v6  ;;  %v5129_v39 = vld [vmem:[#allocation10 + $0x2c8] sm:$0xff]  ;;  %v5131_v6 = vld [vmem:[#allocation10 + $0x2d8] sm:$0xff] }
 0x800   :  { %4874 = vmatprep.subr.mxu0 %v4637_v52  ;;  %4945 = vmatprep.subr.mxu1 %v4639_v29  ;;  %v5128_v52 = vld [vmem:[#allocation10 + $0x2c0] sm:$0xff]  ;;  %v5130_v29 = vld [vmem:[#allocation10 + $0x2d0] sm:$0xff] }
 0x801   :  { %4875 = vmatpush2.msra.mxu0 %v4636_v60  ;;  %4946 = vmatpush2.msra.mxu1 %v4638_v44  ;;  %v5121_v60 = vld [vmem:[#allocation10 + $0x288] sm:$0xff]  ;;  %v5123_v44 = vld [vmem:[#allocation10 + $0x298] sm:$0xff] }
 0x802   :  { %4876 = vmatprep.subr.mxu0 %v4629_v3  ;;  %4947 = vmatprep.subr.mxu1 %v4631_v55  ;;  %v5120_v3 = vld [vmem:[#allocation10 + $0x280] sm:$0xff]  ;;  %v5122_v55 = vld [vmem:[#allocation10 + $0x290] sm:$0xff] }
 0x803   :  { %4877 = vmatpush2.msra.mxu0 %v4628_v34  ;;  %4948 = vmatpush2.msra.mxu1 %v4630_v1  ;;  %v5113_v34 = vld [vmem:[#allocation10 + $0x248] sm:$0xff]  ;;  %v5115_v1 = vld [vmem:[#allocation10 + $0x258] sm:$0xff] }
 0x804   :  { %4878 = vmatprep.subr.mxu0 %v4621_v14  ;;  %4949 = vmatprep.subr.mxu1 %v4623_v4  ;;  %v5112_v14 = vld [vmem:[#allocation10 + $0x240] sm:$0xff]  ;;  %v5114_v4 = vld [vmem:[#allocation10 + $0x250] sm:$0xff] }
 0x805   :  { %4879 = vmatpush2.msra.mxu0 %v4620_v7  ;;  %4950 = vmatpush2.msra.mxu1 %v4622_v8  ;;  %v5105_v7 = vld [vmem:[#allocation10 + $0x208] sm:$0xff]  ;;  %v5107_v8 = vld [vmem:[#allocation10 + $0x218] sm:$0xff] }
 0x806   :  { %4880 = vmatprep.subr.mxu0 %v4613_v23  ;;  %4951 = vmatprep.subr.mxu1 %v4615_v24  ;;  %v5104_v23 = vld [vmem:[#allocation10 + $0x200] sm:$0xff]  ;;  %v5106_v24 = vld [vmem:[#allocation10 + $0x210] sm:$0xff] }
 0x807   :  { %4881 = vmatpush2.msra.mxu0 %v4612_v48  ;;  %4952 = vmatpush2.msra.mxu1 %v4614_v11  ;;  %v5097_v48 = vld [vmem:[#allocation10 + $0x1c8] sm:$0xff]  ;;  %v5099_v11 = vld [vmem:[#allocation10 + $0x1d8] sm:$0xff] }
 0x808   :  { %4882 = vmatprep.subr.mxu0 %v4605_v31  ;;  %4953 = vmatprep.subr.mxu1 %v4607_v43  ;;  %v5096_v31 = vld [vmem:[#allocation10 + $0x1c0] sm:$0xff]  ;;  %v5098_v43 = vld [vmem:[#allocation10 + $0x1d0] sm:$0xff] }
 0x809   :  { %4883 = vmatpush2.msra.mxu0 %v4604_v32  ;;  %4954 = vmatpush2.msra.mxu1 %v4606_v27  ;;  %v5089_v32 = vld [vmem:[#allocation10 + $0x188] sm:$0xff]  ;;  %v5091_v27 = vld [vmem:[#allocation10 + $0x198] sm:$0xff] }
 0x80a   :  { %4884 = vmatprep.subr.mxu0 %v4597_v47  ;;  %4955 = vmatprep.subr.mxu1 %v4599_v9  ;;  %v5088_v47 = vld [vmem:[#allocation10 + $0x180] sm:$0xff]  ;;  %v5090_v9 = vld [vmem:[#allocation10 + $0x190] sm:$0xff] }
 0x80b   :  { %4885 = vmatpush2.msra.mxu0 %v4596_v2  ;;  %4956 = vmatpush2.msra.mxu1 %v4598_v58  ;;  %v5081_v2 = vld [vmem:[#allocation10 + $0x148] sm:$0xff]  ;;  %v5083_v58 = vld [vmem:[#allocation10 + $0x158] sm:$0xff] }
 0x80c   :  { %4886 = vmatprep.subr.mxu0 %v4589_v17  ;;  %4957 = vmatprep.subr.mxu1 %v4591_v22  ;;  %v5080_v17 = vld [vmem:[#allocation10 + $0x140] sm:$0xff]  ;;  %v5082_v22 = vld [vmem:[#allocation10 + $0x150] sm:$0xff] }
 0x80d   :  { %4887 = vmatpush2.msra.mxu0 %v4588_v13  ;;  %4958 = vmatpush2.msra.mxu1 %v4590_v45  ;;  %v5073_v13 = vld [vmem:[#allocation10 + $0x108] sm:$0xff]  ;;  %v5075_v45 = vld [vmem:[#allocation10 + $0x118] sm:$0xff] }
 0x80e   :  { %4888 = vmatprep.subr.mxu0 %v4581_v37  ;;  %4959 = vmatprep.subr.mxu1 %v4583_v21  ;;  %v5072_v37 = vld [vmem:[#allocation10 + $0x100] sm:$0xff]  ;;  %v5074_v21 = vld [vmem:[#allocation10 + $0x110] sm:$0xff] }
 0x80f   :  { %4889 = vmatpush2.msra.mxu0 %v4580_v42  ;;  %4960 = vmatpush2.msra.mxu1 %v4582_v49  ;;  %v5065_v42 = vld [vmem:[#allocation10 + $0xc8] sm:$0xff]  ;;  %v5067_v49 = vld [vmem:[#allocation10 + $0xd8] sm:$0xff] }
 0x810   :  { %4890 = vmatprep.subr.mxu0 %v4573_v57  ;;  %4961 = vmatprep.subr.mxu1 %v4575_v46  ;;  %v5064_v57 = vld [vmem:[#allocation10 + $0xc0] sm:$0xff]  ;;  %v5066_v46 = vld [vmem:[#allocation10 + $0xd0] sm:$0xff] }
 0x811   :  { %4891 = vmatpush2.msra.mxu0 %v4572_v61  ;;  %4962 = vmatpush2.msra.mxu1 %v4574_v62  ;;  %v5057_v61 = vld [vmem:[#allocation10 + $0x88] sm:$0xff]  ;;  %v5059_v62 = vld [vmem:[#allocation10 + $0x98] sm:$0xff] }
 0x812   :  { %4892 = vmatprep.subr.mxu0 %v4565_v50  ;;  %4963 = vmatprep.subr.mxu1 %v4567_v53  ;;  %v5056_v50 = vld [vmem:[#allocation10 + $0x80] sm:$0xff]  ;;  %v5058_v53 = vld [vmem:[#allocation10 + $0x90] sm:$0xff] }
 0x813   :  { %4893 = vmatpush2.msra.mxu0 %v4564_v54  ;;  %4964 = vmatpush2.msra.mxu1 %v4566_v20  ;;  %v5049_v54 = vld [vmem:[#allocation10 + $0x48] sm:$0xff]  ;;  %v5051_v20 = vld [vmem:[#allocation10 + $0x58] sm:$0xff] }
 0x814   :  { %4895 = vmatmul.mubr.f32.vlgmr.msra.gmra.mxu0 %v6578_v41  ;;  %4966 = vmatmul.mubr.f32.vlgmr.msra.gmra.mxu1 %v6578_v41  ;;  %v5137_v41 = vld [vmem:[#allocation10 + $0x308] sm:$0xff] }
 0x815   :  { %5296 = vmatprep.subr.mxu0 %v5161_v0  ;;  %5367 = vmatprep.subr.mxu1 %v5163_v30  ;;  %v5048_v0 = vld [vmem:[#allocation10 + $0x40] sm:$0xff]  ;;  %v5050_v30 = vld [vmem:[#allocation10 + $0x50] sm:$0xff] }
 0x816   :  { %5297 = vmatpush1.msra.mxu0 %v5160_v33  ;;  %5368 = vmatpush1.msra.mxu1 %v5162_v35  ;;  %v5041_v33 = vld [vmem:[#allocation10 + $0x8] sm:$0xff]  ;;  %v5043_v35 = vld [vmem:[#allocation10 + $0x18] sm:$0xff] }
 0x817   :  { %5298 = vmatprep.subr.mxu0 %v5153_v10  ;;  %5369 = vmatprep.subr.mxu1 %v5155_v25  ;;  %v5040_v10 = vld [vmem:[#allocation10] sm:$0xff]  ;;  %v5042_v25 = vld [vmem:[#allocation10 + $0x10] sm:$0xff] }
 0x818   :  { %5299 = vmatpush1.msra.mxu0 %v5152_v12  ;;  %5370 = vmatpush1.msra.mxu1 %v5154_v38  ;;  %v5289_v12 = vld [vmem:[#allocation10 + $0x7c8] sm:$0xff]  ;;  %v5291_v38 = vld [vmem:[#allocation10 + $0x7d8] sm:$0xff] }
 0x819   :  { %5300 = vmatprep.subr.mxu0 %v5145_v15  ;;  %5371 = vmatprep.subr.mxu1 %v5147_v40  ;;  %v5288_v15 = vld [vmem:[#allocation10 + $0x7c0] sm:$0xff]  ;;  %v5290_v40 = vld [vmem:[#allocation10 + $0x7d0] sm:$0xff] }
 0x81a   :  { %5301 = vmatpush1.msra.mxu0 %v5144_v63  ;;  %5372 = vmatpush1.msra.mxu1 %v5146_v5  ;;  %v5281_v63 = vld [vmem:[#allocation10 + $0x788] sm:$0xff]  ;;  %v5283_v5 = vld [vmem:[#allocation10 + $0x798] sm:$0xff] }
 0x81b   :  { %5302 = vmatprep.subr.mxu0 %v5137_v41  ;;  %5373 = vmatprep.subr.mxu1 %v5139_v26  ;;  %v5280_v41 = vld [vmem:[#allocation10 + $0x780] sm:$0xff]  ;;  %v5282_v26 = vld [vmem:[#allocation10 + $0x790] sm:$0xff] }
 0x81c   :  { %5303 = vmatpush1.msra.mxu0 %v5136_v28  ;;  %5374 = vmatpush1.msra.mxu1 %v5138_v51  ;;  %v5273_v28 = vld [vmem:[#allocation10 + $0x748] sm:$0xff]  ;;  %v5275_v51 = vld [vmem:[#allocation10 + $0x758] sm:$0xff] }
 0x81d   :  { %5304 = vmatprep.subr.mxu0 %v5129_v39  ;;  %5375 = vmatprep.subr.mxu1 %v5131_v6  ;;  %v5272_v39 = vld [vmem:[#allocation10 + $0x740] sm:$0xff]  ;;  %v5274_v6 = vld [vmem:[#allocation10 + $0x750] sm:$0xff] }
 0x81e   :  { %5305 = vmatpush1.msra.mxu0 %v5128_v52  ;;  %5376 = vmatpush1.msra.mxu1 %v5130_v29  ;;  %v5265_v52 = vld [vmem:[#allocation10 + $0x708] sm:$0xff]  ;;  %v5267_v29 = vld [vmem:[#allocation10 + $0x718] sm:$0xff] }
 0x81f   :  { %5306 = vmatprep.subr.mxu0 %v5121_v60  ;;  %5377 = vmatprep.subr.mxu1 %v5123_v44  ;;  %v5264_v60 = vld [vmem:[#allocation10 + $0x700] sm:$0xff]  ;;  %v5266_v44 = vld [vmem:[#allocation10 + $0x710] sm:$0xff] }
 0x820   :  { %5307 = vmatpush1.msra.mxu0 %v5120_v3  ;;  %5378 = vmatpush1.msra.mxu1 %v5122_v55  ;;  %v5257_v3 = vld [vmem:[#allocation10 + $0x6c8] sm:$0xff]  ;;  %v5259_v55 = vld [vmem:[#allocation10 + $0x6d8] sm:$0xff] }
 0x821   :  { %5308 = vmatprep.subr.mxu0 %v5113_v34  ;;  %5379 = vmatprep.subr.mxu1 %v5115_v1  ;;  %v5256_v34 = vld [vmem:[#allocation10 + $0x6c0] sm:$0xff]  ;;  %v5258_v1 = vld [vmem:[#allocation10 + $0x6d0] sm:$0xff] }
 0x822   :  { %5309 = vmatpush1.msra.mxu0 %v5112_v14  ;;  %5380 = vmatpush1.msra.mxu1 %v5114_v4  ;;  %v5249_v14 = vld [vmem:[#allocation10 + $0x688] sm:$0xff]  ;;  %v5251_v4 = vld [vmem:[#allocation10 + $0x698] sm:$0xff] }
 0x823   :  { %5310 = vmatprep.subr.mxu0 %v5105_v7  ;;  %5381 = vmatprep.subr.mxu1 %v5107_v8  ;;  %v5248_v7 = vld [vmem:[#allocation10 + $0x680] sm:$0xff]  ;;  %v5250_v8 = vld [vmem:[#allocation10 + $0x690] sm:$0xff] }
 0x824   :  { %5311 = vmatpush1.msra.mxu0 %v5104_v23  ;;  %5382 = vmatpush1.msra.mxu1 %v5106_v24  ;;  %v5241_v23 = vld [vmem:[#allocation10 + $0x648] sm:$0xff]  ;;  %v5243_v24 = vld [vmem:[#allocation10 + $0x658] sm:$0xff] }
 0x825   :  { %5312 = vmatprep.subr.mxu0 %v5097_v48  ;;  %5383 = vmatprep.subr.mxu1 %v5099_v11  ;;  %v5240_v48 = vld [vmem:[#allocation10 + $0x640] sm:$0xff]  ;;  %v5242_v11 = vld [vmem:[#allocation10 + $0x650] sm:$0xff] }
 0x826   :  { %5313 = vmatpush1.msra.mxu0 %v5096_v31  ;;  %5384 = vmatpush1.msra.mxu1 %v5098_v43  ;;  %v5233_v31 = vld [vmem:[#allocation10 + $0x608] sm:$0xff]  ;;  %v5235_v43 = vld [vmem:[#allocation10 + $0x618] sm:$0xff] }
 0x827   :  { %5314 = vmatprep.subr.mxu0 %v5089_v32  ;;  %5385 = vmatprep.subr.mxu1 %v5091_v27  ;;  %v5232_v32 = vld [vmem:[#allocation10 + $0x600] sm:$0xff]  ;;  %v5234_v27 = vld [vmem:[#allocation10 + $0x610] sm:$0xff] }
 0x828   :  { %5315 = vmatpush1.msra.mxu0 %v5088_v47  ;;  %5386 = vmatpush1.msra.mxu1 %v5090_v9  ;;  %v5225_v47 = vld [vmem:[#allocation10 + $0x5c8] sm:$0xff]  ;;  %v5227_v9 = vld [vmem:[#allocation10 + $0x5d8] sm:$0xff] }
 0x829   :  { %5316 = vmatprep.subr.mxu0 %v5081_v2  ;;  %5387 = vmatprep.subr.mxu1 %v5083_v58  ;;  %v5224_v2 = vld [vmem:[#allocation10 + $0x5c0] sm:$0xff]  ;;  %v5226_v58 = vld [vmem:[#allocation10 + $0x5d0] sm:$0xff] }
 0x82a   :  { %5317 = vmatpush1.msra.mxu0 %v5080_v17  ;;  %5388 = vmatpush1.msra.mxu1 %v5082_v22  ;;  %v5217_v17 = vld [vmem:[#allocation10 + $0x588] sm:$0xff]  ;;  %v5219_v22 = vld [vmem:[#allocation10 + $0x598] sm:$0xff] }
 0x82b   :  { %5318 = vmatprep.subr.mxu0 %v5073_v13  ;;  %5389 = vmatprep.subr.mxu1 %v5075_v45  ;;  %v5216_v13 = vld [vmem:[#allocation10 + $0x580] sm:$0xff]  ;;  %v5218_v45 = vld [vmem:[#allocation10 + $0x590] sm:$0xff] }
 0x82c   :  { %5319 = vmatpush1.msra.mxu0 %v5072_v37  ;;  %5390 = vmatpush1.msra.mxu1 %v5074_v21  ;;  %v5209_v37 = vld [vmem:[#allocation10 + $0x548] sm:$0xff]  ;;  %v5211_v21 = vld [vmem:[#allocation10 + $0x558] sm:$0xff] }
 0x82d   :  { %5320 = vmatprep.subr.mxu0 %v5065_v42  ;;  %5391 = vmatprep.subr.mxu1 %v5067_v49  ;;  %v5208_v42 = vld [vmem:[#allocation10 + $0x540] sm:$0xff]  ;;  %v5210_v49 = vld [vmem:[#allocation10 + $0x550] sm:$0xff] }
 0x82e   :  { %5321 = vmatpush1.msra.mxu0 %v5064_v57  ;;  %5392 = vmatpush1.msra.mxu1 %v5066_v46  ;;  %v5201_v57 = vld [vmem:[#allocation10 + $0x508] sm:$0xff]  ;;  %v5203_v46 = vld [vmem:[#allocation10 + $0x518] sm:$0xff] }
 0x82f   :  { %5322 = vmatprep.subr.mxu0 %v5057_v61  ;;  %5393 = vmatprep.subr.mxu1 %v5059_v62  ;;  %v5200_v61 = vld [vmem:[#allocation10 + $0x500] sm:$0xff]  ;;  %v5202_v62 = vld [vmem:[#allocation10 + $0x510] sm:$0xff] }
 0x830   :  { %5323 = vmatpush1.msra.mxu0 %v5056_v50  ;;  %5394 = vmatpush1.msra.mxu1 %v5058_v53  ;;  %v5193_v50 = vld [vmem:[#allocation10 + $0x4c8] sm:$0xff]  ;;  %v5195_v53 = vld [vmem:[#allocation10 + $0x4d8] sm:$0xff] }
 0x831   :  { %5324 = vmatprep.subr.mxu0 %v5049_v54  ;;  %5395 = vmatprep.subr.mxu1 %v5051_v20  ;;  %v5192_v54 = vld [vmem:[#allocation10 + $0x4c0] sm:$0xff]  ;;  %v5194_v20 = vld [vmem:[#allocation10 + $0x4d0] sm:$0xff] }
 0x832   :  { %5325 = vmatpush1.msra.mxu0 %v5048_v0  ;;  %5396 = vmatpush1.msra.mxu1 %v5050_v30  ;;  %v5185_v0 = vld [vmem:[#allocation10 + $0x488] sm:$0xff]  ;;  %v5187_v30 = vld [vmem:[#allocation10 + $0x498] sm:$0xff] }
 0x833   :  { %5326 = vmatprep.subr.mxu0 %v5041_v33  ;;  %5397 = vmatprep.subr.mxu1 %v5043_v35  ;;  %v5184_v33 = vld [vmem:[#allocation10 + $0x480] sm:$0xff]  ;;  %v5186_v35 = vld [vmem:[#allocation10 + $0x490] sm:$0xff] }
 0x834   :  { %5327 = vmatpush1.msra.mxu0 %v5040_v10  ;;  %5398 = vmatpush1.msra.mxu1 %v5042_v25  ;;  %v5177_v10 = vld [vmem:[#allocation10 + $0x448] sm:$0xff]  ;;  %v5179_v25 = vld [vmem:[#allocation10 + $0x458] sm:$0xff] }
 0x835   :  { %5328 = vmatprep.subr.mxu0 %v5289_v12  ;;  %5399 = vmatprep.subr.mxu1 %v5291_v38  ;;  %v5176_v12 = vld [vmem:[#allocation10 + $0x440] sm:$0xff]  ;;  %v5178_v38 = vld [vmem:[#allocation10 + $0x450] sm:$0xff] }
 0x836   :  { %5329 = vmatpush2.msra.mxu0 %v5288_v15  ;;  %5400 = vmatpush2.msra.mxu1 %v5290_v40  ;;  %v5169_v15 = vld [vmem:[#allocation10 + $0x408] sm:$0xff]  ;;  %v5171_v40 = vld [vmem:[#allocation10 + $0x418] sm:$0xff] }
 0x837   :  { %5330 = vmatprep.subr.mxu0 %v5281_v63  ;;  %5401 = vmatprep.subr.mxu1 %v5283_v5  ;;  %v5168_v63 = vld [vmem:[#allocation10 + $0x400] sm:$0xff]  ;;  %v5170_v5 = vld [vmem:[#allocation10 + $0x410] sm:$0xff] }
 0x838   :  { %5331 = vmatpush2.msra.mxu0 %v5280_v41  ;;  %5402 = vmatpush2.msra.mxu1 %v5282_v26  ;;  %v5165_v41 = vld [vmem:[#allocation10 + $0x3e8] sm:$0xff]  ;;  %v5167_v26 = vld [vmem:[#allocation10 + $0x3f8] sm:$0xff] }
 0x839   :  { %5332 = vmatprep.subr.mxu0 %v5273_v28  ;;  %5403 = vmatprep.subr.mxu1 %v5275_v51 }
 0x83a   :  { %5333 = vmatpush2.msra.mxu0 %v5272_v39  ;;  %5404 = vmatpush2.msra.mxu1 %v5274_v6  ;;  %v6660_v6 = vld [vmem:[#allocation19_spill] sm:$0xff] }
 0x83b   :  { %5334 = vmatprep.subr.mxu0 %v5265_v52  ;;  %5405 = vmatprep.subr.mxu1 %v5267_v29  ;;  %v6661_v29 = vld [vmem:[#allocation20_spill] sm:$0xff] }
 0x83c   :  { %5335 = vmatpush2.msra.mxu0 %v5264_v60  ;;  %5406 = vmatpush2.msra.mxu1 %v5266_v44 }
 0x83d   :  { %5336 = vmatprep.subr.mxu0 %v5257_v3  ;;  %5407 = vmatprep.subr.mxu1 %v5259_v55  ;;  %v6662_v3 = vld [vmem:[#allocation21_spill] sm:$0xff] }
 0x83e   :  { %5337 = vmatpush2.msra.mxu0 %v5256_v34  ;;  %5408 = vmatpush2.msra.mxu1 %v5258_v1  ;;  %v6663_v1 = vld [vmem:[#allocation22_spill] sm:$0xff] }
 0x83f   :  { %5338 = vmatprep.subr.mxu0 %v5249_v14  ;;  %5409 = vmatprep.subr.mxu1 %v5251_v4 }
 0x840   :  { %5339 = vmatpush2.msra.mxu0 %v5248_v7  ;;  %5410 = vmatpush2.msra.mxu1 %v5250_v8 }
 0x841   :  { %5340 = vmatprep.subr.mxu0 %v5241_v23  ;;  %5411 = vmatprep.subr.mxu1 %v5243_v24 }
 0x842   :  { %5341 = vmatpush2.msra.mxu0 %v5240_v48  ;;  %5412 = vmatpush2.msra.mxu1 %v5242_v11 }
 0x843   :  { %5342 = vmatprep.subr.mxu0 %v5233_v31  ;;  %5413 = vmatprep.subr.mxu1 %v5235_v43 }
 0x844   :  { %5343 = vmatpush2.msra.mxu0 %v5232_v32  ;;  %5414 = vmatpush2.msra.mxu1 %v5234_v27  ;;  %v6664_v27 = vld [vmem:[#allocation31_spill] sm:$0xff] }
 0x845   :  { %5344 = vmatprep.subr.mxu0 %v5225_v47  ;;  %5415 = vmatprep.subr.mxu1 %v5227_v9  ;;  %v586_v47 = vadd.f32 %v6664_v27, %v6418_v18  ;;  %v6665_v9 = vld [vmem:[#allocation32_spill] sm:$0xff] }
 0x846   :  { %5345 = vmatpush2.msra.mxu0 %v5224_v2  ;;  %5416 = vmatpush2.msra.mxu1 %v5226_v58  ;;  %v699_v2 = vadd.f32 %v6665_v9, %v6421_v19  ;;  %v6666_v58 = vld [vmem:[#allocation33_spill] sm:$0xff]  ;;  %v5127_v27 = vld [vmem:[#allocation10 + $0x2b8] sm:$0xff]  ;;  %v5126_v9 = vld [vmem:[#allocation10 + $0x2b0] sm:$0xff] }
 0x847   :  { %5346 = vmatprep.subr.mxu0 %v5217_v17  ;;  %5417 = vmatprep.subr.mxu1 %v5219_v22  ;;  %v588_v17 = vadd.f32 %v6666_v58, %v6424_v16  ;;  %v5119_v58 = vld [vmem:[#allocation10 + $0x278] sm:$0xff] }
 0x848   :  { %5347 = vmatpush2.msra.mxu0 %v5216_v13  ;;  %5418 = vmatpush2.msra.mxu1 %v5218_v45 }
 0x849   :  { %5348 = vmatprep.subr.mxu0 %v5209_v37  ;;  %5419 = vmatprep.subr.mxu1 %v5211_v21  ;;  %v6667_v37 = vld [vmem:[#allocation34_spill] sm:$0xff] }
 0x84a   :  { %5349 = vmatpush2.msra.mxu0 %v5208_v42  ;;  %5420 = vmatpush2.msra.mxu1 %v5210_v49  ;;  %v701_v21 = vadd.f32 %v6667_v37, %v6427_v59  ;;  %v5108_v37 = vld [vmem:[#allocation10 + $0x220] sm:$0xff] }
 0x84b   :  { %5350 = vmatprep.subr.mxu0 %v5201_v57  ;;  %5421 = vmatprep.subr.mxu1 %v5203_v46 }
 0x84c   :  { %5351 = vmatpush2.msra.mxu0 %v5200_v61  ;;  %5422 = vmatpush2.msra.mxu1 %v5202_v62 }
 0x84d   :  { %5352 = vmatprep.subr.mxu0 %v5193_v50  ;;  %5423 = vmatprep.subr.mxu1 %v5195_v53 }
 0x84e   :  { %5353 = vmatpush2.msra.mxu0 %v5192_v54  ;;  %5424 = vmatpush2.msra.mxu1 %v5194_v20 }
 0x84f   :  { %5354 = vmatprep.subr.mxu0 %v5185_v0  ;;  %5425 = vmatprep.subr.mxu1 %v5187_v30 }
 0x850   :  { %5355 = vmatpush2.msra.mxu0 %v5184_v33  ;;  %5426 = vmatpush2.msra.mxu1 %v5186_v35 }
 0x851   :  { %5356 = vmatprep.subr.mxu0 %v5177_v10  ;;  %5427 = vmatprep.subr.mxu1 %v5179_v25 }
 0x852   :  { %5357 = vmatpush2.msra.mxu0 %v5176_v12  ;;  %5428 = vmatpush2.msra.mxu1 %v5178_v38 }
 0x853   :  { %5358 = vmatprep.subr.mxu0 %v5169_v15  ;;  %5429 = vmatprep.subr.mxu1 %v5171_v40 }
 0x854   :  { %5359 = vmatpush2.msra.mxu0 %v5168_v63  ;;  %5430 = vmatpush2.msra.mxu1 %v5170_v5 }
 0x855   :  { %5438 = vmatprep.subr.mxu0 %v5165_v41  ;;  %5509 = vmatprep.subr.mxu1 %v5167_v26 }
 0x893   :  { %v4754_v28 = vpop.f32.mrf.mxu0  ;;  %v4825_v51 = vpop.f32.mrf.mxu1 }
 0x894   :  { %v4972_v52 = vadd.f32 %v4754_v28, %v6660_v6  ;;  %v4974_v60 = vadd.f32 %v4825_v51, %v6661_v29  ;;  %v5166_v29 = vld [vmem:[#allocation10 + $0x3f0] sm:$0xff] }
 0x895   :  { %v4756_v39 = vpop.f32.mrf.mxu0  ;;  %v4827_v44 = vpop.f32.mrf.mxu1 }
 0x896   :  { %v4973_v55 = vadd.f32 %v4756_v39, %v6662_v3  ;;  %v5698_v34 = vmul.f32 -1.442695, %v4972_v52  ;;  %v4975_v14 = vadd.f32 %v4827_v44, %v6663_v1  ;;  %v5700_v4 = vmul.f32 -1.442695, %v4974_v60  ;;  %v5157_v60 = vld [vmem:[#allocation10 + $0x3a8] sm:$0xff]  ;;  %v5159_v44 = vld [vmem:[#allocation10 + $0x3b8] sm:$0xff] }
 0x897   :  { %v5156_v3 = vld [vmem:[#allocation10 + $0x3a0] sm:$0xff]  ;;  %v5151_v1 = vld [vmem:[#allocation10 + $0x378] sm:$0xff] }
 0x898   :  { %v5699_v7 = vmul.f32 -1.442695, %v4973_v55  ;;  %5914 = vpow2.f32 %v5698_v34  ;;  %v5701_v8 = vmul.f32 -1.442695, %v4975_v14  ;;  %v5158_v55 = vld [vmem:[#allocation10 + $0x3b0] sm:$0xff]  ;;  %v5149_v34 = vld [vmem:[#allocation10 + $0x368] sm:$0xff] }
 0x899   :  { %5916 = vpow2.f32 %v5700_v4  ;;  %v5148_v14 = vld [vmem:[#allocation10 + $0x360] sm:$0xff]  ;;  %v5150_v4 = vld [vmem:[#allocation10 + $0x370] sm:$0xff] }
 0x89a   :  { %5918 = vpow2.f32 %v5699_v7  ;;  %v5141_v7 = vld [vmem:[#allocation10 + $0x328] sm:$0xff] }
 0x89b   :  { %5920 = vpow2.f32 %v5701_v8  ;;  %v5143_v8 = vld [vmem:[#allocation10 + $0x338] sm:$0xff] }
 0x8a5   :  { %v5915_v23 = vpop.eup %5914 }
 0x8a6   :  { %v5917_v24 = vpop.eup %5916  ;;  %v4992_v11 = vadd.f32 1.0, %v5915_v23  ;;  %v5140_v23 = vld [vmem:[#allocation10 + $0x320] sm:$0xff] }
 0x8a7   :  { %v5919_v48 = vpop.eup %5918  ;;  %v4994_v43 = vadd.f32 1.0, %v5917_v24  ;;  %v5142_v24 = vld [vmem:[#allocation10 + $0x330] sm:$0xff] }
 0x8a8   :  { %v5921_v31 = vpop.eup %5920  ;;  %v4993_v32 = vadd.f32 1.0, %v5919_v48  ;;  %5922 = vrcp.f32 %v4992_v11  ;;  %v5133_v48 = vld [vmem:[#allocation10 + $0x2e8] sm:$0xff]  ;;  %v5135_v11 = vld [vmem:[#allocation10 + $0x2f8] sm:$0xff] }
 0x8a9   :  { %v4995_v22 = vadd.f32 1.0, %v5921_v31  ;;  %5924 = vrcp.f32 %v4994_v43  ;;  %v5132_v31 = vld [vmem:[#allocation10 + $0x2e0] sm:$0xff]  ;;  %v5134_v43 = vld [vmem:[#allocation10 + $0x2f0] sm:$0xff] }
 0x8aa   :  { %5926 = vrcp.f32 %v4993_v32  ;;  %v5125_v32 = vld [vmem:[#allocation10 + $0x2a8] sm:$0xff] }
 0x8b5   :  { %v5923_v54 = vpop.eup %5922 }
 0x8b6   :  { %v5925_v20 = vpop.eup %5924 }
 0x8b7   :  { %v5927_v0 = vpop.eup %5926  ;;  %v5018_v35 = vmul.f32 %v5925_v20, %v6571_v36  ;;  %v5087_v20 = vld [vmem:[#allocation10 + $0x178] sm:$0xff] }
 0x8d4   :  { %v4896_v13 = vpop.f32.mrf.mxu0  ;;  %v4967_v45 = vpop.f32.mrf.mxu1 }
 0x8d5   :  { %v4976_v42 = vadd.f32 %v4896_v13, %v586_v47  ;;  %v4978_v49 = vadd.f32 %v4967_v45, %v699_v2  ;;  %v5124_v47 = vld [vmem:[#allocation10 + $0x2a0] sm:$0xff]  ;;  %v5117_v2 = vld [vmem:[#allocation10 + $0x268] sm:$0xff]  ;;  %v5111_v45 = vld [vmem:[#allocation10 + $0x238] sm:$0xff] }
 0x8d6   :  { %v4898_v57 = vpop.f32.mrf.mxu0  ;;  %v4969_v46 = vpop.f32.mrf.mxu1  ;;  %v5109_v13 = vld [vmem:[#allocation10 + $0x228] sm:$0xff] }
 0x8d7   :  { %5928 = vtanh.f32 %v4976_v42  ;;  %v5702_v61 = vmul.f32 -1.442695, %v4978_v49  ;;  %v4977_v62 = vadd.f32 %v4898_v57, %v588_v17  ;;  %v4979_v50 = vadd.f32 %v4969_v46, %v701_v21  ;;  %v5116_v17 = vld [vmem:[#allocation10 + $0x260] sm:$0xff]  ;;  %v5110_v21 = vld [vmem:[#allocation10 + $0x230] sm:$0xff]  ;;  %v5101_v42 = vld [vmem:[#allocation10 + $0x1e8] sm:$0xff] }
 0x8d8   :  { %5930 = vrcp.f32 %v4995_v22  ;;  %v5118_v22 = vld [vmem:[#allocation10 + $0x270] sm:$0xff]  ;;  %v5103_v49 = vld [vmem:[#allocation10 + $0x1f8] sm:$0xff]  ;;  %v5100_v57 = vld [vmem:[#allocation10 + $0x1e0] sm:$0xff] }
 0x8d9   :  { %5932 = vpow2.f32 %v5702_v61  ;;  %v5703_v53 = vmul.f32 -1.442695, %v4979_v50  ;;  %v5102_v46 = vld [vmem:[#allocation10 + $0x1f0] sm:$0xff]  ;;  %v5093_v61 = vld [vmem:[#allocation10 + $0x1a8] sm:$0xff]  ;;  %v5092_v50 = vld [vmem:[#allocation10 + $0x1a0] sm:$0xff] }
 0x8da   :  { %5934 = vtanh.f32 %v4977_v62  ;;  %v5095_v62 = vld [vmem:[#allocation10 + $0x1b8] sm:$0xff] }
 0x8db   :  { %5936 = vpow2.f32 %v5703_v53  ;;  %v5094_v53 = vld [vmem:[#allocation10 + $0x1b0] sm:$0xff] }
 0x8e4   :  { %v5929_v30 = vpop.eup %5928 }
 0x8e5   :  { %v5931_v33 = vpop.eup %5930  ;;  %v5020_v10 = vmul.f32 %v5929_v30, %v5923_v54  ;;  %v5085_v54 = vld [vmem:[#allocation10 + $0x168] sm:$0xff]  ;;  %v5086_v30 = vld [vmem:[#allocation10 + $0x170] sm:$0xff] }
 0x8e6   :  { %v5933_v25 = vpop.eup %5932  ;;  %v5019_v63 = vmul.f32 %v5931_v33, %v6575_v56  ;;  %v5164_v56 = vld [vmem:[#allocation10 + $0x3e0] sm:$0xff]  ;;  %v5077_v33 = vld [vmem:[#allocation10 + $0x128] sm:$0xff] }
 0x8e7   :  { %v5935_v12 = vpop.eup %5934  ;;  %v6598_v38 = vadd.f32 %v5020_v10, %v5018_v35  ;;  %v5012_v15 = vadd.f32 1.0, %v5933_v25  ;;  %v5079_v35 = vld [vmem:[#allocation10 + $0x138] sm:$0xff]  ;;  %v5076_v10 = vld [vmem:[#allocation10 + $0x120] sm:$0xff]  ;;  %v5078_v25 = vld [vmem:[#allocation10 + $0x130] sm:$0xff] }
 0x8e8   :  { %v5937_v40 = vpop.eup %5936  ;;  %v5021_v5 = vmul.f32 %v5935_v12, %v5927_v0  ;;  %v5084_v0 = vld [vmem:[#allocation10 + $0x160] sm:$0xff]  ;;  %v5069_v12 = vld [vmem:[#allocation10 + $0xe8] sm:$0xff] }
 0x8e9   :  { %5938 = vtanh.f32 %v6598_v38  ;;  %v5013_v41 = vadd.f32 1.0, %v5937_v40  ;;  %v5068_v40 = vld [vmem:[#allocation10 + $0xe0] sm:$0xff] }
 0x8ea   :  { %5940 = vrcp.f32 %v5012_v15  ;;  %v6602_v26 = vadd.f32 %v5021_v5, %v5019_v63  ;;  %v5071_v15 = vld [vmem:[#allocation10 + $0xf8] sm:$0xff]  ;;  %v5070_v63 = vld [vmem:[#allocation10 + $0xf0] sm:$0xff]  ;;  %v5061_v5 = vld [vmem:[#allocation10 + $0xa8] sm:$0xff] }
 0x8eb   :  { %5942 = vrcp.f32 %v5013_v41  ;;  %v5063_v41 = vld [vmem:[#allocation10 + $0xb8] sm:$0xff] }
 0x8ec   :  { %5944 = vtanh.f32 %v6602_v26 }
 0x8f6   :  { %v5939_v36 = vpop.eup %5938 }
 0x8f7   :  { %v5941_v28 = vpop.eup %5940 }
 0x8f8   :  { %v5943_v51 = vpop.eup %5942  ;;  %v6605_v39 = vmul.f32 %v5941_v28, %v5939_v36  ;;  %v5060_v36 = vld [vmem:[#allocation10 + $0xa0] sm:$0xff]  ;;  %v5062_v28 = vld [vmem:[#allocation10 + $0xb0] sm:$0xff] }
 0x8f9   :  { %v5945_v6 = vpop.eup %5944 }
 0x8fa   :  { %v5027_v52 = vmul.f32 %v5945_v6, %v5943_v51  ;;  %5029 = vst [vmem:[#allocation13 + $0x60] sm:$0xff] %v6605_v39  ;;  %v5053_v51 = vld [vmem:[#allocation10 + $0x68] sm:$0xff]  ;;  %v5055_v6 = vld [vmem:[#allocation10 + $0x78] sm:$0xff] }
 0x8fc   :  { %5030 = vst [vmem:[#allocation13 + $0x68] sm:$0xff] %v5027_v52  ;;  %5360 = vmatprep.mubr.f32.mxu0 %v5027_v52  ;;  %5431 = vmatprep.mubr.f32.mxu1 %v5027_v52 }
 0x8fd   :  { %5361 = vmatmul.mubr.f32.vlgmr.msra.gmra.mxu0 %v6605_v39  ;;  %5432 = vmatmul.mubr.f32.vlgmr.msra.gmra.mxu1 %v6605_v39 }
 0x8fe   :  { %5439 = vmatpush1.msra.mxu0 %v5164_v56  ;;  %5510 = vmatpush1.msra.mxu1 %v5166_v29  ;;  %v5054_v56 = vld [vmem:[#allocation10 + $0x70] sm:$0xff]  ;;  %v5045_v29 = vld [vmem:[#allocation10 + $0x28] sm:$0xff] }
 0x8ff   :  { %5440 = vmatprep.subr.mxu0 %v5157_v60  ;;  %5502 = vmatprep.mubr.f32.mxu0 %v5027_v52  ;;  %v5047_v60 = vld [vmem:[#allocation10 + $0x38] sm:$0xff] }
 0x900   :  { %5511 = vmatprep.subr.mxu1 %v5159_v44  ;;  %5573 = vmatprep.mubr.f32.mxu1 %v5027_v52  ;;  %v5052_v52 = vld [vmem:[#allocation10 + $0x60] sm:$0xff] }
 0x901   :  { %5441 = vmatpush1.msra.mxu0 %v5156_v3  ;;  %5512 = vmatpush1.msra.mxu1 %v5158_v55  ;;  %v5044_v44 = vld [vmem:[#allocation10 + $0x20] sm:$0xff]  ;;  %v5046_v3 = vld [vmem:[#allocation10 + $0x30] sm:$0xff]  ;;  %v5293_v55 = vld [vmem:[#allocation10 + $0x7e8] sm:$0xff] }
 0x902   :  { %5442 = vmatprep.subr.mxu0 %v5149_v34  ;;  %5513 = vmatprep.subr.mxu1 %v5151_v1  ;;  %v5295_v34 = vld [vmem:[#allocation10 + $0x7f8] sm:$0xff]  ;;  %v5292_v1 = vld [vmem:[#allocation10 + $0x7e0] sm:$0xff] }
 0x903   :  { %5443 = vmatpush1.msra.mxu0 %v5148_v14  ;;  %5514 = vmatpush1.msra.mxu1 %v5150_v4  ;;  %v5294_v14 = vld [vmem:[#allocation10 + $0x7f0] sm:$0xff]  ;;  %v5285_v4 = vld [vmem:[#allocation10 + $0x7a8] sm:$0xff] }
 0x904   :  { %5444 = vmatprep.subr.mxu0 %v5141_v7  ;;  %5515 = vmatprep.subr.mxu1 %v5143_v8  ;;  %v5287_v7 = vld [vmem:[#allocation10 + $0x7b8] sm:$0xff]  ;;  %v5284_v8 = vld [vmem:[#allocation10 + $0x7a0] sm:$0xff] }
 0x905   :  { %5445 = vmatpush1.msra.mxu0 %v5140_v23  ;;  %5516 = vmatpush1.msra.mxu1 %v5142_v24  ;;  %v5286_v23 = vld [vmem:[#allocation10 + $0x7b0] sm:$0xff]  ;;  %v5277_v24 = vld [vmem:[#allocation10 + $0x768] sm:$0xff] }
 0x906   :  { %5446 = vmatprep.subr.mxu0 %v5133_v48  ;;  %5517 = vmatprep.subr.mxu1 %v5135_v11  ;;  %v5279_v48 = vld [vmem:[#allocation10 + $0x778] sm:$0xff]  ;;  %v5276_v11 = vld [vmem:[#allocation10 + $0x760] sm:$0xff] }
 0x907   :  { %5447 = vmatpush1.msra.mxu0 %v5132_v31  ;;  %5518 = vmatpush1.msra.mxu1 %v5134_v43  ;;  %v5278_v31 = vld [vmem:[#allocation10 + $0x770] sm:$0xff]  ;;  %v5269_v43 = vld [vmem:[#allocation10 + $0x728] sm:$0xff] }
 0x908   :  { %5448 = vmatprep.subr.mxu0 %v5125_v32  ;;  %5519 = vmatprep.subr.mxu1 %v5127_v27  ;;  %v5271_v32 = vld [vmem:[#allocation10 + $0x738] sm:$0xff]  ;;  %v5268_v27 = vld [vmem:[#allocation10 + $0x720] sm:$0xff] }
 0x909   :  { %5449 = vmatpush1.msra.mxu0 %v5124_v47  ;;  %5520 = vmatpush1.msra.mxu1 %v5126_v9  ;;  %v5270_v47 = vld [vmem:[#allocation10 + $0x730] sm:$0xff]  ;;  %v5261_v9 = vld [vmem:[#allocation10 + $0x6e8] sm:$0xff] }
 0x90a   :  { %5450 = vmatprep.subr.mxu0 %v5117_v2  ;;  %5521 = vmatprep.subr.mxu1 %v5119_v58  ;;  %v5263_v2 = vld [vmem:[#allocation10 + $0x6f8] sm:$0xff]  ;;  %v5260_v58 = vld [vmem:[#allocation10 + $0x6e0] sm:$0xff] }
 0x90b   :  { %5451 = vmatpush1.msra.mxu0 %v5116_v17  ;;  %5522 = vmatpush1.msra.mxu1 %v5118_v22  ;;  %v5262_v17 = vld [vmem:[#allocation10 + $0x6f0] sm:$0xff]  ;;  %v5253_v22 = vld [vmem:[#allocation10 + $0x6a8] sm:$0xff] }
 0x90c   :  { %5452 = vmatprep.subr.mxu0 %v5109_v13  ;;  %5523 = vmatprep.subr.mxu1 %v5111_v45  ;;  %v5255_v13 = vld [vmem:[#allocation10 + $0x6b8] sm:$0xff]  ;;  %v5252_v45 = vld [vmem:[#allocation10 + $0x6a0] sm:$0xff] }
 0x90d   :  { %5453 = vmatpush1.msra.mxu0 %v5108_v37  ;;  %5524 = vmatpush1.msra.mxu1 %v5110_v21  ;;  %v5254_v37 = vld [vmem:[#allocation10 + $0x6b0] sm:$0xff]  ;;  %v5245_v21 = vld [vmem:[#allocation10 + $0x668] sm:$0xff] }
 0x90e   :  { %5454 = vmatprep.subr.mxu0 %v5101_v42  ;;  %5525 = vmatprep.subr.mxu1 %v5103_v49  ;;  %v5247_v42 = vld [vmem:[#allocation10 + $0x678] sm:$0xff]  ;;  %v5244_v49 = vld [vmem:[#allocation10 + $0x660] sm:$0xff] }
 0x90f   :  { %5455 = vmatpush1.msra.mxu0 %v5100_v57  ;;  %5526 = vmatpush1.msra.mxu1 %v5102_v46  ;;  %v5246_v57 = vld [vmem:[#allocation10 + $0x670] sm:$0xff]  ;;  %v5237_v46 = vld [vmem:[#allocation10 + $0x628] sm:$0xff] }
 0x910   :  { %5456 = vmatprep.subr.mxu0 %v5093_v61  ;;  %5527 = vmatprep.subr.mxu1 %v5095_v62  ;;  %v5239_v61 = vld [vmem:[#allocation10 + $0x638] sm:$0xff]  ;;  %v5236_v62 = vld [vmem:[#allocation10 + $0x620] sm:$0xff] }
 0x911   :  { %5457 = vmatpush1.msra.mxu0 %v5092_v50  ;;  %5528 = vmatpush1.msra.mxu1 %v5094_v53  ;;  %v5238_v50 = vld [vmem:[#allocation10 + $0x630] sm:$0xff]  ;;  %v5229_v53 = vld [vmem:[#allocation10 + $0x5e8] sm:$0xff] }
 0x912   :  { %5458 = vmatprep.subr.mxu0 %v5085_v54  ;;  %5529 = vmatprep.subr.mxu1 %v5087_v20  ;;  %v5231_v54 = vld [vmem:[#allocation10 + $0x5f8] sm:$0xff]  ;;  %v5228_v20 = vld [vmem:[#allocation10 + $0x5e0] sm:$0xff] }
 0x913   :  { %5459 = vmatpush1.msra.mxu0 %v5084_v0  ;;  %5530 = vmatpush1.msra.mxu1 %v5086_v30  ;;  %v5230_v0 = vld [vmem:[#allocation10 + $0x5f0] sm:$0xff]  ;;  %v5221_v30 = vld [vmem:[#allocation10 + $0x5a8] sm:$0xff] }
 0x914   :  { %5460 = vmatprep.subr.mxu0 %v5077_v33  ;;  %5531 = vmatprep.subr.mxu1 %v5079_v35  ;;  %v5223_v33 = vld [vmem:[#allocation10 + $0x5b8] sm:$0xff]  ;;  %v5220_v35 = vld [vmem:[#allocation10 + $0x5a0] sm:$0xff] }
 0x915   :  { %5461 = vmatpush1.msra.mxu0 %v5076_v10  ;;  %5532 = vmatpush1.msra.mxu1 %v5078_v25  ;;  %v5222_v10 = vld [vmem:[#allocation10 + $0x5b0] sm:$0xff]  ;;  %v5213_v25 = vld [vmem:[#allocation10 + $0x568] sm:$0xff] }
 0x916   :  { %5462 = vmatprep.subr.mxu0 %v5069_v12  ;;  %5533 = vmatprep.subr.mxu1 %v5071_v15  ;;  %v5215_v12 = vld [vmem:[#allocation10 + $0x578] sm:$0xff]  ;;  %v5212_v15 = vld [vmem:[#allocation10 + $0x560] sm:$0xff] }
 0x917   :  { %5463 = vmatpush1.msra.mxu0 %v5068_v40  ;;  %5534 = vmatpush1.msra.mxu1 %v5070_v63  ;;  %v5214_v40 = vld [vmem:[#allocation10 + $0x570] sm:$0xff]  ;;  %v5205_v63 = vld [vmem:[#allocation10 + $0x528] sm:$0xff] }
 0x918   :  { %5464 = vmatprep.subr.mxu0 %v5061_v5  ;;  %5535 = vmatprep.subr.mxu1 %v5063_v41  ;;  %v5207_v5 = vld [vmem:[#allocation10 + $0x538] sm:$0xff]  ;;  %v5204_v41 = vld [vmem:[#allocation10 + $0x520] sm:$0xff] }
 0x919   :  { %5465 = vmatpush1.msra.mxu0 %v5060_v36  ;;  %5536 = vmatpush1.msra.mxu1 %v5062_v28  ;;  %v5206_v36 = vld [vmem:[#allocation10 + $0x530] sm:$0xff]  ;;  %v5197_v28 = vld [vmem:[#allocation10 + $0x4e8] sm:$0xff] }
 0x91a   :  { %5466 = vmatprep.subr.mxu0 %v5053_v51  ;;  %5537 = vmatprep.subr.mxu1 %v5055_v6  ;;  %v5199_v51 = vld [vmem:[#allocation10 + $0x4f8] sm:$0xff]  ;;  %v5196_v6 = vld [vmem:[#allocation10 + $0x4e0] sm:$0xff] }
 0x91b   :  { %5467 = vmatpush1.msra.mxu0 %v5052_v52  ;;  %5538 = vmatpush1.msra.mxu1 %v5054_v56  ;;  %v5198_v52 = vld [vmem:[#allocation10 + $0x4f0] sm:$0xff]  ;;  %v5189_v56 = vld [vmem:[#allocation10 + $0x4a8] sm:$0xff] }
 0x91c   :  { %5468 = vmatprep.subr.mxu0 %v5045_v29  ;;  %5539 = vmatprep.subr.mxu1 %v5047_v60  ;;  %v5191_v29 = vld [vmem:[#allocation10 + $0x4b8] sm:$0xff]  ;;  %v5188_v60 = vld [vmem:[#allocation10 + $0x4a0] sm:$0xff] }
 0x91d   :  { %5469 = vmatpush1.msra.mxu0 %v5044_v44  ;;  %5540 = vmatpush1.msra.mxu1 %v5046_v3  ;;  %v5190_v44 = vld [vmem:[#allocation10 + $0x4b0] sm:$0xff]  ;;  %v5181_v3 = vld [vmem:[#allocation10 + $0x468] sm:$0xff] }
 0x91e   :  { %5470 = vmatprep.subr.mxu0 %v5293_v55  ;;  %5541 = vmatprep.subr.mxu1 %v5295_v34  ;;  %v5183_v55 = vld [vmem:[#allocation10 + $0x478] sm:$0xff]  ;;  %v5180_v34 = vld [vmem:[#allocation10 + $0x460] sm:$0xff] }
 0x91f   :  { %5471 = vmatpush2.msra.mxu0 %v5292_v1  ;;  %5542 = vmatpush2.msra.mxu1 %v5294_v14  ;;  %v5182_v1 = vld [vmem:[#allocation10 + $0x470] sm:$0xff]  ;;  %v5173_v14 = vld [vmem:[#allocation10 + $0x428] sm:$0xff] }
 0x920   :  { %5472 = vmatprep.subr.mxu0 %v5285_v4  ;;  %5543 = vmatprep.subr.mxu1 %v5287_v7  ;;  %v5175_v4 = vld [vmem:[#allocation10 + $0x438] sm:$0xff]  ;;  %v5172_v7 = vld [vmem:[#allocation10 + $0x420] sm:$0xff] }
 0x921   :  { %5473 = vmatpush2.msra.mxu0 %v5284_v8  ;;  %5544 = vmatpush2.msra.mxu1 %v5286_v23  ;;  %v5174_v8 = vld [vmem:[#allocation10 + $0x430] sm:$0xff] }
 0x922   :  { %5474 = vmatprep.subr.mxu0 %v5277_v24  ;;  %5545 = vmatprep.subr.mxu1 %v5279_v48 }
 0x923   :  { %5475 = vmatpush2.msra.mxu0 %v5276_v11  ;;  %5546 = vmatpush2.msra.mxu1 %v5278_v31  ;;  %v6668_v11 = vld [vmem:[#allocation23_spill] sm:$0xff] }
 0x924   :  { %5476 = vmatprep.subr.mxu0 %v5269_v43  ;;  %5547 = vmatprep.subr.mxu1 %v5271_v32  ;;  %v6669_v43 = vld [vmem:[#allocation24_spill] sm:$0xff] }
 0x925   :  { %5477 = vmatpush2.msra.mxu0 %v5268_v27  ;;  %5548 = vmatpush2.msra.mxu1 %v5270_v47  ;;  %v6670_v47 = vld [vmem:[#allocation25_spill] sm:$0xff] }
 0x926   :  { %5478 = vmatprep.subr.mxu0 %v5261_v9  ;;  %5549 = vmatprep.subr.mxu1 %v5263_v2 }
 0x927   :  { %5479 = vmatpush2.msra.mxu0 %v5260_v58  ;;  %5550 = vmatpush2.msra.mxu1 %v5262_v17  ;;  %v6671_v58 = vld [vmem:[#allocation26_spill] sm:$0xff] }
 0x928   :  { %5480 = vmatprep.subr.mxu0 %v5253_v22  ;;  %5551 = vmatprep.subr.mxu1 %v5255_v13 }
 0x929   :  { %5481 = vmatpush2.msra.mxu0 %v5252_v45  ;;  %5552 = vmatpush2.msra.mxu1 %v5254_v37 }
 0x92a   :  { %5482 = vmatprep.subr.mxu0 %v5245_v21  ;;  %5553 = vmatprep.subr.mxu1 %v5247_v42 }
 0x92b   :  { %5483 = vmatpush2.msra.mxu0 %v5244_v49  ;;  %5554 = vmatpush2.msra.mxu1 %v5246_v57 }
 0x92c   :  { %5484 = vmatprep.subr.mxu0 %v5237_v46  ;;  %5555 = vmatprep.subr.mxu1 %v5239_v61  ;;  %v6672_v61 = vld [vmem:[#allocation35_spill] sm:$0xff] }
 0x92d   :  { %5485 = vmatpush2.msra.mxu0 %v5236_v62  ;;  %5556 = vmatpush2.msra.mxu1 %v5238_v50  ;;  %v592_v62 = vadd.f32 %v6672_v61, %v6418_v18  ;;  %v6673_v50 = vld [vmem:[#allocation36_spill] sm:$0xff] }
 0x92e   :  { %5486 = vmatprep.subr.mxu0 %v5229_v53  ;;  %5557 = vmatprep.subr.mxu1 %v5231_v54  ;;  %v705_v53 = vadd.f32 %v6673_v50, %v6421_v19  ;;  %v6674_v54 = vld [vmem:[#allocation37_spill] sm:$0xff] }
 0x92f   :  { %5487 = vmatpush2.msra.mxu0 %v5228_v20  ;;  %5558 = vmatpush2.msra.mxu1 %v5230_v0  ;;  %v594_v20 = vadd.f32 %v6674_v54, %v6424_v16 }
 0x930   :  { %5488 = vmatprep.subr.mxu0 %v5221_v30  ;;  %5559 = vmatprep.subr.mxu1 %v5223_v33 }
 0x931   :  { %5489 = vmatpush2.msra.mxu0 %v5220_v35  ;;  %5560 = vmatpush2.msra.mxu1 %v5222_v10  ;;  %v6675_v35 = vld [vmem:[#allocation38_spill] sm:$0xff] }
 0x932   :  { %5490 = vmatprep.subr.mxu0 %v5213_v25  ;;  %5561 = vmatprep.subr.mxu1 %v5215_v12  ;;  %v707_v10 = vadd.f32 %v6675_v35, %v6427_v59 }
 0x933   :  { %5491 = vmatpush2.msra.mxu0 %v5212_v15  ;;  %5562 = vmatpush2.msra.mxu1 %v5214_v40 }
 0x934   :  { %5492 = vmatprep.subr.mxu0 %v5205_v63  ;;  %5563 = vmatprep.subr.mxu1 %v5207_v5 }
 0x935   :  { %5493 = vmatpush2.msra.mxu0 %v5204_v41  ;;  %5564 = vmatpush2.msra.mxu1 %v5206_v36 }
 0x936   :  { %5494 = vmatprep.subr.mxu0 %v5197_v28  ;;  %5565 = vmatprep.subr.mxu1 %v5199_v51 }
 0x937   :  { %5495 = vmatpush2.msra.mxu0 %v5196_v6  ;;  %5566 = vmatpush2.msra.mxu1 %v5198_v52 }
 0x938   :  { %5496 = vmatprep.subr.mxu0 %v5189_v56  ;;  %5567 = vmatprep.subr.mxu1 %v5191_v29 }
 0x939   :  { %5497 = vmatpush2.msra.mxu0 %v5188_v60  ;;  %5568 = vmatpush2.msra.mxu1 %v5190_v44 }
 0x93a   :  { %5498 = vmatprep.subr.mxu0 %v5181_v3  ;;  %5569 = vmatprep.subr.mxu1 %v5183_v55 }
 0x93b   :  { %5499 = vmatpush2.msra.mxu0 %v5180_v34  ;;  %5570 = vmatpush2.msra.mxu1 %v5182_v1 }
 0x93c   :  { %5500 = vmatprep.subr.mxu0 %v5173_v14  ;;  %5571 = vmatprep.subr.mxu1 %v5175_v4 }
 0x93d   :  { %5501 = vmatpush2.msra.mxu0 %v5172_v7  ;;  %5572 = vmatpush2.msra.mxu1 %v5174_v8 }
 0x93e   :  { %5503 = vmatmul.mubr.f32.vlgmr.msra.gmra.mxu0 %v6605_v39  ;;  %5574 = vmatmul.mubr.f32.vlgmr.msra.gmra.mxu1 %v6605_v39 }
 0x9bd   :  { %v5362_v23 = vpop.f32.mrf.mxu0  ;;  %v5433_v24 = vpop.f32.mrf.mxu1 }
 0x9be   :  { %v5580_v31 = vadd.f32 %v5362_v23, %v6668_v11  ;;  %v5582_v32 = vadd.f32 %v5433_v24, %v6669_v43 }
 0x9bf   :  { %v5364_v48 = vpop.f32.mrf.mxu0  ;;  %v5435_v27 = vpop.f32.mrf.mxu1 }
 0x9c0   :  { %v5581_v9 = vadd.f32 %v5364_v48, %v6670_v47  ;;  %v5704_v2 = vmul.f32 -1.442695, %v5580_v31  ;;  %v5583_v17 = vadd.f32 %v5435_v27, %v6671_v58  ;;  %v5706_v22 = vmul.f32 -1.442695, %v5582_v32 }
 0x9c2   :  { %v5705_v13 = vmul.f32 -1.442695, %v5581_v9  ;;  %5946 = vpow2.f32 %v5704_v2  ;;  %v5707_v45 = vmul.f32 -1.442695, %v5583_v17 }
 0x9c3   :  { %5948 = vpow2.f32 %v5706_v22 }
 0x9c4   :  { %5950 = vpow2.f32 %v5705_v13 }
 0x9c5   :  { %5952 = vpow2.f32 %v5707_v45 }
 0x9cf   :  { %v5947_v39 = vpop.eup %5946 }
 0x9d0   :  { %v5949_v37 = vpop.eup %5948  ;;  %v5600_v42 = vadd.f32 1.0, %v5947_v39 }
 0x9d1   :  { %v5951_v21 = vpop.eup %5950  ;;  %v5602_v57 = vadd.f32 1.0, %v5949_v37 }
 0x9d2   :  { %v5953_v49 = vpop.eup %5952  ;;  %v5601_v46 = vadd.f32 1.0, %v5951_v21  ;;  %5954 = vrcp.f32 %v5600_v42 }
 0x9d3   :  { %v5603_v0 = vadd.f32 1.0, %v5953_v49  ;;  %5956 = vrcp.f32 %v5602_v57 }
 0x9d4   :  { %5958 = vrcp.f32 %v5601_v46 }
 0x9df   :  { %v5955_v5 = vpop.eup %5954 }
 0x9e0   :  { %v5957_v41 = vpop.eup %5956 }
 0x9e1   :  { %v5959_v36 = vpop.eup %5958  ;;  %v5626_v51 = vmul.f32 %v5957_v41, %v6598_v38 }
 0x9fe   :  { %v5504_v30 = vpop.f32.mrf.mxu0  ;;  %v5575_v33 = vpop.f32.mrf.mxu1 }
 0x9ff   :  { %v5584_v25 = vadd.f32 %v5504_v30, %v592_v62  ;;  %v5586_v12 = vadd.f32 %v5575_v33, %v705_v53 }
 0xa00   :  { %v5506_v15 = vpop.f32.mrf.mxu0  ;;  %v5577_v40 = vpop.f32.mrf.mxu1 }
 0xa01   :  { %5960 = vtanh.f32 %v5584_v25  ;;  %v5708_v18 = vmul.f32 -1.442695, %v5586_v12  ;;  %v5585_v63 = vadd.f32 %v5506_v15, %v594_v20  ;;  %v5587_v19 = vadd.f32 %v5577_v40, %v707_v10 }
 0xa02   :  { %5962 = vrcp.f32 %v5603_v0 }
 0xa03   :  { %5964 = vpow2.f32 %v5708_v18  ;;  %v5709_v16 = vmul.f32 -1.442695, %v5587_v19 }
 0xa04   :  { %5966 = vtanh.f32 %v5585_v63 }
 0xa05   :  { %5968 = vpow2.f32 %v5709_v16 }
 0xa0e   :  { %v5961_v28 = vpop.eup %5960 }
 0xa0f   :  { %v5963_v59 = vpop.eup %5962  ;;  %v5628_v6 = vmul.f32 %v5961_v28, %v5955_v5 }
 0xa10   :  { %v5965_v52 = vpop.eup %5964  ;;  %v5627_v3 = vmul.f32 %v5963_v59, %v6602_v26 }
 0xa11   :  { %v5967_v56 = vpop.eup %5966  ;;  %v5630_v29 = vadd.f32 %v5628_v6, %v5626_v51  ;;  %v5620_v60 = vadd.f32 1.0, %v5965_v52 }
 0xa12   :  { %v5969_v44 = vpop.eup %5968  ;;  %v5629_v55 = vmul.f32 %v5967_v56, %v5959_v36 }
 0xa13   :  { %5970 = vtanh.f32 %v5630_v29  ;;  %v5621_v34 = vadd.f32 1.0, %v5969_v44 }
 0xa14   :  { %5972 = vrcp.f32 %v5620_v60  ;;  %v5631_v1 = vadd.f32 %v5629_v55, %v5627_v3 }
 0xa15   :  { %5974 = vrcp.f32 %v5621_v34 }
 0xa16   :  { %5976 = vtanh.f32 %v5631_v1 }
 0xa20   :  { %v5971_v14 = vpop.eup %5970 }
 0xa21   :  { %v5973_v4 = vpop.eup %5972 }
 0xa22   :  { %v5975_v38 = vpop.eup %5974  ;;  %v5634_v7 = vmul.f32 %v5973_v4, %v5971_v14 }
 0xa23   :  { %v5977_v8 = vpop.eup %5976 }
 0xa24   :  { %5637 = vst [vmem:[#allocation13 + $0x70] sm:$0xff] %v5634_v7  ;;  %v5635_v23 = vmul.f32 %v5977_v8, %v5975_v38 }
 0xa26   :  { %5638 = vst [vmem:[#allocation13 + $0x78] sm:$0xff] %v5635_v23 }
 0xa27   :  { %6069 = shalt.err (!%p6066_p10)
}
 0xa28   :  { %s6096_s12 = smov 256   ;;  %s6097_s13 = smov 16  }
 0xa29   :  { %5654 = dma.vmem_to_hbm [thread:$0]  %s5649_s3, 2048, %s6633_s4, [#allocation7], %s6096_s12, %s6096_s12, %s6097_s13  }
 0xa2a   :  { %6084 = dma.done.wait [#allocation7], 2048  }
 0xa2b   :  { %6085 = vsyncadd [#allocation7], 4294965248 }
 0xa2c   :  { %5658 = vsyncpa [#allocation6], 1 }
 0xa2d   :  { %5659 = vsyncpa [#allocation9], 1 }
 0xa2e   :  { %5660 = vsyncpa [#allocation12], 1 }
 0xa2f   :  { %5661 = vsyncpa [#allocation7], 1 }

</bundles_post_ra>
